<compile_context>
chip_gen: v5e
topology: v5e:2x2
jax: 0.10.0
libtpu: 0.0.40
codegen_flags: <defaults>
</compile_context>

<pallas_src>
import functools

import jax
import jax.numpy as jnp
from jax import lax
from jax.experimental import pallas as pl
from jax.experimental.pallas import tpu as pltpu

LANE = 128
SUBLANE = 8


def _round_up(x, m):
    return (x + m - 1) // m * m


def _sigmoid(x):
    # sigmoid(x) == 0.5 * (tanh(0.5 x) + 1): single EUP transcendental.
    return 0.5 * (jnp.tanh(0.5 * x) + 1.0)


# --------------- fused LSTM stack + RA gather + classifier kernel ---------------
def _fused_lstm_kernel(ra_ref, x_ref, w_ref, b_ref, wc_ref, bc_ref, out_ref,
                       *scratch, num_layers, tt_chunk, in_width, hidden_pad):
    L = num_layers
    IN = in_width
    Hp = hidden_pad
    xh = scratch[:L]           # per-layer [TB, IN+Hp] bf16: [x_t | h_t] adjacent
    cs = scratch[L:2 * L]      # per-layer [TB, Hp] f32 cell state
    h_ra = scratch[2 * L]      # [TB, Hp] bf16: last-layer h at the RA position

    t_chunk = pl.program_id(1)

    @pl.when(t_chunk == 0)
    def _init():
        for l in range(L):
            xh[l][...] = jnp.zeros_like(xh[l])
            cs[l][...] = jnp.zeros_like(cs[l])
        h_ra[...] = jnp.zeros_like(h_ra)

    ra = ra_ref[...]           # [TB, 1] int32 (RA position per row)

    def step(tt, carry):
        global_t = t_chunk * tt_chunk + tt
        xh[0][:, 0:IN] = x_ref[tt]              # layer-0 input for this step
        for l in range(L):
            # One fused MXU push per layer: [TB, IN+Hp] x [IN+Hp, 4Hp].
            gates = (jnp.dot(xh[l][...], w_ref[l],
                             preferred_element_type=jnp.float32)
                     + b_ref[l])                # [TB, 4Hp] f32
            i_g = _sigmoid(gates[:, 0 * Hp:1 * Hp])
            f_g = _sigmoid(gates[:, 1 * Hp:2 * Hp])
            g_g = jnp.tanh(gates[:, 2 * Hp:3 * Hp])
            o_g = _sigmoid(gates[:, 3 * Hp:4 * Hp])
            c_new = f_g * cs[l][...] + i_g * g_g
            h_new = o_g * jnp.tanh(c_new)
            cs[l][...] = c_new
            h_bf = h_new.astype(jnp.bfloat16)
            xh[l][:, IN:IN + Hp] = h_bf         # recurrent input, next time step
            if l + 1 < L:
                xh[l + 1][:, 0:Hp] = h_bf       # feed next layer (stays in VMEM)
            else:
                # Keep only the last layer's hidden state at the RA position.
                h_ra[...] = jnp.where(ra == global_t, h_bf, h_ra[...])
        return carry

    lax.fori_loop(0, tt_chunk, step, 0, unroll=True)

    @pl.when(t_chunk == pl.num_programs(1) - 1)
    def _finalize():
        # Fused classifier: h_ra is already resident in VMEM.
        out_ref[...] = (jnp.dot(h_ra[...], wc_ref[...],
                                preferred_element_type=jnp.float32)
                        + bc_ref[...])


def fused_lstm_classifier(ra_col, x_tbi, w_stack, b_stack, w_cls, b_cls,
                          *, tt_chunk, batch_block):
    """ra_col:[Bp,1] i32, x_tbi:[Tp,Bp,IN] bf16, w_stack:[L,IN+Hp,4Hp] bf16,
    b_stack:[L,1,4Hp] f32, w_cls:[Hp,Vp] bf16, b_cls:[1,Vp] f32 -> [Bp,Vp] f32"""
    Tp, Bp, IN = x_tbi.shape
    L, _, Gp = w_stack.shape
    Hp = Gp // 4
    Vp = w_cls.shape[1]
    TB = batch_block
    grid = (Bp // TB, Tp // tt_chunk)

    kernel = functools.partial(
        _fused_lstm_kernel, num_layers=L, tt_chunk=tt_chunk,
        in_width=IN, hidden_pad=Hp)

    scratch_shapes = (
        [pltpu.VMEM((TB, IN + Hp), jnp.bfloat16) for _ in range(L)]   # [x|h]
        + [pltpu.VMEM((TB, Hp), jnp.float32) for _ in range(L)]       # c (f32)
        + [pltpu.VMEM((TB, Hp), jnp.bfloat16)]                        # h @ RA
    )

    return pl.pallas_call(
        kernel,
        out_shape=jax.ShapeDtypeStruct((Bp, Vp), jnp.float32),
        grid_spec=pltpu.PrefetchScalarGridSpec(
            num_scalar_prefetch=0,
            grid=grid,
            in_specs=[
                pl.BlockSpec((TB, 1), lambda b, t: (b, 0)),                # ra
                pl.BlockSpec((tt_chunk, TB, IN), lambda b, t: (t, b, 0)),  # x
                pl.BlockSpec((L, IN + Hp, Gp), lambda b, t: (0, 0, 0)),    # W
                pl.BlockSpec((L, 1, Gp), lambda b, t: (0, 0, 0)),          # bias
                pl.BlockSpec((Hp, Vp), lambda b, t: (0, 0)),               # W_cls
                pl.BlockSpec((1, Vp), lambda b, t: (0, 0)),                # b_cls
            ],
            out_specs=pl.BlockSpec((TB, Vp), lambda b, t: (b, 0)),
            scratch_shapes=scratch_shapes,
        ),
        compiler_params=pltpu.CompilerParams(
            # batch blocks are independent (v7x 2-TC sharding); time is the
            # recurrence so it stays innermost + arbitrary.
            dimension_semantics=("parallel", "arbitrary")),
    )(ra_col, x_tbi, w_stack, b_stack, w_cls, b_cls)


# ------------------------------ model / weights -------------------------------
class Params:
    def __init__(self, vocab_size, embedding_size, hidden_size, layers, RA):
        self.vocab_size = vocab_size
        self.embedding_size = embedding_size
        self.hidden_size = hidden_size
        self.layers = layers
        self.RA = RA


def init_weights(key, p):
    """nn.Embedding / nn.LSTM / nn.Linear shaped params plus the custom
    reset_parameters (forget-gate bias: b_hh[H:2H]=1, b_ih[H:2H]=0)."""
    H, E, V, L = p.hidden_size, p.embedding_size, p.vocab_size, p.layers
    k = 1.0 / jnp.sqrt(jnp.float32(H))
    keys = jax.random.split(key, 3 + 4 * L)

    weights = {}
    weights["embedding"] = jax.random.normal(keys[0], (V, E), jnp.float32)

    lstm = []
    for l in range(L):
        in_size = E if l == 0 else H
        kw = keys[3 + 4 * l: 3 + 4 * (l + 1)]
        w_ih = jax.random.uniform(kw[0], (4 * H, in_size), jnp.float32, -k, k)
        w_hh = jax.random.uniform(kw[1], (4 * H, H), jnp.float32, -k, k)
        b_ih = jax.random.uniform(kw[2], (4 * H,), jnp.float32, -k, k)
        b_hh = jax.random.uniform(kw[3], (4 * H,), jnp.float32, -k, k)
        b_ih = b_ih.at[H:2 * H].set(0.0)
        b_hh = b_hh.at[H:2 * H].set(1.0)
        lstm.append((w_ih, w_hh, b_ih, b_hh))
    weights["lstm"] = lstm

    kl = 1.0 / jnp.sqrt(jnp.float32(H))
    weights["linear_w"] = jax.random.uniform(keys[1], (V, H), jnp.float32, -kl, kl)
    weights["linear_b"] = jax.random.uniform(keys[2], (V,), jnp.float32, -kl, kl)
    return weights


def _pack_weights(weights, p, *, IN, Hp, Vp):
    """Fuse (w_ih | w_hh) per layer into [IN+Hp, 4Hp], pad gates to
    lane-aligned Hp slots (padded gate columns are all-zero -> padded hidden
    units stay exactly 0)."""
    H, E, V, L = p.hidden_size, p.embedding_size, p.vocab_size, p.layers
    Gp = 4 * Hp
    w_stack = jnp.zeros((L, IN + Hp, Gp), jnp.float32)
    b_stack = jnp.zeros((L, 1, Gp), jnp.float32)
    for l, (w_ih, w_hh, b_ih, b_hh) in enumerate(weights["lstm"]):
        in_size = E if l == 0 else H
        bias = b_ih + b_hh
        for g in range(4):                      # PyTorch gate order i, f, g, o
            w_stack = w_stack.at[l, :in_size, g * Hp:g * Hp + H].set(
                jnp.transpose(w_ih[g * H:(g + 1) * H, :]))
            w_stack = w_stack.at[l, IN:IN + H, g * Hp:g * Hp + H].set(
                jnp.transpose(w_hh[g * H:(g + 1) * H, :]))
            b_stack = b_stack.at[l, 0, g * Hp:g * Hp + H].set(
                bias[g * H:(g + 1) * H])
    w_cls = jnp.zeros((Hp, Vp), jnp.float32).at[:H, :V].set(
        jnp.transpose(weights["linear_w"]))
    b_cls = jnp.zeros((1, Vp), jnp.float32).at[0, :V].set(weights["linear_b"])
    emb = jnp.zeros((V, IN), jnp.float32).at[:, :E].set(weights["embedding"])
    return (w_stack.astype(jnp.bfloat16), b_stack,
            w_cls.astype(jnp.bfloat16), b_cls, emb.astype(jnp.bfloat16))


def forward(x_tokens, weights, p, *, tt_chunk=8, batch_block=None):
    """x_tokens: [B, T] int32 token ids. Returns logits [B, vocab_size]."""
    B, T = x_tokens.shape
    H, E, V = p.hidden_size, p.embedding_size, p.vocab_size
    Hp = _round_up(H, LANE)
    Ep = _round_up(E, LANE)
    IN = max(Ep, Hp)
    Vp = _round_up(V, LANE)
    Bp = _round_up(B, SUBLANE)
    Tp = _round_up(T, tt_chunk)
    TB = Bp if batch_block is None else batch_block

    # RA position per row (model assumes exactly one RA token per sequence).
    ra_idx = jnp.argmax(x_tokens == p.RA, axis=1).astype(jnp.int32)
    ra_col = jnp.zeros((Bp, 1), jnp.int32).at[:B, 0].set(ra_idx)

    tokens_p = jnp.zeros((Bp, Tp), jnp.int32).at[:B, :T].set(x_tokens)

    w_stack, b_stack, w_cls, b_cls, emb_table = _pack_weights(
        weights, p, IN=IN, Hp=Hp, Vp=Vp)

    # Time-major embedded inputs produced directly by the gather
    # (no separate full [B,T,E] -> [T,B,E] HBM relayout pass).
    x_tbi = emb_table[jnp.transpose(tokens_p)]        # [Tp, Bp, IN] bf16

    logits_p = fused_lstm_classifier(
        ra_col, x_tbi, w_stack, b_stack, w_cls, b_cls,
        tt_chunk=tt_chunk, batch_block=TB)
    return logits_p[:B, :V]


if __name__ == "__main__":
    # Small, TPU-friendly sizes.
    p = Params(vocab_size=32, embedding_size=16, hidden_size=32, layers=2, RA=31)
    B, T = 4, 8

    key = jax.random.PRNGKey(0)
    k_w, k_tok, k_len = jax.random.split(key, 3)

    weights = init_weights(k_w, p)

    # Tokens in [0, RA) so RA only appears where we place it; one RA per row.
    tokens = jax.random.randint(k_tok, (B, T), 0, p.RA, dtype=jnp.int32)
    lengths = jax.random.randint(k_len, (B,), 2, T + 1, dtype=jnp.int32)  # in [2, T]
    ra_positions = lengths - 1
    tokens = tokens.at[jnp.arange(B), ra_positions].set(p.RA)

    logits = forward(tokens, weights, p)
    jax.block_until_ready(logits)

    assert logits.shape == (B, p.vocab_size), logits.shape
    assert jnp.all(jnp.isfinite(logits))
    print("KERNEL_OK")
</pallas_src>

<mosaic_0001>
module attributes {stable_mosaic.version = 11 : i64} {
  func.func @_fused_lstm_kernel(%arg0: i32, %arg1: i32, %arg2: memref<8x1xi32, #tpu.memory_space<vmem>>, %arg3: memref<8x8x128xbf16, #tpu.memory_space<vmem>>, %arg4: memref<2x256x512xbf16, #tpu.memory_space<vmem>>, %arg5: memref<2x1x512xf32, #tpu.memory_space<vmem>>, %arg6: memref<128x128xbf16, #tpu.memory_space<vmem>>, %arg7: memref<1x128xf32, #tpu.memory_space<vmem>>, %arg8: memref<8x128xf32, #tpu.memory_space<vmem>>, %arg9: memref<8x256xbf16, #tpu.memory_space<vmem>>, %arg10: memref<8x256xbf16, #tpu.memory_space<vmem>>, %arg11: memref<8x128xf32, #tpu.memory_space<vmem>>, %arg12: memref<8x128xf32, #tpu.memory_space<vmem>>, %arg13: memref<8x128xbf16, #tpu.memory_space<vmem>>) attributes {dimension_semantics = [#tpu.dimension_semantics<parallel>, #tpu.dimension_semantics<arbitrary>], iteration_bounds = array<i64: 1, 1>, scalar_prefetch = 0 : i64, scratch_operands = 5 : i64, tpu.core_type = #tpu.core_type<tc>, window_params = [{transform_indices = @transform_0, window_bounds = array<i64: 8, 1>}, {transform_indices = @transform_1, window_bounds = array<i64: 8, 8, 128>}, {pipeline_mode = #tpu.pipeline_mode<synchronous>, transform_indices = @transform_2, window_bounds = array<i64: 2, 256, 512>}, {pipeline_mode = #tpu.pipeline_mode<synchronous>, transform_indices = @transform_3, window_bounds = array<i64: 2, 1, 512>}, {pipeline_mode = #tpu.pipeline_mode<synchronous>, transform_indices = @transform_4, window_bounds = array<i64: 128, 128>}, {pipeline_mode = #tpu.pipeline_mode<synchronous>, transform_indices = @transform_5, window_bounds = array<i64: 1, 128>}, {transform_indices = @transform_6, window_bounds = array<i64: 8, 128>}]} {
    %c0_i32 = arith.constant 0 : i32
    %0 = arith.cmpi eq, %arg1, %c0_i32 : i32
    %1 = arith.extui %0 : i1 to i32
    %c0_i32_0 = arith.constant 0 : i32
    %2 = arith.cmpi ne, %1, %c0_i32_0 : i32
    scf.if %2 {
      %cst_474 = arith.constant 0.000000e+00 : bf16
      %807 = vector.broadcast %cst_474 : bf16 to vector<8x256xbf16>
      %c0_475 = arith.constant 0 : index
      %c0_476 = arith.constant 0 : index
      %808 = vector.load %arg9[%c0_475, %c0_476] : memref<8x256xbf16, #tpu.memory_space<vmem>>, vector<8x256xbf16>
      tpu.vector_store %arg9[%c0_475, %c0_476], %807 {strides = array<i32>} : memref<8x256xbf16, #tpu.memory_space<vmem>>, vector<8x256xbf16>,
      %cst_477 = arith.constant 0.000000e+00 : f32
      %809 = vector.broadcast %cst_477 : f32 to vector<8x128xf32>
      %c0_478 = arith.constant 0 : index
      %c0_479 = arith.constant 0 : index
      %810 = vector.load %arg11[%c0_478, %c0_479] : memref<8x128xf32, #tpu.memory_space<vmem>>, vector<8x128xf32>
      tpu.vector_store %arg11[%c0_478, %c0_479], %809 {strides = array<i32>} : memref<8x128xf32, #tpu.memory_space<vmem>>, vector<8x128xf32>,
      %cst_480 = arith.constant 0.000000e+00 : bf16
      %811 = vector.broadcast %cst_480 : bf16 to vector<8x256xbf16>
      %c0_481 = arith.constant 0 : index
      %c0_482 = arith.constant 0 : index
      %812 = vector.load %arg10[%c0_481, %c0_482] : memref<8x256xbf16, #tpu.memory_space<vmem>>, vector<8x256xbf16>
      tpu.vector_store %arg10[%c0_481, %c0_482], %811 {strides = array<i32>} : memref<8x256xbf16, #tpu.memory_space<vmem>>, vector<8x256xbf16>,
      %cst_483 = arith.constant 0.000000e+00 : f32
      %813 = vector.broadcast %cst_483 : f32 to vector<8x128xf32>
      %c0_484 = arith.constant 0 : index
      %c0_485 = arith.constant 0 : index
      %814 = vector.load %arg12[%c0_484, %c0_485] : memref<8x128xf32, #tpu.memory_space<vmem>>, vector<8x128xf32>
      tpu.vector_store %arg12[%c0_484, %c0_485], %813 {strides = array<i32>} : memref<8x128xf32, #tpu.memory_space<vmem>>, vector<8x128xf32>,
      %cst_486 = arith.constant 0.000000e+00 : bf16
      %815 = vector.broadcast %cst_486 : bf16 to vector<8x128xbf16>
      %c0_487 = arith.constant 0 : index
      %c0_488 = arith.constant 0 : index
      %816 = vector.load %arg13[%c0_487, %c0_488] : memref<8x128xbf16, #tpu.memory_space<vmem>>, vector<8x128xbf16>
      tpu.vector_store %arg13[%c0_487, %c0_488], %815 {strides = array<i32>} : memref<8x128xbf16, #tpu.memory_space<vmem>>, vector<8x128xbf16>,
    } else {
    }
    %c0 = arith.constant 0 : index
    %c0_1 = arith.constant 0 : index
    %3 = vector.load %arg2[%c0, %c0_1] : memref<8x1xi32, #tpu.memory_space<vmem>>, vector<8x1xi32>
    %c0_i32_2 = arith.constant 0 : i32
    %c8_i32 = arith.constant 8 : i32
    %4 = arith.muli %arg1, %c8_i32 : i32
    %5 = arith.addi %4, %c0_i32_2 : i32
    %6 = arith.index_cast %c0_i32_2 : i32 to index
    %c0_3 = arith.constant 0 : index
    %c0_4 = arith.constant 0 : index
    %7 = vector.load %arg3[%6, %c0_3, %c0_4] : memref<8x8x128xbf16, #tpu.memory_space<vmem>>, vector<1x8x128xbf16>
    %8 = vector.shape_cast %7 : vector<1x8x128xbf16> to vector<8x128xbf16>
    %c0_5 = arith.constant 0 : index
    %c0_6 = arith.constant 0 : index
    %9 = vector.load %arg9[%c0_5, %c0_6] : memref<8x256xbf16, #tpu.memory_space<vmem>>, vector<8x128xbf16>
    tpu.vector_store %arg9[%c0_5, %c0_6], %8 {strides = array<i32>} : memref<8x256xbf16, #tpu.memory_space<vmem>>, vector<8x128xbf16>,
    %c0_7 = arith.constant 0 : index
    %c0_8 = arith.constant 0 : index
    %10 = vector.load %arg9[%c0_7, %c0_8] : memref<8x256xbf16, #tpu.memory_space<vmem>>, vector<8x256xbf16>
    %c0_9 = arith.constant 0 : index
    %c0_10 = arith.constant 0 : index
    %c0_11 = arith.constant 0 : index
    %11 = vector.load %arg4[%c0_9, %c0_10, %c0_11] : memref<2x256x512xbf16, #tpu.memory_space<vmem>>, vector<1x256x512xbf16>
    %12 = vector.shape_cast %11 : vector<1x256x512xbf16> to vector<256x512xbf16>
    %cst = arith.constant dense<0.000000e+00> : vector<8x512xf32>
    %13 = tpu.matmul %10, %12, %cst {dimension_numbers = #tpu.dot_dimension_numbers<[1], [0], [0], [1], [0, 0, 1, 1], [], []>} : vector<8x256xbf16>, vector<256x512xbf16>, vector<8x512xf32> -> vector<8x512xf32>
    %c0_12 = arith.constant 0 : index
    %c0_13 = arith.constant 0 : index
    %c0_14 = arith.constant 0 : index
    %14 = vector.load %arg5[%c0_12, %c0_13, %c0_14] : memref<2x1x512xf32, #tpu.memory_space<vmem>>, vector<1x1x512xf32>
    %15 = vector.shape_cast %14 : vector<1x1x512xf32> to vector<1x512xf32>
    %16 = vector.broadcast %15 : vector<1x512xf32> to vector<8x512xf32>
    %17 = arith.addf %13, %16 : vector<8x512xf32>
    %18 = vector.extract_strided_slice %17 {offsets = [0, 0], sizes = [8, 128], strides = [1, 1]} : vector<8x512xf32> to vector<8x128xf32>
    %cst_15 = arith.constant 5.000000e-01 : f32
    %19 = vector.broadcast %cst_15 : f32 to vector<8x128xf32>
    %20 = arith.mulf %19, %18 : vector<8x128xf32>
    %21 = math.tanh %20 : vector<8x128xf32>
    %cst_16 = arith.constant 1.000000e+00 : f32
    %22 = vector.broadcast %cst_16 : f32 to vector<8x128xf32>
    %23 = arith.addf %21, %22 : vector<8x128xf32>
    %cst_17 = arith.constant 5.000000e-01 : f32
    %24 = vector.broadcast %cst_17 : f32 to vector<8x128xf32>
    %25 = arith.mulf %24, %23 : vector<8x128xf32>
    %26 = vector.extract_strided_slice %17 {offsets = [0, 128], sizes = [8, 128], strides = [1, 1]} : vector<8x512xf32> to vector<8x128xf32>
    %cst_18 = arith.constant 5.000000e-01 : f32
    %27 = vector.broadcast %cst_18 : f32 to vector<8x128xf32>
    %28 = arith.mulf %27, %26 : vector<8x128xf32>
    %29 = math.tanh %28 : vector<8x128xf32>
    %cst_19 = arith.constant 1.000000e+00 : f32
    %30 = vector.broadcast %cst_19 : f32 to vector<8x128xf32>
    %31 = arith.addf %29, %30 : vector<8x128xf32>
    %cst_20 = arith.constant 5.000000e-01 : f32
    %32 = vector.broadcast %cst_20 : f32 to vector<8x128xf32>
    %33 = arith.mulf %32, %31 : vector<8x128xf32>
    %34 = vector.extract_strided_slice %17 {offsets = [0, 256], sizes = [8, 128], strides = [1, 1]} : vector<8x512xf32> to vector<8x128xf32>
    %35 = math.tanh %34 : vector<8x128xf32>
    %36 = vector.extract_strided_slice %17 {offsets = [0, 384], sizes = [8, 128], strides = [1, 1]} : vector<8x512xf32> to vector<8x128xf32>
    %cst_21 = arith.constant 5.000000e-01 : f32
    %37 = vector.broadcast %cst_21 : f32 to vector<8x128xf32>
    %38 = arith.mulf %37, %36 : vector<8x128xf32>
    %39 = math.tanh %38 : vector<8x128xf32>
    %cst_22 = arith.constant 1.000000e+00 : f32
    %40 = vector.broadcast %cst_22 : f32 to vector<8x128xf32>
    %41 = arith.addf %39, %40 : vector<8x128xf32>
    %cst_23 = arith.constant 5.000000e-01 : f32
    %42 = vector.broadcast %cst_23 : f32 to vector<8x128xf32>
    %43 = arith.mulf %42, %41 : vector<8x128xf32>
    %c0_24 = arith.constant 0 : index
    %c0_25 = arith.constant 0 : index
    %44 = vector.load %arg11[%c0_24, %c0_25] : memref<8x128xf32, #tpu.memory_space<vmem>>, vector<8x128xf32>
    %45 = arith.mulf %33, %44 : vector<8x128xf32>
    %46 = arith.mulf %25, %35 : vector<8x128xf32>
    %47 = arith.addf %45, %46 : vector<8x128xf32>
    %48 = math.tanh %47 : vector<8x128xf32>
    %49 = arith.mulf %43, %48 : vector<8x128xf32>
    %c0_26 = arith.constant 0 : index
    %c0_27 = arith.constant 0 : index
    %50 = vector.load %arg11[%c0_26, %c0_27] : memref<8x128xf32, #tpu.memory_space<vmem>>, vector<8x128xf32>
    tpu.vector_store %arg11[%c0_26, %c0_27], %47 {strides = array<i32>} : memref<8x128xf32, #tpu.memory_space<vmem>>, vector<8x128xf32>,
    %51 = arith.truncf %49 : vector<8x128xf32> to vector<8x128xbf16>
    %c0_28 = arith.constant 0 : index
    %c128 = arith.constant 128 : index
    %52 = vector.load %arg9[%c0_28, %c128] : memref<8x256xbf16, #tpu.memory_space<vmem>>, vector<8x128xbf16>
    tpu.vector_store %arg9[%c0_28, %c128], %51 {strides = array<i32>} : memref<8x256xbf16, #tpu.memory_space<vmem>>, vector<8x128xbf16>,
    %c0_29 = arith.constant 0 : index
    %c0_30 = arith.constant 0 : index
    %53 = vector.load %arg10[%c0_29, %c0_30] : memref<8x256xbf16, #tpu.memory_space<vmem>>, vector<8x128xbf16>
    tpu.vector_store %arg10[%c0_29, %c0_30], %51 {strides = array<i32>} : memref<8x256xbf16, #tpu.memory_space<vmem>>, vector<8x128xbf16>,
    %c0_31 = arith.constant 0 : index
    %c0_32 = arith.constant 0 : index
    %54 = vector.load %arg10[%c0_31, %c0_32] : memref<8x256xbf16, #tpu.memory_space<vmem>>, vector<8x256xbf16>
    %c1 = arith.constant 1 : index
    %c0_33 = arith.constant 0 : index
    %c0_34 = arith.constant 0 : index
    %55 = vector.load %arg4[%c1, %c0_33, %c0_34] : memref<2x256x512xbf16, #tpu.memory_space<vmem>>, vector<1x256x512xbf16>
    %56 = vector.shape_cast %55 : vector<1x256x512xbf16> to vector<256x512xbf16>
    %cst_35 = arith.constant dense<0.000000e+00> : vector<8x512xf32>
    %57 = tpu.matmul %54, %56, %cst_35 {dimension_numbers = #tpu.dot_dimension_numbers<[1], [0], [0], [1], [0, 0, 1, 1], [], []>} : vector<8x256xbf16>, vector<256x512xbf16>, vector<8x512xf32> -> vector<8x512xf32>
    %c1_36 = arith.constant 1 : index
    %c0_37 = arith.constant 0 : index
    %c0_38 = arith.constant 0 : index
    %58 = vector.load %arg5[%c1_36, %c0_37, %c0_38] : memref<2x1x512xf32, #tpu.memory_space<vmem>>, vector<1x1x512xf32>
    %59 = vector.shape_cast %58 : vector<1x1x512xf32> to vector<1x512xf32>
    %60 = vector.broadcast %59 : vector<1x512xf32> to vector<8x512xf32>
    %61 = arith.addf %57, %60 : vector<8x512xf32>
    %62 = vector.extract_strided_slice %61 {offsets = [0, 0], sizes = [8, 128], strides = [1, 1]} : vector<8x512xf32> to vector<8x128xf32>
    %cst_39 = arith.constant 5.000000e-01 : f32
    %63 = vector.broadcast %cst_39 : f32 to vector<8x128xf32>
    %64 = arith.mulf %63, %62 : vector<8x128xf32>
    %65 = math.tanh %64 : vector<8x128xf32>
    %cst_40 = arith.constant 1.000000e+00 : f32
    %66 = vector.broadcast %cst_40 : f32 to vector<8x128xf32>
    %67 = arith.addf %65, %66 : vector<8x128xf32>
    %cst_41 = arith.constant 5.000000e-01 : f32
    %68 = vector.broadcast %cst_41 : f32 to vector<8x128xf32>
    %69 = arith.mulf %68, %67 : vector<8x128xf32>
    %70 = vector.extract_strided_slice %61 {offsets = [0, 128], sizes = [8, 128], strides = [1, 1]} : vector<8x512xf32> to vector<8x128xf32>
    %cst_42 = arith.constant 5.000000e-01 : f32
    %71 = vector.broadcast %cst_42 : f32 to vector<8x128xf32>
    %72 = arith.mulf %71, %70 : vector<8x128xf32>
    %73 = math.tanh %72 : vector<8x128xf32>
    %cst_43 = arith.constant 1.000000e+00 : f32
    %74 = vector.broadcast %cst_43 : f32 to vector<8x128xf32>
    %75 = arith.addf %73, %74 : vector<8x128xf32>
    %cst_44 = arith.constant 5.000000e-01 : f32
    %76 = vector.broadcast %cst_44 : f32 to vector<8x128xf32>
    %77 = arith.mulf %76, %75 : vector<8x128xf32>
    %78 = vector.extract_strided_slice %61 {offsets = [0, 256], sizes = [8, 128], strides = [1, 1]} : vector<8x512xf32> to vector<8x128xf32>
    %79 = math.tanh %78 : vector<8x128xf32>
    %80 = vector.extract_strided_slice %61 {offsets = [0, 384], sizes = [8, 128], strides = [1, 1]} : vector<8x512xf32> to vector<8x128xf32>
    %cst_45 = arith.constant 5.000000e-01 : f32
    %81 = vector.broadcast %cst_45 : f32 to vector<8x128xf32>
    %82 = arith.mulf %81, %80 : vector<8x128xf32>
    %83 = math.tanh %82 : vector<8x128xf32>
    %cst_46 = arith.constant 1.000000e+00 : f32
    %84 = vector.broadcast %cst_46 : f32 to vector<8x128xf32>
    %85 = arith.addf %83, %84 : vector<8x128xf32>
    %cst_47 = arith.constant 5.000000e-01 : f32
    %86 = vector.broadcast %cst_47 : f32 to vector<8x128xf32>
    %87 = arith.mulf %86, %85 : vector<8x128xf32>
    %c0_48 = arith.constant 0 : index
    %c0_49 = arith.constant 0 : index
    %88 = vector.load %arg12[%c0_48, %c0_49] : memref<8x128xf32, #tpu.memory_space<vmem>>, vector<8x128xf32>
    %89 = arith.mulf %77, %88 : vector<8x128xf32>
    %90 = arith.mulf %69, %79 : vector<8x128xf32>
    %91 = arith.addf %89, %90 : vector<8x128xf32>
    %92 = math.tanh %91 : vector<8x128xf32>
    %93 = arith.mulf %87, %92 : vector<8x128xf32>
    %c0_50 = arith.constant 0 : index
    %c0_51 = arith.constant 0 : index
    %94 = vector.load %arg12[%c0_50, %c0_51] : memref<8x128xf32, #tpu.memory_space<vmem>>, vector<8x128xf32>
    tpu.vector_store %arg12[%c0_50, %c0_51], %91 {strides = array<i32>} : memref<8x128xf32, #tpu.memory_space<vmem>>, vector<8x128xf32>,
    %95 = arith.truncf %93 : vector<8x128xf32> to vector<8x128xbf16>
    %c0_52 = arith.constant 0 : index
    %c128_53 = arith.constant 128 : index
    %96 = vector.load %arg10[%c0_52, %c128_53] : memref<8x256xbf16, #tpu.memory_space<vmem>>, vector<8x128xbf16>
    tpu.vector_store %arg10[%c0_52, %c128_53], %95 {strides = array<i32>} : memref<8x256xbf16, #tpu.memory_space<vmem>>, vector<8x128xbf16>,
    %97 = vector.broadcast %5 : i32 to vector<8x1xi32>
    %98 = arith.cmpi eq, %3, %97 : vector<8x1xi32>
    %c0_54 = arith.constant 0 : index
    %c0_55 = arith.constant 0 : index
    %99 = vector.load %arg13[%c0_54, %c0_55] : memref<8x128xbf16, #tpu.memory_space<vmem>>, vector<8x128xbf16>
    %100 = vector.shape_cast %98 : vector<8x1xi1> to vector<8x1xi1>
    %101 = vector.broadcast %100 : vector<8x1xi1> to vector<8x128xi1>
    %102 = arith.select %101, %95, %99 : vector<8x128xi1>, vector<8x128xbf16>
    %c0_56 = arith.constant 0 : index
    %c0_57 = arith.constant 0 : index
    %103 = vector.load %arg13[%c0_56, %c0_57] : memref<8x128xbf16, #tpu.memory_space<vmem>>, vector<8x128xbf16>
    tpu.vector_store %arg13[%c0_56, %c0_57], %102 {strides = array<i32>} : memref<8x128xbf16, #tpu.memory_space<vmem>>, vector<8x128xbf16>,
    %c1_i32 = arith.constant 1 : i32
    %c8_i32_58 = arith.constant 8 : i32
    %104 = arith.muli %arg1, %c8_i32_58 : i32
    %105 = arith.addi %104, %c1_i32 : i32
    %106 = arith.index_cast %c1_i32 : i32 to index
    %c0_59 = arith.constant 0 : index
    %c0_60 = arith.constant 0 : index
    %107 = vector.load %arg3[%106, %c0_59, %c0_60] : memref<8x8x128xbf16, #tpu.memory_space<vmem>>, vector<1x8x128xbf16>
    %108 = vector.shape_cast %107 : vector<1x8x128xbf16> to vector<8x128xbf16>
    %c0_61 = arith.constant 0 : index
    %c0_62 = arith.constant 0 : index
    %109 = vector.load %arg9[%c0_61, %c0_62] : memref<8x256xbf16, #tpu.memory_space<vmem>>, vector<8x128xbf16>
    tpu.vector_store %arg9[%c0_61, %c0_62], %108 {strides = array<i32>} : memref<8x256xbf16, #tpu.memory_space<vmem>>, vector<8x128xbf16>,
    %c0_63 = arith.constant 0 : index
    %c0_64 = arith.constant 0 : index
    %110 = vector.load %arg9[%c0_63, %c0_64] : memref<8x256xbf16, #tpu.memory_space<vmem>>, vector<8x256xbf16>
    %c0_65 = arith.constant 0 : index
    %c0_66 = arith.constant 0 : index
    %c0_67 = arith.constant 0 : index
    %111 = vector.load %arg4[%c0_65, %c0_66, %c0_67] : memref<2x256x512xbf16, #tpu.memory_space<vmem>>, vector<1x256x512xbf16>
    %112 = vector.shape_cast %111 : vector<1x256x512xbf16> to vector<256x512xbf16>
    %cst_68 = arith.constant dense<0.000000e+00> : vector<8x512xf32>
    %113 = tpu.matmul %110, %112, %cst_68 {dimension_numbers = #tpu.dot_dimension_numbers<[1], [0], [0], [1], [0, 0, 1, 1], [], []>} : vector<8x256xbf16>, vector<256x512xbf16>, vector<8x512xf32> -> vector<8x512xf32>
    %c0_69 = arith.constant 0 : index
    %c0_70 = arith.constant 0 : index
    %c0_71 = arith.constant 0 : index
    %114 = vector.load %arg5[%c0_69, %c0_70, %c0_71] : memref<2x1x512xf32, #tpu.memory_space<vmem>>, vector<1x1x512xf32>
    %115 = vector.shape_cast %114 : vector<1x1x512xf32> to vector<1x512xf32>
    %116 = vector.broadcast %115 : vector<1x512xf32> to vector<8x512xf32>
    %117 = arith.addf %113, %116 : vector<8x512xf32>
    %118 = vector.extract_strided_slice %117 {offsets = [0, 0], sizes = [8, 128], strides = [1, 1]} : vector<8x512xf32> to vector<8x128xf32>
    %cst_72 = arith.constant 5.000000e-01 : f32
    %119 = vector.broadcast %cst_72 : f32 to vector<8x128xf32>
    %120 = arith.mulf %119, %118 : vector<8x128xf32>
    %121 = math.tanh %120 : vector<8x128xf32>
    %cst_73 = arith.constant 1.000000e+00 : f32
    %122 = vector.broadcast %cst_73 : f32 to vector<8x128xf32>
    %123 = arith.addf %121, %122 : vector<8x128xf32>
    %cst_74 = arith.constant 5.000000e-01 : f32
    %124 = vector.broadcast %cst_74 : f32 to vector<8x128xf32>
    %125 = arith.mulf %124, %123 : vector<8x128xf32>
    %126 = vector.extract_strided_slice %117 {offsets = [0, 128], sizes = [8, 128], strides = [1, 1]} : vector<8x512xf32> to vector<8x128xf32>
    %cst_75 = arith.constant 5.000000e-01 : f32
    %127 = vector.broadcast %cst_75 : f32 to vector<8x128xf32>
    %128 = arith.mulf %127, %126 : vector<8x128xf32>
    %129 = math.tanh %128 : vector<8x128xf32>
    %cst_76 = arith.constant 1.000000e+00 : f32
    %130 = vector.broadcast %cst_76 : f32 to vector<8x128xf32>
    %131 = arith.addf %129, %130 : vector<8x128xf32>
    %cst_77 = arith.constant 5.000000e-01 : f32
    %132 = vector.broadcast %cst_77 : f32 to vector<8x128xf32>
    %133 = arith.mulf %132, %131 : vector<8x128xf32>
    %134 = vector.extract_strided_slice %117 {offsets = [0, 256], sizes = [8, 128], strides = [1, 1]} : vector<8x512xf32> to vector<8x128xf32>
    %135 = math.tanh %134 : vector<8x128xf32>
    %136 = vector.extract_strided_slice %117 {offsets = [0, 384], sizes = [8, 128], strides = [1, 1]} : vector<8x512xf32> to vector<8x128xf32>
    %cst_78 = arith.constant 5.000000e-01 : f32
    %137 = vector.broadcast %cst_78 : f32 to vector<8x128xf32>
    %138 = arith.mulf %137, %136 : vector<8x128xf32>
    %139 = math.tanh %138 : vector<8x128xf32>
    %cst_79 = arith.constant 1.000000e+00 : f32
    %140 = vector.broadcast %cst_79 : f32 to vector<8x128xf32>
    %141 = arith.addf %139, %140 : vector<8x128xf32>
    %cst_80 = arith.constant 5.000000e-01 : f32
    %142 = vector.broadcast %cst_80 : f32 to vector<8x128xf32>
    %143 = arith.mulf %142, %141 : vector<8x128xf32>
    %c0_81 = arith.constant 0 : index
    %c0_82 = arith.constant 0 : index
    %144 = vector.load %arg11[%c0_81, %c0_82] : memref<8x128xf32, #tpu.memory_space<vmem>>, vector<8x128xf32>
    %145 = arith.mulf %133, %144 : vector<8x128xf32>
    %146 = arith.mulf %125, %135 : vector<8x128xf32>
    %147 = arith.addf %145, %146 : vector<8x128xf32>
    %148 = math.tanh %147 : vector<8x128xf32>
    %149 = arith.mulf %143, %148 : vector<8x128xf32>
    %c0_83 = arith.constant 0 : index
    %c0_84 = arith.constant 0 : index
    %150 = vector.load %arg11[%c0_83, %c0_84] : memref<8x128xf32, #tpu.memory_space<vmem>>, vector<8x128xf32>
    tpu.vector_store %arg11[%c0_83, %c0_84], %147 {strides = array<i32>} : memref<8x128xf32, #tpu.memory_space<vmem>>, vector<8x128xf32>,
    %151 = arith.truncf %149 : vector<8x128xf32> to vector<8x128xbf16>
    %c0_85 = arith.constant 0 : index
    %c128_86 = arith.constant 128 : index
    %152 = vector.load %arg9[%c0_85, %c128_86] : memref<8x256xbf16, #tpu.memory_space<vmem>>, vector<8x128xbf16>
    tpu.vector_store %arg9[%c0_85, %c128_86], %151 {strides = array<i32>} : memref<8x256xbf16, #tpu.memory_space<vmem>>, vector<8x128xbf16>,
    %c0_87 = arith.constant 0 : index
    %c0_88 = arith.constant 0 : index
    %153 = vector.load %arg10[%c0_87, %c0_88] : memref<8x256xbf16, #tpu.memory_space<vmem>>, vector<8x128xbf16>
    tpu.vector_store %arg10[%c0_87, %c0_88], %151 {strides = array<i32>} : memref<8x256xbf16, #tpu.memory_space<vmem>>, vector<8x128xbf16>,
    %c0_89 = arith.constant 0 : index
    %c0_90 = arith.constant 0 : index
    %154 = vector.load %arg10[%c0_89, %c0_90] : memref<8x256xbf16, #tpu.memory_space<vmem>>, vector<8x256xbf16>
    %c1_91 = arith.constant 1 : index
    %c0_92 = arith.constant 0 : index
    %c0_93 = arith.constant 0 : index
    %155 = vector.load %arg4[%c1_91, %c0_92, %c0_93] : memref<2x256x512xbf16, #tpu.memory_space<vmem>>, vector<1x256x512xbf16>
    %156 = vector.shape_cast %155 : vector<1x256x512xbf16> to vector<256x512xbf16>
    %cst_94 = arith.constant dense<0.000000e+00> : vector<8x512xf32>
    %157 = tpu.matmul %154, %156, %cst_94 {dimension_numbers = #tpu.dot_dimension_numbers<[1], [0], [0], [1], [0, 0, 1, 1], [], []>} : vector<8x256xbf16>, vector<256x512xbf16>, vector<8x512xf32> -> vector<8x512xf32>
    %c1_95 = arith.constant 1 : index
    %c0_96 = arith.constant 0 : index
    %c0_97 = arith.constant 0 : index
    %158 = vector.load %arg5[%c1_95, %c0_96, %c0_97] : memref<2x1x512xf32, #tpu.memory_space<vmem>>, vector<1x1x512xf32>
    %159 = vector.shape_cast %158 : vector<1x1x512xf32> to vector<1x512xf32>
    %160 = vector.broadcast %159 : vector<1x512xf32> to vector<8x512xf32>
    %161 = arith.addf %157, %160 : vector<8x512xf32>
    %162 = vector.extract_strided_slice %161 {offsets = [0, 0], sizes = [8, 128], strides = [1, 1]} : vector<8x512xf32> to vector<8x128xf32>
    %cst_98 = arith.constant 5.000000e-01 : f32
    %163 = vector.broadcast %cst_98 : f32 to vector<8x128xf32>
    %164 = arith.mulf %163, %162 : vector<8x128xf32>
    %165 = math.tanh %164 : vector<8x128xf32>
    %cst_99 = arith.constant 1.000000e+00 : f32
    %166 = vector.broadcast %cst_99 : f32 to vector<8x128xf32>
    %167 = arith.addf %165, %166 : vector<8x128xf32>
    %cst_100 = arith.constant 5.000000e-01 : f32
    %168 = vector.broadcast %cst_100 : f32 to vector<8x128xf32>
    %169 = arith.mulf %168, %167 : vector<8x128xf32>
    %170 = vector.extract_strided_slice %161 {offsets = [0, 128], sizes = [8, 128], strides = [1, 1]} : vector<8x512xf32> to vector<8x128xf32>
    %cst_101 = arith.constant 5.000000e-01 : f32
    %171 = vector.broadcast %cst_101 : f32 to vector<8x128xf32>
    %172 = arith.mulf %171, %170 : vector<8x128xf32>
    %173 = math.tanh %172 : vector<8x128xf32>
    %cst_102 = arith.constant 1.000000e+00 : f32
    %174 = vector.broadcast %cst_102 : f32 to vector<8x128xf32>
    %175 = arith.addf %173, %174 : vector<8x128xf32>
    %cst_103 = arith.constant 5.000000e-01 : f32
    %176 = vector.broadcast %cst_103 : f32 to vector<8x128xf32>
    %177 = arith.mulf %176, %175 : vector<8x128xf32>
    %178 = vector.extract_strided_slice %161 {offsets = [0, 256], sizes = [8, 128], strides = [1, 1]} : vector<8x512xf32> to vector<8x128xf32>
    %179 = math.tanh %178 : vector<8x128xf32>
    %180 = vector.extract_strided_slice %161 {offsets = [0, 384], sizes = [8, 128], strides = [1, 1]} : vector<8x512xf32> to vector<8x128xf32>
    %cst_104 = arith.constant 5.000000e-01 : f32
    %181 = vector.broadcast %cst_104 : f32 to vector<8x128xf32>
    %182 = arith.mulf %181, %180 : vector<8x128xf32>
    %183 = math.tanh %182 : vector<8x128xf32>
    %cst_105 = arith.constant 1.000000e+00 : f32
    %184 = vector.broadcast %cst_105 : f32 to vector<8x128xf32>
    %185 = arith.addf %183, %184 : vector<8x128xf32>
    %cst_106 = arith.constant 5.000000e-01 : f32
    %186 = vector.broadcast %cst_106 : f32 to vector<8x128xf32>
    %187 = arith.mulf %186, %185 : vector<8x128xf32>
    %c0_107 = arith.constant 0 : index
    %c0_108 = arith.constant 0 : index
    %188 = vector.load %arg12[%c0_107, %c0_108] : memref<8x128xf32, #tpu.memory_space<vmem>>, vector<8x128xf32>
    %189 = arith.mulf %177, %188 : vector<8x128xf32>
    %190 = arith.mulf %169, %179 : vector<8x128xf32>
    %191 = arith.addf %189, %190 : vector<8x128xf32>
    %192 = math.tanh %191 : vector<8x128xf32>
    %193 = arith.mulf %187, %192 : vector<8x128xf32>
    %c0_109 = arith.constant 0 : index
    %c0_110 = arith.constant 0 : index
    %194 = vector.load %arg12[%c0_109, %c0_110] : memref<8x128xf32, #tpu.memory_space<vmem>>, vector<8x128xf32>
    tpu.vector_store %arg12[%c0_109, %c0_110], %191 {strides = array<i32>} : memref<8x128xf32, #tpu.memory_space<vmem>>, vector<8x128xf32>,
    %195 = arith.truncf %193 : vector<8x128xf32> to vector<8x128xbf16>
    %c0_111 = arith.constant 0 : index
    %c128_112 = arith.constant 128 : index
    %196 = vector.load %arg10[%c0_111, %c128_112] : memref<8x256xbf16, #tpu.memory_space<vmem>>, vector<8x128xbf16>
    tpu.vector_store %arg10[%c0_111, %c128_112], %195 {strides = array<i32>} : memref<8x256xbf16, #tpu.memory_space<vmem>>, vector<8x128xbf16>,
    %197 = vector.broadcast %105 : i32 to vector<8x1xi32>
    %198 = arith.cmpi eq, %3, %197 : vector<8x1xi32>
    %c0_113 = arith.constant 0 : index
    %c0_114 = arith.constant 0 : index
    %199 = vector.load %arg13[%c0_113, %c0_114] : memref<8x128xbf16, #tpu.memory_space<vmem>>, vector<8x128xbf16>
    %200 = vector.shape_cast %198 : vector<8x1xi1> to vector<8x1xi1>
    %201 = vector.broadcast %200 : vector<8x1xi1> to vector<8x128xi1>
    %202 = arith.select %201, %195, %199 : vector<8x128xi1>, vector<8x128xbf16>
    %c0_115 = arith.constant 0 : index
    %c0_116 = arith.constant 0 : index
    %203 = vector.load %arg13[%c0_115, %c0_116] : memref<8x128xbf16, #tpu.memory_space<vmem>>, vector<8x128xbf16>
    tpu.vector_store %arg13[%c0_115, %c0_116], %202 {strides = array<i32>} : memref<8x128xbf16, #tpu.memory_space<vmem>>, vector<8x128xbf16>,
    %c2_i32 = arith.constant 2 : i32
    %c8_i32_117 = arith.constant 8 : i32
    %204 = arith.muli %arg1, %c8_i32_117 : i32
    %205 = arith.addi %204, %c2_i32 : i32
    %206 = arith.index_cast %c2_i32 : i32 to index
    %c0_118 = arith.constant 0 : index
    %c0_119 = arith.constant 0 : index
    %207 = vector.load %arg3[%206, %c0_118, %c0_119] : memref<8x8x128xbf16, #tpu.memory_space<vmem>>, vector<1x8x128xbf16>
    %208 = vector.shape_cast %207 : vector<1x8x128xbf16> to vector<8x128xbf16>
    %c0_120 = arith.constant 0 : index
    %c0_121 = arith.constant 0 : index
    %209 = vector.load %arg9[%c0_120, %c0_121] : memref<8x256xbf16, #tpu.memory_space<vmem>>, vector<8x128xbf16>
    tpu.vector_store %arg9[%c0_120, %c0_121], %208 {strides = array<i32>} : memref<8x256xbf16, #tpu.memory_space<vmem>>, vector<8x128xbf16>,
    %c0_122 = arith.constant 0 : index
    %c0_123 = arith.constant 0 : index
    %210 = vector.load %arg9[%c0_122, %c0_123] : memref<8x256xbf16, #tpu.memory_space<vmem>>, vector<8x256xbf16>
    %c0_124 = arith.constant 0 : index
    %c0_125 = arith.constant 0 : index
    %c0_126 = arith.constant 0 : index
    %211 = vector.load %arg4[%c0_124, %c0_125, %c0_126] : memref<2x256x512xbf16, #tpu.memory_space<vmem>>, vector<1x256x512xbf16>
    %212 = vector.shape_cast %211 : vector<1x256x512xbf16> to vector<256x512xbf16>
    %cst_127 = arith.constant dense<0.000000e+00> : vector<8x512xf32>
    %213 = tpu.matmul %210, %212, %cst_127 {dimension_numbers = #tpu.dot_dimension_numbers<[1], [0], [0], [1], [0, 0, 1, 1], [], []>} : vector<8x256xbf16>, vector<256x512xbf16>, vector<8x512xf32> -> vector<8x512xf32>
    %c0_128 = arith.constant 0 : index
    %c0_129 = arith.constant 0 : index
    %c0_130 = arith.constant 0 : index
    %214 = vector.load %arg5[%c0_128, %c0_129, %c0_130] : memref<2x1x512xf32, #tpu.memory_space<vmem>>, vector<1x1x512xf32>
    %215 = vector.shape_cast %214 : vector<1x1x512xf32> to vector<1x512xf32>
    %216 = vector.broadcast %215 : vector<1x512xf32> to vector<8x512xf32>
    %217 = arith.addf %213, %216 : vector<8x512xf32>
    %218 = vector.extract_strided_slice %217 {offsets = [0, 0], sizes = [8, 128], strides = [1, 1]} : vector<8x512xf32> to vector<8x128xf32>
    %cst_131 = arith.constant 5.000000e-01 : f32
    %219 = vector.broadcast %cst_131 : f32 to vector<8x128xf32>
    %220 = arith.mulf %219, %218 : vector<8x128xf32>
    %221 = math.tanh %220 : vector<8x128xf32>
    %cst_132 = arith.constant 1.000000e+00 : f32
    %222 = vector.broadcast %cst_132 : f32 to vector<8x128xf32>
    %223 = arith.addf %221, %222 : vector<8x128xf32>
    %cst_133 = arith.constant 5.000000e-01 : f32
    %224 = vector.broadcast %cst_133 : f32 to vector<8x128xf32>
    %225 = arith.mulf %224, %223 : vector<8x128xf32>
    %226 = vector.extract_strided_slice %217 {offsets = [0, 128], sizes = [8, 128], strides = [1, 1]} : vector<8x512xf32> to vector<8x128xf32>
    %cst_134 = arith.constant 5.000000e-01 : f32
    %227 = vector.broadcast %cst_134 : f32 to vector<8x128xf32>
    %228 = arith.mulf %227, %226 : vector<8x128xf32>
    %229 = math.tanh %228 : vector<8x128xf32>
    %cst_135 = arith.constant 1.000000e+00 : f32
    %230 = vector.broadcast %cst_135 : f32 to vector<8x128xf32>
    %231 = arith.addf %229, %230 : vector<8x128xf32>
    %cst_136 = arith.constant 5.000000e-01 : f32
    %232 = vector.broadcast %cst_136 : f32 to vector<8x128xf32>
    %233 = arith.mulf %232, %231 : vector<8x128xf32>
    %234 = vector.extract_strided_slice %217 {offsets = [0, 256], sizes = [8, 128], strides = [1, 1]} : vector<8x512xf32> to vector<8x128xf32>
    %235 = math.tanh %234 : vector<8x128xf32>
    %236 = vector.extract_strided_slice %217 {offsets = [0, 384], sizes = [8, 128], strides = [1, 1]} : vector<8x512xf32> to vector<8x128xf32>
    %cst_137 = arith.constant 5.000000e-01 : f32
    %237 = vector.broadcast %cst_137 : f32 to vector<8x128xf32>
    %238 = arith.mulf %237, %236 : vector<8x128xf32>
    %239 = math.tanh %238 : vector<8x128xf32>
    %cst_138 = arith.constant 1.000000e+00 : f32
    %240 = vector.broadcast %cst_138 : f32 to vector<8x128xf32>
    %241 = arith.addf %239, %240 : vector<8x128xf32>
    %cst_139 = arith.constant 5.000000e-01 : f32
    %242 = vector.broadcast %cst_139 : f32 to vector<8x128xf32>
    %243 = arith.mulf %242, %241 : vector<8x128xf32>
    %c0_140 = arith.constant 0 : index
    %c0_141 = arith.constant 0 : index
    %244 = vector.load %arg11[%c0_140, %c0_141] : memref<8x128xf32, #tpu.memory_space<vmem>>, vector<8x128xf32>
    %245 = arith.mulf %233, %244 : vector<8x128xf32>
    %246 = arith.mulf %225, %235 : vector<8x128xf32>
    %247 = arith.addf %245, %246 : vector<8x128xf32>
    %248 = math.tanh %247 : vector<8x128xf32>
    %249 = arith.mulf %243, %248 : vector<8x128xf32>
    %c0_142 = arith.constant 0 : index
    %c0_143 = arith.constant 0 : index
    %250 = vector.load %arg11[%c0_142, %c0_143] : memref<8x128xf32, #tpu.memory_space<vmem>>, vector<8x128xf32>
    tpu.vector_store %arg11[%c0_142, %c0_143], %247 {strides = array<i32>} : memref<8x128xf32, #tpu.memory_space<vmem>>, vector<8x128xf32>,
    %251 = arith.truncf %249 : vector<8x128xf32> to vector<8x128xbf16>
    %c0_144 = arith.constant 0 : index
    %c128_145 = arith.constant 128 : index
    %252 = vector.load %arg9[%c0_144, %c128_145] : memref<8x256xbf16, #tpu.memory_space<vmem>>, vector<8x128xbf16>
    tpu.vector_store %arg9[%c0_144, %c128_145], %251 {strides = array<i32>} : memref<8x256xbf16, #tpu.memory_space<vmem>>, vector<8x128xbf16>,
    %c0_146 = arith.constant 0 : index
    %c0_147 = arith.constant 0 : index
    %253 = vector.load %arg10[%c0_146, %c0_147] : memref<8x256xbf16, #tpu.memory_space<vmem>>, vector<8x128xbf16>
    tpu.vector_store %arg10[%c0_146, %c0_147], %251 {strides = array<i32>} : memref<8x256xbf16, #tpu.memory_space<vmem>>, vector<8x128xbf16>,
    %c0_148 = arith.constant 0 : index
    %c0_149 = arith.constant 0 : index
    %254 = vector.load %arg10[%c0_148, %c0_149] : memref<8x256xbf16, #tpu.memory_space<vmem>>, vector<8x256xbf16>
    %c1_150 = arith.constant 1 : index
    %c0_151 = arith.constant 0 : index
    %c0_152 = arith.constant 0 : index
    %255 = vector.load %arg4[%c1_150, %c0_151, %c0_152] : memref<2x256x512xbf16, #tpu.memory_space<vmem>>, vector<1x256x512xbf16>
    %256 = vector.shape_cast %255 : vector<1x256x512xbf16> to vector<256x512xbf16>
    %cst_153 = arith.constant dense<0.000000e+00> : vector<8x512xf32>
    %257 = tpu.matmul %254, %256, %cst_153 {dimension_numbers = #tpu.dot_dimension_numbers<[1], [0], [0], [1], [0, 0, 1, 1], [], []>} : vector<8x256xbf16>, vector<256x512xbf16>, vector<8x512xf32> -> vector<8x512xf32>
    %c1_154 = arith.constant 1 : index
    %c0_155 = arith.constant 0 : index
    %c0_156 = arith.constant 0 : index
    %258 = vector.load %arg5[%c1_154, %c0_155, %c0_156] : memref<2x1x512xf32, #tpu.memory_space<vmem>>, vector<1x1x512xf32>
    %259 = vector.shape_cast %258 : vector<1x1x512xf32> to vector<1x512xf32>
    %260 = vector.broadcast %259 : vector<1x512xf32> to vector<8x512xf32>
    %261 = arith.addf %257, %260 : vector<8x512xf32>
    %262 = vector.extract_strided_slice %261 {offsets = [0, 0], sizes = [8, 128], strides = [1, 1]} : vector<8x512xf32> to vector<8x128xf32>
    %cst_157 = arith.constant 5.000000e-01 : f32
    %263 = vector.broadcast %cst_157 : f32 to vector<8x128xf32>
    %264 = arith.mulf %263, %262 : vector<8x128xf32>
    %265 = math.tanh %264 : vector<8x128xf32>
    %cst_158 = arith.constant 1.000000e+00 : f32
    %266 = vector.broadcast %cst_158 : f32 to vector<8x128xf32>
    %267 = arith.addf %265, %266 : vector<8x128xf32>
    %cst_159 = arith.constant 5.000000e-01 : f32
    %268 = vector.broadcast %cst_159 : f32 to vector<8x128xf32>
    %269 = arith.mulf %268, %267 : vector<8x128xf32>
    %270 = vector.extract_strided_slice %261 {offsets = [0, 128], sizes = [8, 128], strides = [1, 1]} : vector<8x512xf32> to vector<8x128xf32>
    %cst_160 = arith.constant 5.000000e-01 : f32
    %271 = vector.broadcast %cst_160 : f32 to vector<8x128xf32>
    %272 = arith.mulf %271, %270 : vector<8x128xf32>
    %273 = math.tanh %272 : vector<8x128xf32>
    %cst_161 = arith.constant 1.000000e+00 : f32
    %274 = vector.broadcast %cst_161 : f32 to vector<8x128xf32>
    %275 = arith.addf %273, %274 : vector<8x128xf32>
    %cst_162 = arith.constant 5.000000e-01 : f32
    %276 = vector.broadcast %cst_162 : f32 to vector<8x128xf32>
    %277 = arith.mulf %276, %275 : vector<8x128xf32>
    %278 = vector.extract_strided_slice %261 {offsets = [0, 256], sizes = [8, 128], strides = [1, 1]} : vector<8x512xf32> to vector<8x128xf32>
    %279 = math.tanh %278 : vector<8x128xf32>
    %280 = vector.extract_strided_slice %261 {offsets = [0, 384], sizes = [8, 128], strides = [1, 1]} : vector<8x512xf32> to vector<8x128xf32>
    %cst_163 = arith.constant 5.000000e-01 : f32
    %281 = vector.broadcast %cst_163 : f32 to vector<8x128xf32>
    %282 = arith.mulf %281, %280 : vector<8x128xf32>
    %283 = math.tanh %282 : vector<8x128xf32>
    %cst_164 = arith.constant 1.000000e+00 : f32
    %284 = vector.broadcast %cst_164 : f32 to vector<8x128xf32>
    %285 = arith.addf %283, %284 : vector<8x128xf32>
    %cst_165 = arith.constant 5.000000e-01 : f32
    %286 = vector.broadcast %cst_165 : f32 to vector<8x128xf32>
    %287 = arith.mulf %286, %285 : vector<8x128xf32>
    %c0_166 = arith.constant 0 : index
    %c0_167 = arith.constant 0 : index
    %288 = vector.load %arg12[%c0_166, %c0_167] : memref<8x128xf32, #tpu.memory_space<vmem>>, vector<8x128xf32>
    %289 = arith.mulf %277, %288 : vector<8x128xf32>
    %290 = arith.mulf %269, %279 : vector<8x128xf32>
    %291 = arith.addf %289, %290 : vector<8x128xf32>
    %292 = math.tanh %291 : vector<8x128xf32>
    %293 = arith.mulf %287, %292 : vector<8x128xf32>
    %c0_168 = arith.constant 0 : index
    %c0_169 = arith.constant 0 : index
    %294 = vector.load %arg12[%c0_168, %c0_169] : memref<8x128xf32, #tpu.memory_space<vmem>>, vector<8x128xf32>
    tpu.vector_store %arg12[%c0_168, %c0_169], %291 {strides = array<i32>} : memref<8x128xf32, #tpu.memory_space<vmem>>, vector<8x128xf32>,
    %295 = arith.truncf %293 : vector<8x128xf32> to vector<8x128xbf16>
    %c0_170 = arith.constant 0 : index
    %c128_171 = arith.constant 128 : index
    %296 = vector.load %arg10[%c0_170, %c128_171] : memref<8x256xbf16, #tpu.memory_space<vmem>>, vector<8x128xbf16>
    tpu.vector_store %arg10[%c0_170, %c128_171], %295 {strides = array<i32>} : memref<8x256xbf16, #tpu.memory_space<vmem>>, vector<8x128xbf16>,
    %297 = vector.broadcast %205 : i32 to vector<8x1xi32>
    %298 = arith.cmpi eq, %3, %297 : vector<8x1xi32>
    %c0_172 = arith.constant 0 : index
    %c0_173 = arith.constant 0 : index
    %299 = vector.load %arg13[%c0_172, %c0_173] : memref<8x128xbf16, #tpu.memory_space<vmem>>, vector<8x128xbf16>
    %300 = vector.shape_cast %298 : vector<8x1xi1> to vector<8x1xi1>
    %301 = vector.broadcast %300 : vector<8x1xi1> to vector<8x128xi1>
    %302 = arith.select %301, %295, %299 : vector<8x128xi1>, vector<8x128xbf16>
    %c0_174 = arith.constant 0 : index
    %c0_175 = arith.constant 0 : index
    %303 = vector.load %arg13[%c0_174, %c0_175] : memref<8x128xbf16, #tpu.memory_space<vmem>>, vector<8x128xbf16>
    tpu.vector_store %arg13[%c0_174, %c0_175], %302 {strides = array<i32>} : memref<8x128xbf16, #tpu.memory_space<vmem>>, vector<8x128xbf16>,
    %c3_i32 = arith.constant 3 : i32
    %c8_i32_176 = arith.constant 8 : i32
    %304 = arith.muli %arg1, %c8_i32_176 : i32
    %305 = arith.addi %304, %c3_i32 : i32
    %306 = arith.index_cast %c3_i32 : i32 to index
    %c0_177 = arith.constant 0 : index
    %c0_178 = arith.constant 0 : index
    %307 = vector.load %arg3[%306, %c0_177, %c0_178] : memref<8x8x128xbf16, #tpu.memory_space<vmem>>, vector<1x8x128xbf16>
    %308 = vector.shape_cast %307 : vector<1x8x128xbf16> to vector<8x128xbf16>
    %c0_179 = arith.constant 0 : index
    %c0_180 = arith.constant 0 : index
    %309 = vector.load %arg9[%c0_179, %c0_180] : memref<8x256xbf16, #tpu.memory_space<vmem>>, vector<8x128xbf16>
    tpu.vector_store %arg9[%c0_179, %c0_180], %308 {strides = array<i32>} : memref<8x256xbf16, #tpu.memory_space<vmem>>, vector<8x128xbf16>,
    %c0_181 = arith.constant 0 : index
    %c0_182 = arith.constant 0 : index
    %310 = vector.load %arg9[%c0_181, %c0_182] : memref<8x256xbf16, #tpu.memory_space<vmem>>, vector<8x256xbf16>
    %c0_183 = arith.constant 0 : index
    %c0_184 = arith.constant 0 : index
    %c0_185 = arith.constant 0 : index
    %311 = vector.load %arg4[%c0_183, %c0_184, %c0_185] : memref<2x256x512xbf16, #tpu.memory_space<vmem>>, vector<1x256x512xbf16>
    %312 = vector.shape_cast %311 : vector<1x256x512xbf16> to vector<256x512xbf16>
    %cst_186 = arith.constant dense<0.000000e+00> : vector<8x512xf32>
    %313 = tpu.matmul %310, %312, %cst_186 {dimension_numbers = #tpu.dot_dimension_numbers<[1], [0], [0], [1], [0, 0, 1, 1], [], []>} : vector<8x256xbf16>, vector<256x512xbf16>, vector<8x512xf32> -> vector<8x512xf32>
    %c0_187 = arith.constant 0 : index
    %c0_188 = arith.constant 0 : index
    %c0_189 = arith.constant 0 : index
    %314 = vector.load %arg5[%c0_187, %c0_188, %c0_189] : memref<2x1x512xf32, #tpu.memory_space<vmem>>, vector<1x1x512xf32>
    %315 = vector.shape_cast %314 : vector<1x1x512xf32> to vector<1x512xf32>
    %316 = vector.broadcast %315 : vector<1x512xf32> to vector<8x512xf32>
    %317 = arith.addf %313, %316 : vector<8x512xf32>
    %318 = vector.extract_strided_slice %317 {offsets = [0, 0], sizes = [8, 128], strides = [1, 1]} : vector<8x512xf32> to vector<8x128xf32>
    %cst_190 = arith.constant 5.000000e-01 : f32
    %319 = vector.broadcast %cst_190 : f32 to vector<8x128xf32>
    %320 = arith.mulf %319, %318 : vector<8x128xf32>
    %321 = math.tanh %320 : vector<8x128xf32>
    %cst_191 = arith.constant 1.000000e+00 : f32
    %322 = vector.broadcast %cst_191 : f32 to vector<8x128xf32>
    %323 = arith.addf %321, %322 : vector<8x128xf32>
    %cst_192 = arith.constant 5.000000e-01 : f32
    %324 = vector.broadcast %cst_192 : f32 to vector<8x128xf32>
    %325 = arith.mulf %324, %323 : vector<8x128xf32>
    %326 = vector.extract_strided_slice %317 {offsets = [0, 128], sizes = [8, 128], strides = [1, 1]} : vector<8x512xf32> to vector<8x128xf32>
    %cst_193 = arith.constant 5.000000e-01 : f32
    %327 = vector.broadcast %cst_193 : f32 to vector<8x128xf32>
    %328 = arith.mulf %327, %326 : vector<8x128xf32>
    %329 = math.tanh %328 : vector<8x128xf32>
    %cst_194 = arith.constant 1.000000e+00 : f32
    %330 = vector.broadcast %cst_194 : f32 to vector<8x128xf32>
    %331 = arith.addf %329, %330 : vector<8x128xf32>
    %cst_195 = arith.constant 5.000000e-01 : f32
    %332 = vector.broadcast %cst_195 : f32 to vector<8x128xf32>
    %333 = arith.mulf %332, %331 : vector<8x128xf32>
    %334 = vector.extract_strided_slice %317 {offsets = [0, 256], sizes = [8, 128], strides = [1, 1]} : vector<8x512xf32> to vector<8x128xf32>
    %335 = math.tanh %334 : vector<8x128xf32>
    %336 = vector.extract_strided_slice %317 {offsets = [0, 384], sizes = [8, 128], strides = [1, 1]} : vector<8x512xf32> to vector<8x128xf32>
    %cst_196 = arith.constant 5.000000e-01 : f32
    %337 = vector.broadcast %cst_196 : f32 to vector<8x128xf32>
    %338 = arith.mulf %337, %336 : vector<8x128xf32>
    %339 = math.tanh %338 : vector<8x128xf32>
    %cst_197 = arith.constant 1.000000e+00 : f32
    %340 = vector.broadcast %cst_197 : f32 to vector<8x128xf32>
    %341 = arith.addf %339, %340 : vector<8x128xf32>
    %cst_198 = arith.constant 5.000000e-01 : f32
    %342 = vector.broadcast %cst_198 : f32 to vector<8x128xf32>
    %343 = arith.mulf %342, %341 : vector<8x128xf32>
    %c0_199 = arith.constant 0 : index
    %c0_200 = arith.constant 0 : index
    %344 = vector.load %arg11[%c0_199, %c0_200] : memref<8x128xf32, #tpu.memory_space<vmem>>, vector<8x128xf32>
    %345 = arith.mulf %333, %344 : vector<8x128xf32>
    %346 = arith.mulf %325, %335 : vector<8x128xf32>
    %347 = arith.addf %345, %346 : vector<8x128xf32>
    %348 = math.tanh %347 : vector<8x128xf32>
    %349 = arith.mulf %343, %348 : vector<8x128xf32>
    %c0_201 = arith.constant 0 : index
    %c0_202 = arith.constant 0 : index
    %350 = vector.load %arg11[%c0_201, %c0_202] : memref<8x128xf32, #tpu.memory_space<vmem>>, vector<8x128xf32>
    tpu.vector_store %arg11[%c0_201, %c0_202], %347 {strides = array<i32>} : memref<8x128xf32, #tpu.memory_space<vmem>>, vector<8x128xf32>,
    %351 = arith.truncf %349 : vector<8x128xf32> to vector<8x128xbf16>
    %c0_203 = arith.constant 0 : index
    %c128_204 = arith.constant 128 : index
    %352 = vector.load %arg9[%c0_203, %c128_204] : memref<8x256xbf16, #tpu.memory_space<vmem>>, vector<8x128xbf16>
    tpu.vector_store %arg9[%c0_203, %c128_204], %351 {strides = array<i32>} : memref<8x256xbf16, #tpu.memory_space<vmem>>, vector<8x128xbf16>,
    %c0_205 = arith.constant 0 : index
    %c0_206 = arith.constant 0 : index
    %353 = vector.load %arg10[%c0_205, %c0_206] : memref<8x256xbf16, #tpu.memory_space<vmem>>, vector<8x128xbf16>
    tpu.vector_store %arg10[%c0_205, %c0_206], %351 {strides = array<i32>} : memref<8x256xbf16, #tpu.memory_space<vmem>>, vector<8x128xbf16>,
    %c0_207 = arith.constant 0 : index
    %c0_208 = arith.constant 0 : index
    %354 = vector.load %arg10[%c0_207, %c0_208] : memref<8x256xbf16, #tpu.memory_space<vmem>>, vector<8x256xbf16>
    %c1_209 = arith.constant 1 : index
    %c0_210 = arith.constant 0 : index
    %c0_211 = arith.constant 0 : index
    %355 = vector.load %arg4[%c1_209, %c0_210, %c0_211] : memref<2x256x512xbf16, #tpu.memory_space<vmem>>, vector<1x256x512xbf16>
    %356 = vector.shape_cast %355 : vector<1x256x512xbf16> to vector<256x512xbf16>
    %cst_212 = arith.constant dense<0.000000e+00> : vector<8x512xf32>
    %357 = tpu.matmul %354, %356, %cst_212 {dimension_numbers = #tpu.dot_dimension_numbers<[1], [0], [0], [1], [0, 0, 1, 1], [], []>} : vector<8x256xbf16>, vector<256x512xbf16>, vector<8x512xf32> -> vector<8x512xf32>
    %c1_213 = arith.constant 1 : index
    %c0_214 = arith.constant 0 : index
    %c0_215 = arith.constant 0 : index
    %358 = vector.load %arg5[%c1_213, %c0_214, %c0_215] : memref<2x1x512xf32, #tpu.memory_space<vmem>>, vector<1x1x512xf32>
    %359 = vector.shape_cast %358 : vector<1x1x512xf32> to vector<1x512xf32>
    %360 = vector.broadcast %359 : vector<1x512xf32> to vector<8x512xf32>
    %361 = arith.addf %357, %360 : vector<8x512xf32>
    %362 = vector.extract_strided_slice %361 {offsets = [0, 0], sizes = [8, 128], strides = [1, 1]} : vector<8x512xf32> to vector<8x128xf32>
    %cst_216 = arith.constant 5.000000e-01 : f32
    %363 = vector.broadcast %cst_216 : f32 to vector<8x128xf32>
    %364 = arith.mulf %363, %362 : vector<8x128xf32>
    %365 = math.tanh %364 : vector<8x128xf32>
    %cst_217 = arith.constant 1.000000e+00 : f32
    %366 = vector.broadcast %cst_217 : f32 to vector<8x128xf32>
    %367 = arith.addf %365, %366 : vector<8x128xf32>
    %cst_218 = arith.constant 5.000000e-01 : f32
    %368 = vector.broadcast %cst_218 : f32 to vector<8x128xf32>
    %369 = arith.mulf %368, %367 : vector<8x128xf32>
    %370 = vector.extract_strided_slice %361 {offsets = [0, 128], sizes = [8, 128], strides = [1, 1]} : vector<8x512xf32> to vector<8x128xf32>
    %cst_219 = arith.constant 5.000000e-01 : f32
    %371 = vector.broadcast %cst_219 : f32 to vector<8x128xf32>
    %372 = arith.mulf %371, %370 : vector<8x128xf32>
    %373 = math.tanh %372 : vector<8x128xf32>
    %cst_220 = arith.constant 1.000000e+00 : f32
    %374 = vector.broadcast %cst_220 : f32 to vector<8x128xf32>
    %375 = arith.addf %373, %374 : vector<8x128xf32>
    %cst_221 = arith.constant 5.000000e-01 : f32
    %376 = vector.broadcast %cst_221 : f32 to vector<8x128xf32>
    %377 = arith.mulf %376, %375 : vector<8x128xf32>
    %378 = vector.extract_strided_slice %361 {offsets = [0, 256], sizes = [8, 128], strides = [1, 1]} : vector<8x512xf32> to vector<8x128xf32>
    %379 = math.tanh %378 : vector<8x128xf32>
    %380 = vector.extract_strided_slice %361 {offsets = [0, 384], sizes = [8, 128], strides = [1, 1]} : vector<8x512xf32> to vector<8x128xf32>
    %cst_222 = arith.constant 5.000000e-01 : f32
    %381 = vector.broadcast %cst_222 : f32 to vector<8x128xf32>
    %382 = arith.mulf %381, %380 : vector<8x128xf32>
    %383 = math.tanh %382 : vector<8x128xf32>
    %cst_223 = arith.constant 1.000000e+00 : f32
    %384 = vector.broadcast %cst_223 : f32 to vector<8x128xf32>
    %385 = arith.addf %383, %384 : vector<8x128xf32>
    %cst_224 = arith.constant 5.000000e-01 : f32
    %386 = vector.broadcast %cst_224 : f32 to vector<8x128xf32>
    %387 = arith.mulf %386, %385 : vector<8x128xf32>
    %c0_225 = arith.constant 0 : index
    %c0_226 = arith.constant 0 : index
    %388 = vector.load %arg12[%c0_225, %c0_226] : memref<8x128xf32, #tpu.memory_space<vmem>>, vector<8x128xf32>
    %389 = arith.mulf %377, %388 : vector<8x128xf32>
    %390 = arith.mulf %369, %379 : vector<8x128xf32>
    %391 = arith.addf %389, %390 : vector<8x128xf32>
    %392 = math.tanh %391 : vector<8x128xf32>
    %393 = arith.mulf %387, %392 : vector<8x128xf32>
    %c0_227 = arith.constant 0 : index
    %c0_228 = arith.constant 0 : index
    %394 = vector.load %arg12[%c0_227, %c0_228] : memref<8x128xf32, #tpu.memory_space<vmem>>, vector<8x128xf32>
    tpu.vector_store %arg12[%c0_227, %c0_228], %391 {strides = array<i32>} : memref<8x128xf32, #tpu.memory_space<vmem>>, vector<8x128xf32>,
    %395 = arith.truncf %393 : vector<8x128xf32> to vector<8x128xbf16>
    %c0_229 = arith.constant 0 : index
    %c128_230 = arith.constant 128 : index
    %396 = vector.load %arg10[%c0_229, %c128_230] : memref<8x256xbf16, #tpu.memory_space<vmem>>, vector<8x128xbf16>
    tpu.vector_store %arg10[%c0_229, %c128_230], %395 {strides = array<i32>} : memref<8x256xbf16, #tpu.memory_space<vmem>>, vector<8x128xbf16>,
    %397 = vector.broadcast %305 : i32 to vector<8x1xi32>
    %398 = arith.cmpi eq, %3, %397 : vector<8x1xi32>
    %c0_231 = arith.constant 0 : index
    %c0_232 = arith.constant 0 : index
    %399 = vector.load %arg13[%c0_231, %c0_232] : memref<8x128xbf16, #tpu.memory_space<vmem>>, vector<8x128xbf16>
    %400 = vector.shape_cast %398 : vector<8x1xi1> to vector<8x1xi1>
    %401 = vector.broadcast %400 : vector<8x1xi1> to vector<8x128xi1>
    %402 = arith.select %401, %395, %399 : vector<8x128xi1>, vector<8x128xbf16>
    %c0_233 = arith.constant 0 : index
    %c0_234 = arith.constant 0 : index
    %403 = vector.load %arg13[%c0_233, %c0_234] : memref<8x128xbf16, #tpu.memory_space<vmem>>, vector<8x128xbf16>
    tpu.vector_store %arg13[%c0_233, %c0_234], %402 {strides = array<i32>} : memref<8x128xbf16, #tpu.memory_space<vmem>>, vector<8x128xbf16>,
    %c4_i32 = arith.constant 4 : i32
    %c8_i32_235 = arith.constant 8 : i32
    %404 = arith.muli %arg1, %c8_i32_235 : i32
    %405 = arith.addi %404, %c4_i32 : i32
    %406 = arith.index_cast %c4_i32 : i32 to index
    %c0_236 = arith.constant 0 : index
    %c0_237 = arith.constant 0 : index
    %407 = vector.load %arg3[%406, %c0_236, %c0_237] : memref<8x8x128xbf16, #tpu.memory_space<vmem>>, vector<1x8x128xbf16>
    %408 = vector.shape_cast %407 : vector<1x8x128xbf16> to vector<8x128xbf16>
    %c0_238 = arith.constant 0 : index
    %c0_239 = arith.constant 0 : index
    %409 = vector.load %arg9[%c0_238, %c0_239] : memref<8x256xbf16, #tpu.memory_space<vmem>>, vector<8x128xbf16>
    tpu.vector_store %arg9[%c0_238, %c0_239], %408 {strides = array<i32>} : memref<8x256xbf16, #tpu.memory_space<vmem>>, vector<8x128xbf16>,
    %c0_240 = arith.constant 0 : index
    %c0_241 = arith.constant 0 : index
    %410 = vector.load %arg9[%c0_240, %c0_241] : memref<8x256xbf16, #tpu.memory_space<vmem>>, vector<8x256xbf16>
    %c0_242 = arith.constant 0 : index
    %c0_243 = arith.constant 0 : index
    %c0_244 = arith.constant 0 : index
    %411 = vector.load %arg4[%c0_242, %c0_243, %c0_244] : memref<2x256x512xbf16, #tpu.memory_space<vmem>>, vector<1x256x512xbf16>
    %412 = vector.shape_cast %411 : vector<1x256x512xbf16> to vector<256x512xbf16>
    %cst_245 = arith.constant dense<0.000000e+00> : vector<8x512xf32>
    %413 = tpu.matmul %410, %412, %cst_245 {dimension_numbers = #tpu.dot_dimension_numbers<[1], [0], [0], [1], [0, 0, 1, 1], [], []>} : vector<8x256xbf16>, vector<256x512xbf16>, vector<8x512xf32> -> vector<8x512xf32>
    %c0_246 = arith.constant 0 : index
    %c0_247 = arith.constant 0 : index
    %c0_248 = arith.constant 0 : index
    %414 = vector.load %arg5[%c0_246, %c0_247, %c0_248] : memref<2x1x512xf32, #tpu.memory_space<vmem>>, vector<1x1x512xf32>
    %415 = vector.shape_cast %414 : vector<1x1x512xf32> to vector<1x512xf32>
    %416 = vector.broadcast %415 : vector<1x512xf32> to vector<8x512xf32>
    %417 = arith.addf %413, %416 : vector<8x512xf32>
    %418 = vector.extract_strided_slice %417 {offsets = [0, 0], sizes = [8, 128], strides = [1, 1]} : vector<8x512xf32> to vector<8x128xf32>
    %cst_249 = arith.constant 5.000000e-01 : f32
    %419 = vector.broadcast %cst_249 : f32 to vector<8x128xf32>
    %420 = arith.mulf %419, %418 : vector<8x128xf32>
    %421 = math.tanh %420 : vector<8x128xf32>
    %cst_250 = arith.constant 1.000000e+00 : f32
    %422 = vector.broadcast %cst_250 : f32 to vector<8x128xf32>
    %423 = arith.addf %421, %422 : vector<8x128xf32>
    %cst_251 = arith.constant 5.000000e-01 : f32
    %424 = vector.broadcast %cst_251 : f32 to vector<8x128xf32>
    %425 = arith.mulf %424, %423 : vector<8x128xf32>
    %426 = vector.extract_strided_slice %417 {offsets = [0, 128], sizes = [8, 128], strides = [1, 1]} : vector<8x512xf32> to vector<8x128xf32>
    %cst_252 = arith.constant 5.000000e-01 : f32
    %427 = vector.broadcast %cst_252 : f32 to vector<8x128xf32>
    %428 = arith.mulf %427, %426 : vector<8x128xf32>
    %429 = math.tanh %428 : vector<8x128xf32>
    %cst_253 = arith.constant 1.000000e+00 : f32
    %430 = vector.broadcast %cst_253 : f32 to vector<8x128xf32>
    %431 = arith.addf %429, %430 : vector<8x128xf32>
    %cst_254 = arith.constant 5.000000e-01 : f32
    %432 = vector.broadcast %cst_254 : f32 to vector<8x128xf32>
    %433 = arith.mulf %432, %431 : vector<8x128xf32>
    %434 = vector.extract_strided_slice %417 {offsets = [0, 256], sizes = [8, 128], strides = [1, 1]} : vector<8x512xf32> to vector<8x128xf32>
    %435 = math.tanh %434 : vector<8x128xf32>
    %436 = vector.extract_strided_slice %417 {offsets = [0, 384], sizes = [8, 128], strides = [1, 1]} : vector<8x512xf32> to vector<8x128xf32>
    %cst_255 = arith.constant 5.000000e-01 : f32
    %437 = vector.broadcast %cst_255 : f32 to vector<8x128xf32>
    %438 = arith.mulf %437, %436 : vector<8x128xf32>
    %439 = math.tanh %438 : vector<8x128xf32>
    %cst_256 = arith.constant 1.000000e+00 : f32
    %440 = vector.broadcast %cst_256 : f32 to vector<8x128xf32>
    %441 = arith.addf %439, %440 : vector<8x128xf32>
    %cst_257 = arith.constant 5.000000e-01 : f32
    %442 = vector.broadcast %cst_257 : f32 to vector<8x128xf32>
    %443 = arith.mulf %442, %441 : vector<8x128xf32>
    %c0_258 = arith.constant 0 : index
    %c0_259 = arith.constant 0 : index
    %444 = vector.load %arg11[%c0_258, %c0_259] : memref<8x128xf32, #tpu.memory_space<vmem>>, vector<8x128xf32>
    %445 = arith.mulf %433, %444 : vector<8x128xf32>
    %446 = arith.mulf %425, %435 : vector<8x128xf32>
    %447 = arith.addf %445, %446 : vector<8x128xf32>
    %448 = math.tanh %447 : vector<8x128xf32>
    %449 = arith.mulf %443, %448 : vector<8x128xf32>
    %c0_260 = arith.constant 0 : index
    %c0_261 = arith.constant 0 : index
    %450 = vector.load %arg11[%c0_260, %c0_261] : memref<8x128xf32, #tpu.memory_space<vmem>>, vector<8x128xf32>
    tpu.vector_store %arg11[%c0_260, %c0_261], %447 {strides = array<i32>} : memref<8x128xf32, #tpu.memory_space<vmem>>, vector<8x128xf32>,
    %451 = arith.truncf %449 : vector<8x128xf32> to vector<8x128xbf16>
    %c0_262 = arith.constant 0 : index
    %c128_263 = arith.constant 128 : index
    %452 = vector.load %arg9[%c0_262, %c128_263] : memref<8x256xbf16, #tpu.memory_space<vmem>>, vector<8x128xbf16>
    tpu.vector_store %arg9[%c0_262, %c128_263], %451 {strides = array<i32>} : memref<8x256xbf16, #tpu.memory_space<vmem>>, vector<8x128xbf16>,
    %c0_264 = arith.constant 0 : index
    %c0_265 = arith.constant 0 : index
    %453 = vector.load %arg10[%c0_264, %c0_265] : memref<8x256xbf16, #tpu.memory_space<vmem>>, vector<8x128xbf16>
    tpu.vector_store %arg10[%c0_264, %c0_265], %451 {strides = array<i32>} : memref<8x256xbf16, #tpu.memory_space<vmem>>, vector<8x128xbf16>,
    %c0_266 = arith.constant 0 : index
    %c0_267 = arith.constant 0 : index
    %454 = vector.load %arg10[%c0_266, %c0_267] : memref<8x256xbf16, #tpu.memory_space<vmem>>, vector<8x256xbf16>
    %c1_268 = arith.constant 1 : index
    %c0_269 = arith.constant 0 : index
    %c0_270 = arith.constant 0 : index
    %455 = vector.load %arg4[%c1_268, %c0_269, %c0_270] : memref<2x256x512xbf16, #tpu.memory_space<vmem>>, vector<1x256x512xbf16>
    %456 = vector.shape_cast %455 : vector<1x256x512xbf16> to vector<256x512xbf16>
    %cst_271 = arith.constant dense<0.000000e+00> : vector<8x512xf32>
    %457 = tpu.matmul %454, %456, %cst_271 {dimension_numbers = #tpu.dot_dimension_numbers<[1], [0], [0], [1], [0, 0, 1, 1], [], []>} : vector<8x256xbf16>, vector<256x512xbf16>, vector<8x512xf32> -> vector<8x512xf32>
    %c1_272 = arith.constant 1 : index
    %c0_273 = arith.constant 0 : index
    %c0_274 = arith.constant 0 : index
    %458 = vector.load %arg5[%c1_272, %c0_273, %c0_274] : memref<2x1x512xf32, #tpu.memory_space<vmem>>, vector<1x1x512xf32>
    %459 = vector.shape_cast %458 : vector<1x1x512xf32> to vector<1x512xf32>
    %460 = vector.broadcast %459 : vector<1x512xf32> to vector<8x512xf32>
    %461 = arith.addf %457, %460 : vector<8x512xf32>
    %462 = vector.extract_strided_slice %461 {offsets = [0, 0], sizes = [8, 128], strides = [1, 1]} : vector<8x512xf32> to vector<8x128xf32>
    %cst_275 = arith.constant 5.000000e-01 : f32
    %463 = vector.broadcast %cst_275 : f32 to vector<8x128xf32>
    %464 = arith.mulf %463, %462 : vector<8x128xf32>
    %465 = math.tanh %464 : vector<8x128xf32>
    %cst_276 = arith.constant 1.000000e+00 : f32
    %466 = vector.broadcast %cst_276 : f32 to vector<8x128xf32>
    %467 = arith.addf %465, %466 : vector<8x128xf32>
    %cst_277 = arith.constant 5.000000e-01 : f32
    %468 = vector.broadcast %cst_277 : f32 to vector<8x128xf32>
    %469 = arith.mulf %468, %467 : vector<8x128xf32>
    %470 = vector.extract_strided_slice %461 {offsets = [0, 128], sizes = [8, 128], strides = [1, 1]} : vector<8x512xf32> to vector<8x128xf32>
    %cst_278 = arith.constant 5.000000e-01 : f32
    %471 = vector.broadcast %cst_278 : f32 to vector<8x128xf32>
    %472 = arith.mulf %471, %470 : vector<8x128xf32>
    %473 = math.tanh %472 : vector<8x128xf32>
    %cst_279 = arith.constant 1.000000e+00 : f32
    %474 = vector.broadcast %cst_279 : f32 to vector<8x128xf32>
    %475 = arith.addf %473, %474 : vector<8x128xf32>
    %cst_280 = arith.constant 5.000000e-01 : f32
    %476 = vector.broadcast %cst_280 : f32 to vector<8x128xf32>
    %477 = arith.mulf %476, %475 : vector<8x128xf32>
    %478 = vector.extract_strided_slice %461 {offsets = [0, 256], sizes = [8, 128], strides = [1, 1]} : vector<8x512xf32> to vector<8x128xf32>
    %479 = math.tanh %478 : vector<8x128xf32>
    %480 = vector.extract_strided_slice %461 {offsets = [0, 384], sizes = [8, 128], strides = [1, 1]} : vector<8x512xf32> to vector<8x128xf32>
    %cst_281 = arith.constant 5.000000e-01 : f32
    %481 = vector.broadcast %cst_281 : f32 to vector<8x128xf32>
    %482 = arith.mulf %481, %480 : vector<8x128xf32>
    %483 = math.tanh %482 : vector<8x128xf32>
    %cst_282 = arith.constant 1.000000e+00 : f32
    %484 = vector.broadcast %cst_282 : f32 to vector<8x128xf32>
    %485 = arith.addf %483, %484 : vector<8x128xf32>
    %cst_283 = arith.constant 5.000000e-01 : f32
    %486 = vector.broadcast %cst_283 : f32 to vector<8x128xf32>
    %487 = arith.mulf %486, %485 : vector<8x128xf32>
    %c0_284 = arith.constant 0 : index
    %c0_285 = arith.constant 0 : index
    %488 = vector.load %arg12[%c0_284, %c0_285] : memref<8x128xf32, #tpu.memory_space<vmem>>, vector<8x128xf32>
    %489 = arith.mulf %477, %488 : vector<8x128xf32>
    %490 = arith.mulf %469, %479 : vector<8x128xf32>
    %491 = arith.addf %489, %490 : vector<8x128xf32>
    %492 = math.tanh %491 : vector<8x128xf32>
    %493 = arith.mulf %487, %492 : vector<8x128xf32>
    %c0_286 = arith.constant 0 : index
    %c0_287 = arith.constant 0 : index
    %494 = vector.load %arg12[%c0_286, %c0_287] : memref<8x128xf32, #tpu.memory_space<vmem>>, vector<8x128xf32>
    tpu.vector_store %arg12[%c0_286, %c0_287], %491 {strides = array<i32>} : memref<8x128xf32, #tpu.memory_space<vmem>>, vector<8x128xf32>,
    %495 = arith.truncf %493 : vector<8x128xf32> to vector<8x128xbf16>
    %c0_288 = arith.constant 0 : index
    %c128_289 = arith.constant 128 : index
    %496 = vector.load %arg10[%c0_288, %c128_289] : memref<8x256xbf16, #tpu.memory_space<vmem>>, vector<8x128xbf16>
    tpu.vector_store %arg10[%c0_288, %c128_289], %495 {strides = array<i32>} : memref<8x256xbf16, #tpu.memory_space<vmem>>, vector<8x128xbf16>,
    %497 = vector.broadcast %405 : i32 to vector<8x1xi32>
    %498 = arith.cmpi eq, %3, %497 : vector<8x1xi32>
    %c0_290 = arith.constant 0 : index
    %c0_291 = arith.constant 0 : index
    %499 = vector.load %arg13[%c0_290, %c0_291] : memref<8x128xbf16, #tpu.memory_space<vmem>>, vector<8x128xbf16>
    %500 = vector.shape_cast %498 : vector<8x1xi1> to vector<8x1xi1>
    %501 = vector.broadcast %500 : vector<8x1xi1> to vector<8x128xi1>
    %502 = arith.select %501, %495, %499 : vector<8x128xi1>, vector<8x128xbf16>
    %c0_292 = arith.constant 0 : index
    %c0_293 = arith.constant 0 : index
    %503 = vector.load %arg13[%c0_292, %c0_293] : memref<8x128xbf16, #tpu.memory_space<vmem>>, vector<8x128xbf16>
    tpu.vector_store %arg13[%c0_292, %c0_293], %502 {strides = array<i32>} : memref<8x128xbf16, #tpu.memory_space<vmem>>, vector<8x128xbf16>,
    %c5_i32 = arith.constant 5 : i32
    %c8_i32_294 = arith.constant 8 : i32
    %504 = arith.muli %arg1, %c8_i32_294 : i32
    %505 = arith.addi %504, %c5_i32 : i32
    %506 = arith.index_cast %c5_i32 : i32 to index
    %c0_295 = arith.constant 0 : index
    %c0_296 = arith.constant 0 : index
    %507 = vector.load %arg3[%506, %c0_295, %c0_296] : memref<8x8x128xbf16, #tpu.memory_space<vmem>>, vector<1x8x128xbf16>
    %508 = vector.shape_cast %507 : vector<1x8x128xbf16> to vector<8x128xbf16>
    %c0_297 = arith.constant 0 : index
    %c0_298 = arith.constant 0 : index
    %509 = vector.load %arg9[%c0_297, %c0_298] : memref<8x256xbf16, #tpu.memory_space<vmem>>, vector<8x128xbf16>
    tpu.vector_store %arg9[%c0_297, %c0_298], %508 {strides = array<i32>} : memref<8x256xbf16, #tpu.memory_space<vmem>>, vector<8x128xbf16>,
    %c0_299 = arith.constant 0 : index
    %c0_300 = arith.constant 0 : index
    %510 = vector.load %arg9[%c0_299, %c0_300] : memref<8x256xbf16, #tpu.memory_space<vmem>>, vector<8x256xbf16>
    %c0_301 = arith.constant 0 : index
    %c0_302 = arith.constant 0 : index
    %c0_303 = arith.constant 0 : index
    %511 = vector.load %arg4[%c0_301, %c0_302, %c0_303] : memref<2x256x512xbf16, #tpu.memory_space<vmem>>, vector<1x256x512xbf16>
    %512 = vector.shape_cast %511 : vector<1x256x512xbf16> to vector<256x512xbf16>
    %cst_304 = arith.constant dense<0.000000e+00> : vector<8x512xf32>
    %513 = tpu.matmul %510, %512, %cst_304 {dimension_numbers = #tpu.dot_dimension_numbers<[1], [0], [0], [1], [0, 0, 1, 1], [], []>} : vector<8x256xbf16>, vector<256x512xbf16>, vector<8x512xf32> -> vector<8x512xf32>
    %c0_305 = arith.constant 0 : index
    %c0_306 = arith.constant 0 : index
    %c0_307 = arith.constant 0 : index
    %514 = vector.load %arg5[%c0_305, %c0_306, %c0_307] : memref<2x1x512xf32, #tpu.memory_space<vmem>>, vector<1x1x512xf32>
    %515 = vector.shape_cast %514 : vector<1x1x512xf32> to vector<1x512xf32>
    %516 = vector.broadcast %515 : vector<1x512xf32> to vector<8x512xf32>
    %517 = arith.addf %513, %516 : vector<8x512xf32>
    %518 = vector.extract_strided_slice %517 {offsets = [0, 0], sizes = [8, 128], strides = [1, 1]} : vector<8x512xf32> to vector<8x128xf32>
    %cst_308 = arith.constant 5.000000e-01 : f32
    %519 = vector.broadcast %cst_308 : f32 to vector<8x128xf32>
    %520 = arith.mulf %519, %518 : vector<8x128xf32>
    %521 = math.tanh %520 : vector<8x128xf32>
    %cst_309 = arith.constant 1.000000e+00 : f32
    %522 = vector.broadcast %cst_309 : f32 to vector<8x128xf32>
    %523 = arith.addf %521, %522 : vector<8x128xf32>
    %cst_310 = arith.constant 5.000000e-01 : f32
    %524 = vector.broadcast %cst_310 : f32 to vector<8x128xf32>
    %525 = arith.mulf %524, %523 : vector<8x128xf32>
    %526 = vector.extract_strided_slice %517 {offsets = [0, 128], sizes = [8, 128], strides = [1, 1]} : vector<8x512xf32> to vector<8x128xf32>
    %cst_311 = arith.constant 5.000000e-01 : f32
    %527 = vector.broadcast %cst_311 : f32 to vector<8x128xf32>
    %528 = arith.mulf %527, %526 : vector<8x128xf32>
    %529 = math.tanh %528 : vector<8x128xf32>
    %cst_312 = arith.constant 1.000000e+00 : f32
    %530 = vector.broadcast %cst_312 : f32 to vector<8x128xf32>
    %531 = arith.addf %529, %530 : vector<8x128xf32>
    %cst_313 = arith.constant 5.000000e-01 : f32
    %532 = vector.broadcast %cst_313 : f32 to vector<8x128xf32>
    %533 = arith.mulf %532, %531 : vector<8x128xf32>
    %534 = vector.extract_strided_slice %517 {offsets = [0, 256], sizes = [8, 128], strides = [1, 1]} : vector<8x512xf32> to vector<8x128xf32>
    %535 = math.tanh %534 : vector<8x128xf32>
    %536 = vector.extract_strided_slice %517 {offsets = [0, 384], sizes = [8, 128], strides = [1, 1]} : vector<8x512xf32> to vector<8x128xf32>
    %cst_314 = arith.constant 5.000000e-01 : f32
    %537 = vector.broadcast %cst_314 : f32 to vector<8x128xf32>
    %538 = arith.mulf %537, %536 : vector<8x128xf32>
    %539 = math.tanh %538 : vector<8x128xf32>
    %cst_315 = arith.constant 1.000000e+00 : f32
    %540 = vector.broadcast %cst_315 : f32 to vector<8x128xf32>
    %541 = arith.addf %539, %540 : vector<8x128xf32>
    %cst_316 = arith.constant 5.000000e-01 : f32
    %542 = vector.broadcast %cst_316 : f32 to vector<8x128xf32>
    %543 = arith.mulf %542, %541 : vector<8x128xf32>
    %c0_317 = arith.constant 0 : index
    %c0_318 = arith.constant 0 : index
    %544 = vector.load %arg11[%c0_317, %c0_318] : memref<8x128xf32, #tpu.memory_space<vmem>>, vector<8x128xf32>
    %545 = arith.mulf %533, %544 : vector<8x128xf32>
    %546 = arith.mulf %525, %535 : vector<8x128xf32>
    %547 = arith.addf %545, %546 : vector<8x128xf32>
    %548 = math.tanh %547 : vector<8x128xf32>
    %549 = arith.mulf %543, %548 : vector<8x128xf32>
    %c0_319 = arith.constant 0 : index
    %c0_320 = arith.constant 0 : index
    %550 = vector.load %arg11[%c0_319, %c0_320] : memref<8x128xf32, #tpu.memory_space<vmem>>, vector<8x128xf32>
    tpu.vector_store %arg11[%c0_319, %c0_320], %547 {strides = array<i32>} : memref<8x128xf32, #tpu.memory_space<vmem>>, vector<8x128xf32>,
    %551 = arith.truncf %549 : vector<8x128xf32> to vector<8x128xbf16>
    %c0_321 = arith.constant 0 : index
    %c128_322 = arith.constant 128 : index
    %552 = vector.load %arg9[%c0_321, %c128_322] : memref<8x256xbf16, #tpu.memory_space<vmem>>, vector<8x128xbf16>
    tpu.vector_store %arg9[%c0_321, %c128_322], %551 {strides = array<i32>} : memref<8x256xbf16, #tpu.memory_space<vmem>>, vector<8x128xbf16>,
    %c0_323 = arith.constant 0 : index
    %c0_324 = arith.constant 0 : index
    %553 = vector.load %arg10[%c0_323, %c0_324] : memref<8x256xbf16, #tpu.memory_space<vmem>>, vector<8x128xbf16>
    tpu.vector_store %arg10[%c0_323, %c0_324], %551 {strides = array<i32>} : memref<8x256xbf16, #tpu.memory_space<vmem>>, vector<8x128xbf16>,
    %c0_325 = arith.constant 0 : index
    %c0_326 = arith.constant 0 : index
    %554 = vector.load %arg10[%c0_325, %c0_326] : memref<8x256xbf16, #tpu.memory_space<vmem>>, vector<8x256xbf16>
    %c1_327 = arith.constant 1 : index
    %c0_328 = arith.constant 0 : index
    %c0_329 = arith.constant 0 : index
    %555 = vector.load %arg4[%c1_327, %c0_328, %c0_329] : memref<2x256x512xbf16, #tpu.memory_space<vmem>>, vector<1x256x512xbf16>
    %556 = vector.shape_cast %555 : vector<1x256x512xbf16> to vector<256x512xbf16>
    %cst_330 = arith.constant dense<0.000000e+00> : vector<8x512xf32>
    %557 = tpu.matmul %554, %556, %cst_330 {dimension_numbers = #tpu.dot_dimension_numbers<[1], [0], [0], [1], [0, 0, 1, 1], [], []>} : vector<8x256xbf16>, vector<256x512xbf16>, vector<8x512xf32> -> vector<8x512xf32>
    %c1_331 = arith.constant 1 : index
    %c0_332 = arith.constant 0 : index
    %c0_333 = arith.constant 0 : index
    %558 = vector.load %arg5[%c1_331, %c0_332, %c0_333] : memref<2x1x512xf32, #tpu.memory_space<vmem>>, vector<1x1x512xf32>
    %559 = vector.shape_cast %558 : vector<1x1x512xf32> to vector<1x512xf32>
    %560 = vector.broadcast %559 : vector<1x512xf32> to vector<8x512xf32>
    %561 = arith.addf %557, %560 : vector<8x512xf32>
    %562 = vector.extract_strided_slice %561 {offsets = [0, 0], sizes = [8, 128], strides = [1, 1]} : vector<8x512xf32> to vector<8x128xf32>
    %cst_334 = arith.constant 5.000000e-01 : f32
    %563 = vector.broadcast %cst_334 : f32 to vector<8x128xf32>
    %564 = arith.mulf %563, %562 : vector<8x128xf32>
    %565 = math.tanh %564 : vector<8x128xf32>
    %cst_335 = arith.constant 1.000000e+00 : f32
    %566 = vector.broadcast %cst_335 : f32 to vector<8x128xf32>
    %567 = arith.addf %565, %566 : vector<8x128xf32>
    %cst_336 = arith.constant 5.000000e-01 : f32
    %568 = vector.broadcast %cst_336 : f32 to vector<8x128xf32>
    %569 = arith.mulf %568, %567 : vector<8x128xf32>
    %570 = vector.extract_strided_slice %561 {offsets = [0, 128], sizes = [8, 128], strides = [1, 1]} : vector<8x512xf32> to vector<8x128xf32>
    %cst_337 = arith.constant 5.000000e-01 : f32
    %571 = vector.broadcast %cst_337 : f32 to vector<8x128xf32>
    %572 = arith.mulf %571, %570 : vector<8x128xf32>
    %573 = math.tanh %572 : vector<8x128xf32>
    %cst_338 = arith.constant 1.000000e+00 : f32
    %574 = vector.broadcast %cst_338 : f32 to vector<8x128xf32>
    %575 = arith.addf %573, %574 : vector<8x128xf32>
    %cst_339 = arith.constant 5.000000e-01 : f32
    %576 = vector.broadcast %cst_339 : f32 to vector<8x128xf32>
    %577 = arith.mulf %576, %575 : vector<8x128xf32>
    %578 = vector.extract_strided_slice %561 {offsets = [0, 256], sizes = [8, 128], strides = [1, 1]} : vector<8x512xf32> to vector<8x128xf32>
    %579 = math.tanh %578 : vector<8x128xf32>
    %580 = vector.extract_strided_slice %561 {offsets = [0, 384], sizes = [8, 128], strides = [1, 1]} : vector<8x512xf32> to vector<8x128xf32>
    %cst_340 = arith.constant 5.000000e-01 : f32
    %581 = vector.broadcast %cst_340 : f32 to vector<8x128xf32>
    %582 = arith.mulf %581, %580 : vector<8x128xf32>
    %583 = math.tanh %582 : vector<8x128xf32>
    %cst_341 = arith.constant 1.000000e+00 : f32
    %584 = vector.broadcast %cst_341 : f32 to vector<8x128xf32>
    %585 = arith.addf %583, %584 : vector<8x128xf32>
    %cst_342 = arith.constant 5.000000e-01 : f32
    %586 = vector.broadcast %cst_342 : f32 to vector<8x128xf32>
    %587 = arith.mulf %586, %585 : vector<8x128xf32>
    %c0_343 = arith.constant 0 : index
    %c0_344 = arith.constant 0 : index
    %588 = vector.load %arg12[%c0_343, %c0_344] : memref<8x128xf32, #tpu.memory_space<vmem>>, vector<8x128xf32>
    %589 = arith.mulf %577, %588 : vector<8x128xf32>
    %590 = arith.mulf %569, %579 : vector<8x128xf32>
    %591 = arith.addf %589, %590 : vector<8x128xf32>
    %592 = math.tanh %591 : vector<8x128xf32>
    %593 = arith.mulf %587, %592 : vector<8x128xf32>
    %c0_345 = arith.constant 0 : index
    %c0_346 = arith.constant 0 : index
    %594 = vector.load %arg12[%c0_345, %c0_346] : memref<8x128xf32, #tpu.memory_space<vmem>>, vector<8x128xf32>
    tpu.vector_store %arg12[%c0_345, %c0_346], %591 {strides = array<i32>} : memref<8x128xf32, #tpu.memory_space<vmem>>, vector<8x128xf32>,
    %595 = arith.truncf %593 : vector<8x128xf32> to vector<8x128xbf16>
    %c0_347 = arith.constant 0 : index
    %c128_348 = arith.constant 128 : index
    %596 = vector.load %arg10[%c0_347, %c128_348] : memref<8x256xbf16, #tpu.memory_space<vmem>>, vector<8x128xbf16>
    tpu.vector_store %arg10[%c0_347, %c128_348], %595 {strides = array<i32>} : memref<8x256xbf16, #tpu.memory_space<vmem>>, vector<8x128xbf16>,
    %597 = vector.broadcast %505 : i32 to vector<8x1xi32>
    %598 = arith.cmpi eq, %3, %597 : vector<8x1xi32>
    %c0_349 = arith.constant 0 : index
    %c0_350 = arith.constant 0 : index
    %599 = vector.load %arg13[%c0_349, %c0_350] : memref<8x128xbf16, #tpu.memory_space<vmem>>, vector<8x128xbf16>
    %600 = vector.shape_cast %598 : vector<8x1xi1> to vector<8x1xi1>
    %601 = vector.broadcast %600 : vector<8x1xi1> to vector<8x128xi1>
    %602 = arith.select %601, %595, %599 : vector<8x128xi1>, vector<8x128xbf16>
    %c0_351 = arith.constant 0 : index
    %c0_352 = arith.constant 0 : index
    %603 = vector.load %arg13[%c0_351, %c0_352] : memref<8x128xbf16, #tpu.memory_space<vmem>>, vector<8x128xbf16>
    tpu.vector_store %arg13[%c0_351, %c0_352], %602 {strides = array<i32>} : memref<8x128xbf16, #tpu.memory_space<vmem>>, vector<8x128xbf16>,
    %c6_i32 = arith.constant 6 : i32
    %c8_i32_353 = arith.constant 8 : i32
    %604 = arith.muli %arg1, %c8_i32_353 : i32
    %605 = arith.addi %604, %c6_i32 : i32
    %606 = arith.index_cast %c6_i32 : i32 to index
    %c0_354 = arith.constant 0 : index
    %c0_355 = arith.constant 0 : index
    %607 = vector.load %arg3[%606, %c0_354, %c0_355] : memref<8x8x128xbf16, #tpu.memory_space<vmem>>, vector<1x8x128xbf16>
    %608 = vector.shape_cast %607 : vector<1x8x128xbf16> to vector<8x128xbf16>
    %c0_356 = arith.constant 0 : index
    %c0_357 = arith.constant 0 : index
    %609 = vector.load %arg9[%c0_356, %c0_357] : memref<8x256xbf16, #tpu.memory_space<vmem>>, vector<8x128xbf16>
    tpu.vector_store %arg9[%c0_356, %c0_357], %608 {strides = array<i32>} : memref<8x256xbf16, #tpu.memory_space<vmem>>, vector<8x128xbf16>,
    %c0_358 = arith.constant 0 : index
    %c0_359 = arith.constant 0 : index
    %610 = vector.load %arg9[%c0_358, %c0_359] : memref<8x256xbf16, #tpu.memory_space<vmem>>, vector<8x256xbf16>
    %c0_360 = arith.constant 0 : index
    %c0_361 = arith.constant 0 : index
    %c0_362 = arith.constant 0 : index
    %611 = vector.load %arg4[%c0_360, %c0_361, %c0_362] : memref<2x256x512xbf16, #tpu.memory_space<vmem>>, vector<1x256x512xbf16>
    %612 = vector.shape_cast %611 : vector<1x256x512xbf16> to vector<256x512xbf16>
    %cst_363 = arith.constant dense<0.000000e+00> : vector<8x512xf32>
    %613 = tpu.matmul %610, %612, %cst_363 {dimension_numbers = #tpu.dot_dimension_numbers<[1], [0], [0], [1], [0, 0, 1, 1], [], []>} : vector<8x256xbf16>, vector<256x512xbf16>, vector<8x512xf32> -> vector<8x512xf32>
    %c0_364 = arith.constant 0 : index
    %c0_365 = arith.constant 0 : index
    %c0_366 = arith.constant 0 : index
    %614 = vector.load %arg5[%c0_364, %c0_365, %c0_366] : memref<2x1x512xf32, #tpu.memory_space<vmem>>, vector<1x1x512xf32>
    %615 = vector.shape_cast %614 : vector<1x1x512xf32> to vector<1x512xf32>
    %616 = vector.broadcast %615 : vector<1x512xf32> to vector<8x512xf32>
    %617 = arith.addf %613, %616 : vector<8x512xf32>
    %618 = vector.extract_strided_slice %617 {offsets = [0, 0], sizes = [8, 128], strides = [1, 1]} : vector<8x512xf32> to vector<8x128xf32>
    %cst_367 = arith.constant 5.000000e-01 : f32
    %619 = vector.broadcast %cst_367 : f32 to vector<8x128xf32>
    %620 = arith.mulf %619, %618 : vector<8x128xf32>
    %621 = math.tanh %620 : vector<8x128xf32>
    %cst_368 = arith.constant 1.000000e+00 : f32
    %622 = vector.broadcast %cst_368 : f32 to vector<8x128xf32>
    %623 = arith.addf %621, %622 : vector<8x128xf32>
    %cst_369 = arith.constant 5.000000e-01 : f32
    %624 = vector.broadcast %cst_369 : f32 to vector<8x128xf32>
    %625 = arith.mulf %624, %623 : vector<8x128xf32>
    %626 = vector.extract_strided_slice %617 {offsets = [0, 128], sizes = [8, 128], strides = [1, 1]} : vector<8x512xf32> to vector<8x128xf32>
    %cst_370 = arith.constant 5.000000e-01 : f32
    %627 = vector.broadcast %cst_370 : f32 to vector<8x128xf32>
    %628 = arith.mulf %627, %626 : vector<8x128xf32>
    %629 = math.tanh %628 : vector<8x128xf32>
    %cst_371 = arith.constant 1.000000e+00 : f32
    %630 = vector.broadcast %cst_371 : f32 to vector<8x128xf32>
    %631 = arith.addf %629, %630 : vector<8x128xf32>
    %cst_372 = arith.constant 5.000000e-01 : f32
    %632 = vector.broadcast %cst_372 : f32 to vector<8x128xf32>
    %633 = arith.mulf %632, %631 : vector<8x128xf32>
    %634 = vector.extract_strided_slice %617 {offsets = [0, 256], sizes = [8, 128], strides = [1, 1]} : vector<8x512xf32> to vector<8x128xf32>
    %635 = math.tanh %634 : vector<8x128xf32>
    %636 = vector.extract_strided_slice %617 {offsets = [0, 384], sizes = [8, 128], strides = [1, 1]} : vector<8x512xf32> to vector<8x128xf32>
    %cst_373 = arith.constant 5.000000e-01 : f32
    %637 = vector.broadcast %cst_373 : f32 to vector<8x128xf32>
    %638 = arith.mulf %637, %636 : vector<8x128xf32>
    %639 = math.tanh %638 : vector<8x128xf32>
    %cst_374 = arith.constant 1.000000e+00 : f32
    %640 = vector.broadcast %cst_374 : f32 to vector<8x128xf32>
    %641 = arith.addf %639, %640 : vector<8x128xf32>
    %cst_375 = arith.constant 5.000000e-01 : f32
    %642 = vector.broadcast %cst_375 : f32 to vector<8x128xf32>
    %643 = arith.mulf %642, %641 : vector<8x128xf32>
    %c0_376 = arith.constant 0 : index
    %c0_377 = arith.constant 0 : index
    %644 = vector.load %arg11[%c0_376, %c0_377] : memref<8x128xf32, #tpu.memory_space<vmem>>, vector<8x128xf32>
    %645 = arith.mulf %633, %644 : vector<8x128xf32>
    %646 = arith.mulf %625, %635 : vector<8x128xf32>
    %647 = arith.addf %645, %646 : vector<8x128xf32>
    %648 = math.tanh %647 : vector<8x128xf32>
    %649 = arith.mulf %643, %648 : vector<8x128xf32>
    %c0_378 = arith.constant 0 : index
    %c0_379 = arith.constant 0 : index
    %650 = vector.load %arg11[%c0_378, %c0_379] : memref<8x128xf32, #tpu.memory_space<vmem>>, vector<8x128xf32>
    tpu.vector_store %arg11[%c0_378, %c0_379], %647 {strides = array<i32>} : memref<8x128xf32, #tpu.memory_space<vmem>>, vector<8x128xf32>,
    %651 = arith.truncf %649 : vector<8x128xf32> to vector<8x128xbf16>
    %c0_380 = arith.constant 0 : index
    %c128_381 = arith.constant 128 : index
    %652 = vector.load %arg9[%c0_380, %c128_381] : memref<8x256xbf16, #tpu.memory_space<vmem>>, vector<8x128xbf16>
    tpu.vector_store %arg9[%c0_380, %c128_381], %651 {strides = array<i32>} : memref<8x256xbf16, #tpu.memory_space<vmem>>, vector<8x128xbf16>,
    %c0_382 = arith.constant 0 : index
    %c0_383 = arith.constant 0 : index
    %653 = vector.load %arg10[%c0_382, %c0_383] : memref<8x256xbf16, #tpu.memory_space<vmem>>, vector<8x128xbf16>
    tpu.vector_store %arg10[%c0_382, %c0_383], %651 {strides = array<i32>} : memref<8x256xbf16, #tpu.memory_space<vmem>>, vector<8x128xbf16>,
    %c0_384 = arith.constant 0 : index
    %c0_385 = arith.constant 0 : index
    %654 = vector.load %arg10[%c0_384, %c0_385] : memref<8x256xbf16, #tpu.memory_space<vmem>>, vector<8x256xbf16>
    %c1_386 = arith.constant 1 : index
    %c0_387 = arith.constant 0 : index
    %c0_388 = arith.constant 0 : index
    %655 = vector.load %arg4[%c1_386, %c0_387, %c0_388] : memref<2x256x512xbf16, #tpu.memory_space<vmem>>, vector<1x256x512xbf16>
    %656 = vector.shape_cast %655 : vector<1x256x512xbf16> to vector<256x512xbf16>
    %cst_389 = arith.constant dense<0.000000e+00> : vector<8x512xf32>
    %657 = tpu.matmul %654, %656, %cst_389 {dimension_numbers = #tpu.dot_dimension_numbers<[1], [0], [0], [1], [0, 0, 1, 1], [], []>} : vector<8x256xbf16>, vector<256x512xbf16>, vector<8x512xf32> -> vector<8x512xf32>
    %c1_390 = arith.constant 1 : index
    %c0_391 = arith.constant 0 : index
    %c0_392 = arith.constant 0 : index
    %658 = vector.load %arg5[%c1_390, %c0_391, %c0_392] : memref<2x1x512xf32, #tpu.memory_space<vmem>>, vector<1x1x512xf32>
    %659 = vector.shape_cast %658 : vector<1x1x512xf32> to vector<1x512xf32>
    %660 = vector.broadcast %659 : vector<1x512xf32> to vector<8x512xf32>
    %661 = arith.addf %657, %660 : vector<8x512xf32>
    %662 = vector.extract_strided_slice %661 {offsets = [0, 0], sizes = [8, 128], strides = [1, 1]} : vector<8x512xf32> to vector<8x128xf32>
    %cst_393 = arith.constant 5.000000e-01 : f32
    %663 = vector.broadcast %cst_393 : f32 to vector<8x128xf32>
    %664 = arith.mulf %663, %662 : vector<8x128xf32>
    %665 = math.tanh %664 : vector<8x128xf32>
    %cst_394 = arith.constant 1.000000e+00 : f32
    %666 = vector.broadcast %cst_394 : f32 to vector<8x128xf32>
    %667 = arith.addf %665, %666 : vector<8x128xf32>
    %cst_395 = arith.constant 5.000000e-01 : f32
    %668 = vector.broadcast %cst_395 : f32 to vector<8x128xf32>
    %669 = arith.mulf %668, %667 : vector<8x128xf32>
    %670 = vector.extract_strided_slice %661 {offsets = [0, 128], sizes = [8, 128], strides = [1, 1]} : vector<8x512xf32> to vector<8x128xf32>
    %cst_396 = arith.constant 5.000000e-01 : f32
    %671 = vector.broadcast %cst_396 : f32 to vector<8x128xf32>
    %672 = arith.mulf %671, %670 : vector<8x128xf32>
    %673 = math.tanh %672 : vector<8x128xf32>
    %cst_397 = arith.constant 1.000000e+00 : f32
    %674 = vector.broadcast %cst_397 : f32 to vector<8x128xf32>
    %675 = arith.addf %673, %674 : vector<8x128xf32>
    %cst_398 = arith.constant 5.000000e-01 : f32
    %676 = vector.broadcast %cst_398 : f32 to vector<8x128xf32>
    %677 = arith.mulf %676, %675 : vector<8x128xf32>
    %678 = vector.extract_strided_slice %661 {offsets = [0, 256], sizes = [8, 128], strides = [1, 1]} : vector<8x512xf32> to vector<8x128xf32>
    %679 = math.tanh %678 : vector<8x128xf32>
    %680 = vector.extract_strided_slice %661 {offsets = [0, 384], sizes = [8, 128], strides = [1, 1]} : vector<8x512xf32> to vector<8x128xf32>
    %cst_399 = arith.constant 5.000000e-01 : f32
    %681 = vector.broadcast %cst_399 : f32 to vector<8x128xf32>
    %682 = arith.mulf %681, %680 : vector<8x128xf32>
    %683 = math.tanh %682 : vector<8x128xf32>
    %cst_400 = arith.constant 1.000000e+00 : f32
    %684 = vector.broadcast %cst_400 : f32 to vector<8x128xf32>
    %685 = arith.addf %683, %684 : vector<8x128xf32>
    %cst_401 = arith.constant 5.000000e-01 : f32
    %686 = vector.broadcast %cst_401 : f32 to vector<8x128xf32>
    %687 = arith.mulf %686, %685 : vector<8x128xf32>
    %c0_402 = arith.constant 0 : index
    %c0_403 = arith.constant 0 : index
    %688 = vector.load %arg12[%c0_402, %c0_403] : memref<8x128xf32, #tpu.memory_space<vmem>>, vector<8x128xf32>
    %689 = arith.mulf %677, %688 : vector<8x128xf32>
    %690 = arith.mulf %669, %679 : vector<8x128xf32>
    %691 = arith.addf %689, %690 : vector<8x128xf32>
    %692 = math.tanh %691 : vector<8x128xf32>
    %693 = arith.mulf %687, %692 : vector<8x128xf32>
    %c0_404 = arith.constant 0 : index
    %c0_405 = arith.constant 0 : index
    %694 = vector.load %arg12[%c0_404, %c0_405] : memref<8x128xf32, #tpu.memory_space<vmem>>, vector<8x128xf32>
    tpu.vector_store %arg12[%c0_404, %c0_405], %691 {strides = array<i32>} : memref<8x128xf32, #tpu.memory_space<vmem>>, vector<8x128xf32>,
    %695 = arith.truncf %693 : vector<8x128xf32> to vector<8x128xbf16>
    %c0_406 = arith.constant 0 : index
    %c128_407 = arith.constant 128 : index
    %696 = vector.load %arg10[%c0_406, %c128_407] : memref<8x256xbf16, #tpu.memory_space<vmem>>, vector<8x128xbf16>
    tpu.vector_store %arg10[%c0_406, %c128_407], %695 {strides = array<i32>} : memref<8x256xbf16, #tpu.memory_space<vmem>>, vector<8x128xbf16>,
    %697 = vector.broadcast %605 : i32 to vector<8x1xi32>
    %698 = arith.cmpi eq, %3, %697 : vector<8x1xi32>
    %c0_408 = arith.constant 0 : index
    %c0_409 = arith.constant 0 : index
    %699 = vector.load %arg13[%c0_408, %c0_409] : memref<8x128xbf16, #tpu.memory_space<vmem>>, vector<8x128xbf16>
    %700 = vector.shape_cast %698 : vector<8x1xi1> to vector<8x1xi1>
    %701 = vector.broadcast %700 : vector<8x1xi1> to vector<8x128xi1>
    %702 = arith.select %701, %695, %699 : vector<8x128xi1>, vector<8x128xbf16>
    %c0_410 = arith.constant 0 : index
    %c0_411 = arith.constant 0 : index
    %703 = vector.load %arg13[%c0_410, %c0_411] : memref<8x128xbf16, #tpu.memory_space<vmem>>, vector<8x128xbf16>
    tpu.vector_store %arg13[%c0_410, %c0_411], %702 {strides = array<i32>} : memref<8x128xbf16, #tpu.memory_space<vmem>>, vector<8x128xbf16>,
    %c7_i32 = arith.constant 7 : i32
    %c8_i32_412 = arith.constant 8 : i32
    %704 = arith.muli %arg1, %c8_i32_412 : i32
    %705 = arith.addi %704, %c7_i32 : i32
    %706 = arith.index_cast %c7_i32 : i32 to index
    %c0_413 = arith.constant 0 : index
    %c0_414 = arith.constant 0 : index
    %707 = vector.load %arg3[%706, %c0_413, %c0_414] : memref<8x8x128xbf16, #tpu.memory_space<vmem>>, vector<1x8x128xbf16>
    %708 = vector.shape_cast %707 : vector<1x8x128xbf16> to vector<8x128xbf16>
    %c0_415 = arith.constant 0 : index
    %c0_416 = arith.constant 0 : index
    %709 = vector.load %arg9[%c0_415, %c0_416] : memref<8x256xbf16, #tpu.memory_space<vmem>>, vector<8x128xbf16>
    tpu.vector_store %arg9[%c0_415, %c0_416], %708 {strides = array<i32>} : memref<8x256xbf16, #tpu.memory_space<vmem>>, vector<8x128xbf16>,
    %c0_417 = arith.constant 0 : index
    %c0_418 = arith.constant 0 : index
    %710 = vector.load %arg9[%c0_417, %c0_418] : memref<8x256xbf16, #tpu.memory_space<vmem>>, vector<8x256xbf16>
    %c0_419 = arith.constant 0 : index
    %c0_420 = arith.constant 0 : index
    %c0_421 = arith.constant 0 : index
    %711 = vector.load %arg4[%c0_419, %c0_420, %c0_421] : memref<2x256x512xbf16, #tpu.memory_space<vmem>>, vector<1x256x512xbf16>
    %712 = vector.shape_cast %711 : vector<1x256x512xbf16> to vector<256x512xbf16>
    %cst_422 = arith.constant dense<0.000000e+00> : vector<8x512xf32>
    %713 = tpu.matmul %710, %712, %cst_422 {dimension_numbers = #tpu.dot_dimension_numbers<[1], [0], [0], [1], [0, 0, 1, 1], [], []>} : vector<8x256xbf16>, vector<256x512xbf16>, vector<8x512xf32> -> vector<8x512xf32>
    %c0_423 = arith.constant 0 : index
    %c0_424 = arith.constant 0 : index
    %c0_425 = arith.constant 0 : index
    %714 = vector.load %arg5[%c0_423, %c0_424, %c0_425] : memref<2x1x512xf32, #tpu.memory_space<vmem>>, vector<1x1x512xf32>
    %715 = vector.shape_cast %714 : vector<1x1x512xf32> to vector<1x512xf32>
    %716 = vector.broadcast %715 : vector<1x512xf32> to vector<8x512xf32>
    %717 = arith.addf %713, %716 : vector<8x512xf32>
    %718 = vector.extract_strided_slice %717 {offsets = [0, 0], sizes = [8, 128], strides = [1, 1]} : vector<8x512xf32> to vector<8x128xf32>
    %cst_426 = arith.constant 5.000000e-01 : f32
    %719 = vector.broadcast %cst_426 : f32 to vector<8x128xf32>
    %720 = arith.mulf %719, %718 : vector<8x128xf32>
    %721 = math.tanh %720 : vector<8x128xf32>
    %cst_427 = arith.constant 1.000000e+00 : f32
    %722 = vector.broadcast %cst_427 : f32 to vector<8x128xf32>
    %723 = arith.addf %721, %722 : vector<8x128xf32>
    %cst_428 = arith.constant 5.000000e-01 : f32
    %724 = vector.broadcast %cst_428 : f32 to vector<8x128xf32>
    %725 = arith.mulf %724, %723 : vector<8x128xf32>
    %726 = vector.extract_strided_slice %717 {offsets = [0, 128], sizes = [8, 128], strides = [1, 1]} : vector<8x512xf32> to vector<8x128xf32>
    %cst_429 = arith.constant 5.000000e-01 : f32
    %727 = vector.broadcast %cst_429 : f32 to vector<8x128xf32>
    %728 = arith.mulf %727, %726 : vector<8x128xf32>
    %729 = math.tanh %728 : vector<8x128xf32>
    %cst_430 = arith.constant 1.000000e+00 : f32
    %730 = vector.broadcast %cst_430 : f32 to vector<8x128xf32>
    %731 = arith.addf %729, %730 : vector<8x128xf32>
    %cst_431 = arith.constant 5.000000e-01 : f32
    %732 = vector.broadcast %cst_431 : f32 to vector<8x128xf32>
    %733 = arith.mulf %732, %731 : vector<8x128xf32>
    %734 = vector.extract_strided_slice %717 {offsets = [0, 256], sizes = [8, 128], strides = [1, 1]} : vector<8x512xf32> to vector<8x128xf32>
    %735 = math.tanh %734 : vector<8x128xf32>
    %736 = vector.extract_strided_slice %717 {offsets = [0, 384], sizes = [8, 128], strides = [1, 1]} : vector<8x512xf32> to vector<8x128xf32>
    %cst_432 = arith.constant 5.000000e-01 : f32
    %737 = vector.broadcast %cst_432 : f32 to vector<8x128xf32>
    %738 = arith.mulf %737, %736 : vector<8x128xf32>
    %739 = math.tanh %738 : vector<8x128xf32>
    %cst_433 = arith.constant 1.000000e+00 : f32
    %740 = vector.broadcast %cst_433 : f32 to vector<8x128xf32>
    %741 = arith.addf %739, %740 : vector<8x128xf32>
    %cst_434 = arith.constant 5.000000e-01 : f32
    %742 = vector.broadcast %cst_434 : f32 to vector<8x128xf32>
    %743 = arith.mulf %742, %741 : vector<8x128xf32>
    %c0_435 = arith.constant 0 : index
    %c0_436 = arith.constant 0 : index
    %744 = vector.load %arg11[%c0_435, %c0_436] : memref<8x128xf32, #tpu.memory_space<vmem>>, vector<8x128xf32>
    %745 = arith.mulf %733, %744 : vector<8x128xf32>
    %746 = arith.mulf %725, %735 : vector<8x128xf32>
    %747 = arith.addf %745, %746 : vector<8x128xf32>
    %748 = math.tanh %747 : vector<8x128xf32>
    %749 = arith.mulf %743, %748 : vector<8x128xf32>
    %c0_437 = arith.constant 0 : index
    %c0_438 = arith.constant 0 : index
    %750 = vector.load %arg11[%c0_437, %c0_438] : memref<8x128xf32, #tpu.memory_space<vmem>>, vector<8x128xf32>
    tpu.vector_store %arg11[%c0_437, %c0_438], %747 {strides = array<i32>} : memref<8x128xf32, #tpu.memory_space<vmem>>, vector<8x128xf32>,
    %751 = arith.truncf %749 : vector<8x128xf32> to vector<8x128xbf16>
    %c0_439 = arith.constant 0 : index
    %c128_440 = arith.constant 128 : index
    %752 = vector.load %arg9[%c0_439, %c128_440] : memref<8x256xbf16, #tpu.memory_space<vmem>>, vector<8x128xbf16>
    tpu.vector_store %arg9[%c0_439, %c128_440], %751 {strides = array<i32>} : memref<8x256xbf16, #tpu.memory_space<vmem>>, vector<8x128xbf16>,
    %c0_441 = arith.constant 0 : index
    %c0_442 = arith.constant 0 : index
    %753 = vector.load %arg10[%c0_441, %c0_442] : memref<8x256xbf16, #tpu.memory_space<vmem>>, vector<8x128xbf16>
    tpu.vector_store %arg10[%c0_441, %c0_442], %751 {strides = array<i32>} : memref<8x256xbf16, #tpu.memory_space<vmem>>, vector<8x128xbf16>,
    %c0_443 = arith.constant 0 : index
    %c0_444 = arith.constant 0 : index
    %754 = vector.load %arg10[%c0_443, %c0_444] : memref<8x256xbf16, #tpu.memory_space<vmem>>, vector<8x256xbf16>
    %c1_445 = arith.constant 1 : index
    %c0_446 = arith.constant 0 : index
    %c0_447 = arith.constant 0 : index
    %755 = vector.load %arg4[%c1_445, %c0_446, %c0_447] : memref<2x256x512xbf16, #tpu.memory_space<vmem>>, vector<1x256x512xbf16>
    %756 = vector.shape_cast %755 : vector<1x256x512xbf16> to vector<256x512xbf16>
    %cst_448 = arith.constant dense<0.000000e+00> : vector<8x512xf32>
    %757 = tpu.matmul %754, %756, %cst_448 {dimension_numbers = #tpu.dot_dimension_numbers<[1], [0], [0], [1], [0, 0, 1, 1], [], []>} : vector<8x256xbf16>, vector<256x512xbf16>, vector<8x512xf32> -> vector<8x512xf32>
    %c1_449 = arith.constant 1 : index
    %c0_450 = arith.constant 0 : index
    %c0_451 = arith.constant 0 : index
    %758 = vector.load %arg5[%c1_449, %c0_450, %c0_451] : memref<2x1x512xf32, #tpu.memory_space<vmem>>, vector<1x1x512xf32>
    %759 = vector.shape_cast %758 : vector<1x1x512xf32> to vector<1x512xf32>
    %760 = vector.broadcast %759 : vector<1x512xf32> to vector<8x512xf32>
    %761 = arith.addf %757, %760 : vector<8x512xf32>
    %762 = vector.extract_strided_slice %761 {offsets = [0, 0], sizes = [8, 128], strides = [1, 1]} : vector<8x512xf32> to vector<8x128xf32>
    %cst_452 = arith.constant 5.000000e-01 : f32
    %763 = vector.broadcast %cst_452 : f32 to vector<8x128xf32>
    %764 = arith.mulf %763, %762 : vector<8x128xf32>
    %765 = math.tanh %764 : vector<8x128xf32>
    %cst_453 = arith.constant 1.000000e+00 : f32
    %766 = vector.broadcast %cst_453 : f32 to vector<8x128xf32>
    %767 = arith.addf %765, %766 : vector<8x128xf32>
    %cst_454 = arith.constant 5.000000e-01 : f32
    %768 = vector.broadcast %cst_454 : f32 to vector<8x128xf32>
    %769 = arith.mulf %768, %767 : vector<8x128xf32>
    %770 = vector.extract_strided_slice %761 {offsets = [0, 128], sizes = [8, 128], strides = [1, 1]} : vector<8x512xf32> to vector<8x128xf32>
    %cst_455 = arith.constant 5.000000e-01 : f32
    %771 = vector.broadcast %cst_455 : f32 to vector<8x128xf32>
    %772 = arith.mulf %771, %770 : vector<8x128xf32>
    %773 = math.tanh %772 : vector<8x128xf32>
    %cst_456 = arith.constant 1.000000e+00 : f32
    %774 = vector.broadcast %cst_456 : f32 to vector<8x128xf32>
    %775 = arith.addf %773, %774 : vector<8x128xf32>
    %cst_457 = arith.constant 5.000000e-01 : f32
    %776 = vector.broadcast %cst_457 : f32 to vector<8x128xf32>
    %777 = arith.mulf %776, %775 : vector<8x128xf32>
    %778 = vector.extract_strided_slice %761 {offsets = [0, 256], sizes = [8, 128], strides = [1, 1]} : vector<8x512xf32> to vector<8x128xf32>
    %779 = math.tanh %778 : vector<8x128xf32>
    %780 = vector.extract_strided_slice %761 {offsets = [0, 384], sizes = [8, 128], strides = [1, 1]} : vector<8x512xf32> to vector<8x128xf32>
    %cst_458 = arith.constant 5.000000e-01 : f32
    %781 = vector.broadcast %cst_458 : f32 to vector<8x128xf32>
    %782 = arith.mulf %781, %780 : vector<8x128xf32>
    %783 = math.tanh %782 : vector<8x128xf32>
    %cst_459 = arith.constant 1.000000e+00 : f32
    %784 = vector.broadcast %cst_459 : f32 to vector<8x128xf32>
    %785 = arith.addf %783, %784 : vector<8x128xf32>
    %cst_460 = arith.constant 5.000000e-01 : f32
    %786 = vector.broadcast %cst_460 : f32 to vector<8x128xf32>
    %787 = arith.mulf %786, %785 : vector<8x128xf32>
    %c0_461 = arith.constant 0 : index
    %c0_462 = arith.constant 0 : index
    %788 = vector.load %arg12[%c0_461, %c0_462] : memref<8x128xf32, #tpu.memory_space<vmem>>, vector<8x128xf32>
    %789 = arith.mulf %777, %788 : vector<8x128xf32>
    %790 = arith.mulf %769, %779 : vector<8x128xf32>
    %791 = arith.addf %789, %790 : vector<8x128xf32>
    %792 = math.tanh %791 : vector<8x128xf32>
    %793 = arith.mulf %787, %792 : vector<8x128xf32>
    %c0_463 = arith.constant 0 : index
    %c0_464 = arith.constant 0 : index
    %794 = vector.load %arg12[%c0_463, %c0_464] : memref<8x128xf32, #tpu.memory_space<vmem>>, vector<8x128xf32>
    tpu.vector_store %arg12[%c0_463, %c0_464], %791 {strides = array<i32>} : memref<8x128xf32, #tpu.memory_space<vmem>>, vector<8x128xf32>,
    %795 = arith.truncf %793 : vector<8x128xf32> to vector<8x128xbf16>
    %c0_465 = arith.constant 0 : index
    %c128_466 = arith.constant 128 : index
    %796 = vector.load %arg10[%c0_465, %c128_466] : memref<8x256xbf16, #tpu.memory_space<vmem>>, vector<8x128xbf16>
    tpu.vector_store %arg10[%c0_465, %c128_466], %795 {strides = array<i32>} : memref<8x256xbf16, #tpu.memory_space<vmem>>, vector<8x128xbf16>,
    %797 = vector.broadcast %705 : i32 to vector<8x1xi32>
    %798 = arith.cmpi eq, %3, %797 : vector<8x1xi32>
    %c0_467 = arith.constant 0 : index
    %c0_468 = arith.constant 0 : index
    %799 = vector.load %arg13[%c0_467, %c0_468] : memref<8x128xbf16, #tpu.memory_space<vmem>>, vector<8x128xbf16>
    %800 = vector.shape_cast %798 : vector<8x1xi1> to vector<8x1xi1>
    %801 = vector.broadcast %800 : vector<8x1xi1> to vector<8x128xi1>
    %802 = arith.select %801, %795, %799 : vector<8x128xi1>, vector<8x128xbf16>
    %c0_469 = arith.constant 0 : index
    %c0_470 = arith.constant 0 : index
    %803 = vector.load %arg13[%c0_469, %c0_470] : memref<8x128xbf16, #tpu.memory_space<vmem>>, vector<8x128xbf16>
    tpu.vector_store %arg13[%c0_469, %c0_470], %802 {strides = array<i32>} : memref<8x128xbf16, #tpu.memory_space<vmem>>, vector<8x128xbf16>,
    %c8_i32_471 = arith.constant 8 : i32
    %c0_i32_472 = arith.constant 0 : i32
    %804 = arith.cmpi eq, %arg1, %c0_i32_472 : i32
    %805 = arith.extui %804 : i1 to i32
    %c0_i32_473 = arith.constant 0 : i32
    %806 = arith.cmpi ne, %805, %c0_i32_473 : i32
    scf.if %806 {
      %c0_474 = arith.constant 0 : index
      %c0_475 = arith.constant 0 : index
      %807 = vector.load %arg13[%c0_474, %c0_475] : memref<8x128xbf16, #tpu.memory_space<vmem>>, vector<8x128xbf16>
      %c0_476 = arith.constant 0 : index
      %c0_477 = arith.constant 0 : index
      %808 = vector.load %arg6[%c0_476, %c0_477] : memref<128x128xbf16, #tpu.memory_space<vmem>>, vector<128x128xbf16>
      %cst_478 = arith.constant dense<0.000000e+00> : vector<8x128xf32>
      %809 = tpu.matmul %807, %808, %cst_478 {dimension_numbers = #tpu.dot_dimension_numbers<[1], [0], [0], [1], [0, 0, 1, 1], [], []>} : vector<8x128xbf16>, vector<128x128xbf16>, vector<8x128xf32> -> vector<8x128xf32>
      %c0_479 = arith.constant 0 : index
      %c0_480 = arith.constant 0 : index
      %810 = vector.load %arg7[%c0_479, %c0_480] : memref<1x128xf32, #tpu.memory_space<vmem>>, vector<1x128xf32>
      %811 = vector.broadcast %810 : vector<1x128xf32> to vector<8x128xf32>
      %812 = arith.addf %809, %811 : vector<8x128xf32>
      %c0_481 = arith.constant 0 : index
      %c0_482 = arith.constant 0 : index
      %813 = vector.load %arg8[%c0_481, %c0_482] : memref<8x128xf32, #tpu.memory_space<vmem>>, vector<8x128xf32>
      tpu.vector_store %arg8[%c0_481, %c0_482], %812 {strides = array<i32>} : memref<8x128xf32, #tpu.memory_space<vmem>>, vector<8x128xf32>,
    } else {
    }
    return
  }
  func.func @transform_0(%arg0: i32, %arg1: i32) -> (i32, i32) {
    %c0_i32 = arith.constant 0 : i32
    %c0_i32_0 = arith.constant 0 : i32
    return %arg0, %c0_i32 : i32, i32
  }
  func.func @transform_1(%arg0: i32, %arg1: i32) -> (i32, i32, i32) {
    %c0_i32 = arith.constant 0 : i32
    %c0_i32_0 = arith.constant 0 : i32
    return %arg1, %arg0, %c0_i32 : i32, i32, i32
  }
  func.func @transform_2(%arg0: i32, %arg1: i32) -> (i32, i32, i32) {
    %c0_i32 = arith.constant 0 : i32
    %c0_i32_0 = arith.constant 0 : i32
    %c0_i32_1 = arith.constant 0 : i32
    %c0_i32_2 = arith.constant 0 : i32
    return %c0_i32, %c0_i32_0, %c0_i32_1 : i32, i32, i32
  }
  func.func @transform_3(%arg0: i32, %arg1: i32) -> (i32, i32, i32) {
    %c0_i32 = arith.constant 0 : i32
    %c0_i32_0 = arith.constant 0 : i32
    %c0_i32_1 = arith.constant 0 : i32
    %c0_i32_2 = arith.constant 0 : i32
    return %c0_i32, %c0_i32_0, %c0_i32_1 : i32, i32, i32
  }
  func.func @transform_4(%arg0: i32, %arg1: i32) -> (i32, i32) {
    %c0_i32 = arith.constant 0 : i32
    %c0_i32_0 = arith.constant 0 : i32
    %c0_i32_1 = arith.constant 0 : i32
    return %c0_i32, %c0_i32_0 : i32, i32
  }
  func.func @transform_5(%arg0: i32, %arg1: i32) -> (i32, i32) {
    %c0_i32 = arith.constant 0 : i32
    %c0_i32_0 = arith.constant 0 : i32
    %c0_i32_1 = arith.constant 0 : i32
    return %c0_i32, %c0_i32_0 : i32, i32
  }
  func.func @transform_6(%arg0: i32, %arg1: i32) -> (i32, i32) {
    %c0_i32 = arith.constant 0 : i32
    %c0_i32_0 = arith.constant 0 : i32
    return %arg0, %c0_i32 : i32, i32
  }
}

</mosaic_0001>

<bundles_post_ra>
// kernel: tpu_custom_call.1
= control target key start
LH: loop header
LB: loop body
LE: loop exit
PB: predicated region body
PF: predicated region fallthrough
CT: control target
= control target key end

     0   :  { %11 = vsyncpa [#allocation8], 0  ;;  %s14795_s0 = inlined_call_operand.vmem [shape: s32[8,1], index: 0, kind: input, shape index: {}]   ;;  %s14796_s1 = inlined_call_operand.hbm [shape: bf16[8,8,128], index: 1, kind: input, shape index: {}]   ;;  %s14797_s2 = inlined_call_operand.hbm [shape: bf16[2,256,512], index: 2, kind: input, shape index: {}]   ;;  %s14798_s3 = inlined_call_operand.vmem [shape: f32[2,1,512], index: 3, kind: input, shape index: {}]   ;;  %s14799_s4 = inlined_call_operand.hbm [shape: bf16[128,128], index: 4, kind: input, shape index: {}]   ;;  %s14800_s5 = inlined_call_operand.vmem [shape: f32[1,128], index: 5, kind: input, shape index: {}]   ;;  %s14801_s6 = inlined_call_operand.hbm [shape: f32[8,128], index: 6, kind: output, shape index: {}]  }
   0x1   :  { %12 = vsyncpa [#allocation11], 0  ;;  %s33_s23 = sshll.u32 %s14797_s2, 4  ;;  %s34_s23 = int_to_ptr.hbm [resolvable:$true] %s33_s23 }
   0x2   :  { %13 = vsyncpa [#allocation9], 0  ;;  %s14212_s24 = smov [#allocation10]   ;;  %s20_s28 = sshll.u32 %s14796_s1, 4  ;;  %s21_s28 = int_to_ptr.hbm [resolvable:$true] %s20_s28 }
   0x3   :  { %s35_s25 = sshll.u32 %s14212_s24, 4  ;;  %s14213_s29 = smov 256   ;;  %s36_s25 = int_to_ptr.vmem [resolvable:$true] %s35_s25 }
   0x4   :  { %s14214_s30 = smov 16   ;;  %s14215_s7 = smov [#allocation7]  }
   0x5   :  { %41 = dma.hbm_to_vmem [thread:$0]  %s34_s23, 16384, %s36_s25, [#allocation11], %s14213_s29, %s14213_s29, %s14214_s30  }
   0x6   :  { %s22_s8 = sshll.u32 %s14215_s7, 4  ;;  %s14216_s9 = smov 64   ;;  %s23_s8 = int_to_ptr.vmem [resolvable:$true] %s22_s8 }
   0x7   :  { %s14217_s10 = smov 4   ;;  %s48_s12 = sshll.u32 %s14799_s4, 4  ;;  %s49_s12 = int_to_ptr.hbm [resolvable:$true] %s48_s12 }
   0x8   :  { %28 = dma.hbm_to_vmem [thread:$0]  %s21_s28, 512, %s23_s8, [#allocation8], %s14216_s9, %s14216_s9, %s14217_s10  }
   0x9   :  { %s14218_s13 = smov [#allocation12]  }
   0xa   :  { %s50_s14 = sshll.u32 %s14218_s13, 4  ;;  %s51_s14 = int_to_ptr.vmem [resolvable:$true] %s50_s14 }
   0xb   :  { %56 = dma.hbm_to_vmem [thread:$0]  %s49_s12, 1024, %s51_s14, [#allocation11], %s14216_s9, %s14216_s9, %s14217_s10  }
   0xc   :  { %14206 = dma.done.wait [#allocation8], 512  }
   0xd   :  { %14207 = vsyncadd [#allocation8], 4294966784 }
   0xe   :  { %14208 = dma.done.wait [#allocation11], 17408  }
   0xf   :  { %14209 = vsyncadd [#allocation11], 4294949888  ;;  %v14219_v0 = vmov 0   ;;  %v8877_v1 = vld [vmem:[#allocation10 + $0xe0] sm:$0xf]  ;;  %s14220_s8 = smov [#allocation13]  }
  0x10   :  { %76 = vst [vmem:[#allocation2] sm:$0xff] %v14219_v0  ;;  %13940 = vset.pattern.permute.xlu0 %v14219_v0  ;;  %13941 = vset.pattern.permute.xlu1 %v14219_v0  ;;  %v12929_v2 = vld [vmem:[#allocation10 + $0xec] sm:$0xf0]  ;;  %v9005_v3 = vld [vmem:[#allocation10 + $0x1e0] sm:$0xf]  ;;  %s8750_s9 = sshll.u32 %s14220_s8, 4  ;;  %s8751_s9 = int_to_ptr.vmem [resolvable:$true] %s8750_s9 }
  0x11   :  { %78 = vst [vmem:[#allocation3] sm:$0xff] %v14219_v0  ;;  %13942 = vset.pattern.permute.xlu2 %v14219_v0  ;;  %v8878_v4 = vor.u32 %v12929_v2, %v8877_v1  ;;  %v12961_v5 = vld [vmem:[#allocation10 + $0x1ec] sm:$0xf0]  ;;  %v12927_v6 = vld [vmem:[#allocation10 + $0xe4] sm:$0xf]  ;;  %s8752_s11 = sshll.u32 %s14801_s6, 4  ;;  %s8753_s11 = int_to_ptr.hbm [resolvable:$true] %s8752_s11 }
  0x12   :  { %80 = vst [vmem:[#allocation6] sm:$0xf] %v14219_v0  ;;  %v8879_v7 = vld [vmem:[#allocation10 + $0xf0] sm:$0xf0]  ;;  %v9006_v8 = vor.u32 %v12961_v5, %v9005_v3  ;;  %v12959_v10 = vld [vmem:[#allocation10 + $0x1e4] sm:$0xf] }
  0x13   :  { %v8882_v9 = vor.u32 %v12927_v6, %v8879_v7  ;;  %v9007_v11 = vld [vmem:[#allocation10 + $0x1f0] sm:$0xf0]  ;;  %v8861_v12 = vld [vmem:[#allocation10 + $0xc0] sm:$0xf]  ;;  %487 = vmatpush.bf16.msra.mxu0 %v8878_v4  ;;  %v12925_v14 = vld [vmem:[#allocation10 + $0xcc] sm:$0xf0] }
  0x14   :  { %v9010_v13 = vor.u32 %v12959_v10, %v9007_v11  ;;  %v8989_v15 = vld [vmem:[#allocation10 + $0x1c0] sm:$0xf]  ;;  %v12957_v16 = vld [vmem:[#allocation10 + $0x1cc] sm:$0xf0]  ;;  %500 = vmatpush.bf16.msra.mxu1 %v9006_v8  ;;  %v8862_v17 = vor.u32 %v12925_v14, %v8861_v12  ;;  %v12923_v19 = vld [vmem:[#allocation10 + $0xc4] sm:$0xf] }
  0x15   :  { %513 = vmatpush.bf16.msra.mxu2 %v8882_v9  ;;  %v8990_v18 = vor.u32 %v12957_v16, %v8989_v15  ;;  %v8863_v20 = vld [vmem:[#allocation10 + $0xd0] sm:$0xf0]  ;;  %v12955_v21 = vld [vmem:[#allocation10 + $0x1c4] sm:$0xf]  ;;  %v8845_v24 = vld [vmem:[#allocation10 + $0xa0] sm:$0xf] }
  0x16   :  { %526 = vmatpush.bf16.msra.mxu3 %v9010_v13  ;;  %v8866_v22 = vor.u32 %v12923_v19, %v8863_v20  ;;  %v8991_v23 = vld [vmem:[#allocation10 + $0x1d0] sm:$0xf0]  ;;  %v12921_v25 = vld [vmem:[#allocation10 + $0xac] sm:$0xf0]  ;;  %v8973_v27 = vld [vmem:[#allocation10 + $0x1a0] sm:$0xf] }
  0x17   :  { %v8994_v26 = vor.u32 %v12955_v21, %v8991_v23  ;;  %v12953_v28 = vld [vmem:[#allocation10 + $0x1ac] sm:$0xf0]  ;;  %v12919_v29 = vld [vmem:[#allocation10 + $0xa4] sm:$0xf]  ;;  %488 = vmatpush.bf16.msra.mxu0 %v8862_v17  ;;  %v8846_v30 = vor.u32 %v12921_v25, %v8845_v24  ;;  %v8847_v31 = vld [vmem:[#allocation10 + $0xb0] sm:$0xf0] }
  0x18   :  { %v12951_v32 = vld [vmem:[#allocation10 + $0x1a4] sm:$0xf]  ;;  %v8975_v33 = vld [vmem:[#allocation10 + $0x1b0] sm:$0xf0]  ;;  %501 = vmatpush.bf16.msra.mxu1 %v8990_v18  ;;  %v8974_v34 = vor.u32 %v12953_v28, %v8973_v27  ;;  %v8850_v35 = vor.u32 %v12919_v29, %v8847_v31  ;;  %v8829_v36 = vld [vmem:[#allocation10 + $0x80] sm:$0xf] }
  0x19   :  { %514 = vmatpush.bf16.msra.mxu2 %v8866_v22  ;;  %v12917_v37 = vld [vmem:[#allocation10 + $0x8c] sm:$0xf0]  ;;  %v8957_v38 = vld [vmem:[#allocation10 + $0x180] sm:$0xf]  ;;  %v8978_v39 = vor.u32 %v12951_v32, %v8975_v33  ;;  %v12915_v41 = vld [vmem:[#allocation10 + $0x84] sm:$0xf] }
  0x1a   :  { %527 = vmatpush.bf16.msra.mxu3 %v8994_v26  ;;  %v12949_v40 = vld [vmem:[#allocation10 + $0x18c] sm:$0xf0]  ;;  %v8831_v42 = vld [vmem:[#allocation10 + $0x90] sm:$0xf0]  ;;  %v12947_v43 = vld [vmem:[#allocation10 + $0x184] sm:$0xf]  ;;  %v8830_v45 = vor.u32 %v12917_v37, %v8829_v36 }
  0x1b   :  { %v8959_v44 = vld [vmem:[#allocation10 + $0x190] sm:$0xf0]  ;;  %489 = vmatpush.bf16.msra.mxu0 %v8846_v30  ;;  %v8958_v46 = vor.u32 %v12949_v40, %v8957_v38  ;;  %v8834_v47 = vor.u32 %v12915_v41, %v8831_v42  ;;  %v8813_v48 = vld [vmem:[#allocation10 + $0x60] sm:$0xf]  ;;  %v12913_v49 = vld [vmem:[#allocation10 + $0x6c] sm:$0xf0] }
  0x1c   :  { %502 = vmatpush.bf16.msra.mxu1 %v8974_v34  ;;  %v8941_v50 = vld [vmem:[#allocation10 + $0x160] sm:$0xf]  ;;  %v8962_v51 = vor.u32 %v12947_v43, %v8959_v44  ;;  %v12945_v52 = vld [vmem:[#allocation10 + $0x16c] sm:$0xf0]  ;;  %v12911_v53 = vld [vmem:[#allocation10 + $0x64] sm:$0xf]  ;;  %v8814_v57 = vor.u32 %v12913_v49, %v8813_v48 }
  0x1d   :  { %515 = vmatpush.bf16.msra.mxu2 %v8850_v35  ;;  %v8815_v54 = vld [vmem:[#allocation10 + $0x70] sm:$0xf0]  ;;  %v12943_v55 = vld [vmem:[#allocation10 + $0x164] sm:$0xf]  ;;  %v8942_v58 = vor.u32 %v12945_v52, %v8941_v50  ;;  %v8797_v60 = vld [vmem:[#allocation10 + $0x40] sm:$0xf] }
  0x1e   :  { %528 = vmatpush.bf16.msra.mxu3 %v8978_v39  ;;  %v8943_v56 = vld [vmem:[#allocation10 + $0x170] sm:$0xf0]  ;;  %v8818_v59 = vor.u32 %v12911_v53, %v8815_v54  ;;  %v12909_v61 = vld [vmem:[#allocation10 + $0x4c] sm:$0xf0]  ;;  %v8925_v62 = vld [vmem:[#allocation10 + $0x140] sm:$0xf] }
  0x1f   :  { %490 = vmatpush.bf16.msra.mxu0 %v8830_v45  ;;  %v8946_v63 = vor.u32 %v12943_v55, %v8943_v56  ;;  %v12941_v1 = vld [vmem:[#allocation10 + $0x14c] sm:$0xf0]  ;;  %v12907_v2 = vld [vmem:[#allocation10 + $0x44] sm:$0xf]  ;;  %v8799_v3 = vld [vmem:[#allocation10 + $0x50] sm:$0xf0]  ;;  %v8798_v6 = vor.u32 %v12909_v61, %v8797_v60 }
  0x20   :  { %503 = vmatpush.bf16.msra.mxu1 %v8958_v46  ;;  %v12939_v4 = vld [vmem:[#allocation10 + $0x144] sm:$0xf]  ;;  %v8927_v5 = vld [vmem:[#allocation10 + $0x150] sm:$0xf0]  ;;  %v8926_v7 = vor.u32 %v12941_v1, %v8925_v62  ;;  %v8802_v8 = vor.u32 %v12907_v2, %v8799_v3  ;;  %v8781_v9 = vld [vmem:[#allocation10 + $0x20] sm:$0xf] }
  0x21   :  { %516 = vmatpush.bf16.msra.mxu2 %v8834_v47  ;;  %v12905_v10 = vld [vmem:[#allocation10 + $0x2c] sm:$0xf0]  ;;  %v8909_v11 = vld [vmem:[#allocation10 + $0x120] sm:$0xf]  ;;  %v8930_v12 = vor.u32 %v12939_v4, %v8927_v5  ;;  %v12903_v14 = vld [vmem:[#allocation10 + $0x24] sm:$0xf] }
  0x22   :  { %529 = vmatpush.bf16.msra.mxu3 %v8962_v51  ;;  %v12937_v13 = vld [vmem:[#allocation10 + $0x12c] sm:$0xf0]  ;;  %v8783_v15 = vld [vmem:[#allocation10 + $0x30] sm:$0xf0]  ;;  %v12935_v16 = vld [vmem:[#allocation10 + $0x124] sm:$0xf]  ;;  %v8782_v19 = vor.u32 %v12905_v10, %v8781_v9 }
  0x23   :  { %491 = vmatpush.bf16.msra.mxu0 %v8814_v57  ;;  %v8911_v17 = vld [vmem:[#allocation10 + $0x130] sm:$0xf0]  ;;  %v8765_v18 = vld [vmem:[#allocation10] sm:$0xf]  ;;  %v12901_v20 = vld [vmem:[#allocation10 + $0xc] sm:$0xf0]  ;;  %v8910_v23 = vor.u32 %v12937_v13, %v8909_v11  ;;  %v8786_v24 = vor.u32 %v12903_v14, %v8783_v15 }
  0x24   :  { %504 = vmatpush.bf16.msra.mxu1 %v8942_v58  ;;  %v8893_v21 = vld [vmem:[#allocation10 + $0x100] sm:$0xf]  ;;  %v12933_v22 = vld [vmem:[#allocation10 + $0x10c] sm:$0xf0]  ;;  %v12899_v25 = vld [vmem:[#allocation10 + $0x4] sm:$0xf]  ;;  %v8914_v28 = vor.u32 %v12935_v16, %v8911_v17  ;;  %v8766_v35 = vor.u32 %v12901_v20, %v8765_v18 }
  0x25   :  { %517 = vmatpush.bf16.msra.mxu2 %v8818_v59  ;;  %v8767_v26 = vld [vmem:[#allocation10 + $0x10] sm:$0xf0]  ;;  %v12931_v27 = vld [vmem:[#allocation10 + $0x104] sm:$0xf]  ;;  %v8885_v30 = vld [vmem:[#allocation10 + $0xe8] sm:$0xf]  ;;  %v8894_v38 = vor.u32 %v12933_v22, %v8893_v21 }
  0x26   :  { %530 = vmatpush.bf16.msra.mxu3 %v8946_v63  ;;  %v8895_v29 = vld [vmem:[#allocation10 + $0x110] sm:$0xf0]  ;;  %v12930_v31 = vld [vmem:[#allocation10 + $0xf4] sm:$0xf0]  ;;  %v9013_v32 = vld [vmem:[#allocation10 + $0x1e8] sm:$0xf]  ;;  %v8770_v39 = vor.u32 %v12899_v25, %v8767_v26 }
  0x27   :  { %492 = vmatpush.bf16.msra.mxu0 %v8798_v6  ;;  %v12962_v33 = vld [vmem:[#allocation10 + $0x1f4] sm:$0xf0]  ;;  %v83_v34 = vld [vmem:[#allocation7] sm:$0xf]  ;;  %v12928_v36 = vld [vmem:[#allocation10 + $0xec] sm:$0xf]  ;;  %v8898_v42 = vor.u32 %v12931_v27, %v8895_v29  ;;  %v8886_v43 = vor.u32 %v12930_v31, %v8885_v30 }
  0x28   :  { %505 = vmatpush.bf16.msra.mxu1 %v8926_v7  ;;  %v8887_v37 = vld [vmem:[#allocation10 + $0xf8] sm:$0xf0]  ;;  %84 = vst [vmem:[#allocation2] sm:$0xf] %v83_v34  ;;  %v12960_v40 = vld [vmem:[#allocation10 + $0x1ec] sm:$0xf]  ;;  %v9014_v44 = vor.u32 %v12962_v33, %v9013_v32 }
  0x29   :  { %518 = vmatpush.bf16.msra.mxu2 %v8802_v8  ;;  %v9015_v41 = vld [vmem:[#allocation10 + $0x1f8] sm:$0xf0]  ;;  %v8890_v45 = vor.u32 %v12928_v36, %v8887_v37  ;;  %v8869_v46 = vld [vmem:[#allocation10 + $0xc8] sm:$0xf]  ;;  %v12926_v47 = vld [vmem:[#allocation10 + $0xd4] sm:$0xf0] }
  0x2a   :  { %531 = vmatpush.bf16.msra.mxu3 %v8930_v12  ;;  %v8997_v48 = vld [vmem:[#allocation10 + $0x1c8] sm:$0xf]  ;;  %v9018_v49 = vor.u32 %v12960_v40, %v9015_v41  ;;  %v12958_v50 = vld [vmem:[#allocation10 + $0x1d4] sm:$0xf0]  ;;  %v12924_v51 = vld [vmem:[#allocation10 + $0xcc] sm:$0xf]  ;;  %v8870_v55 = vor.u32 %v12926_v47, %v8869_v46 }
  0x2b   :  { %493 = vmatpush.bf16.msra.mxu0 %v8782_v19  ;;  %v8871_v52 = vld [vmem:[#allocation10 + $0xd8] sm:$0xf0]  ;;  %v12956_v53 = vld [vmem:[#allocation10 + $0x1cc] sm:$0xf]  ;;  %v8853_v56 = vld [vmem:[#allocation10 + $0xa8] sm:$0xf]  ;;  %v8998_v57 = vor.u32 %v12958_v50, %v8997_v48 }
  0x2c   :  { %506 = vmatpush.bf16.msra.mxu1 %v8910_v23  ;;  %v8999_v54 = vld [vmem:[#allocation10 + $0x1d8] sm:$0xf0]  ;;  %v8874_v58 = vor.u32 %v12924_v51, %v8871_v52  ;;  %v12922_v60 = vld [vmem:[#allocation10 + $0xb4] sm:$0xf0]  ;;  %v8981_v61 = vld [vmem:[#allocation10 + $0x1a8] sm:$0xf] }
  0x2d   :  { %519 = vmatpush.bf16.msra.mxu2 %v8786_v24  ;;  %v9002_v62 = vor.u32 %v12956_v53, %v8999_v54  ;;  %v12954_v1 = vld [vmem:[#allocation10 + $0x1b4] sm:$0xf0]  ;;  %v12920_v2 = vld [vmem:[#allocation10 + $0xac] sm:$0xf]  ;;  %v8855_v3 = vld [vmem:[#allocation10 + $0xb8] sm:$0xf0]  ;;  %v8854_v8 = vor.u32 %v12922_v60, %v8853_v56 }
  0x2e   :  { %532 = vmatpush.bf16.msra.mxu3 %v8914_v28  ;;  %v12952_v5 = vld [vmem:[#allocation10 + $0x1ac] sm:$0xf]  ;;  %v8983_v6 = vld [vmem:[#allocation10 + $0x1b8] sm:$0xf0]  ;;  %v8982_v10 = vor.u32 %v12954_v1, %v8981_v61  ;;  %v8858_v11 = vor.u32 %v12920_v2, %v8855_v3  ;;  %v8837_v12 = vld [vmem:[#allocation10 + $0x88] sm:$0xf] }
  0x2f   :  { %494 = vmatpush.bf16.msra.mxu0 %v8766_v35  ;;  %v85_v59 = vld [vmem:[#allocation2] sm:$0xff]  ;;  %v12918_v13 = vld [vmem:[#allocation10 + $0x94] sm:$0xf0]  ;;  %v8965_v14 = vld [vmem:[#allocation10 + $0x188] sm:$0xf]  ;;  %v8986_v15 = vor.u32 %v12952_v5, %v8983_v6 }
  0x30   :  { %507 = vmatpush.bf16.msra.mxu1 %v8894_v38  ;;  %v161_v63 = vunpack.c.l.b16 %v85_v59  ;;  %v162_v4 = vunpack.c.h.b16 %v85_v59  ;;  %v12950_v16 = vld [vmem:[#allocation10 + $0x194] sm:$0xf0]  ;;  %v12916_v17 = vld [vmem:[#allocation10 + $0x8c] sm:$0xf]  ;;  %v8839_v18 = vld [vmem:[#allocation10 + $0x98] sm:$0xf0]  ;;  %v8838_v21 = vor.u32 %v12918_v13, %v8837_v12 }
  0x31   :  { %520 = vmatpush.bf16.msra.mxu2 %v8770_v39  ;;  %v12948_v19 = vld [vmem:[#allocation10 + $0x18c] sm:$0xf]  ;;  %v8967_v20 = vld [vmem:[#allocation10 + $0x198] sm:$0xf0]  ;;  %v8966_v22 = vor.u32 %v12950_v16, %v8965_v14  ;;  %v8842_v23 = vor.u32 %v12916_v17, %v8839_v18  ;;  %v8821_v24 = vld [vmem:[#allocation10 + $0x68] sm:$0xf] }
  0x32   :  { %533 = vmatpush.bf16.msra.mxu3 %v8898_v42  ;;  %v14271_v7 = vpack.c.b16 %v161_v63, %v161_v63  ;;  %v14273_v9 = vpack.c.b16 %v162_v4, %v162_v4  ;;  %v12914_v25 = vld [vmem:[#allocation10 + $0x74] sm:$0xf0]  ;;  %v8949_v26 = vld [vmem:[#allocation10 + $0x168] sm:$0xf]  ;;  %v8970_v27 = vor.u32 %v12948_v19, %v8967_v20  ;;  %v12912_v29 = vld [vmem:[#allocation10 + $0x6c] sm:$0xf] }
  0x33   :  { %539 = vmatpush.bf16.msrb.mxu0 %v8886_v43  ;;  %v12946_v28 = vld [vmem:[#allocation10 + $0x174] sm:$0xf0]  ;;  %v8823_v30 = vld [vmem:[#allocation10 + $0x78] sm:$0xf0]  ;;  %v12944_v31 = vld [vmem:[#allocation10 + $0x16c] sm:$0xf]  ;;  %v8822_v33 = vor.u32 %v12914_v25, %v8821_v24 }
  0x34   :  { %552 = vmatpush.bf16.msrb.mxu1 %v9014_v44  ;;  %521 = vmatmul.bf16.vlgmr.msra.gmra.mxu2 %v14271_v7  ;;  %v8951_v32 = vld [vmem:[#allocation10 + $0x178] sm:$0xf0]  ;;  %v8950_v34 = vor.u32 %v12946_v28, %v8949_v26  ;;  %v8826_v35 = vor.u32 %v12912_v29, %v8823_v30  ;;  %v8805_v36 = vld [vmem:[#allocation10 + $0x48] sm:$0xf]  ;;  %v12910_v37 = vld [vmem:[#allocation10 + $0x54] sm:$0xf0] }
  0x35   :  { %565 = vmatpush.bf16.msrb.mxu2 %v8890_v45  ;;  %495 = vmatmul.bf16.vlgmr.msra.gmra.mxu0 %v14271_v7  ;;  %v8933_v38 = vld [vmem:[#allocation10 + $0x148] sm:$0xf]  ;;  %v8954_v39 = vor.u32 %v12944_v31, %v8951_v32  ;;  %v12942_v40 = vld [vmem:[#allocation10 + $0x154] sm:$0xf0]  ;;  %v12908_v41 = vld [vmem:[#allocation10 + $0x4c] sm:$0xf]  ;;  %v8806_v45 = vor.u32 %v12910_v37, %v8805_v36 }
  0x36   :  { %578 = vmatpush.bf16.msrb.mxu3 %v9018_v49  ;;  %508 = vmatmul.bf16.vlgmr.msra.gmra.mxu1 %v14273_v9  ;;  %v8807_v42 = vld [vmem:[#allocation10 + $0x58] sm:$0xf0]  ;;  %v12940_v43 = vld [vmem:[#allocation10 + $0x14c] sm:$0xf]  ;;  %v8934_v46 = vor.u32 %v12942_v40, %v8933_v38  ;;  %v8789_v48 = vld [vmem:[#allocation10 + $0x28] sm:$0xf] }
  0x37   :  { %540 = vmatpush.bf16.msrb.mxu0 %v8870_v55  ;;  %534 = vmatmul.bf16.vlgmr.msra.gmra.mxu3 %v14273_v9  ;;  %v8935_v44 = vld [vmem:[#allocation10 + $0x158] sm:$0xf0]  ;;  %v8810_v47 = vor.u32 %v12908_v41, %v8807_v42  ;;  %v12906_v49 = vld [vmem:[#allocation10 + $0x34] sm:$0xf0]  ;;  %v8917_v50 = vld [vmem:[#allocation10 + $0x128] sm:$0xf] }
  0x38   :  { %553 = vmatpush.bf16.msrb.mxu1 %v8998_v57  ;;  %v8938_v51 = vor.u32 %v12940_v43, %v8935_v44  ;;  %v12938_v52 = vld [vmem:[#allocation10 + $0x134] sm:$0xf0]  ;;  %v12904_v53 = vld [vmem:[#allocation10 + $0x2c] sm:$0xf]  ;;  %v8791_v54 = vld [vmem:[#allocation10 + $0x38] sm:$0xf0]  ;;  %v8790_v57 = vor.u32 %v12906_v49, %v8789_v48 }
  0x39   :  { %566 = vmatpush.bf16.msrb.mxu2 %v8874_v58  ;;  %v12936_v55 = vld [vmem:[#allocation10 + $0x12c] sm:$0xf]  ;;  %v8919_v56 = vld [vmem:[#allocation10 + $0x138] sm:$0xf0]  ;;  %v8918_v58 = vor.u32 %v12938_v52, %v8917_v50  ;;  %v8794_v59 = vor.u32 %v12904_v53, %v8791_v54  ;;  %v8773_v60 = vld [vmem:[#allocation10 + $0x8] sm:$0xf] }
  0x3a   :  { %579 = vmatpush.bf16.msrb.mxu3 %v9002_v62  ;;  %v12902_v61 = vld [vmem:[#allocation10 + $0x14] sm:$0xf0]  ;;  %v8901_v62 = vld [vmem:[#allocation10 + $0x108] sm:$0xf]  ;;  %v8922_v63 = vor.u32 %v12936_v55, %v8919_v56  ;;  %v12900_v2 = vld [vmem:[#allocation10 + $0xc] sm:$0xf] }
  0x3b   :  { %541 = vmatpush.bf16.msrb.mxu0 %v8854_v8  ;;  %v12934_v1 = vld [vmem:[#allocation10 + $0x114] sm:$0xf0]  ;;  %v8775_v3 = vld [vmem:[#allocation10 + $0x18] sm:$0xf0]  ;;  %v12932_v4 = vld [vmem:[#allocation10 + $0x10c] sm:$0xf]  ;;  %v8774_v6 = vor.u32 %v12902_v61, %v8773_v60 }
  0x3c   :  { %554 = vmatpush.bf16.msrb.mxu1 %v8982_v10  ;;  %v8903_v5 = vld [vmem:[#allocation10 + $0x118] sm:$0xf0]  ;;  %v8902_v8 = vor.u32 %v12934_v1, %v8901_v62  ;;  %v8778_v10 = vor.u32 %v12900_v2, %v8775_v3  ;;  %v9134_v12 = vld [vmem:[#allocation10 + $0x2e0] sm:$0xf]  ;;  %v12993_v13 = vld [vmem:[#allocation10 + $0x2ec] sm:$0xf0] }
  0x3d   :  { %567 = vmatpush.bf16.msrb.mxu2 %v8858_v11  ;;  %v8906_v11 = vor.u32 %v12932_v4, %v8903_v5  ;;  %v9262_v14 = vld [vmem:[#allocation10 + $0x3e0] sm:$0xf]  ;;  %v13025_v16 = vld [vmem:[#allocation10 + $0x3ec] sm:$0xf0]  ;;  %v12991_v17 = vld [vmem:[#allocation10 + $0x2e4] sm:$0xf] }
  0x3e   :  { %580 = vmatpush.bf16.msrb.mxu3 %v8986_v15  ;;  %v9135_v15 = vor.u32 %v12993_v13, %v9134_v12  ;;  %v9136_v18 = vld [vmem:[#allocation10 + $0x2f0] sm:$0xf0]  ;;  %v9263_v19 = vor.u32 %v13025_v16, %v9262_v14  ;;  %v9118_v24 = vld [vmem:[#allocation10 + $0x2c0] sm:$0xf]  ;;  %v12989_v25 = vld [vmem:[#allocation10 + $0x2cc] sm:$0xf0] }
  0x3f   :  { %542 = vmatpush.bf16.msrb.mxu0 %v8838_v21  ;;  %v9139_v20 = vor.u32 %v12991_v17, %v9136_v18  ;;  %v13023_v21 = vld [vmem:[#allocation10 + $0x3e4] sm:$0xf]  ;;  %v13021_v26 = vld [vmem:[#allocation10 + $0x3cc] sm:$0xf0]  ;;  %v9120_v28 = vld [vmem:[#allocation10 + $0x2d0] sm:$0xf0] }
  0x40   :  { %555 = vmatpush.bf16.msrb.mxu1 %v8966_v22  ;;  %v9264_v22 = vld [vmem:[#allocation10 + $0x3f0] sm:$0xf0]  ;;  %v13019_v31 = vld [vmem:[#allocation10 + $0x3c4] sm:$0xf]  ;;  %v9230_v36 = vld [vmem:[#allocation10 + $0x3a0] sm:$0xf] }
  0x41   :  { %568 = vmatpush.bf16.msrb.mxu2 %v8842_v23  ;;  %v9267_v23 = vor.u32 %v13023_v21, %v9264_v22  ;;  %v9248_v32 = vld [vmem:[#allocation10 + $0x3d0] sm:$0xf0]  ;;  %v13017_v38 = vld [vmem:[#allocation10 + $0x3ac] sm:$0xf0]  ;;  %v13015_v43 = vld [vmem:[#allocation10 + $0x3a4] sm:$0xf] }
  0x42   :  { %581 = vmatpush.bf16.msrb.mxu3 %v8970_v27  ;;  %v12987_v27 = vld [vmem:[#allocation10 + $0x2c4] sm:$0xf]  ;;  %v9104_v40 = vld [vmem:[#allocation10 + $0x2b0] sm:$0xf0]  ;;  %v9231_v41 = vor.u32 %v13017_v38, %v9230_v36  ;;  %v9214_v48 = vld [vmem:[#allocation10 + $0x380] sm:$0xf] }
  0x43   :  { %543 = vmatpush.bf16.msrb.mxu0 %v8822_v33  ;;  %v9123_v30 = vor.u32 %v12987_v27, %v9120_v28  ;;  %v9251_v33 = vor.u32 %v13019_v31, %v9248_v32  ;;  %v9232_v44 = vld [vmem:[#allocation10 + $0x3b0] sm:$0xf0]  ;;  %v13013_v50 = vld [vmem:[#allocation10 + $0x38c] sm:$0xf0]  ;;  %v13011_v55 = vld [vmem:[#allocation10 + $0x384] sm:$0xf] }
  0x44   :  { %556 = vmatpush.bf16.msrb.mxu1 %v8950_v34  ;;  %v9102_v34 = vld [vmem:[#allocation10 + $0x2a0] sm:$0xf]  ;;  %v9088_v52 = vld [vmem:[#allocation10 + $0x290] sm:$0xf0]  ;;  %v9215_v53 = vor.u32 %v13013_v50, %v9214_v48  ;;  %v13009_v62 = vld [vmem:[#allocation10 + $0x36c] sm:$0xf0] }
  0x45   :  { %569 = vmatpush.bf16.msrb.mxu2 %v8826_v35  ;;  %v12985_v35 = vld [vmem:[#allocation10 + $0x2ac] sm:$0xf0]  ;;  %v9216_v56 = vld [vmem:[#allocation10 + $0x390] sm:$0xf0]  ;;  %v9198_v60 = vld [vmem:[#allocation10 + $0x360] sm:$0xf] }
  0x46   :  { %582 = vmatpush.bf16.msrb.mxu3 %v8954_v39  ;;  %v9103_v37 = vor.u32 %v12985_v35, %v9102_v34  ;;  %v12983_v39 = vld [vmem:[#allocation10 + $0x2a4] sm:$0xf]  ;;  %v9072_v1 = vld [vmem:[#allocation10 + $0x270] sm:$0xf0]  ;;  %v9199_v2 = vor.u32 %v13009_v62, %v9198_v60  ;;  %v13005_v13 = vld [vmem:[#allocation10 + $0x34c] sm:$0xf0] }
  0x47   :  { %544 = vmatpush.bf16.msrb.mxu0 %v8806_v45  ;;  %v9107_v42 = vor.u32 %v12983_v39, %v9104_v40  ;;  %v9235_v45 = vor.u32 %v13015_v43, %v9232_v44  ;;  %v13007_v4 = vld [vmem:[#allocation10 + $0x364] sm:$0xf]  ;;  %v9200_v5 = vld [vmem:[#allocation10 + $0x370] sm:$0xf0]  ;;  %v9038_v22 = vld [vmem:[#allocation10 + $0x220] sm:$0xf] }
  0x48   :  { %557 = vmatpush.bf16.msrb.mxu1 %v8934_v46  ;;  %v9086_v46 = vld [vmem:[#allocation10 + $0x280] sm:$0xf]  ;;  %v12971_v14 = vld [vmem:[#allocation10 + $0x244] sm:$0xf]  ;;  %v12997_v40 = vld [vmem:[#allocation10 + $0x30c] sm:$0xf0] }
  0x49   :  { %570 = vmatpush.bf16.msrb.mxu2 %v8810_v47  ;;  %v12981_v47 = vld [vmem:[#allocation10 + $0x28c] sm:$0xf0]  ;;  %v13003_v18 = vld [vmem:[#allocation10 + $0x344] sm:$0xf]  ;;  %v9022_v36 = vld [vmem:[#allocation10 + $0x200] sm:$0xf] }
  0x4a   :  { %583 = vmatpush.bf16.msrb.mxu3 %v8938_v51  ;;  %v9087_v49 = vor.u32 %v12981_v47, %v9086_v46  ;;  %v12979_v51 = vld [vmem:[#allocation10 + $0x284] sm:$0xf]  ;;  %v9150_v38 = vld [vmem:[#allocation10 + $0x300] sm:$0xf]  ;;  %v9152_v46 = vld [vmem:[#allocation10 + $0x310] sm:$0xf0] }
  0x4b   :  { %545 = vmatpush.bf16.msrb.mxu0 %v8790_v57  ;;  %v9091_v54 = vor.u32 %v12979_v51, %v9088_v52  ;;  %v9219_v57 = vor.u32 %v13011_v55, %v9216_v56  ;;  %v9151_v43 = vor.u32 %v12997_v40, %v9150_v38  ;;  %v9142_v47 = vld [vmem:[#allocation10 + $0x2e8] sm:$0xf]  ;;  %v13026_v51 = vld [vmem:[#allocation10 + $0x3f4] sm:$0xf0]  ;;  %v12992_v55 = vld [vmem:[#allocation10 + $0x2ec] sm:$0xf] }
  0x4c   :  { %558 = vmatpush.bf16.msrb.mxu1 %v8918_v58  ;;  %v9070_v58 = vld [vmem:[#allocation10 + $0x260] sm:$0xf]  ;;  %v9270_v50 = vld [vmem:[#allocation10 + $0x3e8] sm:$0xf]  ;;  %v9144_v56 = vld [vmem:[#allocation10 + $0x2f8] sm:$0xf0] }
  0x4d   :  { %571 = vmatpush.bf16.msrb.mxu2 %v8794_v59  ;;  %v12977_v59 = vld [vmem:[#allocation10 + $0x26c] sm:$0xf0]  ;;  %v9147_v60 = vor.u32 %v12992_v55, %v9144_v56  ;;  %v9272_v62 = vld [vmem:[#allocation10 + $0x3f8] sm:$0xf0]  ;;  %v13014_v38 = vld [vmem:[#allocation10 + $0x394] sm:$0xf0] }
  0x4e   :  { %584 = vmatpush.bf16.msrb.mxu3 %v8922_v63  ;;  %v9071_v61 = vor.u32 %v12977_v59, %v9070_v58  ;;  %v12975_v63 = vld [vmem:[#allocation10 + $0x264] sm:$0xf]  ;;  %v9208_v55 = vld [vmem:[#allocation10 + $0x378] sm:$0xf0] }
  0x4f   :  { %546 = vmatpush.bf16.msrb.mxu0 %v8774_v6  ;;  %v9075_v3 = vor.u32 %v12975_v63, %v9072_v1  ;;  %v9203_v6 = vor.u32 %v13007_v4, %v9200_v5  ;;  %v9126_v63 = vld [vmem:[#allocation10 + $0x2c8] sm:$0xf]  ;;  %v13022_v4 = vld [vmem:[#allocation10 + $0x3d4] sm:$0xf0] }
  0x50   :  { %559 = vmatpush.bf16.msrb.mxu1 %v8902_v8  ;;  %v9054_v8 = vld [vmem:[#allocation10 + $0x240] sm:$0xf] }
  0x51   :  { %572 = vmatpush.bf16.msrb.mxu2 %v8778_v10  ;;  %v12973_v10 = vld [vmem:[#allocation10 + $0x24c] sm:$0xf0] }
  0x52   :  { %585 = vmatpush.bf16.msrb.mxu3 %v8906_v11  ;;  %547 = vmatmul.bf16.vlgmr.msrb.gmra.mxu0 %v14271_v7  ;;  %v9182_v11 = vld [vmem:[#allocation10 + $0x340] sm:$0xf]  ;;  %v9055_v12 = vor.u32 %v12973_v10, %v9054_v8  ;;  %v12988_v10 = vld [vmem:[#allocation10 + $0x2cc] sm:$0xf] }
  0x53   :  { %560 = vmatmul.bf16.vlgmr.msrb.gmra.mxu1 %v14273_v9  ;;  %1018 = vmatpush.bf16.msra.mxu0 %v9135_v15  ;;  %v9056_v15 = vld [vmem:[#allocation10 + $0x250] sm:$0xf0]  ;;  %v9183_v16 = vor.u32 %v13005_v13, %v9182_v11  ;;  %v9128_v11 = vld [vmem:[#allocation10 + $0x2d8] sm:$0xf0] }
  0x54   :  { %573 = vmatmul.bf16.vlgmr.msrb.gmra.mxu2 %v14271_v7  ;;  %1031 = vmatpush.bf16.msra.mxu1 %v9263_v19  ;;  %v9246_v7 = vld [vmem:[#allocation10 + $0x3c0] sm:$0xf]  ;;  %v9059_v17 = vor.u32 %v12971_v14, %v9056_v15  ;;  %v9184_v19 = vld [vmem:[#allocation10 + $0x350] sm:$0xf0]  ;;  %v9131_v14 = vor.u32 %v12988_v10, %v9128_v11  ;;  %v9256_v15 = vld [vmem:[#allocation10 + $0x3d8] sm:$0xf0] }
  0x55   :  { %586 = vmatmul.bf16.vlgmr.msrb.gmra.mxu3 %v14273_v9  ;;  %1044 = vmatpush.bf16.msra.mxu2 %v9139_v20  ;;  %v9119_v9 = vor.u32 %v12989_v25, %v9118_v24  ;;  %v9247_v29 = vor.u32 %v13021_v26, %v9246_v7  ;;  %v14286_v20 = vld [vmem:[%s14798_s3] sm:$0xf]  ;;  %v9187_v21 = vor.u32 %v13003_v18, %v9184_v19  ;;  %v9166_v24 = vld [vmem:[#allocation10 + $0x320] sm:$0xf]  ;;  %v13001_v7 = vld [vmem:[#allocation10 + $0x32c] sm:$0xf0] }
  0x56   :  { %1057 = vmatpush.bf16.msra.mxu3 %v9267_v23  ;;  %v12969_v23 = vld [vmem:[#allocation10 + $0x22c] sm:$0xf0]  ;;  %v9040_v26 = vld [vmem:[#allocation10 + $0x230] sm:$0xf0]  ;;  %v9167_v27 = vor.u32 %v13001_v7, %v9166_v24  ;;  %v152_v31 = vperm.slane %v14286_v20, 0  ;;  %v154_v56 = vperm.slane %v14286_v20, 2 }
  0x57   :  { %1019 = vmatpush.bf16.msra.mxu0 %v9119_v9  ;;  %v9039_v25 = vor.u32 %v12969_v23, %v9038_v22  ;;  %v12967_v9 = vld [vmem:[#allocation10 + $0x224] sm:$0xf]  ;;  %v9110_v19 = vld [vmem:[#allocation10 + $0x2a8] sm:$0xf]  ;;  %v13018_v24 = vld [vmem:[#allocation10 + $0x3b4] sm:$0xf0] }
  0x58   :  { %1032 = vmatpush.bf16.msra.mxu1 %v9247_v29  ;;  %v9043_v28 = vor.u32 %v12967_v9, %v9040_v26  ;;  %v12999_v29 = vld [vmem:[#allocation10 + $0x324] sm:$0xf]  ;;  %v9238_v23 = vld [vmem:[#allocation10 + $0x3a8] sm:$0xf]  ;;  %v9112_v9 = vld [vmem:[#allocation10 + $0x2b8] sm:$0xf0] }
  0x59   :  { %1045 = vmatpush.bf16.msra.mxu2 %v9123_v30  ;;  %v9168_v30 = vld [vmem:[#allocation10 + $0x330] sm:$0xf0]  ;;  %v9239_v7 = vor.u32 %v13018_v24, %v9238_v23  ;;  %v13016_v26 = vld [vmem:[#allocation10 + $0x3ac] sm:$0xf]  ;;  %v13002_v23 = vld [vmem:[#allocation10 + $0x334] sm:$0xf0] }
  0x5a   :  { %1058 = vmatpush.bf16.msra.mxu3 %v9251_v33  ;;  %v153_v33 = vperm.slane %v14286_v20, 1  ;;  %v9171_v34 = vor.u32 %v12999_v29, %v9168_v30  ;;  %v12968_v24 = vld [vmem:[#allocation10 + $0x22c] sm:$0xf] }
  0x5b   :  { %1020 = vmatpush.bf16.msra.mxu0 %v9103_v37  ;;  %v12965_v37 = vld [vmem:[#allocation10 + $0x20c] sm:$0xf0] }
  0x5c   :  { %1033 = vmatpush.bf16.msra.mxu1 %v9231_v41  ;;  %v9023_v39 = vor.u32 %v12965_v37, %v9022_v36  ;;  %v12963_v41 = vld [vmem:[#allocation10 + $0x204] sm:$0xf]  ;;  %v9222_v37 = vld [vmem:[#allocation10 + $0x388] sm:$0xf] }
  0x5d   :  { %1046 = vmatpush.bf16.msra.mxu2 %v9107_v42  ;;  %v9024_v42 = vld [vmem:[#allocation10 + $0x210] sm:$0xf0]  ;;  %v9223_v40 = vor.u32 %v13014_v38, %v9222_v37 }
  0x5e   :  { %1059 = vmatpush.bf16.msra.mxu3 %v9235_v45  ;;  %v9027_v44 = vor.u32 %v12963_v41, %v9024_v42  ;;  %v12995_v45 = vld [vmem:[#allocation10 + $0x304] sm:$0xf]  ;;  %v9096_v41 = vld [vmem:[#allocation10 + $0x298] sm:$0xf0]  ;;  %v13012_v42 = vld [vmem:[#allocation10 + $0x38c] sm:$0xf] }
  0x5f   :  { %1021 = vmatpush.bf16.msra.mxu0 %v9087_v49  ;;  %v9155_v48 = vor.u32 %v12995_v45, %v9152_v46  ;;  %v12994_v49 = vld [vmem:[#allocation10 + $0x2f4] sm:$0xf0]  ;;  %v9078_v46 = vld [vmem:[#allocation10 + $0x268] sm:$0xf] }
  0x60   :  { %1034 = vmatpush.bf16.msra.mxu1 %v9215_v53  ;;  %v9143_v53 = vor.u32 %v12994_v49, %v9142_v47  ;;  %v12978_v47 = vld [vmem:[#allocation10 + $0x274] sm:$0xf0] }
  0x61   :  { %1047 = vmatpush.bf16.msra.mxu2 %v9091_v54  ;;  %v9271_v54 = vor.u32 %v13026_v51, %v9270_v50  ;;  %v9079_v49 = vor.u32 %v12978_v47, %v9078_v46  ;;  %v13010_v50 = vld [vmem:[#allocation10 + $0x374] sm:$0xf0]  ;;  %v12976_v51 = vld [vmem:[#allocation10 + $0x26c] sm:$0xf] }
  0x62   :  { %1060 = vmatpush.bf16.msra.mxu3 %v9219_v57 }
  0x63   :  { %1022 = vmatpush.bf16.msra.mxu0 %v9071_v61  ;;  %v13024_v61 = vld [vmem:[#allocation10 + $0x3ec] sm:$0xf] }
  0x64   :  { %1035 = vmatpush.bf16.msra.mxu1 %v9199_v2  ;;  %v9275_v1 = vor.u32 %v13024_v61, %v9272_v62  ;;  %v12990_v2 = vld [vmem:[#allocation10 + $0x2d4] sm:$0xf0] }
  0x65   :  { %1048 = vmatpush.bf16.msra.mxu2 %v9075_v3  ;;  %v9254_v3 = vld [vmem:[#allocation10 + $0x3c8] sm:$0xf]  ;;  %v12974_v61 = vld [vmem:[#allocation10 + $0x254] sm:$0xf0] }
  0x66   :  { %1061 = vmatpush.bf16.msra.mxu3 %v9203_v6  ;;  %v9127_v6 = vor.u32 %v12990_v2, %v9126_v63  ;;  %v9255_v8 = vor.u32 %v13022_v4, %v9254_v3  ;;  %v9190_v63 = vld [vmem:[#allocation10 + $0x348] sm:$0xf] }
  0x67   :  { %1023 = vmatpush.bf16.msra.mxu0 %v9055_v12  ;;  %v13020_v12 = vld [vmem:[#allocation10 + $0x3cc] sm:$0xf] }
  0x68   :  { %1036 = vmatpush.bf16.msra.mxu1 %v9183_v16  ;;  %v9259_v18 = vor.u32 %v13020_v12, %v9256_v15  ;;  %v9192_v15 = vld [vmem:[#allocation10 + $0x358] sm:$0xf0] }
  0x69   :  { %1049 = vmatpush.bf16.msra.mxu2 %v9059_v17 }
  0x6a   :  { %1062 = vmatpush.bf16.msra.mxu3 %v9187_v21  ;;  %v12986_v21 = vld [vmem:[#allocation10 + $0x2b4] sm:$0xf0] }
  0x6b   :  { %1024 = vmatpush.bf16.msra.mxu0 %v9039_v25  ;;  %v9111_v22 = vor.u32 %v12986_v21, %v9110_v19  ;;  %v12984_v25 = vld [vmem:[#allocation10 + $0x2ac] sm:$0xf]  ;;  %v9174_v19 = vld [vmem:[#allocation10 + $0x328] sm:$0xf] }
  0x6c   :  { %1037 = vmatpush.bf16.msra.mxu1 %v9167_v27  ;;  %v9240_v27 = vld [vmem:[#allocation10 + $0x3b8] sm:$0xf0]  ;;  %v9115_v29 = vor.u32 %v12984_v25, %v9112_v9 }
  0x6d   :  { %1050 = vmatpush.bf16.msra.mxu2 %v9043_v28  ;;  %v9243_v30 = vor.u32 %v13016_v26, %v9240_v27  ;;  %v9048_v25 = vld [vmem:[#allocation10 + $0x238] sm:$0xf0]  ;;  %v9175_v26 = vor.u32 %v13002_v23, %v9174_v19  ;;  %v13085_v23 = vld [vmem:[#allocation10 + $0x1cc] sm:$0xf0] }
  0x6e   :  { %1063 = vmatpush.bf16.msra.mxu3 %v9171_v34  ;;  %v9094_v34 = vld [vmem:[#allocation10 + $0x288] sm:$0xf]  ;;  %v9051_v27 = vor.u32 %v12968_v24, %v9048_v25  ;;  %v13051_v24 = vld [vmem:[#allocation10 + $0xc4] sm:$0xf]  ;;  %v9376_v25 = vld [vmem:[#allocation10 + $0xd0] sm:$0xf0] }
  0x6f   :  { %1025 = vmatpush.bf16.msra.mxu0 %v9023_v39  ;;  %v12980_v39 = vld [vmem:[#allocation10 + $0x28c] sm:$0xf] }
  0x70   :  { %1038 = vmatpush.bf16.msra.mxu1 %v9151_v43  ;;  %v9099_v43 = vor.u32 %v12980_v39, %v9096_v41  ;;  %v12996_v39 = vld [vmem:[#allocation10 + $0x30c] sm:$0xf] }
  0x71   :  { %1051 = vmatpush.bf16.msra.mxu2 %v9027_v44  ;;  %v9224_v44 = vld [vmem:[#allocation10 + $0x398] sm:$0xf0] }
  0x72   :  { %1064 = vmatpush.bf16.msra.mxu3 %v9155_v48  ;;  %v9227_v45 = vor.u32 %v13012_v42, %v9224_v44  ;;  %v9206_v48 = vld [vmem:[#allocation10 + $0x368] sm:$0xf] }
  0x73   :  { %1070 = vmatpush.bf16.msrb.mxu0 %v9143_v53  ;;  %v9080_v53 = vld [vmem:[#allocation10 + $0x278] sm:$0xf0] }
  0x74   :  { %1083 = vmatpush.bf16.msrb.mxu1 %v9271_v54  ;;  %v13008_v54 = vld [vmem:[#allocation10 + $0x36c] sm:$0xf] }
  0x75   :  { %1096 = vmatpush.bf16.msrb.mxu2 %v9147_v60  ;;  %v9062_v60 = vld [vmem:[#allocation10 + $0x248] sm:$0xf] }
  0x76   :  { %1109 = vmatpush.bf16.msrb.mxu3 %v9275_v1  ;;  %v9063_v62 = vor.u32 %v12974_v61, %v9062_v60  ;;  %v13006_v1 = vld [vmem:[#allocation10 + $0x354] sm:$0xf0] }
  0x77   :  { %1071 = vmatpush.bf16.msrb.mxu0 %v9127_v6  ;;  %v9191_v4 = vor.u32 %v13006_v1, %v9190_v63  ;;  %v9064_v6 = vld [vmem:[#allocation10 + $0x258] sm:$0xf0]  ;;  %v9390_v63 = vld [vmem:[#allocation10 + $0xe0] sm:$0xf]  ;;  %v13057_v1 = vld [vmem:[#allocation10 + $0xec] sm:$0xf0] }
  0x78   :  { %1084 = vmatpush.bf16.msrb.mxu1 %v9255_v8  ;;  %v13004_v8 = vld [vmem:[#allocation10 + $0x34c] sm:$0xf] }
  0x79   :  { %1097 = vmatpush.bf16.msrb.mxu2 %v9131_v14 }
  0x7a   :  { %1110 = vmatpush.bf16.msrb.mxu3 %v9259_v18  ;;  %v12970_v18 = vld [vmem:[#allocation10 + $0x234] sm:$0xf0] }
  0x7b   :  { %1072 = vmatpush.bf16.msrb.mxu0 %v9111_v22 }
  0x7c   :  { %1085 = vmatpush.bf16.msrb.mxu1 %v9239_v7 }
  0x7d   :  { %1098 = vmatpush.bf16.msrb.mxu2 %v9115_v29 }
  0x7e   :  { %1111 = vmatpush.bf16.msrb.mxu3 %v9243_v30  ;;  %v9030_v30 = vld [vmem:[#allocation10 + $0x208] sm:$0xf] }
  0x80   :  { %1086 = vmatpush.bf16.msrb.mxu1 %v9223_v40  ;;  %v9160_v40 = vld [vmem:[#allocation10 + $0x318] sm:$0xf0] }
  0x81   :  { %1099 = vmatpush.bf16.msrb.mxu2 %v9099_v43  ;;  %v9163_v47 = vor.u32 %v12996_v39, %v9160_v40  ;;  %v9342_v39 = vld [vmem:[#allocation10 + $0x80] sm:$0xf]  ;;  %v13045_v40 = vld [vmem:[#allocation10 + $0x8c] sm:$0xf0] }
  0x82   :  { %1112 = vmatpush.bf16.msrb.mxu3 %v9227_v45 }
  0xb2   :  { %v496_v32 = vpop.f32.mrf.mxu0 }
  0xb3   :  { %v509_v35 = vpop.f32.mrf.mxu1  ;;  %v497_v57 = vadd.f32 %v496_v32, %v152_v31 }
  0xb5   :  { %v510_v16 = vadd.f32 %v509_v35, %v497_v57  ;;  %v12982_v35 = vld [vmem:[#allocation10 + $0x294] sm:$0xf0]  ;;  %v1157_v57 = vld [vmem:[#allocation7 + $0x4] sm:$0xf] }
  0xb6   :  { %v9095_v36 = vor.u32 %v12982_v35, %v9094_v34  ;;  %1158 = vst [vmem:[#allocation2] sm:$0xf] %v1157_v57  ;;  %v12964_v34 = vld [vmem:[#allocation10 + $0x20c] sm:$0xf]  ;;  %v9032_v35 = vld [vmem:[#allocation10 + $0x218] sm:$0xf0] }
  0xb7   :  { %v522_v52 = vpop.f32.mrf.mxu2  ;;  %v591_v31 = vmul.f32 0.5, %v510_v16  ;;  %v9195_v16 = vor.u32 %v13004_v8, %v9192_v15  ;;  %v9035_v45 = vor.u32 %v12964_v34, %v9032_v35  ;;  %v9391_v15 = vor.u32 %v13057_v1, %v9390_v63  ;;  %v9360_v34 = vld [vmem:[#allocation10 + $0xb0] sm:$0xf0]  ;;  %v13079_v35 = vld [vmem:[#allocation10 + $0x1a4] sm:$0xf] }
  0xb8   :  { %v523_v58 = vadd.f32 %v522_v52, %v153_v33  ;;  %1073 = vmatpush.bf16.msrb.mxu0 %v9095_v36  ;;  %v9207_v52 = vor.u32 %v13010_v50, %v9206_v48  ;;  %v9310_v1 = vld [vmem:[#allocation10 + $0x40] sm:$0xf] }
  0xb9   :  { %13944 = vtanh.f32 %v591_v31  ;;  %v12966_v31 = vld [vmem:[#allocation10 + $0x214] sm:$0xf0] }
  0xba   :  { %v535_v59 = vpop.f32.mrf.mxu3  ;;  %v498_v5 = vpop.f32.mrf.mxu0  ;;  %1087 = vmatpush.bf16.msrb.mxu1 %v9207_v52  ;;  %v9031_v37 = vor.u32 %v12966_v31, %v9030_v30  ;;  %v9486_v31 = vld [vmem:[#allocation10 + $0x1a0] sm:$0xf] }
  0xbb   :  { %v511_v13 = vpop.f32.mrf.mxu1  ;;  %v536_v17 = vadd.f32 %v535_v59, %v523_v58  ;;  %v9083_v58 = vor.u32 %v12976_v51, %v9080_v53  ;;  %v9211_v59 = vor.u32 %v13008_v54, %v9208_v55  ;;  %v12972_v5 = vld [vmem:[#allocation10 + $0x24c] sm:$0xf] }
  0xbc   :  { %1074 = vmatpush.bf16.msrb.mxu0 %v9079_v49  ;;  %v155_v13 = vperm.slane %v14286_v20, 3  ;;  %v9067_v14 = vor.u32 %v12972_v5, %v9064_v6  ;;  %v13000_v20 = vld [vmem:[#allocation10 + $0x32c] sm:$0xf]  ;;  %v13055_v5 = vld [vmem:[#allocation10 + $0xe4] sm:$0xf] }
  0xbd   :  { %v595_v32 = vmul.f32 0.5, %v536_v17  ;;  %1100 = vmatpush.bf16.msrb.mxu2 %v9083_v58  ;;  %1113 = vmatpush.bf16.msrb.mxu3 %v9211_v59  ;;  %v9046_v17 = vld [vmem:[#allocation10 + $0x228] sm:$0xf] }
  0xbe   :  { %1088 = vmatpush.bf16.msrb.mxu1 %v9191_v4  ;;  %v9047_v22 = vor.u32 %v12970_v18, %v9046_v17  ;;  %v13089_v4 = vld [vmem:[#allocation10 + $0x1ec] sm:$0xf0]  ;;  %v9374_v17 = vld [vmem:[#allocation10 + $0xc0] sm:$0xf] }
  0xbf   :  { %v524_v28 = vpop.f32.mrf.mxu2  ;;  %13946 = vtanh.f32 %v595_v32  ;;  %v13945_v2 = vpop.eup %13944  ;;  %v9158_v32 = vld [vmem:[#allocation10 + $0x308] sm:$0xf]  ;;  %v13053_v18 = vld [vmem:[#allocation10 + $0xcc] sm:$0xf0] }
  0xc0   :  { %1075 = vmatpush.bf16.msrb.mxu0 %v9063_v62  ;;  %v593_v7 = vadd.f32 1.0, %v13945_v2  ;;  %v9176_v28 = vld [vmem:[#allocation10 + $0x338] sm:$0xf0]  ;;  %v9518_v2 = vld [vmem:[#allocation10 + $0x1e0] sm:$0xf] }
  0xc1   :  { %1101 = vmatpush.bf16.msrb.mxu2 %v9067_v14  ;;  %1114 = vmatpush.bf16.msrb.mxu3 %v9195_v16  ;;  %v9179_v29 = vor.u32 %v13000_v20, %v9176_v28  ;;  %v9519_v16 = vor.u32 %v13089_v4, %v9518_v2  ;;  %v9358_v20 = vld [vmem:[#allocation10 + $0xa0] sm:$0xf]  ;;  %v13049_v28 = vld [vmem:[#allocation10 + $0xac] sm:$0xf0] }
  0xc2   :  { %v537_v33 = vpop.f32.mrf.mxu3  ;;  %1089 = vmatpush.bf16.msrb.mxu1 %v9175_v26  ;;  %v594_v48 = vmul.f32 0.5, %v593_v7  ;;  %v13083_v7 = vld [vmem:[#allocation10 + $0x1c4] sm:$0xf]  ;;  %v9375_v26 = vor.u32 %v13053_v18, %v9374_v17  ;;  %v13037_v2 = vld [vmem:[#allocation10 + $0x4c] sm:$0xf0] }
  0xc3   :  { %v12998_v33 = vld [vmem:[#allocation10 + $0x314] sm:$0xf0]  ;;  %v9294_v17 = vld [vmem:[#allocation10 + $0x20] sm:$0xf]  ;;  %v13033_v18 = vld [vmem:[#allocation10 + $0x2c] sm:$0xf0] }
  0xc4   :  { %1076 = vmatpush.bf16.msrb.mxu0 %v9047_v22  ;;  %v9159_v38 = vor.u32 %v12998_v33, %v9158_v32  ;;  %v9502_v22 = vld [vmem:[#allocation10 + $0x1c0] sm:$0xf]  ;;  %v13081_v32 = vld [vmem:[#allocation10 + $0x1ac] sm:$0xf0]  ;;  %v13047_v33 = vld [vmem:[#allocation10 + $0xa4] sm:$0xf] }
  0xc5   :  { %v13947_v10 = vpop.eup %13946  ;;  %1102 = vmatpush.bf16.msrb.mxu2 %v9051_v27  ;;  %1115 = vmatpush.bf16.msrb.mxu3 %v9179_v29  ;;  %v9503_v27 = vor.u32 %v13085_v23, %v9502_v22  ;;  %v9379_v29 = vor.u32 %v13051_v24, %v9376_v25  ;;  %v9422_v22 = vld [vmem:[#allocation10 + $0x120] sm:$0xf]  ;;  %v13065_v23 = vld [vmem:[#allocation10 + $0x12c] sm:$0xf0]  ;;  %v13031_v24 = vld [vmem:[#allocation10 + $0x24] sm:$0xf] }
  0xc6   :  { %v597_v9 = vadd.f32 1.0, %v13947_v10  ;;  %1090 = vmatpush.bf16.msrb.mxu1 %v9159_v38  ;;  %v9392_v10 = vld [vmem:[#allocation10 + $0xf0] sm:$0xf0]  ;;  %v9487_v38 = vor.u32 %v13081_v32, %v9486_v31 }
  0xc7   :  { %v9395_v19 = vor.u32 %v13055_v5, %v9392_v10  ;;  %v9438_v5 = vld [vmem:[#allocation10 + $0x140] sm:$0xf]  ;;  %v9312_v10 = vld [vmem:[#allocation10 + $0x50] sm:$0xf0] }
  0xc8   :  { %v598_v41 = vmul.f32 0.5, %v597_v9  ;;  %1077 = vmatpush.bf16.msrb.mxu0 %v9031_v37  ;;  %v9504_v9 = vld [vmem:[#allocation10 + $0x1d0] sm:$0xf0]  ;;  %v9359_v37 = vor.u32 %v13049_v28, %v9358_v20  ;;  %v9295_v20 = vor.u32 %v13033_v18, %v9294_v17  ;;  %v9423_v28 = vor.u32 %v13065_v23, %v9422_v22  ;;  %v9368_v17 = vld [vmem:[#allocation10 + $0xb8] sm:$0xf0] }
  0xc9   :  { %1103 = vmatpush.bf16.msrb.mxu2 %v9035_v45  ;;  %1116 = vmatpush.bf16.msrb.mxu3 %v9163_v47  ;;  %v9507_v30 = vor.u32 %v13083_v7, %v9504_v9  ;;  %v13043_v45 = vld [vmem:[#allocation10 + $0x84] sm:$0xf]  ;;  %v9296_v25 = vld [vmem:[#allocation10 + $0x30] sm:$0xf0]  ;;  %v13080_v18 = vld [vmem:[#allocation10 + $0x1ac] sm:$0xf] }
  0xca   :  { %v605_v51 = vmul.f32 0.0, %v598_v41  ;;  %v9363_v41 = vor.u32 %v13047_v33, %v9360_v34  ;;  %v13075_v47 = vld [vmem:[#allocation10 + $0x184] sm:$0xf]  ;;  %v9424_v9 = vld [vmem:[#allocation10 + $0x130] sm:$0xf0]  ;;  %v9299_v32 = vor.u32 %v13031_v24, %v9296_v25 }
  0xcb   :  { %v13063_v7 = vld [vmem:[#allocation10 + $0x124] sm:$0xf]  ;;  %v9280_v34 = vld [vmem:[#allocation10 + $0x10] sm:$0xf0]  ;;  %v9350_v23 = vld [vmem:[#allocation10 + $0x88] sm:$0xf] }
  0xcc   :  { %v9427_v33 = vor.u32 %v13063_v7, %v9424_v9  ;;  %v13046_v24 = vld [vmem:[#allocation10 + $0x94] sm:$0xf0]  ;;  %v9478_v9 = vld [vmem:[#allocation10 + $0x188] sm:$0xf] }
  0xcf   :  { %v548_v3 = vpop.f32.mrf.mxu0 }
  0xd0   :  { %v549_v11 = vadd.f32 %v548_v3, %v154_v56  ;;  %v561_v12 = vpop.f32.mrf.mxu1 }
  0xd2   :  { %v562_v21 = vadd.f32 %v561_v12, %v549_v11  ;;  %v13087_v11 = vld [vmem:[#allocation10 + $0x1e4] sm:$0xf]  ;;  %v9520_v12 = vld [vmem:[#allocation10 + $0x1f0] sm:$0xf0] }
  0xd4   :  { %13948 = vtanh.f32 %v562_v21  ;;  %v9523_v21 = vor.u32 %v13087_v11, %v9520_v12  ;;  %v13067_v11 = vld [vmem:[#allocation10 + $0x144] sm:$0xf]  ;;  %v9440_v12 = vld [vmem:[#allocation10 + $0x150] sm:$0xf0] }
  0xd7   :  { %v574_v36 = vpop.f32.mrf.mxu2  ;;  %v550_v44 = vpop.f32.mrf.mxu0 }
  0xd8   :  { %v575_v42 = vadd.f32 %v574_v36, %v155_v13  ;;  %v587_v43 = vpop.f32.mrf.mxu3  ;;  %v563_v46 = vpop.f32.mrf.mxu1  ;;  %v9488_v36 = vld [vmem:[#allocation10 + $0x1b0] sm:$0xf0]  ;;  %v13077_v44 = vld [vmem:[#allocation10 + $0x18c] sm:$0xf0] }
  0xd9   :  { %v9344_v46 = vld [vmem:[#allocation10 + $0x90] sm:$0xf0] }
  0xda   :  { %v588_v49 = vadd.f32 %v587_v43, %v575_v42  ;;  %v13949_v50 = vpop.eup %13948  ;;  %v9491_v42 = vor.u32 %v13079_v35, %v9488_v36  ;;  %v9470_v43 = vld [vmem:[#allocation10 + $0x180] sm:$0xf]  ;;  %v13059_v35 = vld [vmem:[#allocation10 + $0x104] sm:$0xf] }
  0xdb   :  { %v606_v52 = vmul.f32 %v13949_v50, %v594_v48  ;;  %v9472_v48 = vld [vmem:[#allocation10 + $0x190] sm:$0xf0]  ;;  %v9471_v50 = vor.u32 %v13077_v44, %v9470_v43 }
  0xdc   :  { %v600_v53 = vmul.f32 0.5, %v588_v49  ;;  %v9343_v49 = vor.u32 %v13045_v40, %v9342_v39  ;;  %v13058_v39 = vld [vmem:[#allocation10 + $0xf4] sm:$0xf0]  ;;  %v9526_v40 = vld [vmem:[#allocation10 + $0x1e8] sm:$0xf] }
  0xdd   :  { %v14292_v54 = vadd.f32 %v606_v52, %v605_v51  ;;  %v9326_v51 = vld [vmem:[#allocation10 + $0x60] sm:$0xf]  ;;  %v13041_v52 = vld [vmem:[#allocation10 + $0x6c] sm:$0xf0] }
  0xde   :  { %13950 = vtanh.f32 %v600_v53  ;;  %v9347_v53 = vor.u32 %v13043_v45, %v9344_v46  ;;  %v9400_v45 = vld [vmem:[#allocation10 + $0xf8] sm:$0xf0]  ;;  %v13088_v46 = vld [vmem:[#allocation10 + $0x1ec] sm:$0xf] }
  0xdf   :  { %v576_v55 = vpop.f32.mrf.mxu2  ;;  %13952 = vtanh.f32 %v14292_v54 }
  0xe0   :  { %v589_v56 = vpop.f32.mrf.mxu3  ;;  %v9475_v55 = vor.u32 %v13075_v47, %v9472_v48  ;;  %v9528_v47 = vld [vmem:[#allocation10 + $0x1f8] sm:$0xf0] }
  0xe1   :  { %v9454_v56 = vld [vmem:[#allocation10 + $0x160] sm:$0xf] }
  0xe4   :  { %v13951_v57 = vpop.eup %13950 }
  0xe5   :  { %v602_v58 = vadd.f32 1.0, %v13951_v57  ;;  %v13953_v59 = vpop.eup %13952  ;;  %v13073_v57 = vld [vmem:[#allocation10 + $0x16c] sm:$0xf0] }
  0xe6   :  { %v9455_v63 = vor.u32 %v13073_v57, %v9454_v56  ;;  %v13054_v56 = vld [vmem:[#allocation10 + $0xd4] sm:$0xf0] }
  0xe7   :  { %v603_v60 = vmul.f32 0.5, %v602_v58  ;;  %v13039_v58 = vld [vmem:[#allocation10 + $0x64] sm:$0xf] }
  0xe9   :  { %v609_v61 = vmul.f32 %v13953_v59, %v603_v60  ;;  %v9328_v59 = vld [vmem:[#allocation10 + $0x70] sm:$0xf0]  ;;  %v13071_v60 = vld [vmem:[#allocation10 + $0x164] sm:$0xf] }
  0xeb   :  { %v611_v62 = vpack.c.bf16 %v609_v61, %v609_v61  ;;  %v9456_v61 = vld [vmem:[#allocation10 + $0x170] sm:$0xf0] }
  0xec   :  { %v9459_v4 = vor.u32 %v13071_v60, %v9456_v61  ;;  %v13086_v60 = vld [vmem:[#allocation10 + $0x1d4] sm:$0xf0]  ;;  %v13052_v61 = vld [vmem:[#allocation10 + $0xcc] sm:$0xf] }
  0xed   :  { %612 = vst [vmem:[#allocation2 + $0x4] sm:$0xf] %v611_v62 }
  0xee   :  { %613 = vst [vmem:[#allocation3] sm:$0xf] %v611_v62  ;;  %v9327_v62 = vor.u32 %v13041_v52, %v9326_v51 }
  0xf4   :  { %v1159_v31 = vld [vmem:[#allocation2] sm:$0xff] }
  0xf5   :  { %v614_v3 = vld [vmem:[#allocation3] sm:$0xff] }
  0xf6   :  { %v692_v6 = vunpack.c.l.b16 %v614_v3  ;;  %v693_v8 = vunpack.c.h.b16 %v614_v3  ;;  %v9331_v3 = vor.u32 %v13039_v58, %v9328_v59  ;;  %v9531_v58 = vor.u32 %v13088_v46, %v9528_v47  ;;  %v9510_v59 = vld [vmem:[#allocation10 + $0x1c8] sm:$0xf]  ;;  %v13070_v47 = vld [vmem:[#allocation10 + $0x154] sm:$0xf0] }
  0xf7   :  { %v9446_v46 = vld [vmem:[#allocation10 + $0x148] sm:$0xf] }
  0xf8   :  { %v14295_v13 = vpack.c.b16 %v692_v6, %v692_v6  ;;  %v14297_v14 = vpack.c.b16 %v693_v8, %v693_v8  ;;  %v13069_v6 = vld [vmem:[#allocation10 + $0x14c] sm:$0xf0]  ;;  %v13035_v8 = vld [vmem:[#allocation10 + $0x44] sm:$0xf] }
  0xfa   :  { %1026 = vmatmul.bf16.vlgmr.msra.gmra.mxu0 %v14295_v13  ;;  %1039 = vmatmul.bf16.vlgmr.msra.gmra.mxu1 %v14297_v14 }
  0xfb   :  { %1052 = vmatmul.bf16.vlgmr.msra.gmra.mxu2 %v14295_v13  ;;  %1065 = vmatmul.bf16.vlgmr.msra.gmra.mxu3 %v14297_v14 }
  0xfc   :  { %1561 = vmatpush.bf16.msra.mxu0 %v9391_v15  ;;  %1574 = vmatpush.bf16.msra.mxu1 %v9519_v16  ;;  %v9311_v15 = vor.u32 %v13037_v2, %v9310_v1  ;;  %v9439_v16 = vor.u32 %v13069_v6, %v9438_v5  ;;  %v9512_v1 = vld [vmem:[#allocation10 + $0x1d8] sm:$0xf0]  ;;  %v9511_v5 = vor.u32 %v13086_v60, %v9510_v59  ;;  %v9366_v6 = vld [vmem:[#allocation10 + $0xa8] sm:$0xf]  ;;  %v13066_v60 = vld [vmem:[#allocation10 + $0x134] sm:$0xf0] }
  0xfd   :  { %1587 = vmatpush.bf16.msra.mxu2 %v9395_v19  ;;  %1600 = vmatpush.bf16.msra.mxu3 %v9523_v21  ;;  %v9315_v19 = vor.u32 %v13035_v8, %v9312_v10  ;;  %v9443_v21 = vor.u32 %v13067_v11, %v9440_v12  ;;  %v13050_v8 = vld [vmem:[#allocation10 + $0xb4] sm:$0xf0]  ;;  %v9494_v12 = vld [vmem:[#allocation10 + $0x1a8] sm:$0xf] }
  0xfe   :  { %v9430_v59 = vld [vmem:[#allocation10 + $0x128] sm:$0xf] }
 0x100   :  { %1562 = vmatpush.bf16.msra.mxu0 %v9375_v26  ;;  %1575 = vmatpush.bf16.msra.mxu1 %v9503_v27  ;;  %v9278_v26 = vld [vmem:[#allocation10] sm:$0xf] }
 0x101   :  { %1588 = vmatpush.bf16.msra.mxu2 %v9379_v29  ;;  %1601 = vmatpush.bf16.msra.mxu3 %v9507_v30  ;;  %v9406_v27 = vld [vmem:[#allocation10 + $0x100] sm:$0xf]  ;;  %v13061_v29 = vld [vmem:[#allocation10 + $0x10c] sm:$0xf0]  ;;  %v13027_v30 = vld [vmem:[#allocation10 + $0x4] sm:$0xf] }
 0x102   :  { %v9407_v44 = vor.u32 %v13061_v29, %v9406_v27  ;;  %v9283_v48 = vor.u32 %v13027_v30, %v9280_v34  ;;  %v9352_v27 = vld [vmem:[#allocation10 + $0x98] sm:$0xf0]  ;;  %v9334_v30 = vld [vmem:[#allocation10 + $0x68] sm:$0xf] }
 0x103   :  { %v9462_v34 = vld [vmem:[#allocation10 + $0x168] sm:$0xf] }
 0x104   :  { %1563 = vmatpush.bf16.msra.mxu0 %v9359_v37  ;;  %1576 = vmatpush.bf16.msra.mxu1 %v9487_v38  ;;  %v9408_v37 = vld [vmem:[#allocation10 + $0x110] sm:$0xf0]  ;;  %v9398_v38 = vld [vmem:[#allocation10 + $0xe8] sm:$0xf] }
 0x105   :  { %1589 = vmatpush.bf16.msra.mxu2 %v9363_v41  ;;  %1602 = vmatpush.bf16.msra.mxu3 %v9491_v42  ;;  %v13090_v41 = vld [vmem:[#allocation10 + $0x1f4] sm:$0xf0]  ;;  %v13056_v42 = vld [vmem:[#allocation10 + $0xec] sm:$0xf]  ;;  %v9399_v51 = vor.u32 %v13058_v39, %v9398_v38  ;;  %v9464_v39 = vld [vmem:[#allocation10 + $0x178] sm:$0xf0] }
 0x106   :  { %v9527_v52 = vor.u32 %v13090_v41, %v9526_v40  ;;  %v9403_v57 = vor.u32 %v13056_v42, %v9400_v45  ;;  %v13072_v38 = vld [vmem:[#allocation10 + $0x16c] sm:$0xf]  ;;  %v9318_v42 = vld [vmem:[#allocation10 + $0x48] sm:$0xf] }
 0x107   :  { %v9467_v45 = vor.u32 %v13072_v38, %v9464_v39  ;;  %v13153_v38 = vld [vmem:[#allocation10 + $0x3ec] sm:$0xf0]  ;;  %v13119_v39 = vld [vmem:[#allocation10 + $0x2e4] sm:$0xf] }
 0x108   :  { %1564 = vmatpush.bf16.msra.mxu0 %v9343_v49  ;;  %1577 = vmatpush.bf16.msra.mxu1 %v9471_v50  ;;  %v9411_v49 = vor.u32 %v13059_v35, %v9408_v37  ;;  %v1235_v50 = vunpack.c.l.b16 %v1159_v31  ;;  %v13074_v35 = vld [vmem:[#allocation10 + $0x174] sm:$0xf0]  ;;  %v9336_v37 = vld [vmem:[#allocation10 + $0x78] sm:$0xf0] }
 0x109   :  { %1590 = vmatpush.bf16.msra.mxu2 %v9347_v53  ;;  %1603 = vmatpush.bf16.msra.mxu3 %v9475_v55  ;;  %v1236_v53 = vunpack.c.h.b16 %v1159_v31  ;;  %v9382_v55 = vld [vmem:[#allocation10 + $0xc8] sm:$0xf]  ;;  %v13042_v31 = vld [vmem:[#allocation10 + $0x74] sm:$0xf0]  ;;  %v9463_v41 = vor.u32 %v13074_v35, %v9462_v34  ;;  %v9775_v34 = vld [vmem:[#allocation10 + $0x3e0] sm:$0xf] }
 0x10a   :  { %1078 = vmatmul.bf16.vlgmr.msrb.gmra.mxu0 %v14295_v13  ;;  %1091 = vmatmul.bf16.vlgmr.msrb.gmra.mxu1 %v14297_v14  ;;  %v14311_v2 = vpack.c.b16 %v1235_v50, %v1235_v50  ;;  %v9335_v40 = vor.u32 %v13042_v31, %v9334_v30  ;;  %v13068_v50 = vld [vmem:[#allocation10 + $0x14c] sm:$0xf] }
 0x10b   :  { %1104 = vmatmul.bf16.vlgmr.msrb.gmra.mxu2 %v14295_v13  ;;  %1117 = vmatmul.bf16.vlgmr.msrb.gmra.mxu3 %v14297_v14  ;;  %v13029_v13 = vld [vmem:[#allocation10 + $0xc] sm:$0xf0] }
 0x10c   :  { %1565 = vmatpush.bf16.msra.mxu0 %v9327_v62  ;;  %1578 = vmatpush.bf16.msra.mxu1 %v9455_v63  ;;  %v81_v14 = vld [vmem:[%s14795_s0] sm:$0xff]  ;;  %v9279_v43 = vor.u32 %v13029_v13, %v9278_v26  ;;  %v9384_v62 = vld [vmem:[#allocation10 + $0xd8] sm:$0xf0]  ;;  %v13078_v26 = vld [vmem:[#allocation10 + $0x194] sm:$0xf0] }
 0x10d   :  { %1591 = vmatpush.bf16.msra.mxu2 %v9331_v3  ;;  %1604 = vmatpush.bf16.msra.mxu3 %v9459_v4  ;;  %vm1145_vm0 = vcmp.eq.s32.totalorder %v81_v14, 0  ;;  %v13084_v63 = vld [vmem:[#allocation10 + $0x1cc] sm:$0xf]  ;;  %v14313_v3 = vpack.c.b16 %v1236_v53, %v1236_v53  ;;  %v9383_v4 = vor.u32 %v13054_v56, %v9382_v55  ;;  %v9387_v10 = vor.u32 %v13052_v61, %v9384_v62  ;;  %v9302_v55 = vld [vmem:[#allocation10 + $0x28] sm:$0xf] }
 0x10e   :  { %v1147_v36 = vsel %vm1145_vm0, 1, %v14219_v0  ;;  %v9515_v11 = vor.u32 %v13084_v63, %v9512_v1  ;;  %v13044_v13 = vld [vmem:[#allocation10 + $0x8c] sm:$0xf]  ;;  %v9479_v29 = vor.u32 %v13078_v26, %v9478_v9  ;;  %v9447_v53 = vor.u32 %v13070_v47, %v9446_v46  ;;  %v13034_v56 = vld [vmem:[#allocation10 + $0x34] sm:$0xf0] }
 0x10f   :  { %1149 = vperm.xlu0 %13940, %v1147_v36   ;;  %v13076_v14 = vld [vmem:[#allocation10 + $0x18c] sm:$0xf]  ;;  %v9304_v62 = vld [vmem:[#allocation10 + $0x38] sm:$0xf0] }
 0x110   :  { %1566 = vmatpush.bf16.msra.mxu0 %v9311_v15  ;;  %1579 = vmatpush.bf16.msra.mxu1 %v9439_v16  ;;  %v13082_v15 = vld [vmem:[#allocation10 + $0x1b4] sm:$0xf0]  ;;  %v13048_v16 = vld [vmem:[#allocation10 + $0xac] sm:$0xf]  ;;  %v9432_v1 = vld [vmem:[#allocation10 + $0x138] sm:$0xf0] }
 0x111   :  { %1592 = vmatpush.bf16.msra.mxu2 %v9315_v19  ;;  %1605 = vmatpush.bf16.msra.mxu3 %v9443_v21  ;;  %v9496_v19 = vld [vmem:[#allocation10 + $0x1b8] sm:$0xf0]  ;;  %v9367_v21 = vor.u32 %v13050_v8, %v9366_v6  ;;  %v9495_v22 = vor.u32 %v13082_v15, %v9494_v12  ;;  %v9371_v25 = vor.u32 %v13048_v16, %v9368_v17  ;;  %v13040_v36 = vld [vmem:[#allocation10 + $0x6c] sm:$0xf]  ;;  %v9286_v6 = vld [vmem:[#allocation10 + $0x8] sm:$0xf] }
 0x112   :  { %v9499_v7 = vor.u32 %v13080_v18, %v9496_v19  ;;  %v13032_v61 = vld [vmem:[#allocation10 + $0x2c] sm:$0xf]  ;;  %v13030_v8 = vld [vmem:[#allocation10 + $0x14] sm:$0xf0]  ;;  %v9414_v12 = vld [vmem:[#allocation10 + $0x108] sm:$0xf] }
 0x113   :  { %v13064_v63 = vld [vmem:[#allocation10 + $0x12c] sm:$0xf]  ;;  %v13062_v15 = vld [vmem:[#allocation10 + $0x114] sm:$0xf0]  ;;  %v9288_v17 = vld [vmem:[#allocation10 + $0x18] sm:$0xf0] }
 0x114   :  { %1567 = vmatpush.bf16.msra.mxu0 %v9295_v20  ;;  %1580 = vmatpush.bf16.msra.mxu1 %v9423_v28  ;;  %v9480_v20 = vld [vmem:[#allocation10 + $0x198] sm:$0xf0]  ;;  %v9351_v28 = vor.u32 %v13046_v24, %v9350_v23  ;;  %v13028_v16 = vld [vmem:[#allocation10 + $0xc] sm:$0xf] }
 0x115   :  { %1593 = vmatpush.bf16.msra.mxu2 %v9299_v32  ;;  %1606 = vmatpush.bf16.msra.mxu3 %v9427_v33  ;;  %v9355_v32 = vor.u32 %v13044_v13, %v9352_v27  ;;  %v9483_v33 = vor.u32 %v13076_v14, %v9480_v20  ;;  %v13060_v18 = vld [vmem:[#allocation10 + $0x10c] sm:$0xf]  ;;  %v9416_v19 = vld [vmem:[#allocation10 + $0x118] sm:$0xf0]  ;;  %v9291_v23 = vor.u32 %v13028_v16, %v9288_v17  ;;  %v13111_v16 = vld [vmem:[#allocation10 + $0x2a4] sm:$0xf] }
 0x116   :  { %v9419_v24 = vor.u32 %v13060_v18, %v9416_v19  ;;  %v9617_v17 = vld [vmem:[#allocation10 + $0x2b0] sm:$0xf0] }
 0x118   :  { %1568 = vmatpush.bf16.msra.mxu0 %v9279_v43  ;;  %1581 = vmatpush.bf16.msra.mxu1 %v9407_v44  ;;  %v13038_v43 = vld [vmem:[#allocation10 + $0x54] sm:$0xf0]  ;;  %v9339_v44 = vor.u32 %v13040_v36, %v9336_v37 }
 0x119   :  { %1594 = vmatpush.bf16.msra.mxu2 %v9283_v48  ;;  %1607 = vmatpush.bf16.msra.mxu3 %v9411_v49  ;;  %v13036_v48 = vld [vmem:[#allocation10 + $0x4c] sm:$0xf]  ;;  %v9320_v49 = vld [vmem:[#allocation10 + $0x58] sm:$0xf0] }
 0x11b   :  { %1569 = vmatmul.bf16.vlgmr.msra.gmra.mxu0 %v14311_v2  ;;  %1582 = vmatmul.bf16.vlgmr.msra.gmra.mxu1 %v14313_v3 }
 0x11c   :  { %1613 = vmatpush.bf16.msrb.mxu0 %v9399_v51  ;;  %1626 = vmatpush.bf16.msrb.mxu1 %v9527_v52  ;;  %v9448_v51 = vld [vmem:[#allocation10 + $0x158] sm:$0xf0]  ;;  %v9319_v52 = vor.u32 %v13038_v43, %v9318_v42  ;;  %v13151_v42 = vld [vmem:[#allocation10 + $0x3e4] sm:$0xf]  ;;  %v9777_v43 = vld [vmem:[#allocation10 + $0x3f0] sm:$0xf0] }
 0x11d   :  { %1639 = vmatpush.bf16.msrb.mxu2 %v9403_v57  ;;  %1652 = vmatpush.bf16.msrb.mxu3 %v9531_v58  ;;  %v9323_v57 = vor.u32 %v13036_v48, %v9320_v49  ;;  %v9451_v58 = vor.u32 %v13068_v50, %v9448_v51  ;;  %v9780_v47 = vor.u32 %v13151_v42, %v9777_v43  ;;  %v9631_v48 = vld [vmem:[#allocation10 + $0x2c0] sm:$0xf]  ;;  %v13117_v51 = vld [vmem:[#allocation10 + $0x2cc] sm:$0xf0] }
 0x11e   :  { %1595 = vmatmul.bf16.vlgmr.msra.gmra.mxu2 %v14311_v2  ;;  %1608 = vmatmul.bf16.vlgmr.msra.gmra.mxu3 %v14313_v3  ;;  %v9711_v42 = vld [vmem:[#allocation10 + $0x360] sm:$0xf] }
 0x120   :  { %1614 = vmatpush.bf16.msrb.mxu0 %v9383_v4  ;;  %1627 = vmatpush.bf16.msrb.mxu1 %v9511_v5  ;;  %v9303_v4 = vor.u32 %v13034_v56, %v9302_v55  ;;  %v9431_v5 = vor.u32 %v13066_v60, %v9430_v59  ;;  %v9632_v55 = vor.u32 %v13117_v51, %v9631_v48  ;;  %v13149_v56 = vld [vmem:[#allocation10 + $0x3cc] sm:$0xf0]  ;;  %v13103_v48 = vld [vmem:[#allocation10 + $0x264] sm:$0xf] }
 0x121   :  { %1640 = vmatpush.bf16.msrb.mxu2 %v9387_v10  ;;  %1653 = vmatpush.bf16.msrb.mxu3 %v9515_v11  ;;  %v9307_v10 = vor.u32 %v13032_v61, %v9304_v62  ;;  %v9435_v11 = vor.u32 %v13064_v63, %v9432_v1  ;;  %v13147_v62 = vld [vmem:[#allocation10 + $0x3c4] sm:$0xf]  ;;  %v9761_v63 = vld [vmem:[#allocation10 + $0x3d0] sm:$0xf0] }
 0x122   :  { %v13135_v51 = vld [vmem:[#allocation10 + $0x364] sm:$0xf] }
 0x124   :  { %1615 = vmatpush.bf16.msrb.mxu0 %v9367_v21  ;;  %1628 = vmatpush.bf16.msrb.mxu1 %v9495_v22  ;;  %v9287_v21 = vor.u32 %v13030_v8, %v9286_v6  ;;  %v9415_v22 = vor.u32 %v13062_v15, %v9414_v12  ;;  %v9615_v6 = vld [vmem:[#allocation10 + $0x2a0] sm:$0xf]  ;;  %v13113_v8 = vld [vmem:[#allocation10 + $0x2ac] sm:$0xf0] }
 0x125   :  { %1641 = vmatpush.bf16.msrb.mxu2 %v9371_v25  ;;  %1654 = vmatpush.bf16.msrb.mxu3 %v9499_v7  ;;  %v14326_v25 = vld [vmem:[%s14798_s3 + $0x4] sm:$0xf]  ;;  %v9616_v12 = vor.u32 %v13113_v8, %v9615_v6  ;;  %v9569_v6 = vld [vmem:[#allocation10 + $0x250] sm:$0xf0] }
 0x126   :  { %v683_v7 = vperm.slane %v14326_v25, 0  ;;  %v684_v27 = vperm.slane %v14326_v25, 1  ;;  %v685_v36 = vperm.slane %v14326_v25, 2  ;;  %v686_v59 = vperm.slane %v14326_v25, 3  ;;  %v13145_v15 = vld [vmem:[#allocation10 + $0x3ac] sm:$0xf0] }
 0x128   :  { %1616 = vmatpush.bf16.msrb.mxu0 %v9351_v28  ;;  %1629 = vmatpush.bf16.msrb.mxu1 %v9479_v29 }
 0x129   :  { %1642 = vmatpush.bf16.msrb.mxu2 %v9355_v32  ;;  %1655 = vmatpush.bf16.msrb.mxu3 %v9483_v33  ;;  %v9647_v32 = vld [vmem:[#allocation10 + $0x2e0] sm:$0xf]  ;;  %v13121_v33 = vld [vmem:[#allocation10 + $0x2ec] sm:$0xf0] }
 0x12a   :  { %v9648_v37 = vor.u32 %v13121_v33, %v9647_v32  ;;  %v9601_v32 = vld [vmem:[#allocation10 + $0x290] sm:$0xf0]  ;;  %v13139_v33 = vld [vmem:[#allocation10 + $0x384] sm:$0xf] }
 0x12c   :  { %1617 = vmatpush.bf16.msrb.mxu0 %v9335_v40  ;;  %1630 = vmatpush.bf16.msrb.mxu1 %v9463_v41  ;;  %v9776_v40 = vor.u32 %v13153_v38, %v9775_v34  ;;  %v9649_v41 = vld [vmem:[#allocation10 + $0x2f0] sm:$0xf0] }
 0x12d   :  { %1643 = vmatpush.bf16.msrb.mxu2 %v9339_v44  ;;  %1656 = vmatpush.bf16.msrb.mxu3 %v9467_v45  ;;  %v9652_v44 = vor.u32 %v13119_v39, %v9649_v41  ;;  %v13105_v41 = vld [vmem:[#allocation10 + $0x26c] sm:$0xf0] }
 0x130   :  { %1618 = vmatpush.bf16.msrb.mxu0 %v9319_v52  ;;  %1631 = vmatpush.bf16.msrb.mxu1 %v9447_v53  ;;  %v9759_v52 = vld [vmem:[#allocation10 + $0x3c0] sm:$0xf] }
 0x131   :  { %1644 = vmatpush.bf16.msrb.mxu2 %v9323_v57  ;;  %1657 = vmatpush.bf16.msrb.mxu3 %v9451_v58  ;;  %v13115_v57 = vld [vmem:[#allocation10 + $0x2c4] sm:$0xf]  ;;  %v9633_v58 = vld [vmem:[#allocation10 + $0x2d0] sm:$0xf0]  ;;  %v9760_v60 = vor.u32 %v13149_v56, %v9759_v52 }
 0x132   :  { %v9636_v61 = vor.u32 %v13115_v57, %v9633_v58  ;;  %v9713_v52 = vld [vmem:[#allocation10 + $0x370] sm:$0xf0] }
 0x133   :  { %v9716_v57 = vor.u32 %v13135_v51, %v9713_v52 }
 0x134   :  { %1619 = vmatpush.bf16.msrb.mxu0 %v9303_v4  ;;  %1632 = vmatpush.bf16.msrb.mxu1 %v9431_v5  ;;  %v9764_v5 = vor.u32 %v13147_v62, %v9761_v63  ;;  %v9695_v62 = vld [vmem:[#allocation10 + $0x340] sm:$0xf] }
 0x135   :  { %1645 = vmatpush.bf16.msrb.mxu2 %v9307_v10  ;;  %1658 = vmatpush.bf16.msrb.mxu3 %v9435_v11  ;;  %v9743_v10 = vld [vmem:[#allocation10 + $0x3a0] sm:$0xf] }
 0x136   :  { %v9744_v19 = vor.u32 %v13145_v15, %v9743_v10 }
 0x138   :  { %1620 = vmatpush.bf16.msrb.mxu0 %v9287_v21  ;;  %1633 = vmatpush.bf16.msrb.mxu1 %v9415_v22  ;;  %v9620_v21 = vor.u32 %v13111_v16, %v9617_v17  ;;  %v13143_v22 = vld [vmem:[#allocation10 + $0x3a4] sm:$0xf] }
 0x139   :  { %1646 = vmatpush.bf16.msrb.mxu2 %v9291_v23  ;;  %1659 = vmatpush.bf16.msrb.mxu3 %v9419_v24  ;;  %v9745_v23 = vld [vmem:[#allocation10 + $0x3b0] sm:$0xf0] }
 0x13a   :  { %v9748_v25 = vor.u32 %v13143_v22, %v9745_v23  ;;  %v13097_v22 = vld [vmem:[#allocation10 + $0x22c] sm:$0xf0]  ;;  %v9679_v23 = vld [vmem:[#allocation10 + $0x320] sm:$0xf] }
 0x13b   :  { %1621 = vmatmul.bf16.vlgmr.msrb.gmra.mxu0 %v14311_v2  ;;  %1634 = vmatmul.bf16.vlgmr.msrb.gmra.mxu1 %v14313_v3 }
 0x13c   :  { %1647 = vmatmul.bf16.vlgmr.msrb.gmra.mxu2 %v14311_v2  ;;  %1660 = vmatmul.bf16.vlgmr.msrb.gmra.mxu3 %v14313_v3 }
 0x13d   :  { %2090 = vmatpush.bf16.msra.mxu0 %v9648_v37  ;;  %2103 = vmatpush.bf16.msra.mxu1 %v9776_v40  ;;  %v9729_v37 = vld [vmem:[#allocation10 + $0x390] sm:$0xf0]  ;;  %v9583_v40 = vld [vmem:[#allocation10 + $0x260] sm:$0xf] }
 0x13e   :  { %2116 = vmatpush.bf16.msra.mxu2 %v9652_v44  ;;  %2129 = vmatpush.bf16.msra.mxu3 %v9780_v47  ;;  %v9732_v39 = vor.u32 %v13139_v33, %v9729_v37  ;;  %v13137_v47 = vld [vmem:[#allocation10 + $0x36c] sm:$0xf0] }
 0x13f   :  { %v13093_v33 = vld [vmem:[#allocation10 + $0x20c] sm:$0xf0] }
 0x141   :  { %2091 = vmatpush.bf16.msra.mxu0 %v9632_v55  ;;  %2104 = vmatpush.bf16.msra.mxu1 %v9760_v60  ;;  %v14337_v55 = vld [vmem:[%s14798_s3] sm:$0xf]  ;;  %v9567_v60 = vld [vmem:[#allocation10 + $0x240] sm:$0xf] }
 0x142   :  { %2117 = vmatpush.bf16.msra.mxu2 %v9636_v61  ;;  %2130 = vmatpush.bf16.msra.mxu3 %v9764_v5  ;;  %v13101_v61 = vld [vmem:[#allocation10 + $0x24c] sm:$0xf0]  ;;  %v13099_v5 = vld [vmem:[#allocation10 + $0x244] sm:$0xf] }
 0x143   :  { %v9572_v10 = vor.u32 %v13099_v5, %v9569_v6  ;;  %v9785_v5 = vld [vmem:[#allocation10 + $0x3f8] sm:$0xf0]  ;;  %v9639_v6 = vld [vmem:[#allocation10 + $0x2c8] sm:$0xf] }
 0x145   :  { %2092 = vmatpush.bf16.msra.mxu0 %v9616_v12  ;;  %2105 = vmatpush.bf16.msra.mxu1 %v9744_v19  ;;  %v9697_v12 = vld [vmem:[#allocation10 + $0x350] sm:$0xf0] }
 0x146   :  { %2118 = vmatpush.bf16.msra.mxu2 %v9620_v21  ;;  %2131 = vmatpush.bf16.msra.mxu3 %v9748_v25  ;;  %v9551_v21 = vld [vmem:[#allocation10 + $0x220] sm:$0xf]  ;;  %v1227_v25 = vperm.slane %v14337_v55, 1 }
 0x14a   :  { %2132 = vmatpush.bf16.msra.mxu3 %v9732_v39  ;;  %v13125_v39 = vld [vmem:[#allocation10 + $0x30c] sm:$0xf0] }
 0x14e   :  { %2133 = vmatpush.bf16.msra.mxu3 %v9716_v57  ;;  %v9783_v57 = vld [vmem:[#allocation10 + $0x3e8] sm:$0xf] }
 0x177   :  { %v1027_v9 = vpop.f32.mrf.mxu0  ;;  %v1040_v26 = vpop.f32.mrf.mxu1 }
 0x178   :  { %v1028_v13 = vadd.f32 %v1027_v9, %v683_v7 }
 0x17a   :  { %v1041_v14 = vadd.f32 %v1040_v26, %v1028_v13  ;;  %v9599_v13 = vld [vmem:[#allocation10 + $0x280] sm:$0xf] }
 0x17c   :  { %v1122_v31 = vmul.f32 0.5, %v1041_v14 }
 0x17e   :  { %v1053_v20 = vpop.f32.mrf.mxu2  ;;  %v1066_v28 = vpop.f32.mrf.mxu3  ;;  %13954 = vtanh.f32 %v1122_v31  ;;  %v13107_v31 = vld [vmem:[#allocation10 + $0x284] sm:$0xf] }
 0x17f   :  { %v1054_v29 = vadd.f32 %v1053_v20, %v684_v27  ;;  %v1029_v30 = vpop.f32.mrf.mxu0  ;;  %v1042_v2 = vpop.f32.mrf.mxu1  ;;  %v13109_v27 = vld [vmem:[#allocation10 + $0x28c] sm:$0xf0] }
 0x180   :  { %v9727_v30 = vld [vmem:[#allocation10 + $0x380] sm:$0xf]  ;;  %v13141_v2 = vld [vmem:[#allocation10 + $0x38c] sm:$0xf0] }
 0x181   :  { %v1067_v3 = vadd.f32 %v1066_v28, %v1054_v29  ;;  %v9600_v29 = vor.u32 %v13109_v27, %v9599_v13  ;;  %v1150_v63 = vpop.permute.xlu0 %1149 }
 0x182   :  { %vm1151_vm1 = vcmp.eq.s32.totalorder %v1150_v63, 1  ;;  %v13152_v63 = vld [vmem:[#allocation10 + $0x3ec] sm:$0xf] }
 0x183   :  { %v1126_v35 = vmul.f32 0.5, %v1067_v3  ;;  %v9728_v3 = vor.u32 %v13141_v2, %v9727_v30  ;;  %2093 = vmatpush.bf16.msra.mxu0 %v9600_v29  ;;  %vm14346_vm2 = vmpackc.low %vm1151_vm1, %vm1151_vm1 }
 0x184   :  { %v13955_v1 = vpop.eup %13954 }
 0x185   :  { %13956 = vtanh.f32 %v1126_v35  ;;  %v1124_v24 = vadd.f32 1.0, %v13955_v1  ;;  %2106 = vmatpush.bf16.msra.mxu1 %v9728_v3  ;;  %v9568_v1 = vor.u32 %v13101_v61, %v9567_v60  ;;  %v1146_v3 = vld [vmem:[#allocation6] sm:$0xf]  ;;  %v13120_v61 = vld [vmem:[#allocation10 + $0x2ec] sm:$0xf] }
 0x186   :  { %v1055_v45 = vpop.f32.mrf.mxu2  ;;  %v1068_v46 = vpop.f32.mrf.mxu3 }
 0x187   :  { %v1079_v49 = vpop.f32.mrf.mxu0  ;;  %v1092_v50 = vpop.f32.mrf.mxu1  ;;  %v1125_v34 = vmul.f32 0.5, %v1124_v24  ;;  %v9584_v46 = vor.u32 %v13105_v41, %v9583_v40  ;;  %v13091_v40 = vld [vmem:[#allocation10 + $0x204] sm:$0xf]  ;;  %v9537_v41 = vld [vmem:[#allocation10 + $0x210] sm:$0xf0] }
 0x188   :  { %v1080_v53 = vadd.f32 %v1079_v49, %v685_v36  ;;  %v9604_v36 = vor.u32 %v13107_v31, %v9601_v32  ;;  %v9712_v49 = vor.u32 %v13137_v47, %v9711_v42  ;;  %v9535_v32 = vld [vmem:[#allocation10 + $0x200] sm:$0xf]  ;;  %v9540_v47 = vor.u32 %v13091_v40, %v9537_v41  ;;  %v13108_v40 = vld [vmem:[#allocation10 + $0x28c] sm:$0xf]  ;;  %v9609_v41 = vld [vmem:[#allocation10 + $0x298] sm:$0xf0] }
 0x189   :  { %2094 = vmatpush.bf16.msra.mxu0 %v9584_v46 }
 0x18a   :  { %v1093_v4 = vadd.f32 %v1092_v50, %v1080_v53  ;;  %2119 = vmatpush.bf16.msra.mxu2 %v9604_v36  ;;  %v9585_v50 = vld [vmem:[#allocation10 + $0x270] sm:$0xf0]  ;;  %2107 = vmatpush.bf16.msra.mxu1 %v9712_v49 }
 0x18b   :  { %v13957_v11 = vpop.eup %13956  ;;  %v9588_v56 = vor.u32 %v13103_v48, %v9585_v50  ;;  %v13123_v48 = vld [vmem:[#allocation10 + $0x304] sm:$0xf]  ;;  %v9665_v49 = vld [vmem:[#allocation10 + $0x310] sm:$0xf0]  ;;  %v9655_v50 = vld [vmem:[#allocation10 + $0x2e8] sm:$0xf] }
 0x18c   :  { %v1128_v18 = vadd.f32 1.0, %v13957_v11  ;;  %13958 = vtanh.f32 %v1093_v4  ;;  %v13133_v4 = vld [vmem:[#allocation10 + $0x34c] sm:$0xf0]  ;;  %v13131_v11 = vld [vmem:[#allocation10 + $0x344] sm:$0xf]  ;;  %v9668_v52 = vor.u32 %v13123_v48, %v9665_v49 }
 0x18d   :  { %v9696_v8 = vor.u32 %v13133_v4, %v9695_v62  ;;  %v9700_v17 = vor.u32 %v13131_v11, %v9697_v12  ;;  %2095 = vmatpush.bf16.msra.mxu0 %v9568_v1  ;;  %v9657_v62 = vld [vmem:[#allocation10 + $0x2f8] sm:$0xf0]  ;;  %v9788_v11 = vor.u32 %v13152_v63, %v9785_v5  ;;  %v13118_v12 = vld [vmem:[#allocation10 + $0x2d4] sm:$0xf0] }
 0x18e   :  { %v1129_v7 = vmul.f32 0.5, %v1128_v18  ;;  %v1105_v9 = vpop.f32.mrf.mxu2  ;;  %v1118_v26 = vpop.f32.mrf.mxu3  ;;  %2120 = vmatpush.bf16.msra.mxu2 %v9588_v56  ;;  %v1226_v18 = vperm.slane %v14337_v55, 0  ;;  %v13122_v56 = vld [vmem:[#allocation10 + $0x2f4] sm:$0xf0]  ;;  %v9660_v4 = vor.u32 %v13120_v61, %v9657_v62  ;;  %v1228_v61 = vperm.slane %v14337_v55, 2 }
 0x18f   :  { %v1106_v14 = vadd.f32 %v1105_v9, %v686_v59  ;;  %v1081_v20 = vpop.f32.mrf.mxu0  ;;  %v1094_v28 = vpop.f32.mrf.mxu1  ;;  %2108 = vmatpush.bf16.msra.mxu1 %v9696_v8  ;;  %2134 = vmatpush.bf16.msra.mxu3 %v9700_v17  ;;  %v13129_v9 = vld [vmem:[#allocation10 + $0x32c] sm:$0xf0]  ;;  %v9767_v17 = vld [vmem:[#allocation10 + $0x3c8] sm:$0xf]  ;;  %v13106_v48 = vld [vmem:[#allocation10 + $0x274] sm:$0xf0] }
 0x190   :  { %v1136_v43 = vmul.f32 0.0, %v1129_v7  ;;  %v9552_v7 = vor.u32 %v13097_v22, %v9551_v21  ;;  %v9680_v27 = vor.u32 %v13129_v9, %v9679_v23  ;;  %v13127_v20 = vld [vmem:[#allocation10 + $0x324] sm:$0xf]  ;;  %v9681_v28 = vld [vmem:[#allocation10 + $0x330] sm:$0xf0] }
 0x191   :  { %v1119_v35 = vadd.f32 %v1118_v26, %v1106_v14  ;;  %v13095_v26 = vld [vmem:[#allocation10 + $0x224] sm:$0xf]  ;;  %v9553_v14 = vld [vmem:[#allocation10 + $0x230] sm:$0xf0]  ;;  %v9684_v31 = vor.u32 %v13127_v20, %v9681_v28  ;;  %v9641_v22 = vld [vmem:[#allocation10 + $0x2d8] sm:$0xf0] }
 0x192   :  { %v13959_v38 = vpop.eup %13958  ;;  %2121 = vmatpush.bf16.msra.mxu2 %v9572_v10  ;;  %2096 = vmatpush.bf16.msra.mxu0 %v9552_v7  ;;  %v9556_v2 = vor.u32 %v13095_v26, %v9553_v14  ;;  %v13148_v23 = vld [vmem:[#allocation10 + $0x3cc] sm:$0xf]  ;;  %v9769_v9 = vld [vmem:[#allocation10 + $0x3d8] sm:$0xf0]  ;;  %v13114_v26 = vld [vmem:[#allocation10 + $0x2b4] sm:$0xf0] }
 0x193   :  { %v1137_v44 = vmul.f32 %v13959_v38, %v1125_v34  ;;  %v1131_v45 = vmul.f32 0.5, %v1119_v35  ;;  %2109 = vmatpush.bf16.msra.mxu1 %v9680_v27  ;;  %v9663_v34 = vld [vmem:[#allocation10 + $0x300] sm:$0xf]  ;;  %2135 = vmatpush.bf16.msra.mxu3 %v9684_v31  ;;  %v9536_v38 = vor.u32 %v13093_v33, %v9535_v32  ;;  %v9772_v14 = vor.u32 %v13148_v23, %v9769_v9  ;;  %v9751_v28 = vld [vmem:[#allocation10 + $0x3a8] sm:$0xf] }
 0x194   :  { %v9664_v46 = vor.u32 %v13125_v39, %v9663_v34  ;;  %v9625_v31 = vld [vmem:[#allocation10 + $0x2b8] sm:$0xf0]  ;;  %v13142_v39 = vld [vmem:[#allocation10 + $0x394] sm:$0xf0] }
 0x195   :  { %v14332_v53 = vadd.f32 %v1137_v44, %v1136_v43  ;;  %13960 = vtanh.f32 %v1131_v45  ;;  %v9753_v33 = vld [vmem:[#allocation10 + $0x3b8] sm:$0xf0]  ;;  %v13102_v5 = vld [vmem:[#allocation10 + $0x254] sm:$0xf0] }
 0x196   :  { %v1107_v58 = vpop.f32.mrf.mxu2  ;;  %v1120_v59 = vpop.f32.mrf.mxu3  ;;  %2122 = vmatpush.bf16.msra.mxu2 %v9556_v2  ;;  %2097 = vmatpush.bf16.msra.mxu0 %v9536_v38  ;;  %v13112_v2 = vld [vmem:[#allocation10 + $0x2ac] sm:$0xf]  ;;  %v9705_v23 = vld [vmem:[#allocation10 + $0x358] sm:$0xf0] }
 0x197   :  { %13962 = vtanh.f32 %v14332_v53  ;;  %v13154_v58 = vld [vmem:[#allocation10 + $0x3f4] sm:$0xf0]  ;;  %2110 = vmatpush.bf16.msra.mxu1 %v9664_v46  ;;  %v9656_v59 = vor.u32 %v13122_v56, %v9655_v50  ;;  %2136 = vmatpush.bf16.msra.mxu3 %v9668_v52  ;;  %v9628_v32 = vor.u32 %v13112_v2, %v9625_v31  ;;  %v9719_v50 = vld [vmem:[#allocation10 + $0x368] sm:$0xf]  ;;  %v13104_v52 = vld [vmem:[#allocation10 + $0x26c] sm:$0xf] }
 0x198   :  { %v1570_v15 = vpop.f32.mrf.mxu0  ;;  %v14340_v16 = vpop.f32.mrf.mxu1  ;;  %v9784_v60 = vor.u32 %v13154_v58, %v9783_v57  ;;  %v9593_v57 = vld [vmem:[#allocation10 + $0x278] sm:$0xf0]  ;;  %v13136_v58 = vld [vmem:[#allocation10 + $0x36c] sm:$0xf] }
 0x199   :  { %v1571_v42 = vadd.f32 %v1570_v15, %v1226_v18  ;;  %v9640_v15 = vor.u32 %v13118_v12, %v9639_v6  ;;  %v13150_v18 = vld [vmem:[#allocation10 + $0x3d4] sm:$0xf0]  ;;  %v9596_v62 = vor.u32 %v13104_v52, %v9593_v57  ;;  %v9703_v6 = vld [vmem:[#allocation10 + $0x348] sm:$0xf]  ;;  %v9577_v12 = vld [vmem:[#allocation10 + $0x258] sm:$0xf0] }
 0x19a   :  { %2123 = vmatpush.bf16.msra.mxu2 %v9540_v47  ;;  %2142 = vmatpush.bf16.msrb.mxu0 %v9656_v59  ;;  %v9768_v21 = vor.u32 %v13150_v18, %v9767_v17  ;;  %v9591_v47 = vld [vmem:[#allocation10 + $0x268] sm:$0xf]  ;;  %v9721_v59 = vld [vmem:[#allocation10 + $0x378] sm:$0xf0]  ;;  %v1229_v18 = vperm.slane %v14337_v55, 3 }
 0x19b   :  { %v13961_v19 = vpop.eup %13960  ;;  %v1584_v8 = vadd.f32 %v14340_v16, %v1571_v42  ;;  %2155 = vmatpush.bf16.msrb.mxu1 %v9784_v60  ;;  %2181 = vmatpush.bf16.msrb.mxu3 %v9788_v11  ;;  %v9623_v16 = vld [vmem:[#allocation10 + $0x2a8] sm:$0xf]  ;;  %v9592_v49 = vor.u32 %v13106_v48, %v9591_v47  ;;  %v9724_v63 = vor.u32 %v13136_v58, %v9721_v59  ;;  %v13100_v11 = vld [vmem:[#allocation10 + $0x24c] sm:$0xf] }
 0x19c   :  { %v1133_v24 = vadd.f32 1.0, %v13961_v19  ;;  %v13116_v19 = vld [vmem:[#allocation10 + $0x2cc] sm:$0xf]  ;;  %v9624_v20 = vor.u32 %v13114_v26, %v9623_v16  ;;  %v2229_v16 = vld [vmem:[#allocation7 + $0x8] sm:$0xf] }
 0x19d   :  { %v13963_v13 = vpop.eup %13962  ;;  %v9644_v7 = vor.u32 %v13116_v19, %v9641_v22  ;;  %v13132_v22 = vld [vmem:[#allocation10 + $0x34c] sm:$0xf]  ;;  %v9559_v26 = vld [vmem:[#allocation10 + $0x228] sm:$0xf]  ;;  %2230 = vst [vmem:[#allocation2] sm:$0xf] %v2229_v16 }
 0x19e   :  { %v1134_v29 = vmul.f32 0.5, %v1133_v24  ;;  %2168 = vmatpush.bf16.msrb.mxu2 %v9660_v4  ;;  %2143 = vmatpush.bf16.msrb.mxu0 %v9640_v15  ;;  %v9575_v4 = vld [vmem:[#allocation10 + $0x248] sm:$0xf]  ;;  %v9708_v9 = vor.u32 %v13132_v22, %v9705_v23  ;;  %v13096_v55 = vld [vmem:[#allocation10 + $0x22c] sm:$0xf] }
 0x19f   :  { %2156 = vmatpush.bf16.msrb.mxu1 %v9768_v21  ;;  %2182 = vmatpush.bf16.msrb.mxu3 %v9772_v14  ;;  %v9580_v21 = vor.u32 %v13100_v11, %v9577_v12  ;;  %v13128_v31 = vld [vmem:[#allocation10 + $0x32c] sm:$0xf]  ;;  %v10031_v11 = vld [vmem:[#allocation10 + $0x1e0] sm:$0xf]  ;;  %v13215_v22 = vld [vmem:[#allocation10 + $0x1e4] sm:$0xf] }
 0x1a0   :  { %v1140_v35 = vmul.f32 %v13963_v13, %v1134_v29  ;;  %v1572_v44 = vpop.f32.mrf.mxu0  ;;  %v1585_v45 = vpop.f32.mrf.mxu1  ;;  %v1665_v13 = vmul.f32 0.5, %v1584_v8  ;;  %v13146_v29 = vld [vmem:[#allocation10 + $0x3b4] sm:$0xf0]  ;;  %v9576_v8 = vor.u32 %v13102_v5, %v9575_v4  ;;  %v10033_v23 = vld [vmem:[#allocation10 + $0x1f0] sm:$0xf0] }
 0x1a1   :  { %v1596_v36 = vpop.f32.mrf.mxu2  ;;  %v1609_v37 = vpop.f32.mrf.mxu3  ;;  %v9752_v30 = vor.u32 %v13146_v29, %v9751_v28  ;;  %v13140_v44 = vld [vmem:[#allocation10 + $0x38c] sm:$0xf]  ;;  %v9737_v45 = vld [vmem:[#allocation10 + $0x398] sm:$0xf0]  ;;  %v13130_v28 = vld [vmem:[#allocation10 + $0x334] sm:$0xf0] }
 0x1a2   :  { %v1597_v43 = vadd.f32 %v1596_v36, %v1227_v25  ;;  %v1142_v51 = vpack.c.bf16 %v1140_v35, %v1140_v35  ;;  %2169 = vmatpush.bf16.msrb.mxu2 %v9644_v7  ;;  %v9607_v35 = vld [vmem:[#allocation10 + $0x288] sm:$0xf]  ;;  %v13110_v36 = vld [vmem:[#allocation10 + $0x294] sm:$0xf0]  ;;  %13964 = vtanh.f32 %v1665_v13  ;;  %2144 = vmatpush.bf16.msrb.mxu0 %v9624_v20  ;;  %v9740_v46 = vor.u32 %v13140_v44, %v9737_v45  ;;  %v9561_v29 = vld [vmem:[#allocation10 + $0x238] sm:$0xf0] }
 0x1a3   :  { %2157 = vmatpush.bf16.msrb.mxu1 %v9752_v30  ;;  %v9608_v38 = vor.u32 %v13110_v36, %v9607_v35  ;;  %v13098_v13 = vld [vmem:[#allocation10 + $0x234] sm:$0xf0]  ;;  %v9564_v2 = vor.u32 %v13096_v55, %v9561_v29  ;;  %v9671_v35 = vld [vmem:[#allocation10 + $0x308] sm:$0xf]  ;;  %v9673_v44 = vld [vmem:[#allocation10 + $0x318] sm:$0xf0] }
 0x1a4   :  { %1143 = vst [vmem:[#allocation3 + $0x4] sm:$0xf] %v1142_v51  ;;  %v1153_v1 = vsel %vm14346_vm2, %v1142_v51, %v1146_v3  ;;  %v1610_v10 = vadd.f32 %v1609_v37, %v1597_v43  ;;  %v13144_v3 = vld [vmem:[#allocation10 + $0x3ac] sm:$0xf]  ;;  %v9735_v37 = vld [vmem:[#allocation10 + $0x388] sm:$0xf]  ;;  %v9612_v43 = vor.u32 %v13108_v40, %v9609_v41  ;;  %v9560_v20 = vor.u32 %v13098_v13, %v9559_v26 }
 0x1a5   :  { %1154 = vst [vmem:[#allocation6] sm:$0xf] %v1153_v1  ;;  %v9756_v34 = vor.u32 %v13144_v3, %v9753_v33  ;;  %v9736_v42 = vor.u32 %v13142_v39, %v9735_v37  ;;  %v13138_v51 = vld [vmem:[#allocation10 + $0x374] sm:$0xf0]  ;;  %v9689_v3 = vld [vmem:[#allocation10 + $0x338] sm:$0xf0] }
 0x1a6   :  { %v1669_v27 = vmul.f32 0.5, %v1610_v10  ;;  %2170 = vmatpush.bf16.msrb.mxu2 %v9628_v32  ;;  %2145 = vmatpush.bf16.msrb.mxu0 %v9608_v38  ;;  %v9720_v56 = vor.u32 %v13138_v51, %v9719_v50  ;;  %v13134_v10 = vld [vmem:[#allocation10 + $0x354] sm:$0xf0]  ;;  %v9692_v32 = vor.u32 %v13128_v31, %v9689_v3  ;;  %v9543_v33 = vld [vmem:[#allocation10 + $0x208] sm:$0xf] }
 0x1a7   :  { %2183 = vmatpush.bf16.msrb.mxu3 %v9756_v34  ;;  %2158 = vmatpush.bf16.msrb.mxu1 %v9736_v42  ;;  %v9704_v19 = vor.u32 %v13134_v10, %v9703_v6  ;;  %v13094_v34 = vld [vmem:[#allocation10 + $0x214] sm:$0xf0]  ;;  %v13092_v37 = vld [vmem:[#allocation10 + $0x20c] sm:$0xf]  ;;  %v9545_v38 = vld [vmem:[#allocation10 + $0x218] sm:$0xf0] }
 0x1a8   :  { %13966 = vtanh.f32 %v1669_v27  ;;  %v13965_v60 = vpop.eup %13964  ;;  %v9687_v27 = vld [vmem:[#allocation10 + $0x328] sm:$0xf]  ;;  %v13126_v36 = vld [vmem:[#allocation10 + $0x314] sm:$0xf0]  ;;  %v9544_v41 = vor.u32 %v13094_v34, %v9543_v33  ;;  %v13185_v10 = vld [vmem:[#allocation10 + $0xec] sm:$0xf0] }
 0x1a9   :  { %v1598_v24 = vpop.f32.mrf.mxu2  ;;  %v1611_v25 = vpop.f32.mrf.mxu3  ;;  %v9688_v30 = vor.u32 %v13130_v28, %v9687_v27  ;;  %v9672_v42 = vor.u32 %v13126_v36, %v9671_v35  ;;  %v9887_v16 = vld [vmem:[#allocation10 + $0xc0] sm:$0xf]  ;;  %v13181_v26 = vld [vmem:[#allocation10 + $0xcc] sm:$0xf0]  ;;  %v10036_v27 = vor.u32 %v13215_v22, %v10033_v23  ;;  %v13179_v28 = vld [vmem:[#allocation10 + $0xc4] sm:$0xf] }
 0x1aa   :  { %2171 = vmatpush.bf16.msrb.mxu2 %v9612_v43  ;;  %2146 = vmatpush.bf16.msrb.mxu0 %v9592_v49  ;;  %v1667_v24 = vadd.f32 1.0, %v13965_v60  ;;  %v13124_v43 = vld [vmem:[#allocation10 + $0x30c] sm:$0xf]  ;;  %v9548_v49 = vor.u32 %v13092_v37, %v9545_v38  ;;  %v9889_v55 = vld [vmem:[#allocation10 + $0xd0] sm:$0xf0] }
 0x1ab   :  { %2184 = vmatpush.bf16.msrb.mxu3 %v9740_v46  ;;  %2159 = vmatpush.bf16.msrb.mxu1 %v9720_v56  ;;  %v9676_v50 = vor.u32 %v13124_v43, %v9673_v44  ;;  %v13211_v29 = vld [vmem:[#allocation10 + $0x1c4] sm:$0xf]  ;;  %v9871_v3 = vld [vmem:[#allocation10 + $0xa0] sm:$0xf]  ;;  %v9892_v33 = vor.u32 %v13179_v28, %v9889_v55  ;;  %v13209_v36 = vld [vmem:[#allocation10 + $0x1ac] sm:$0xf0] }
 0x1ac   :  { %v1668_v51 = vmul.f32 0.5, %v1667_v24  ;;  %v9999_v35 = vld [vmem:[#allocation10 + $0x1a0] sm:$0xf]  ;;  %v13175_v37 = vld [vmem:[#allocation10 + $0xa4] sm:$0xf] }
 0x1ad   :  { %v9873_v38 = vld [vmem:[#allocation10 + $0xb0] sm:$0xf0]  ;;  %v9855_v43 = vld [vmem:[#allocation10 + $0x80] sm:$0xf]  ;;  %v13173_v44 = vld [vmem:[#allocation10 + $0x8c] sm:$0xf0] }
 0x1ae   :  { %v13967_v1 = vpop.eup %13966  ;;  %2172 = vmatpush.bf16.msrb.mxu2 %v9596_v62  ;;  %2147 = vmatpush.bf16.msrb.mxu0 %v9576_v8  ;;  %v9825_v22 = vld [vmem:[#allocation10 + $0x50] sm:$0xf0]  ;;  %v13195_v23 = vld [vmem:[#allocation10 + $0x144] sm:$0xf]  ;;  %v13193_v28 = vld [vmem:[#allocation10 + $0x12c] sm:$0xf0] }
 0x1af   :  { %v1671_v25 = vadd.f32 1.0, %v13967_v1  ;;  %2185 = vmatpush.bf16.msrb.mxu3 %v9724_v63  ;;  %2160 = vmatpush.bf16.msrb.mxu1 %v9704_v19  ;;  %v13159_v55 = vld [vmem:[#allocation10 + $0x24] sm:$0xf] }
 0x1b1   :  { %v1672_v45 = vmul.f32 0.5, %v1671_v25 }
 0x1b2   :  { %2173 = vmatpush.bf16.msrb.mxu2 %v9580_v21  ;;  %2148 = vmatpush.bf16.msrb.mxu0 %v9560_v20  ;;  %v9905_v21 = vld [vmem:[#allocation10 + $0xf0] sm:$0xf0]  ;;  %v13213_v20 = vld [vmem:[#allocation10 + $0x1cc] sm:$0xf0] }
 0x1b3   :  { %2186 = vmatpush.bf16.msrb.mxu3 %v9708_v9  ;;  %2161 = vmatpush.bf16.msrb.mxu1 %v9688_v30  ;;  %v1679_v57 = vmul.f32 %v1672_v45, %v14292_v54  ;;  %v9903_v54 = vld [vmem:[#allocation10 + $0xe0] sm:$0xf]  ;;  %v10017_v30 = vld [vmem:[#allocation10 + $0x1d0] sm:$0xf0]  ;;  %v9876_v45 = vor.u32 %v13175_v37, %v9873_v38 }
 0x1b4   :  { %v10020_v34 = vor.u32 %v13211_v29, %v10017_v30  ;;  %v9809_v29 = vld [vmem:[#allocation10 + $0x30] sm:$0xf0]  ;;  %v13191_v30 = vld [vmem:[#allocation10 + $0x124] sm:$0xf] }
 0x1b5   :  { %v9812_v37 = vor.u32 %v13159_v55, %v9809_v29  ;;  %v9863_v55 = vld [vmem:[#allocation10 + $0x88] sm:$0xf]  ;;  %v13174_v29 = vld [vmem:[#allocation10 + $0x94] sm:$0xf0] }
 0x1b6   :  { %2174 = vmatpush.bf16.msrb.mxu2 %v9564_v2  ;;  %2149 = vmatpush.bf16.msrb.mxu0 %v9544_v41  ;;  %v9888_v2 = vor.u32 %v13181_v26, %v9887_v16  ;;  %v9807_v26 = vld [vmem:[#allocation10 + $0x20] sm:$0xf] }
 0x1b7   :  { %2187 = vmatpush.bf16.msrb.mxu3 %v9692_v32  ;;  %2162 = vmatpush.bf16.msrb.mxu1 %v9672_v42  ;;  %v13177_v32 = vld [vmem:[#allocation10 + $0xac] sm:$0xf0]  ;;  %v10000_v42 = vor.u32 %v13209_v36, %v9999_v35 }
 0x1b8   :  { %v1622_v15 = vpop.f32.mrf.mxu0  ;;  %v1635_v17 = vpop.f32.mrf.mxu1  ;;  %v9872_v41 = vor.u32 %v13177_v32, %v9871_v3 }
 0x1b9   :  { %v1623_v7 = vadd.f32 %v1622_v15, %v1228_v61  ;;  %v13217_v15 = vld [vmem:[#allocation10 + $0x1ec] sm:$0xf0] }
 0x1ba   :  { %2175 = vmatpush.bf16.msrb.mxu2 %v9548_v49  ;;  %v10032_v9 = vor.u32 %v13217_v15, %v10031_v11  ;;  %v13171_v49 = vld [vmem:[#allocation10 + $0x84] sm:$0xf]  ;;  %v9823_v11 = vld [vmem:[#allocation10 + $0x40] sm:$0xf] }
 0x1bb   :  { %v1636_v14 = vadd.f32 %v1635_v17, %v1623_v7  ;;  %2188 = vmatpush.bf16.msrb.mxu3 %v9676_v50  ;;  %v13183_v17 = vld [vmem:[#allocation10 + $0xe4] sm:$0xf]  ;;  %v9904_v7 = vor.u32 %v13185_v10, %v9903_v54  ;;  %v9857_v50 = vld [vmem:[#allocation10 + $0x90] sm:$0xf0] }
 0x1bc   :  { %v9908_v13 = vor.u32 %v13183_v17, %v9905_v21  ;;  %v13163_v21 = vld [vmem:[#allocation10 + $0x44] sm:$0xf] }
 0x1bd   :  { %13968 = vtanh.f32 %v1636_v14  ;;  %v10015_v14 = vld [vmem:[#allocation10 + $0x1c0] sm:$0xf] }
 0x1be   :  { %v10016_v31 = vor.u32 %v13213_v20, %v10015_v14  ;;  %v9935_v20 = vld [vmem:[#allocation10 + $0x120] sm:$0xf] }
 0x1bf   :  { %v1648_v39 = vpop.f32.mrf.mxu2  ;;  %v1661_v40 = vpop.f32.mrf.mxu3  ;;  %v9936_v32 = vor.u32 %v13193_v28, %v9935_v20 }
 0x1c0   :  { %v1649_v46 = vadd.f32 %v1648_v39, %v1229_v18  ;;  %v1624_v47 = vpop.f32.mrf.mxu0  ;;  %v1637_v48 = vpop.f32.mrf.mxu1  ;;  %v13207_v39 = vld [vmem:[#allocation10 + $0x1a4] sm:$0xf] }
 0x1c1   :  { %v9983_v47 = vld [vmem:[#allocation10 + $0x180] sm:$0xf]  ;;  %v13205_v48 = vld [vmem:[#allocation10 + $0x18c] sm:$0xf0] }
 0x1c2   :  { %v1662_v52 = vadd.f32 %v1661_v40, %v1649_v46  ;;  %v10001_v40 = vld [vmem:[#allocation10 + $0x1b0] sm:$0xf0] }
 0x1c3   :  { %v13969_v56 = vpop.eup %13968  ;;  %v10004_v46 = vor.u32 %v13207_v39, %v10001_v40  ;;  %v13155_v39 = vld [vmem:[#allocation10 + $0x4] sm:$0xf]  ;;  %v9793_v40 = vld [vmem:[#allocation10 + $0x10] sm:$0xf0] }
 0x1c4   :  { %v1680_v58 = vmul.f32 %v13969_v56, %v1668_v51  ;;  %v1674_v59 = vmul.f32 0.5, %v1662_v52  ;;  %v13203_v51 = vld [vmem:[#allocation10 + $0x184] sm:$0xf]  ;;  %v9985_v52 = vld [vmem:[#allocation10 + $0x190] sm:$0xf0]  ;;  %v9856_v56 = vor.u32 %v13173_v44, %v9855_v43 }
 0x1c5   :  { %v9911_v43 = vld [vmem:[#allocation10 + $0xe8] sm:$0xf]  ;;  %v13186_v44 = vld [vmem:[#allocation10 + $0xf4] sm:$0xf0] }
 0x1c6   :  { %v14356_v60 = vadd.f32 %v1680_v58, %v1679_v57  ;;  %13970 = vtanh.f32 %v1674_v59  ;;  %v9984_v57 = vor.u32 %v13205_v48, %v9983_v47  ;;  %v9839_v58 = vld [vmem:[#allocation10 + $0x60] sm:$0xf]  ;;  %v13169_v59 = vld [vmem:[#allocation10 + $0x6c] sm:$0xf0]  ;;  %v13184_v47 = vld [vmem:[#allocation10 + $0xec] sm:$0xf] }
 0x1c7   :  { %v1650_v61 = vpop.f32.mrf.mxu2  ;;  %v1663_v62 = vpop.f32.mrf.mxu3  ;;  %v9840_v54 = vor.u32 %v13169_v59, %v9839_v58  ;;  %v9912_v59 = vor.u32 %v13186_v44, %v9911_v43  ;;  %v9849_v43 = vld [vmem:[#allocation10 + $0x78] sm:$0xf0]  ;;  %v13200_v44 = vld [vmem:[#allocation10 + $0x16c] sm:$0xf] }
 0x1c8   :  { %13972 = vtanh.f32 %v14356_v60  ;;  %v9860_v61 = vor.u32 %v13171_v49, %v9857_v50  ;;  %v9988_v62 = vor.u32 %v13203_v51, %v9985_v52  ;;  %v9913_v50 = vld [vmem:[#allocation10 + $0xf8] sm:$0xf0]  ;;  %v13216_v51 = vld [vmem:[#allocation10 + $0x1ec] sm:$0xf] }
 0x1c9   :  { %v10041_v52 = vld [vmem:[#allocation10 + $0x1f8] sm:$0xf0] }
 0x1cc   :  { %v13971_v63 = vpop.eup %13970 }
 0x1cd   :  { %v1676_v1 = vadd.f32 1.0, %v13971_v63  ;;  %v9967_v63 = vld [vmem:[#allocation10 + $0x160] sm:$0xf] }
 0x1ce   :  { %v13973_v4 = vpop.eup %13972 }
 0x1cf   :  { %v1677_v5 = vmul.f32 0.5, %v1676_v1  ;;  %v13201_v1 = vld [vmem:[#allocation10 + $0x16c] sm:$0xf0] }
 0x1d0   :  { %v9968_v10 = vor.u32 %v13201_v1, %v9967_v63  ;;  %v9895_v63 = vld [vmem:[#allocation10 + $0xc8] sm:$0xf]  ;;  %v13182_v1 = vld [vmem:[#allocation10 + $0xd4] sm:$0xf0] }
 0x1d1   :  { %v1683_v6 = vmul.f32 %v13973_v4, %v1677_v5  ;;  %v13167_v4 = vld [vmem:[#allocation10 + $0x64] sm:$0xf]  ;;  %v9841_v5 = vld [vmem:[#allocation10 + $0x70] sm:$0xf0] }
 0x1d2   :  { %v9844_v15 = vor.u32 %v13167_v4, %v9841_v5  ;;  %v9916_v4 = vor.u32 %v13184_v47, %v9913_v50  ;;  %v10044_v5 = vor.u32 %v13216_v51, %v10041_v52  ;;  %v9959_v52 = vld [vmem:[#allocation10 + $0x148] sm:$0xf] }
 0x1d3   :  { %v1685_v8 = vpack.c.bf16 %v1683_v6, %v1683_v6  ;;  %v13199_v6 = vld [vmem:[#allocation10 + $0x164] sm:$0xf] }
 0x1d5   :  { %1686 = vst [vmem:[#allocation2 + $0x4] sm:$0xf] %v1685_v8 }
 0x1d6   :  { %1687 = vst [vmem:[#allocation3] sm:$0xf] %v1685_v8  ;;  %v9969_v8 = vld [vmem:[#allocation10 + $0x170] sm:$0xf0] }
 0x1d7   :  { %v9972_v17 = vor.u32 %v13199_v6, %v9969_v8  ;;  %v10023_v6 = vld [vmem:[#allocation10 + $0x1c8] sm:$0xf]  ;;  %v13214_v8 = vld [vmem:[#allocation10 + $0x1d4] sm:$0xf0] }
 0x1dc   :  { %v2231_v35 = vld [vmem:[#allocation2] sm:$0xff] }
 0x1dd   :  { %v1688_v12 = vld [vmem:[#allocation3] sm:$0xff]  ;;  %v2307_v58 = vunpack.c.l.b16 %v2231_v35 }
 0x1de   :  { %v1764_v18 = vunpack.c.l.b16 %v1688_v12  ;;  %v1765_v19 = vunpack.c.h.b16 %v1688_v12  ;;  %v13165_v12 = vld [vmem:[#allocation10 + $0x4c] sm:$0xf0] }
 0x1e0   :  { %v14359_v24 = vpack.c.b16 %v1764_v18, %v1764_v18  ;;  %v14361_v25 = vpack.c.b16 %v1765_v19, %v1765_v19  ;;  %v9951_v18 = vld [vmem:[#allocation10 + $0x140] sm:$0xf]  ;;  %v13197_v19 = vld [vmem:[#allocation10 + $0x14c] sm:$0xf0] }
 0x1e1   :  { %v9952_v16 = vor.u32 %v13197_v19, %v9951_v18  ;;  %v9896_v18 = vor.u32 %v13182_v1, %v9895_v63  ;;  %v10024_v19 = vor.u32 %v13214_v8, %v10023_v6  ;;  %v9815_v1 = vld [vmem:[#allocation10 + $0x28] sm:$0xf] }
 0x1e2   :  { %2098 = vmatmul.bf16.vlgmr.msra.gmra.mxu0 %v14359_v24  ;;  %2111 = vmatmul.bf16.vlgmr.msra.gmra.mxu1 %v14361_v25  ;;  %v9943_v8 = vld [vmem:[#allocation10 + $0x128] sm:$0xf] }
 0x1e3   :  { %2124 = vmatmul.bf16.vlgmr.msra.gmra.mxu2 %v14359_v24  ;;  %2137 = vmatmul.bf16.vlgmr.msra.gmra.mxu3 %v14361_v25 }
 0x1e4   :  { %2633 = vmatpush.bf16.msra.mxu0 %v9904_v7  ;;  %2646 = vmatpush.bf16.msra.mxu1 %v10032_v9  ;;  %v9953_v7 = vld [vmem:[#allocation10 + $0x150] sm:$0xf0]  ;;  %v9824_v9 = vor.u32 %v13165_v12, %v9823_v11  ;;  %v13212_v11 = vld [vmem:[#allocation10 + $0x1cc] sm:$0xf]  ;;  %v10025_v12 = vld [vmem:[#allocation10 + $0x1d8] sm:$0xf0] }
 0x1e5   :  { %2659 = vmatpush.bf16.msra.mxu2 %v9908_v13  ;;  %2672 = vmatpush.bf16.msra.mxu3 %v10036_v27  ;;  %v13161_v13 = vld [vmem:[#allocation10 + $0x2c] sm:$0xf0]  ;;  %v9828_v27 = vor.u32 %v13163_v21, %v9825_v22  ;;  %v9956_v14 = vor.u32 %v13195_v23, %v9953_v7  ;;  %v9879_v21 = vld [vmem:[#allocation10 + $0xa8] sm:$0xf]  ;;  %v13178_v22 = vld [vmem:[#allocation10 + $0xb4] sm:$0xf0]  ;;  %v10028_v7 = vor.u32 %v13212_v11, %v10025_v12 }
 0x1e6   :  { %v9808_v3 = vor.u32 %v13161_v13, %v9807_v26  ;;  %v13176_v26 = vld [vmem:[#allocation10 + $0xac] sm:$0xf]  ;;  %v9881_v13 = vld [vmem:[#allocation10 + $0xb8] sm:$0xf0]  ;;  %v9880_v20 = vor.u32 %v13178_v22, %v9879_v21  ;;  %v9799_v22 = vld [vmem:[#allocation10 + $0x8] sm:$0xf] }
 0x1e7   :  { %v9817_v11 = vld [vmem:[#allocation10 + $0x38] sm:$0xf0]  ;;  %v13192_v12 = vld [vmem:[#allocation10 + $0x12c] sm:$0xf] }
 0x1e8   :  { %2634 = vmatpush.bf16.msra.mxu0 %v9888_v2  ;;  %2647 = vmatpush.bf16.msra.mxu1 %v10016_v31  ;;  %v9937_v2 = vld [vmem:[#allocation10 + $0x130] sm:$0xf0]  ;;  %v9791_v31 = vld [vmem:[#allocation10] sm:$0xf] }
 0x1e9   :  { %2660 = vmatpush.bf16.msra.mxu2 %v9892_v33  ;;  %2673 = vmatpush.bf16.msra.mxu3 %v10020_v34  ;;  %v9919_v33 = vld [vmem:[#allocation10 + $0x100] sm:$0xf]  ;;  %v13189_v34 = vld [vmem:[#allocation10 + $0x10c] sm:$0xf0]  ;;  %v9940_v38 = vor.u32 %v13191_v30, %v9937_v2  ;;  %v9884_v30 = vor.u32 %v13176_v26, %v9881_v13  ;;  %v13190_v26 = vld [vmem:[#allocation10 + $0x114] sm:$0xf0] }
 0x1ea   :  { %v9920_v49 = vor.u32 %v13189_v34, %v9919_v33  ;;  %v9993_v33 = vld [vmem:[#allocation10 + $0x198] sm:$0xf0]  ;;  %v9864_v34 = vor.u32 %v13174_v29, %v9863_v55  ;;  %v13156_v13 = vld [vmem:[#allocation10 + $0xc] sm:$0xf] }
 0x1ec   :  { %2635 = vmatpush.bf16.msra.mxu0 %v9872_v41  ;;  %2648 = vmatpush.bf16.msra.mxu1 %v10000_v42  ;;  %v13187_v41 = vld [vmem:[#allocation10 + $0x104] sm:$0xf]  ;;  %v9921_v42 = vld [vmem:[#allocation10 + $0x110] sm:$0xf0] }
 0x1ed   :  { %2661 = vmatpush.bf16.msra.mxu2 %v9876_v45  ;;  %2674 = vmatpush.bf16.msra.mxu3 %v10004_v46  ;;  %v10039_v45 = vld [vmem:[#allocation10 + $0x1e8] sm:$0xf]  ;;  %v13218_v46 = vld [vmem:[#allocation10 + $0x1f4] sm:$0xf0] }
 0x1f0   :  { %2636 = vmatpush.bf16.msra.mxu0 %v9856_v56  ;;  %2649 = vmatpush.bf16.msra.mxu1 %v9984_v57  ;;  %v9796_v56 = vor.u32 %v13155_v39, %v9793_v40  ;;  %v9924_v57 = vor.u32 %v13187_v41, %v9921_v42  ;;  %v9975_v40 = vld [vmem:[#allocation10 + $0x168] sm:$0xf]  ;;  %v13202_v41 = vld [vmem:[#allocation10 + $0x174] sm:$0xf0]  ;;  %v13168_v42 = vld [vmem:[#allocation10 + $0x6c] sm:$0xf] }
 0x1f1   :  { %2662 = vmatpush.bf16.msra.mxu2 %v9860_v61  ;;  %2675 = vmatpush.bf16.msra.mxu3 %v9988_v62  ;;  %v10040_v61 = vor.u32 %v13218_v46, %v10039_v45  ;;  %v2308_v62 = vunpack.c.h.b16 %v2231_v35  ;;  %v9977_v45 = vld [vmem:[#allocation10 + $0x178] sm:$0xf0]  ;;  %v9976_v47 = vor.u32 %v13202_v41, %v9975_v40  ;;  %v9852_v50 = vor.u32 %v13168_v42, %v9849_v43  ;;  %v13249_v40 = vld [vmem:[#allocation10 + $0x2ec] sm:$0xf0]  ;;  %v10288_v41 = vld [vmem:[#allocation10 + $0x3e0] sm:$0xf] }
 0x1f2   :  { %2150 = vmatmul.bf16.vlgmr.msrb.gmra.mxu0 %v14359_v24  ;;  %2163 = vmatmul.bf16.vlgmr.msrb.gmra.mxu1 %v14361_v25  ;;  %v9980_v51 = vor.u32 %v13200_v44, %v9977_v45  ;;  %v13281_v45 = vld [vmem:[#allocation10 + $0x3ec] sm:$0xf0] }
 0x1f3   :  { %2176 = vmatmul.bf16.vlgmr.msrb.gmra.mxu2 %v14359_v24  ;;  %2189 = vmatmul.bf16.vlgmr.msrb.gmra.mxu3 %v14361_v25  ;;  %v13157_v24 = vld [vmem:[#allocation10 + $0xc] sm:$0xf0] }
 0x1f4   :  { %2637 = vmatpush.bf16.msra.mxu0 %v9840_v54  ;;  %2650 = vmatpush.bf16.msra.mxu1 %v9968_v10  ;;  %v14104_v25 = vld [vmem:[%s14795_s0] sm:$0xff]  ;;  %v9792_v48 = vor.u32 %v13157_v24, %v9791_v31  ;;  %v9897_v10 = vld [vmem:[#allocation10 + $0xd8] sm:$0xf0]  ;;  %v9991_v31 = vld [vmem:[#allocation10 + $0x188] sm:$0xf] }
 0x1f5   :  { %2663 = vmatpush.bf16.msra.mxu2 %v9844_v15  ;;  %2676 = vmatpush.bf16.msra.mxu3 %v9972_v17  ;;  %vm2217_vm3 = vcmp.eq.s32.totalorder %v14104_v25, 1  ;;  %v13180_v54 = vld [vmem:[#allocation10 + $0xcc] sm:$0xf]  ;;  %v14375_v15 = vpack.c.b16 %v2307_v58, %v2307_v58  ;;  %v14377_v17 = vpack.c.b16 %v2308_v62, %v2308_v62  ;;  %v13206_v24 = vld [vmem:[#allocation10 + $0x194] sm:$0xf0] }
 0x1f6   :  { %v2219_v36 = vsel %vm2217_vm3, 1, %v14219_v0  ;;  %v9900_v23 = vor.u32 %v13180_v54, %v9897_v10  ;;  %v13172_v25 = vld [vmem:[#allocation10 + $0x8c] sm:$0xf]  ;;  %v9992_v35 = vor.u32 %v13206_v24, %v9991_v31  ;;  %v9833_v58 = vld [vmem:[#allocation10 + $0x58] sm:$0xf0] }
 0x1f7   :  { %2221 = vperm.xlu0 %13940, %v2219_v36   ;;  %v9847_v36 = vld [vmem:[#allocation10 + $0x68] sm:$0xf]  ;;  %v13194_v54 = vld [vmem:[#allocation10 + $0x134] sm:$0xf0]  ;;  %v13160_v10 = vld [vmem:[#allocation10 + $0x2c] sm:$0xf] }
 0x1f8   :  { %2638 = vmatpush.bf16.msra.mxu0 %v9824_v9  ;;  %2651 = vmatpush.bf16.msra.mxu1 %v9952_v16  ;;  %v10007_v9 = vld [vmem:[#allocation10 + $0x1a8] sm:$0xf]  ;;  %v13210_v16 = vld [vmem:[#allocation10 + $0x1b4] sm:$0xf0]  ;;  %v9944_v21 = vor.u32 %v13194_v54, %v9943_v8  ;;  %v13243_v8 = vld [vmem:[#allocation10 + $0x2c4] sm:$0xf] }
 0x1f9   :  { %2664 = vmatpush.bf16.msra.mxu2 %v9828_v27  ;;  %2677 = vmatpush.bf16.msra.mxu3 %v9956_v14  ;;  %v13208_v27 = vld [vmem:[#allocation10 + $0x1ac] sm:$0xf]  ;;  %v10009_v14 = vld [vmem:[#allocation10 + $0x1b8] sm:$0xf0]  ;;  %v10008_v28 = vor.u32 %v13210_v16, %v10007_v9  ;;  %v9927_v16 = vld [vmem:[#allocation10 + $0x108] sm:$0xf] }
 0x1fa   :  { %v10012_v2 = vor.u32 %v13208_v27, %v10009_v14  ;;  %v9801_v27 = vld [vmem:[#allocation10 + $0x18] sm:$0xf0]  ;;  %v13188_v14 = vld [vmem:[#allocation10 + $0x10c] sm:$0xf]  ;;  %v9928_v55 = vor.u32 %v13190_v26, %v9927_v16  ;;  %v10146_v54 = vld [vmem:[#allocation10 + $0x2d0] sm:$0xf0] }
 0x1fb   :  { %v9804_v29 = vor.u32 %v13156_v13, %v9801_v27  ;;  %v13273_v13 = vld [vmem:[#allocation10 + $0x3ac] sm:$0xf0]  ;;  %v13239_v27 = vld [vmem:[#allocation10 + $0x2a4] sm:$0xf] }
 0x1fc   :  { %2639 = vmatpush.bf16.msra.mxu0 %v9808_v3  ;;  %2652 = vmatpush.bf16.msra.mxu1 %v9936_v32  ;;  %v9865_v3 = vld [vmem:[#allocation10 + $0x98] sm:$0xf0]  ;;  %v13204_v32 = vld [vmem:[#allocation10 + $0x18c] sm:$0xf] }
 0x1fd   :  { %2665 = vmatpush.bf16.msra.mxu2 %v9812_v37  ;;  %2678 = vmatpush.bf16.msra.mxu3 %v9940_v38  ;;  %v13170_v37 = vld [vmem:[#allocation10 + $0x74] sm:$0xf0]  ;;  %v9868_v38 = vor.u32 %v13172_v25, %v9865_v3  ;;  %v9996_v39 = vor.u32 %v13204_v32, %v9993_v33 }
 0x1fe   :  { %v9848_v46 = vor.u32 %v13170_v37, %v9847_v36 }
 0x200   :  { %2640 = vmatpush.bf16.msra.mxu0 %v9792_v48  ;;  %2653 = vmatpush.bf16.msra.mxu1 %v9920_v49  ;;  %v9831_v48 = vld [vmem:[#allocation10 + $0x48] sm:$0xf]  ;;  %v13166_v49 = vld [vmem:[#allocation10 + $0x54] sm:$0xf0] }
 0x201   :  { %2666 = vmatpush.bf16.msra.mxu2 %v9796_v56  ;;  %2679 = vmatpush.bf16.msra.mxu3 %v9924_v57  ;;  %v13198_v56 = vld [vmem:[#allocation10 + $0x154] sm:$0xf0]  ;;  %v13164_v57 = vld [vmem:[#allocation10 + $0x4c] sm:$0xf]  ;;  %v9832_v62 = vor.u32 %v13166_v49, %v9831_v48  ;;  %v10162_v48 = vld [vmem:[#allocation10 + $0x2f0] sm:$0xf0] }
 0x202   :  { %v9960_v63 = vor.u32 %v13198_v56, %v9959_v52  ;;  %v13279_v49 = vld [vmem:[#allocation10 + $0x3e4] sm:$0xf] }
 0x203   :  { %2641 = vmatmul.bf16.vlgmr.msra.gmra.mxu0 %v14375_v15  ;;  %2654 = vmatmul.bf16.vlgmr.msra.gmra.mxu1 %v14377_v17 }
 0x204   :  { %2685 = vmatpush.bf16.msrb.mxu0 %v9912_v59  ;;  %2698 = vmatpush.bf16.msrb.mxu1 %v10040_v61  ;;  %v13196_v59 = vld [vmem:[#allocation10 + $0x14c] sm:$0xf]  ;;  %v9961_v61 = vld [vmem:[#allocation10 + $0x158] sm:$0xf0] }
 0x205   :  { %2711 = vmatpush.bf16.msrb.mxu2 %v9916_v4  ;;  %2724 = vmatpush.bf16.msrb.mxu3 %v10044_v5  ;;  %v13162_v4 = vld [vmem:[#allocation10 + $0x34] sm:$0xf0]  ;;  %v9836_v5 = vor.u32 %v13164_v57, %v9833_v58  ;;  %v9964_v6 = vor.u32 %v13196_v59, %v9961_v61  ;;  %v10144_v58 = vld [vmem:[#allocation10 + $0x2c0] sm:$0xf]  ;;  %v13245_v59 = vld [vmem:[#allocation10 + $0x2cc] sm:$0xf0] }
 0x206   :  { %2667 = vmatmul.bf16.vlgmr.msra.gmra.mxu2 %v14375_v15  ;;  %2680 = vmatmul.bf16.vlgmr.msra.gmra.mxu3 %v14377_v17 }
 0x208   :  { %2686 = vmatpush.bf16.msrb.mxu0 %v9896_v18  ;;  %2699 = vmatpush.bf16.msrb.mxu1 %v10024_v19  ;;  %v9945_v18 = vld [vmem:[#allocation10 + $0x138] sm:$0xf0]  ;;  %v9816_v19 = vor.u32 %v13162_v4, %v9815_v1  ;;  %v10272_v1 = vld [vmem:[#allocation10 + $0x3c0] sm:$0xf]  ;;  %v13277_v4 = vld [vmem:[#allocation10 + $0x3cc] sm:$0xf0] }
 0x209   :  { %2712 = vmatpush.bf16.msrb.mxu2 %v9900_v23  ;;  %2725 = vmatpush.bf16.msrb.mxu3 %v10028_v7  ;;  %v13158_v23 = vld [vmem:[#allocation10 + $0x14] sm:$0xf0]  ;;  %v9820_v7 = vor.u32 %v13160_v10, %v9817_v11  ;;  %v9948_v9 = vor.u32 %v13192_v12, %v9945_v18  ;;  %v13275_v10 = vld [vmem:[#allocation10 + $0x3c4] sm:$0xf]  ;;  %v10149_v12 = vor.u32 %v13243_v8, %v10146_v54  ;;  %v10274_v18 = vld [vmem:[#allocation10 + $0x3d0] sm:$0xf0] }
 0x20c   :  { %2687 = vmatpush.bf16.msrb.mxu0 %v9880_v20  ;;  %2700 = vmatpush.bf16.msrb.mxu1 %v10008_v28  ;;  %v9929_v20 = vld [vmem:[#allocation10 + $0x118] sm:$0xf0]  ;;  %v9800_v28 = vor.u32 %v13158_v23, %v9799_v22  ;;  %v10277_v22 = vor.u32 %v13275_v10, %v10274_v18  ;;  %v10128_v23 = vld [vmem:[#allocation10 + $0x2a0] sm:$0xf]  ;;  %v13229_v10 = vld [vmem:[#allocation10 + $0x24c] sm:$0xf0] }
 0x20d   :  { %2713 = vmatpush.bf16.msrb.mxu2 %v9884_v30  ;;  %2726 = vmatpush.bf16.msrb.mxu3 %v10012_v2  ;;  %v9932_v30 = vor.u32 %v13188_v14, %v9929_v20  ;;  %v14390_v2 = vld [vmem:[%s14798_s3 + $0x4] sm:$0xf]  ;;  %v10130_v14 = vld [vmem:[#allocation10 + $0x2b0] sm:$0xf0] }
 0x20e   :  { %v1755_v31 = vperm.slane %v14390_v2, 0  ;;  %v1756_v32 = vperm.slane %v14390_v2, 1  ;;  %v1757_v43 = vperm.slane %v14390_v2, 2  ;;  %v1758_v11 = vperm.slane %v14390_v2, 3 }
 0x210   :  { %2688 = vmatpush.bf16.msrb.mxu0 %v9864_v34  ;;  %2701 = vmatpush.bf16.msrb.mxu1 %v9992_v35 }
 0x211   :  { %2714 = vmatpush.bf16.msrb.mxu2 %v9868_v38  ;;  %2727 = vmatpush.bf16.msrb.mxu3 %v9996_v39  ;;  %v10160_v39 = vld [vmem:[#allocation10 + $0x2e0] sm:$0xf] }
 0x212   :  { %v10161_v44 = vor.u32 %v13249_v40, %v10160_v39  ;;  %v10114_v40 = vld [vmem:[#allocation10 + $0x290] sm:$0xf0] }
 0x214   :  { %2689 = vmatpush.bf16.msrb.mxu0 %v9848_v46  ;;  %2702 = vmatpush.bf16.msrb.mxu1 %v9976_v47  ;;  %v13247_v46 = vld [vmem:[#allocation10 + $0x2e4] sm:$0xf]  ;;  %v10289_v47 = vor.u32 %v13281_v45, %v10288_v41 }
 0x215   :  { %2715 = vmatpush.bf16.msrb.mxu2 %v9852_v50  ;;  %2728 = vmatpush.bf16.msrb.mxu3 %v9980_v51  ;;  %v10290_v50 = vld [vmem:[#allocation10 + $0x3f0] sm:$0xf0]  ;;  %v10165_v51 = vor.u32 %v13247_v46, %v10162_v48  ;;  %v13267_v41 = vld [vmem:[#allocation10 + $0x384] sm:$0xf]  ;;  %v10096_v48 = vld [vmem:[#allocation10 + $0x260] sm:$0xf] }
 0x216   :  { %v10293_v57 = vor.u32 %v13279_v49, %v10290_v50  ;;  %v13233_v49 = vld [vmem:[#allocation10 + $0x26c] sm:$0xf0]  ;;  %v10224_v50 = vld [vmem:[#allocation10 + $0x360] sm:$0xf] }
 0x218   :  { %2690 = vmatpush.bf16.msrb.mxu0 %v9832_v62  ;;  %2703 = vmatpush.bf16.msrb.mxu1 %v9960_v63  ;;  %v10145_v63 = vor.u32 %v13245_v59, %v10144_v58  ;;  %v13265_v58 = vld [vmem:[#allocation10 + $0x36c] sm:$0xf0]  ;;  %v13231_v59 = vld [vmem:[#allocation10 + $0x264] sm:$0xf] }
 0x219   :  { %2716 = vmatpush.bf16.msrb.mxu2 %v9836_v5  ;;  %2729 = vmatpush.bf16.msrb.mxu3 %v9964_v6  ;;  %v10273_v6 = vor.u32 %v13277_v4, %v10272_v1  ;;  %v10226_v1 = vld [vmem:[#allocation10 + $0x370] sm:$0xf0] }
 0x21c   :  { %2691 = vmatpush.bf16.msrb.mxu0 %v9816_v19  ;;  %2704 = vmatpush.bf16.msrb.mxu1 %v9944_v21 }
 0x21d   :  { %2717 = vmatpush.bf16.msrb.mxu2 %v9820_v7  ;;  %2730 = vmatpush.bf16.msrb.mxu3 %v9948_v9  ;;  %v13241_v7 = vld [vmem:[#allocation10 + $0x2ac] sm:$0xf0]  ;;  %v10256_v9 = vld [vmem:[#allocation10 + $0x3a0] sm:$0xf] }
 0x21e   :  { %v10129_v26 = vor.u32 %v13241_v7, %v10128_v23 }
 0x220   :  { %2692 = vmatpush.bf16.msrb.mxu0 %v9800_v28  ;;  %2705 = vmatpush.bf16.msrb.mxu1 %v9928_v55  ;;  %v10257_v28 = vor.u32 %v13273_v13, %v10256_v9  ;;  %v10133_v55 = vor.u32 %v13239_v27, %v10130_v14  ;;  %v13259_v9 = vld [vmem:[#allocation10 + $0x344] sm:$0xf] }
 0x221   :  { %2718 = vmatpush.bf16.msrb.mxu2 %v9804_v29  ;;  %2731 = vmatpush.bf16.msrb.mxu3 %v9932_v30  ;;  %v13271_v29 = vld [vmem:[#allocation10 + $0x3a4] sm:$0xf]  ;;  %v10258_v30 = vld [vmem:[#allocation10 + $0x3b0] sm:$0xf0] }
 0x223   :  { %2693 = vmatmul.bf16.vlgmr.msrb.gmra.mxu0 %v14375_v15  ;;  %2706 = vmatmul.bf16.vlgmr.msrb.gmra.mxu1 %v14377_v17 }
 0x224   :  { %2719 = vmatmul.bf16.vlgmr.msrb.gmra.mxu2 %v14375_v15  ;;  %2732 = vmatmul.bf16.vlgmr.msrb.gmra.mxu3 %v14377_v17 }
 0x225   :  { %3162 = vmatpush.bf16.msra.mxu0 %v10161_v44  ;;  %3175 = vmatpush.bf16.msra.mxu1 %v10289_v47 }
 0x226   :  { %3188 = vmatpush.bf16.msra.mxu2 %v10165_v51  ;;  %3201 = vmatpush.bf16.msra.mxu3 %v10293_v57  ;;  %v10097_v57 = vor.u32 %v13233_v49, %v10096_v48  ;;  %v10050_v48 = vld [vmem:[#allocation10 + $0x210] sm:$0xf0] }
 0x229   :  { %3163 = vmatpush.bf16.msra.mxu0 %v10145_v63  ;;  %3176 = vmatpush.bf16.msra.mxu1 %v10273_v6  ;;  %v13263_v63 = vld [vmem:[#allocation10 + $0x364] sm:$0xf] }
 0x22a   :  { %3189 = vmatpush.bf16.msra.mxu2 %v10149_v12  ;;  %3202 = vmatpush.bf16.msra.mxu3 %v10277_v22  ;;  %v10229_v6 = vor.u32 %v13263_v63, %v10226_v1  ;;  %v10082_v22 = vld [vmem:[#allocation10 + $0x250] sm:$0xf0]  ;;  %v13250_v63 = vld [vmem:[#allocation10 + $0x2f4] sm:$0xf0]  ;;  %v10296_v1 = vld [vmem:[#allocation10 + $0x3e8] sm:$0xf] }
 0x22d   :  { %3164 = vmatpush.bf16.msra.mxu0 %v10129_v26  ;;  %3177 = vmatpush.bf16.msra.mxu1 %v10257_v28  ;;  %v14403_v26 = vld [vmem:[%s14798_s3] sm:$0xf]  ;;  %v10064_v28 = vld [vmem:[#allocation10 + $0x220] sm:$0xf] }
 0x22e   :  { %3190 = vmatpush.bf16.msra.mxu2 %v10133_v55  ;;  %v13225_v55 = vld [vmem:[#allocation10 + $0x22c] sm:$0xf0] }
 0x25f   :  { %v2099_v24 = vpop.f32.mrf.mxu0  ;;  %v2112_v25 = vpop.f32.mrf.mxu1 }
 0x260   :  { %v2100_v3 = vadd.f32 %v2099_v24, %v1755_v31  ;;  %v10261_v31 = vor.u32 %v13271_v29, %v10258_v30  ;;  %v10192_v29 = vld [vmem:[#allocation10 + $0x320] sm:$0xf] }
 0x262   :  { %v2113_v33 = vadd.f32 %v2112_v25, %v2100_v3  ;;  %3203 = vmatpush.bf16.msra.mxu3 %v10261_v31  ;;  %v10065_v31 = vor.u32 %v13225_v55, %v10064_v28 }
 0x264   :  { %v2194_v38 = vmul.f32 0.5, %v2113_v33  ;;  %v13237_v33 = vld [vmem:[#allocation10 + $0x28c] sm:$0xf0] }
 0x266   :  { %v2125_v34 = vpop.f32.mrf.mxu2  ;;  %v2138_v35 = vpop.f32.mrf.mxu3  ;;  %13974 = vtanh.f32 %v2194_v38  ;;  %v13269_v38 = vld [vmem:[#allocation10 + $0x38c] sm:$0xf0] }
 0x267   :  { %v2126_v36 = vadd.f32 %v2125_v34, %v1756_v32  ;;  %v2101_v37 = vpop.f32.mrf.mxu0  ;;  %v2114_v15 = vpop.f32.mrf.mxu1  ;;  %v10112_v32 = vld [vmem:[#allocation10 + $0x280] sm:$0xf] }
 0x268   :  { %v10113_v37 = vor.u32 %v13237_v33, %v10112_v32  ;;  %v10240_v15 = vld [vmem:[#allocation10 + $0x380] sm:$0xf]  ;;  %v10066_v33 = vld [vmem:[#allocation10 + $0x230] sm:$0xf0] }
 0x269   :  { %v2139_v17 = vadd.f32 %v2138_v35, %v2126_v36  ;;  %v10241_v39 = vor.u32 %v13269_v38, %v10240_v15  ;;  %v2222_v12 = vpop.permute.xlu0 %2221  ;;  %v13240_v15 = vld [vmem:[#allocation10 + $0x2ac] sm:$0xf] }
 0x26a   :  { %3165 = vmatpush.bf16.msra.mxu0 %v10113_v37  ;;  %vm2223_vm4 = vcmp.eq.s32.totalorder %v2222_v12, 1  ;;  %v2299_v37 = vperm.slane %v14403_v26, 1 }
 0x26b   :  { %v2198_v42 = vmul.f32 0.5, %v2139_v17  ;;  %v13235_v17 = vld [vmem:[#allocation10 + $0x284] sm:$0xf]  ;;  %3178 = vmatpush.bf16.msra.mxu1 %v10241_v39  ;;  %vm14413_vm5 = vmpackc.low %vm2223_vm4, %vm2223_vm4  ;;  %v10048_v39 = vld [vmem:[#allocation10 + $0x200] sm:$0xf] }
 0x26c   :  { %v13975_v19 = vpop.eup %13974  ;;  %v10117_v45 = vor.u32 %v13235_v17, %v10114_v40  ;;  %v13221_v40 = vld [vmem:[#allocation10 + $0x20c] sm:$0xf0] }
 0x26d   :  { %13976 = vtanh.f32 %v2198_v42  ;;  %v2196_v2 = vadd.f32 1.0, %v13975_v19  ;;  %v10242_v42 = vld [vmem:[#allocation10 + $0x390] sm:$0xf0]  ;;  %v13261_v19 = vld [vmem:[#allocation10 + $0x34c] sm:$0xf0] }
 0x26e   :  { %v2127_v52 = vpop.f32.mrf.mxu2  ;;  %v2140_v56 = vpop.f32.mrf.mxu3  ;;  %v10245_v46 = vor.u32 %v13267_v41, %v10242_v42  ;;  %3191 = vmatpush.bf16.msra.mxu2 %v10117_v45  ;;  %3166 = vmatpush.bf16.msra.mxu0 %v10097_v57  ;;  %v10176_v41 = vld [vmem:[#allocation10 + $0x300] sm:$0xf]  ;;  %v10049_v45 = vor.u32 %v13221_v40, %v10048_v39  ;;  %v13251_v57 = vld [vmem:[#allocation10 + $0x304] sm:$0xf] }
 0x26f   :  { %v2151_v61 = vpop.f32.mrf.mxu0  ;;  %v2164_v62 = vpop.f32.mrf.mxu1 }
 0x270   :  { %v2152_v5 = vadd.f32 %v2151_v61, %v1757_v43  ;;  %v2197_v43 = vmul.f32 0.5, %v2196_v2  ;;  %3204 = vmatpush.bf16.msra.mxu3 %v10245_v46  ;;  %v10225_v61 = vor.u32 %v13265_v58, %v10224_v50  ;;  %v2298_v2 = vperm.slane %v14403_v26, 0  ;;  %v13253_v46 = vld [vmem:[#allocation10 + $0x30c] sm:$0xf0]  ;;  %v10178_v58 = vld [vmem:[#allocation10 + $0x310] sm:$0xf0] }
 0x272   :  { %v2165_v21 = vadd.f32 %v2164_v62, %v2152_v5  ;;  %v10098_v62 = vld [vmem:[#allocation10 + $0x270] sm:$0xf0]  ;;  %3179 = vmatpush.bf16.msra.mxu1 %v10225_v61 }
 0x273   :  { %v13977_v16 = vpop.eup %13976  ;;  %v10101_v5 = vor.u32 %v13231_v59, %v10098_v62  ;;  %v10168_v59 = vld [vmem:[#allocation10 + $0x2e8] sm:$0xf]  ;;  %v10181_v62 = vor.u32 %v13251_v57, %v10178_v58 }
 0x274   :  { %v2200_v20 = vadd.f32 1.0, %v13977_v16  ;;  %13978 = vtanh.f32 %v2165_v21  ;;  %v13227_v21 = vld [vmem:[#allocation10 + $0x244] sm:$0xf]  ;;  %3205 = vmatpush.bf16.msra.mxu3 %v10229_v6  ;;  %v10210_v16 = vld [vmem:[#allocation10 + $0x350] sm:$0xf0] }
 0x275   :  { %3192 = vmatpush.bf16.msra.mxu2 %v10101_v5  ;;  %v10085_v7 = vor.u32 %v13227_v21, %v10082_v22  ;;  %v10213_v14 = vor.u32 %v13259_v9, %v10210_v16  ;;  %v13282_v5 = vld [vmem:[#allocation10 + $0x3f4] sm:$0xf0]  ;;  %v10152_v21 = vld [vmem:[#allocation10 + $0x2c8] sm:$0xf] }
 0x276   :  { %v2201_v24 = vmul.f32 0.5, %v2200_v20  ;;  %v2177_v25 = vpop.f32.mrf.mxu2  ;;  %v2190_v3 = vpop.f32.mrf.mxu3  ;;  %v10280_v16 = vld [vmem:[#allocation10 + $0x3c8] sm:$0xf] }
 0x277   :  { %v2178_v34 = vadd.f32 %v2177_v25, %v1758_v11  ;;  %v2153_v35 = vpop.f32.mrf.mxu0  ;;  %v2166_v36 = vpop.f32.mrf.mxu1  ;;  %v10208_v11 = vld [vmem:[#allocation10 + $0x340] sm:$0xf]  ;;  %v13223_v25 = vld [vmem:[#allocation10 + $0x224] sm:$0xf]  ;;  %v10104_v58 = vld [vmem:[#allocation10 + $0x268] sm:$0xf] }
 0x278   :  { %v2208_v51 = vmul.f32 %v2201_v24, %v14332_v53  ;;  %v10080_v53 = vld [vmem:[#allocation10 + $0x240] sm:$0xf]  ;;  %v10209_v23 = vor.u32 %v13261_v19, %v10208_v11  ;;  %3206 = vmatpush.bf16.msra.mxu3 %v10213_v14  ;;  %v13257_v24 = vld [vmem:[#allocation10 + $0x32c] sm:$0xf0]  ;;  %v10194_v35 = vld [vmem:[#allocation10 + $0x330] sm:$0xf0]  ;;  %v10069_v38 = vor.u32 %v13223_v25, %v10066_v33 }
 0x279   :  { %v2191_v44 = vadd.f32 %v2190_v3, %v2178_v34  ;;  %v10081_v18 = vor.u32 %v13229_v10, %v10080_v53  ;;  %3193 = vmatpush.bf16.msra.mxu2 %v10085_v7  ;;  %v10193_v32 = vor.u32 %v13257_v24, %v10192_v29  ;;  %v13255_v34 = vld [vmem:[#allocation10 + $0x324] sm:$0xf]  ;;  %v13248_v53 = vld [vmem:[#allocation10 + $0x2ec] sm:$0xf]  ;;  %v10170_v10 = vld [vmem:[#allocation10 + $0x2f8] sm:$0xf0] }
 0x27a   :  { %v13979_v47 = vpop.eup %13978  ;;  %3180 = vmatpush.bf16.msra.mxu1 %v10209_v23  ;;  %v10197_v17 = vor.u32 %v13255_v34, %v10194_v35  ;;  %v13280_v11 = vld [vmem:[#allocation10 + $0x3ec] sm:$0xf]  ;;  %v10298_v19 = vld [vmem:[#allocation10 + $0x3f8] sm:$0xf0]  ;;  %v13246_v23 = vld [vmem:[#allocation10 + $0x2d4] sm:$0xf0] }
 0x27b   :  { %v2209_v52 = vmul.f32 %v13979_v47, %v2197_v43  ;;  %v2203_v56 = vmul.f32 0.5, %v2191_v44  ;;  %3167 = vmatpush.bf16.msra.mxu0 %v10081_v18  ;;  %v13219_v47 = vld [vmem:[#allocation10 + $0x204] sm:$0xf]  ;;  %v10173_v18 = vor.u32 %v13248_v53, %v10170_v10  ;;  %v10301_v22 = vor.u32 %v13280_v11, %v10298_v19  ;;  %v13278_v14 = vld [vmem:[#allocation10 + $0x3d4] sm:$0xf0] }
 0x27c   :  { %3207 = vmatpush.bf16.msra.mxu3 %v10197_v17  ;;  %v10153_v9 = vor.u32 %v13246_v23, %v10152_v21  ;;  %v10281_v55 = vor.u32 %v13278_v14, %v10280_v16  ;;  %v10154_v29 = vld [vmem:[#allocation10 + $0x2d8] sm:$0xf0]  ;;  %v13242_v33 = vld [vmem:[#allocation10 + $0x2b4] sm:$0xf0]  ;;  %v13272_v17 = vld [vmem:[#allocation10 + $0x3ac] sm:$0xf] }
 0x27d   :  { %v14397_v4 = vadd.f32 %v2209_v52, %v2208_v51  ;;  %13980 = vtanh.f32 %v2203_v56  ;;  %3194 = vmatpush.bf16.msra.mxu2 %v10069_v38  ;;  %v2218_v51 = vld [vmem:[#allocation6] sm:$0xf]  ;;  %v10177_v52 = vor.u32 %v13253_v46, %v10176_v41  ;;  %v10053_v56 = vor.u32 %v13219_v47, %v10050_v48  ;;  %v13274_v35 = vld [vmem:[#allocation10 + $0x3b4] sm:$0xf0]  ;;  %v13236_v48 = vld [vmem:[#allocation10 + $0x28c] sm:$0xf] }
 0x27e   :  { %v2179_v8 = vpop.f32.mrf.mxu2  ;;  %v2192_v54 = vpop.f32.mrf.mxu3  ;;  %3181 = vmatpush.bf16.msra.mxu1 %v10193_v32  ;;  %v10136_v32 = vld [vmem:[#allocation10 + $0x2a8] sm:$0xf]  ;;  %v10138_v38 = vld [vmem:[#allocation10 + $0x2b8] sm:$0xf0]  ;;  %v13270_v47 = vld [vmem:[#allocation10 + $0x394] sm:$0xf0] }
 0x27f   :  { %13982 = vtanh.f32 %v14397_v4  ;;  %3168 = vmatpush.bf16.msra.mxu0 %v10065_v31  ;;  %v10169_v8 = vor.u32 %v13250_v63, %v10168_v59  ;;  %v10297_v54 = vor.u32 %v13282_v5, %v10296_v1  ;;  %v10141_v40 = vor.u32 %v13240_v15, %v10138_v38  ;;  %v10266_v41 = vld [vmem:[#allocation10 + $0x3b8] sm:$0xf0]  ;;  %v13234_v59 = vld [vmem:[#allocation10 + $0x274] sm:$0xf0]  ;;  %v13232_v1 = vld [vmem:[#allocation10 + $0x26c] sm:$0xf] }
 0x280   :  { %v14405_v13 = vpop.f32.mrf.mxu0  ;;  %v14407_v27 = vpop.f32.mrf.mxu1  ;;  %3208 = vmatpush.bf16.msra.mxu3 %v10181_v62  ;;  %v10232_v62 = vld [vmem:[#allocation10 + $0x368] sm:$0xf]  ;;  %v13266_v63 = vld [vmem:[#allocation10 + $0x374] sm:$0xf0]  ;;  %v2300_v53 = vperm.slane %v14403_v26, 2  ;;  %v2301_v10 = vperm.slane %v14403_v26, 3 }
 0x281   :  { %3195 = vmatpush.bf16.msra.mxu2 %v10053_v56  ;;  %v2643_v7 = vadd.f32 %v14405_v13, %v2298_v2  ;;  %v10137_v13 = vor.u32 %v13242_v33, %v10136_v32  ;;  %v10264_v2 = vld [vmem:[#allocation10 + $0x3a8] sm:$0xf]  ;;  %v10250_v56 = vld [vmem:[#allocation10 + $0x398] sm:$0xf0]  ;;  %v10233_v5 = vor.u32 %v13266_v63, %v10232_v62  ;;  %v13230_v19 = vld [vmem:[#allocation10 + $0x254] sm:$0xf0] }
 0x282   :  { %3182 = vmatpush.bf16.msra.mxu1 %v10177_v52  ;;  %v13268_v52 = vld [vmem:[#allocation10 + $0x38c] sm:$0xf]  ;;  %v10216_v21 = vld [vmem:[#allocation10 + $0x348] sm:$0xf]  ;;  %v13262_v23 = vld [vmem:[#allocation10 + $0x354] sm:$0xf0] }
 0x283   :  { %v13981_v20 = vpop.eup %13980  ;;  %3169 = vmatpush.bf16.msra.mxu0 %v10049_v45  ;;  %v10248_v45 = vld [vmem:[#allocation10 + $0x388] sm:$0xf]  ;;  %v10253_v57 = vor.u32 %v13268_v52, %v10250_v56  ;;  %v10218_v26 = vld [vmem:[#allocation10 + $0x358] sm:$0xf0]  ;;  %v13258_v32 = vld [vmem:[#allocation10 + $0x334] sm:$0xf0] }
 0x284   :  { %v2205_v30 = vadd.f32 1.0, %v13981_v20  ;;  %v13244_v20 = vld [vmem:[#allocation10 + $0x2cc] sm:$0xf]  ;;  %3253 = vmatpush.bf16.msrb.mxu3 %v10301_v22  ;;  %v10202_v38 = vld [vmem:[#allocation10 + $0x338] sm:$0xf0] }
 0x285   :  { %v13983_v3 = vpop.eup %13982  ;;  %3240 = vmatpush.bf16.msrb.mxu2 %v10173_v18  ;;  %v10157_v25 = vor.u32 %v13244_v20, %v10154_v29  ;;  %v10088_v18 = vld [vmem:[#allocation10 + $0x248] sm:$0xf]  ;;  %v13260_v29 = vld [vmem:[#allocation10 + $0x34c] sm:$0xf] }
 0x286   :  { %v2206_v36 = vmul.f32 0.5, %v2205_v30  ;;  %3227 = vmatpush.bf16.msrb.mxu1 %v10297_v54  ;;  %v13276_v30 = vld [vmem:[#allocation10 + $0x3cc] sm:$0xf]  ;;  %v10234_v54 = vld [vmem:[#allocation10 + $0x378] sm:$0xf0]  ;;  %v10089_v22 = vor.u32 %v13230_v19, %v10088_v18 }
 0x287   :  { %3214 = vmatpush.bf16.msrb.mxu0 %v10169_v8  ;;  %v13264_v8 = vld [vmem:[#allocation10 + $0x36c] sm:$0xf] }
 0x288   :  { %v2212_v42 = vmul.f32 %v13983_v3, %v2206_v36  ;;  %v2644_v49 = vpop.f32.mrf.mxu0  ;;  %v2657_v50 = vpop.f32.mrf.mxu1  ;;  %v10282_v3 = vld [vmem:[#allocation10 + $0x3d8] sm:$0xf0]  ;;  %v2656_v36 = vadd.f32 %v14407_v27, %v2643_v7  ;;  %v13228_v7 = vld [vmem:[#allocation10 + $0x24c] sm:$0xf] }
 0x289   :  { %v2668_v43 = vpop.f32.mrf.mxu2  ;;  %v2681_v44 = vpop.f32.mrf.mxu3  ;;  %v10285_v34 = vor.u32 %v13276_v30, %v10282_v3  ;;  %3241 = vmatpush.bf16.msrb.mxu2 %v10157_v25  ;;  %v10122_v49 = vld [vmem:[#allocation10 + $0x298] sm:$0xf0]  ;;  %v10249_v50 = vor.u32 %v13270_v47, %v10248_v45  ;;  %v10072_v30 = vld [vmem:[#allocation10 + $0x228] sm:$0xf]  ;;  %v13226_v25 = vld [vmem:[#allocation10 + $0x234] sm:$0xf0] }
 0x28a   :  { %v2214_v61 = vpack.c.bf16 %v2212_v42, %v2212_v42  ;;  %v2669_v6 = vadd.f32 %v2668_v43, %v2299_v37  ;;  %3228 = vmatpush.bf16.msrb.mxu1 %v10281_v55  ;;  %v10265_v37 = vor.u32 %v13274_v35, %v10264_v2  ;;  %v10269_v42 = vor.u32 %v13272_v17, %v10266_v41  ;;  %v10120_v43 = vld [vmem:[#allocation10 + $0x288] sm:$0xf]  ;;  %v13256_v2 = vld [vmem:[#allocation10 + $0x32c] sm:$0xf] }
 0x28b   :  { %3215 = vmatpush.bf16.msrb.mxu0 %v10153_v9  ;;  %3254 = vmatpush.bf16.msrb.mxu3 %v10285_v34  ;;  %v2737_v27 = vmul.f32 0.5, %v2656_v36  ;;  %v10090_v9 = vld [vmem:[#allocation10 + $0x258] sm:$0xf0]  ;;  %v10200_v3 = vld [vmem:[#allocation10 + $0x328] sm:$0xf] }
 0x28c   :  { %2215 = vst [vmem:[#allocation3 + $0x4] sm:$0xf] %v2214_v61  ;;  %v2225_v12 = vsel %vm14413_vm5, %v2214_v61, %v2218_v51  ;;  %v2682_v28 = vadd.f32 %v2681_v44, %v2669_v6  ;;  %v13238_v44 = vld [vmem:[#allocation10 + $0x294] sm:$0xf0]  ;;  %v10125_v51 = vor.u32 %v13236_v48, %v10122_v49  ;;  %v10105_v61 = vor.u32 %v13234_v59, %v10104_v58  ;;  %v10106_v6 = vld [vmem:[#allocation10 + $0x278] sm:$0xf0] }
 0x28d   :  { %2226 = vst [vmem:[#allocation6] sm:$0xf] %v2225_v12  ;;  %v10121_v46 = vor.u32 %v13238_v44, %v10120_v43  ;;  %3242 = vmatpush.bf16.msrb.mxu2 %v10141_v40  ;;  %v10109_v11 = vor.u32 %v13232_v1, %v10106_v6  ;;  %v10237_v12 = vor.u32 %v13264_v8, %v10234_v54  ;;  %v13224_v34 = vld [vmem:[#allocation10 + $0x22c] sm:$0xf]  ;;  %v10056_v17 = vld [vmem:[#allocation10 + $0x208] sm:$0xf] }
 0x28e   :  { %v2741_v39 = vmul.f32 0.5, %v2682_v28  ;;  %3229 = vmatpush.bf16.msrb.mxu1 %v10265_v37  ;;  %v10217_v28 = vor.u32 %v13262_v23, %v10216_v21  ;;  %v10093_v55 = vor.u32 %v13228_v7, %v10090_v9  ;;  %v10073_v37 = vor.u32 %v13226_v25, %v10072_v30  ;;  %v13222_v40 = vld [vmem:[#allocation10 + $0x214] sm:$0xf0]  ;;  %v10184_v41 = vld [vmem:[#allocation10 + $0x308] sm:$0xf] }
 0x28f   :  { %3216 = vmatpush.bf16.msrb.mxu0 %v10137_v13  ;;  %3255 = vmatpush.bf16.msrb.mxu3 %v10269_v42  ;;  %v10074_v13 = vld [vmem:[#allocation10 + $0x238] sm:$0xf0]  ;;  %v10201_v15 = vor.u32 %v13258_v32, %v10200_v3  ;;  %v13254_v42 = vld [vmem:[#allocation10 + $0x314] sm:$0xf0]  ;;  %v10205_v44 = vor.u32 %v13256_v2, %v10202_v38  ;;  %v13220_v45 = vld [vmem:[#allocation10 + $0x20c] sm:$0xf] }
 0x290   :  { %13984 = vtanh.f32 %v2741_v39  ;;  %v10077_v39 = vor.u32 %v13224_v34, %v10074_v13  ;;  %v13252_v47 = vld [vmem:[#allocation10 + $0x30c] sm:$0xf]  ;;  %v10186_v48 = vld [vmem:[#allocation10 + $0x318] sm:$0xf0]  ;;  %v10185_v52 = vor.u32 %v13254_v42, %v10184_v41  ;;  %v13313_v7 = vld [vmem:[#allocation10 + $0xec] sm:$0xf0] }
 0x291   :  { %v2670_v31 = vpop.f32.mrf.mxu2  ;;  %v2683_v24 = vpop.f32.mrf.mxu3  ;;  %13986 = vtanh.f32 %v2737_v27  ;;  %3243 = vmatpush.bf16.msrb.mxu2 %v10125_v51  ;;  %v3301_v49 = vld [vmem:[#allocation7 + $0xc] sm:$0xf]  ;;  %v10057_v51 = vor.u32 %v13222_v40, %v10056_v17  ;;  %v10189_v62 = vor.u32 %v13252_v47, %v10186_v48  ;;  %v10544_v9 = vld [vmem:[#allocation10 + $0x1e0] sm:$0xf]  ;;  %v10546_v30 = vld [vmem:[#allocation10 + $0x1f0] sm:$0xf0] }
 0x292   :  { %3230 = vmatpush.bf16.msrb.mxu1 %v10249_v50  ;;  %v10221_v24 = vor.u32 %v13260_v29, %v10218_v26  ;;  %3302 = vst [vmem:[#allocation2] sm:$0xf] %v3301_v49  ;;  %v10418_v29 = vld [vmem:[#allocation10 + $0xf0] sm:$0xf0]  ;;  %v13343_v26 = vld [vmem:[#allocation10 + $0x1e4] sm:$0xf] }
 0x293   :  { %3217 = vmatpush.bf16.msrb.mxu0 %v10121_v46  ;;  %3256 = vmatpush.bf16.msrb.mxu3 %v10253_v57  ;;  %v10058_v46 = vld [vmem:[#allocation10 + $0x218] sm:$0xf0]  ;;  %v10400_v32 = vld [vmem:[#allocation10 + $0xc0] sm:$0xf]  ;;  %v10549_v13 = vor.u32 %v13343_v26, %v10546_v30  ;;  %v10530_v38 = vld [vmem:[#allocation10 + $0x1d0] sm:$0xf0] }
 0x294   :  { %v10528_v2 = vld [vmem:[#allocation10 + $0x1c0] sm:$0xf]  ;;  %v13305_v41 = vld [vmem:[#allocation10 + $0xac] sm:$0xf0]  ;;  %v10386_v47 = vld [vmem:[#allocation10 + $0xb0] sm:$0xf0] }
 0x295   :  { %3244 = vmatpush.bf16.msrb.mxu2 %v10109_v11  ;;  %v10384_v40 = vld [vmem:[#allocation10 + $0xa0] sm:$0xf]  ;;  %v13335_v48 = vld [vmem:[#allocation10 + $0x1a4] sm:$0xf]  ;;  %v10514_v49 = vld [vmem:[#allocation10 + $0x1b0] sm:$0xf0] }
 0x296   :  { %3231 = vmatpush.bf16.msrb.mxu1 %v10233_v5  ;;  %v13985_v16 = vpop.eup %13984  ;;  %v10338_v26 = vld [vmem:[#allocation10 + $0x50] sm:$0xf0]  ;;  %v13323_v30 = vld [vmem:[#allocation10 + $0x144] sm:$0xf] }
 0x297   :  { %3218 = vmatpush.bf16.msrb.mxu0 %v10105_v61  ;;  %3257 = vmatpush.bf16.msrb.mxu3 %v10237_v12  ;;  %v13987_v33 = vpop.eup %13986  ;;  %v2743_v35 = vadd.f32 1.0, %v13985_v16  ;;  %v10061_v61 = vor.u32 %v13220_v45, %v10058_v46  ;;  %v13337_v45 = vld [vmem:[#allocation10 + $0x1ac] sm:$0xf0]  ;;  %v13303_v46 = vld [vmem:[#allocation10 + $0xa4] sm:$0xf] }
 0x298   :  { %v2739_v43 = vadd.f32 1.0, %v13987_v33  ;;  %v13309_v33 = vld [vmem:[#allocation10 + $0xcc] sm:$0xf0] }
 0x299   :  { %3245 = vmatpush.bf16.msrb.mxu2 %v10093_v55  ;;  %v2744_v56 = vmul.f32 0.5, %v2743_v35  ;;  %v13341_v35 = vld [vmem:[#allocation10 + $0x1cc] sm:$0xf0]  ;;  %v10401_v17 = vor.u32 %v13309_v33, %v10400_v32  ;;  %v10320_v33 = vld [vmem:[#allocation10 + $0x20] sm:$0xf] }
 0x29a   :  { %3232 = vmatpush.bf16.msrb.mxu1 %v10217_v28  ;;  %v2740_v63 = vmul.f32 0.5, %v2739_v43 }
 0x29b   :  { %3219 = vmatpush.bf16.msrb.mxu0 %v10089_v22  ;;  %3258 = vmatpush.bf16.msrb.mxu3 %v10221_v24  ;;  %v2751_v6 = vmul.f32 %v2744_v56, %v14356_v60  ;;  %v10416_v60 = vld [vmem:[#allocation10 + $0xe0] sm:$0xf]  ;;  %v10389_v56 = vor.u32 %v13303_v46, %v10386_v47 }
 0x29c   :  { %v10417_v25 = vor.u32 %v13313_v7, %v10416_v60 }
 0x29d   :  { %3246 = vmatpush.bf16.msrb.mxu2 %v10077_v39  ;;  %v10529_v39 = vor.u32 %v13341_v35, %v10528_v2  ;;  %v10448_v35 = vld [vmem:[#allocation10 + $0x120] sm:$0xf] }
 0x29e   :  { %3233 = vmatpush.bf16.msrb.mxu1 %v10201_v15  ;;  %v13339_v15 = vld [vmem:[#allocation10 + $0x1c4] sm:$0xf] }
 0x29f   :  { %3220 = vmatpush.bf16.msrb.mxu0 %v10073_v37  ;;  %3259 = vmatpush.bf16.msrb.mxu3 %v10205_v44  ;;  %v10402_v37 = vld [vmem:[#allocation10 + $0xd0] sm:$0xf0]  ;;  %v10533_v43 = vor.u32 %v13339_v15, %v10530_v38  ;;  %v10512_v44 = vld [vmem:[#allocation10 + $0x1a0] sm:$0xf]  ;;  %v13319_v38 = vld [vmem:[#allocation10 + $0x124] sm:$0xf] }
 0x2a0   :  { %v2694_v14 = vpop.f32.mrf.mxu0  ;;  %v2707_v20 = vpop.f32.mrf.mxu1  ;;  %v10322_v15 = vld [vmem:[#allocation10 + $0x30] sm:$0xf0] }
 0x2a1   :  { %v2695_v31 = vadd.f32 %v2694_v14, %v2300_v53  ;;  %3247 = vmatpush.bf16.msrb.mxu2 %v10061_v61  ;;  %v13345_v14 = vld [vmem:[#allocation10 + $0x1ec] sm:$0xf0]  ;;  %v13299_v61 = vld [vmem:[#allocation10 + $0x84] sm:$0xf] }
 0x2a2   :  { %3234 = vmatpush.bf16.msrb.mxu1 %v10185_v52  ;;  %v10545_v3 = vor.u32 %v13345_v14, %v10544_v9  ;;  %v13301_v52 = vld [vmem:[#allocation10 + $0x8c] sm:$0xf0]  ;;  %v10336_v9 = vld [vmem:[#allocation10 + $0x40] sm:$0xf] }
 0x2a3   :  { %v2708_v36 = vadd.f32 %v2707_v20, %v2695_v31  ;;  %3221 = vmatpush.bf16.msrb.mxu0 %v10057_v51  ;;  %3260 = vmatpush.bf16.msrb.mxu3 %v10189_v62  ;;  %v13311_v20 = vld [vmem:[#allocation10 + $0xe4] sm:$0xf]  ;;  %v10368_v51 = vld [vmem:[#allocation10 + $0x80] sm:$0xf]  ;;  %v10370_v62 = vld [vmem:[#allocation10 + $0x90] sm:$0xf0] }
 0x2a4   :  { %v10421_v34 = vor.u32 %v13311_v20, %v10418_v29  ;;  %v13291_v29 = vld [vmem:[#allocation10 + $0x44] sm:$0xf] }
 0x2a5   :  { %13988 = vtanh.f32 %v2708_v36  ;;  %v13307_v36 = vld [vmem:[#allocation10 + $0xc4] sm:$0xf] }
 0x2a6   :  { %v10405_v42 = vor.u32 %v13307_v36, %v10402_v37  ;;  %v13321_v36 = vld [vmem:[#allocation10 + $0x12c] sm:$0xf0]  ;;  %v13287_v37 = vld [vmem:[#allocation10 + $0x24] sm:$0xf] }
 0x2a7   :  { %v2720_v27 = vpop.f32.mrf.mxu2  ;;  %v2733_v50 = vpop.f32.mrf.mxu3  ;;  %v10325_v46 = vor.u32 %v13287_v37, %v10322_v15  ;;  %v10376_v37 = vld [vmem:[#allocation10 + $0x88] sm:$0xf]  ;;  %v13302_v15 = vld [vmem:[#allocation10 + $0x94] sm:$0xf0] }
 0x2a8   :  { %v2721_v57 = vadd.f32 %v2720_v27, %v2301_v10  ;;  %v2696_v58 = vpop.f32.mrf.mxu0  ;;  %v2709_v59 = vpop.f32.mrf.mxu1  ;;  %v10385_v27 = vor.u32 %v13305_v41, %v10384_v40  ;;  %v10449_v41 = vor.u32 %v13321_v36, %v10448_v35 }
 0x2a9   :  { %v10496_v58 = vld [vmem:[#allocation10 + $0x180] sm:$0xf]  ;;  %v13333_v59 = vld [vmem:[#allocation10 + $0x18c] sm:$0xf0] }
 0x2aa   :  { %v2734_v1 = vadd.f32 %v2733_v50, %v2721_v57  ;;  %v10513_v50 = vor.u32 %v13337_v45, %v10512_v44  ;;  %v10517_v57 = vor.u32 %v13335_v48, %v10514_v49  ;;  %v13283_v48 = vld [vmem:[#allocation10 + $0x4] sm:$0xf]  ;;  %v10306_v49 = vld [vmem:[#allocation10 + $0x10] sm:$0xf0] }
 0x2ab   :  { %v13989_v5 = vpop.eup %13988 }
 0x2ac   :  { %v2752_v8 = vmul.f32 %v13989_v5, %v2740_v63  ;;  %v2746_v54 = vmul.f32 0.5, %v2734_v1  ;;  %v13331_v63 = vld [vmem:[#allocation10 + $0x184] sm:$0xf]  ;;  %v10498_v1 = vld [vmem:[#allocation10 + $0x190] sm:$0xf0]  ;;  %v10369_v5 = vor.u32 %v13301_v52, %v10368_v51 }
 0x2ad   :  { %v10424_v51 = vld [vmem:[#allocation10 + $0xe8] sm:$0xf]  ;;  %v13314_v52 = vld [vmem:[#allocation10 + $0xf4] sm:$0xf0] }
 0x2ae   :  { %v14424_v53 = vadd.f32 %v2752_v8, %v2751_v6  ;;  %13990 = vtanh.f32 %v2746_v54  ;;  %v10497_v6 = vor.u32 %v13333_v59, %v10496_v58  ;;  %v10352_v8 = vld [vmem:[#allocation10 + $0x60] sm:$0xf]  ;;  %v13297_v54 = vld [vmem:[#allocation10 + $0x6c] sm:$0xf0]  ;;  %v13312_v58 = vld [vmem:[#allocation10 + $0xec] sm:$0xf] }
 0x2af   :  { %v2722_v10 = vpop.f32.mrf.mxu2  ;;  %v2735_v11 = vpop.f32.mrf.mxu3  ;;  %v10353_v60 = vor.u32 %v13297_v54, %v10352_v8  ;;  %v10425_v54 = vor.u32 %v13314_v52, %v10424_v51  ;;  %v10362_v51 = vld [vmem:[#allocation10 + $0x78] sm:$0xf0]  ;;  %v13328_v52 = vld [vmem:[#allocation10 + $0x16c] sm:$0xf] }
 0x2b0   :  { %13992 = vtanh.f32 %v14424_v53  ;;  %v10373_v10 = vor.u32 %v13299_v61, %v10370_v62  ;;  %v10501_v11 = vor.u32 %v13331_v63, %v10498_v1  ;;  %v10426_v62 = vld [vmem:[#allocation10 + $0xf8] sm:$0xf0]  ;;  %v13344_v63 = vld [vmem:[#allocation10 + $0x1ec] sm:$0xf] }
 0x2b1   :  { %v10554_v1 = vld [vmem:[#allocation10 + $0x1f8] sm:$0xf0] }
 0x2b4   :  { %v13991_v12 = vpop.eup %13990 }
 0x2b5   :  { %v2748_v18 = vadd.f32 1.0, %v13991_v12  ;;  %v10480_v12 = vld [vmem:[#allocation10 + $0x160] sm:$0xf] }
 0x2b6   :  { %v13993_v19 = vpop.eup %13992 }
 0x2b7   :  { %v2749_v21 = vmul.f32 0.5, %v2748_v18  ;;  %v13329_v18 = vld [vmem:[#allocation10 + $0x16c] sm:$0xf0] }
 0x2b8   :  { %v10481_v7 = vor.u32 %v13329_v18, %v10480_v12  ;;  %v10408_v12 = vld [vmem:[#allocation10 + $0xc8] sm:$0xf]  ;;  %v13310_v18 = vld [vmem:[#allocation10 + $0xd4] sm:$0xf0] }
 0x2b9   :  { %v2755_v22 = vmul.f32 %v13993_v19, %v2749_v21  ;;  %v13295_v19 = vld [vmem:[#allocation10 + $0x64] sm:$0xf]  ;;  %v10354_v21 = vld [vmem:[#allocation10 + $0x70] sm:$0xf0] }
 0x2ba   :  { %v10357_v14 = vor.u32 %v13295_v19, %v10354_v21  ;;  %v10429_v19 = vor.u32 %v13312_v58, %v10426_v62  ;;  %v10557_v21 = vor.u32 %v13344_v63, %v10554_v1  ;;  %v10472_v1 = vld [vmem:[#allocation10 + $0x148] sm:$0xf] }
 0x2bb   :  { %v2757_v23 = vpack.c.bf16 %v2755_v22, %v2755_v22  ;;  %v13327_v22 = vld [vmem:[#allocation10 + $0x164] sm:$0xf] }
 0x2bd   :  { %2758 = vst [vmem:[#allocation2 + $0x4] sm:$0xf] %v2757_v23 }
 0x2be   :  { %2759 = vst [vmem:[#allocation3] sm:$0xf] %v2757_v23  ;;  %v10482_v23 = vld [vmem:[#allocation10 + $0x170] sm:$0xf0] }
 0x2bf   :  { %v10485_v20 = vor.u32 %v13327_v22, %v10482_v23  ;;  %v10536_v22 = vld [vmem:[#allocation10 + $0x1c8] sm:$0xf]  ;;  %v13342_v23 = vld [vmem:[#allocation10 + $0x1d4] sm:$0xf0] }
 0x2c4   :  { %v3303_v44 = vld [vmem:[#allocation2] sm:$0xff] }
 0x2c5   :  { %v2760_v16 = vld [vmem:[#allocation3] sm:$0xff]  ;;  %v3379_v8 = vunpack.c.l.b16 %v3303_v44 }
 0x2c6   :  { %v2836_v28 = vunpack.c.l.b16 %v2760_v16  ;;  %v2837_v55 = vunpack.c.h.b16 %v2760_v16  ;;  %v13293_v16 = vld [vmem:[#allocation10 + $0x4c] sm:$0xf0] }
 0x2c8   :  { %v14427_v31 = vpack.c.b16 %v2836_v28, %v2836_v28  ;;  %v14429_v24 = vpack.c.b16 %v2837_v55, %v2837_v55  ;;  %v10464_v28 = vld [vmem:[#allocation10 + $0x140] sm:$0xf]  ;;  %v13325_v55 = vld [vmem:[#allocation10 + $0x14c] sm:$0xf0] }
 0x2c9   :  { %v10465_v32 = vor.u32 %v13325_v55, %v10464_v28  ;;  %v10409_v28 = vor.u32 %v13310_v18, %v10408_v12  ;;  %v10537_v55 = vor.u32 %v13342_v23, %v10536_v22  ;;  %v10328_v18 = vld [vmem:[#allocation10 + $0x28] sm:$0xf] }
 0x2ca   :  { %3170 = vmatmul.bf16.vlgmr.msra.gmra.mxu0 %v14427_v31  ;;  %3183 = vmatmul.bf16.vlgmr.msra.gmra.mxu1 %v14429_v24  ;;  %v10456_v23 = vld [vmem:[#allocation10 + $0x128] sm:$0xf] }
 0x2cb   :  { %3196 = vmatmul.bf16.vlgmr.msra.gmra.mxu2 %v14427_v31  ;;  %3209 = vmatmul.bf16.vlgmr.msra.gmra.mxu3 %v14429_v24 }
 0x2cc   :  { %3705 = vmatpush.bf16.msra.mxu0 %v10417_v25  ;;  %3718 = vmatpush.bf16.msra.mxu1 %v10545_v3  ;;  %v10466_v25 = vld [vmem:[#allocation10 + $0x150] sm:$0xf0]  ;;  %v10337_v3 = vor.u32 %v13293_v16, %v10336_v9  ;;  %v13340_v9 = vld [vmem:[#allocation10 + $0x1cc] sm:$0xf]  ;;  %v10538_v16 = vld [vmem:[#allocation10 + $0x1d8] sm:$0xf0] }
 0x2cd   :  { %3731 = vmatpush.bf16.msra.mxu2 %v10421_v34  ;;  %3744 = vmatpush.bf16.msra.mxu3 %v10549_v13  ;;  %v13289_v34 = vld [vmem:[#allocation10 + $0x2c] sm:$0xf0]  ;;  %v10341_v13 = vor.u32 %v13291_v29, %v10338_v26  ;;  %v10469_v2 = vor.u32 %v13323_v30, %v10466_v25  ;;  %v10392_v29 = vld [vmem:[#allocation10 + $0xa8] sm:$0xf]  ;;  %v13306_v26 = vld [vmem:[#allocation10 + $0xb4] sm:$0xf0]  ;;  %v10541_v25 = vor.u32 %v13340_v9, %v10538_v16 }
 0x2ce   :  { %v10321_v40 = vor.u32 %v13289_v34, %v10320_v33  ;;  %v13304_v33 = vld [vmem:[#allocation10 + $0xac] sm:$0xf]  ;;  %v10394_v34 = vld [vmem:[#allocation10 + $0xb8] sm:$0xf0]  ;;  %v10393_v35 = vor.u32 %v13306_v26, %v10392_v29  ;;  %v10312_v26 = vld [vmem:[#allocation10 + $0x8] sm:$0xf] }
 0x2cf   :  { %v10330_v9 = vld [vmem:[#allocation10 + $0x38] sm:$0xf0]  ;;  %v13320_v16 = vld [vmem:[#allocation10 + $0x12c] sm:$0xf] }
 0x2d0   :  { %3706 = vmatpush.bf16.msra.mxu0 %v10401_v17  ;;  %3719 = vmatpush.bf16.msra.mxu1 %v10529_v39  ;;  %v10450_v17 = vld [vmem:[#allocation10 + $0x130] sm:$0xf0]  ;;  %v10304_v39 = vld [vmem:[#allocation10] sm:$0xf] }
 0x2d1   :  { %3732 = vmatpush.bf16.msra.mxu2 %v10405_v42  ;;  %3745 = vmatpush.bf16.msra.mxu3 %v10533_v43  ;;  %v10432_v42 = vld [vmem:[#allocation10 + $0x100] sm:$0xf]  ;;  %v13317_v43 = vld [vmem:[#allocation10 + $0x10c] sm:$0xf0]  ;;  %v10453_v47 = vor.u32 %v13319_v38, %v10450_v17  ;;  %v10397_v38 = vor.u32 %v13304_v33, %v10394_v34  ;;  %v13318_v33 = vld [vmem:[#allocation10 + $0x114] sm:$0xf0] }
 0x2d2   :  { %v10433_v61 = vor.u32 %v13317_v43, %v10432_v42  ;;  %v10506_v42 = vld [vmem:[#allocation10 + $0x198] sm:$0xf0]  ;;  %v10377_v43 = vor.u32 %v13302_v15, %v10376_v37  ;;  %v13284_v34 = vld [vmem:[#allocation10 + $0xc] sm:$0xf] }
 0x2d4   :  { %3707 = vmatpush.bf16.msra.mxu0 %v10385_v27  ;;  %3720 = vmatpush.bf16.msra.mxu1 %v10513_v50  ;;  %v13315_v27 = vld [vmem:[#allocation10 + $0x104] sm:$0xf]  ;;  %v10434_v50 = vld [vmem:[#allocation10 + $0x110] sm:$0xf0] }
 0x2d5   :  { %3733 = vmatpush.bf16.msra.mxu2 %v10389_v56  ;;  %3746 = vmatpush.bf16.msra.mxu3 %v10517_v57  ;;  %v10552_v56 = vld [vmem:[#allocation10 + $0x1e8] sm:$0xf]  ;;  %v13346_v57 = vld [vmem:[#allocation10 + $0x1f4] sm:$0xf0] }
 0x2d8   :  { %3708 = vmatpush.bf16.msra.mxu0 %v10369_v5  ;;  %3721 = vmatpush.bf16.msra.mxu1 %v10497_v6  ;;  %v10309_v5 = vor.u32 %v13283_v48, %v10306_v49  ;;  %v10437_v6 = vor.u32 %v13315_v27, %v10434_v50  ;;  %v10488_v49 = vld [vmem:[#allocation10 + $0x168] sm:$0xf]  ;;  %v13330_v27 = vld [vmem:[#allocation10 + $0x174] sm:$0xf0]  ;;  %v13296_v50 = vld [vmem:[#allocation10 + $0x6c] sm:$0xf] }
 0x2d9   :  { %3734 = vmatpush.bf16.msra.mxu2 %v10373_v10  ;;  %3747 = vmatpush.bf16.msra.mxu3 %v10501_v11  ;;  %v10553_v10 = vor.u32 %v13346_v57, %v10552_v56  ;;  %v3380_v11 = vunpack.c.h.b16 %v3303_v44  ;;  %v10490_v56 = vld [vmem:[#allocation10 + $0x178] sm:$0xf0]  ;;  %v10489_v58 = vor.u32 %v13330_v27, %v10488_v49  ;;  %v10365_v62 = vor.u32 %v13296_v50, %v10362_v51  ;;  %v13377_v49 = vld [vmem:[#allocation10 + $0x2ec] sm:$0xf0]  ;;  %v10801_v27 = vld [vmem:[#allocation10 + $0x3e0] sm:$0xf] }
 0x2da   :  { %3222 = vmatmul.bf16.vlgmr.msrb.gmra.mxu0 %v14427_v31  ;;  %3235 = vmatmul.bf16.vlgmr.msrb.gmra.mxu1 %v14429_v24  ;;  %v10493_v63 = vor.u32 %v13328_v52, %v10490_v56  ;;  %v13409_v56 = vld [vmem:[#allocation10 + $0x3ec] sm:$0xf0] }
 0x2db   :  { %3248 = vmatmul.bf16.vlgmr.msrb.gmra.mxu2 %v14427_v31  ;;  %3261 = vmatmul.bf16.vlgmr.msrb.gmra.mxu3 %v14429_v24  ;;  %v13285_v31 = vld [vmem:[#allocation10 + $0xc] sm:$0xf0] }
 0x2dc   :  { %3709 = vmatpush.bf16.msra.mxu0 %v10353_v60  ;;  %3722 = vmatpush.bf16.msra.mxu1 %v10481_v7  ;;  %v14105_v24 = vld [vmem:[%s14795_s0] sm:$0xff]  ;;  %v10305_v59 = vor.u32 %v13285_v31, %v10304_v39  ;;  %v10410_v7 = vld [vmem:[#allocation10 + $0xd8] sm:$0xf0]  ;;  %v10504_v39 = vld [vmem:[#allocation10 + $0x188] sm:$0xf] }
 0x2dd   :  { %3735 = vmatpush.bf16.msra.mxu2 %v10357_v14  ;;  %3748 = vmatpush.bf16.msra.mxu3 %v10485_v20  ;;  %vm3289_vm6 = vcmp.eq.s32.totalorder %v14105_v24, 2  ;;  %v13308_v60 = vld [vmem:[#allocation10 + $0xcc] sm:$0xf]  ;;  %v14443_v14 = vpack.c.b16 %v3379_v8, %v3379_v8  ;;  %v14445_v20 = vpack.c.b16 %v3380_v11, %v3380_v11  ;;  %v13334_v31 = vld [vmem:[#allocation10 + $0x194] sm:$0xf0] }
 0x2de   :  { %v3291_v45 = vsel %vm3289_vm6, 1, %v14219_v0  ;;  %v10413_v30 = vor.u32 %v13308_v60, %v10410_v7  ;;  %v13300_v24 = vld [vmem:[#allocation10 + $0x8c] sm:$0xf]  ;;  %v10505_v44 = vor.u32 %v13334_v31, %v10504_v39  ;;  %v10346_v8 = vld [vmem:[#allocation10 + $0x58] sm:$0xf0] }
 0x2df   :  { %3293 = vperm.xlu1 %13941, %v3291_v45   ;;  %v10360_v45 = vld [vmem:[#allocation10 + $0x68] sm:$0xf]  ;;  %v13322_v60 = vld [vmem:[#allocation10 + $0x134] sm:$0xf0]  ;;  %v13288_v7 = vld [vmem:[#allocation10 + $0x2c] sm:$0xf] }
 0x2e0   :  { %3710 = vmatpush.bf16.msra.mxu0 %v10337_v3  ;;  %3723 = vmatpush.bf16.msra.mxu1 %v10465_v32  ;;  %v10520_v3 = vld [vmem:[#allocation10 + $0x1a8] sm:$0xf]  ;;  %v13338_v32 = vld [vmem:[#allocation10 + $0x1b4] sm:$0xf0]  ;;  %v10457_v29 = vor.u32 %v13322_v60, %v10456_v23  ;;  %v13371_v23 = vld [vmem:[#allocation10 + $0x2c4] sm:$0xf] }
 0x2e1   :  { %3736 = vmatpush.bf16.msra.mxu2 %v10341_v13  ;;  %3749 = vmatpush.bf16.msra.mxu3 %v10469_v2  ;;  %v13336_v13 = vld [vmem:[#allocation10 + $0x1ac] sm:$0xf]  ;;  %v10522_v2 = vld [vmem:[#allocation10 + $0x1b8] sm:$0xf0]  ;;  %v10521_v36 = vor.u32 %v13338_v32, %v10520_v3  ;;  %v10440_v32 = vld [vmem:[#allocation10 + $0x108] sm:$0xf] }
 0x2e2   :  { %v10525_v17 = vor.u32 %v13336_v13, %v10522_v2  ;;  %v10314_v13 = vld [vmem:[#allocation10 + $0x18] sm:$0xf0]  ;;  %v13316_v2 = vld [vmem:[#allocation10 + $0x10c] sm:$0xf]  ;;  %v10441_v37 = vor.u32 %v13318_v33, %v10440_v32  ;;  %v10659_v60 = vld [vmem:[#allocation10 + $0x2d0] sm:$0xf0] }
 0x2e3   :  { %v10317_v15 = vor.u32 %v13284_v34, %v10314_v13  ;;  %v13401_v34 = vld [vmem:[#allocation10 + $0x3ac] sm:$0xf0]  ;;  %v13367_v13 = vld [vmem:[#allocation10 + $0x2a4] sm:$0xf] }
 0x2e4   :  { %3711 = vmatpush.bf16.msra.mxu0 %v10321_v40  ;;  %3724 = vmatpush.bf16.msra.mxu1 %v10449_v41  ;;  %v10378_v40 = vld [vmem:[#allocation10 + $0x98] sm:$0xf0]  ;;  %v13332_v41 = vld [vmem:[#allocation10 + $0x18c] sm:$0xf] }
 0x2e5   :  { %3737 = vmatpush.bf16.msra.mxu2 %v10325_v46  ;;  %3750 = vmatpush.bf16.msra.mxu3 %v10453_v47  ;;  %v13298_v46 = vld [vmem:[#allocation10 + $0x74] sm:$0xf0]  ;;  %v10381_v47 = vor.u32 %v13300_v24, %v10378_v40  ;;  %v10509_v48 = vor.u32 %v13332_v41, %v10506_v42 }
 0x2e6   :  { %v10361_v57 = vor.u32 %v13298_v46, %v10360_v45 }
 0x2e8   :  { %3712 = vmatpush.bf16.msra.mxu0 %v10305_v59  ;;  %3725 = vmatpush.bf16.msra.mxu1 %v10433_v61  ;;  %v10344_v59 = vld [vmem:[#allocation10 + $0x48] sm:$0xf]  ;;  %v13294_v61 = vld [vmem:[#allocation10 + $0x54] sm:$0xf0] }
 0x2e9   :  { %3738 = vmatpush.bf16.msra.mxu2 %v10309_v5  ;;  %3751 = vmatpush.bf16.msra.mxu3 %v10437_v6  ;;  %v13326_v5 = vld [vmem:[#allocation10 + $0x154] sm:$0xf0]  ;;  %v13292_v6 = vld [vmem:[#allocation10 + $0x4c] sm:$0xf]  ;;  %v10345_v11 = vor.u32 %v13294_v61, %v10344_v59  ;;  %v10675_v59 = vld [vmem:[#allocation10 + $0x2f0] sm:$0xf0] }
 0x2ea   :  { %v10473_v12 = vor.u32 %v13326_v5, %v10472_v1  ;;  %v13407_v61 = vld [vmem:[#allocation10 + $0x3e4] sm:$0xf] }
 0x2eb   :  { %3713 = vmatmul.bf16.vlgmr.msra.gmra.mxu0 %v14443_v14  ;;  %3726 = vmatmul.bf16.vlgmr.msra.gmra.mxu1 %v14445_v20 }
 0x2ec   :  { %3757 = vmatpush.bf16.msrb.mxu0 %v10425_v54  ;;  %3770 = vmatpush.bf16.msrb.mxu1 %v10553_v10  ;;  %v13324_v54 = vld [vmem:[#allocation10 + $0x14c] sm:$0xf]  ;;  %v10474_v10 = vld [vmem:[#allocation10 + $0x158] sm:$0xf0] }
 0x2ed   :  { %3783 = vmatpush.bf16.msrb.mxu2 %v10429_v19  ;;  %3796 = vmatpush.bf16.msrb.mxu3 %v10557_v21  ;;  %v13290_v19 = vld [vmem:[#allocation10 + $0x34] sm:$0xf0]  ;;  %v10349_v21 = vor.u32 %v13292_v6, %v10346_v8  ;;  %v10477_v22 = vor.u32 %v13324_v54, %v10474_v10  ;;  %v10657_v8 = vld [vmem:[#allocation10 + $0x2c0] sm:$0xf]  ;;  %v13373_v54 = vld [vmem:[#allocation10 + $0x2cc] sm:$0xf0] }
 0x2ee   :  { %3739 = vmatmul.bf16.vlgmr.msra.gmra.mxu2 %v14443_v14  ;;  %3752 = vmatmul.bf16.vlgmr.msra.gmra.mxu3 %v14445_v20 }
 0x2f0   :  { %3758 = vmatpush.bf16.msrb.mxu0 %v10409_v28  ;;  %3771 = vmatpush.bf16.msrb.mxu1 %v10537_v55  ;;  %v10458_v28 = vld [vmem:[#allocation10 + $0x138] sm:$0xf0]  ;;  %v10329_v55 = vor.u32 %v13290_v19, %v10328_v18  ;;  %v10785_v18 = vld [vmem:[#allocation10 + $0x3c0] sm:$0xf]  ;;  %v13405_v19 = vld [vmem:[#allocation10 + $0x3cc] sm:$0xf0] }
 0x2f1   :  { %3784 = vmatpush.bf16.msrb.mxu2 %v10413_v30  ;;  %3797 = vmatpush.bf16.msrb.mxu3 %v10541_v25  ;;  %v13286_v30 = vld [vmem:[#allocation10 + $0x14] sm:$0xf0]  ;;  %v10333_v25 = vor.u32 %v13288_v7, %v10330_v9  ;;  %v10461_v3 = vor.u32 %v13320_v16, %v10458_v28  ;;  %v13403_v7 = vld [vmem:[#allocation10 + $0x3c4] sm:$0xf]  ;;  %v10662_v16 = vor.u32 %v13371_v23, %v10659_v60  ;;  %v10787_v28 = vld [vmem:[#allocation10 + $0x3d0] sm:$0xf0] }
 0x2f4   :  { %3759 = vmatpush.bf16.msrb.mxu0 %v10393_v35  ;;  %3772 = vmatpush.bf16.msrb.mxu1 %v10521_v36  ;;  %v10442_v35 = vld [vmem:[#allocation10 + $0x118] sm:$0xf0]  ;;  %v10313_v36 = vor.u32 %v13286_v30, %v10312_v26  ;;  %v10790_v26 = vor.u32 %v13403_v7, %v10787_v28  ;;  %v10641_v30 = vld [vmem:[#allocation10 + $0x2a0] sm:$0xf]  ;;  %v13357_v7 = vld [vmem:[#allocation10 + $0x24c] sm:$0xf0] }
 0x2f5   :  { %3785 = vmatpush.bf16.msrb.mxu2 %v10397_v38  ;;  %3798 = vmatpush.bf16.msrb.mxu3 %v10525_v17  ;;  %v10445_v38 = vor.u32 %v13316_v2, %v10442_v35  ;;  %v14458_v17 = vld [vmem:[%s14798_s3 + $0x4] sm:$0xf]  ;;  %v10643_v2 = vld [vmem:[#allocation10 + $0x2b0] sm:$0xf0] }
 0x2f6   :  { %v2827_v39 = vperm.slane %v14458_v17, 0  ;;  %v2828_v41 = vperm.slane %v14458_v17, 1  ;;  %v2829_v51 = vperm.slane %v14458_v17, 2  ;;  %v2830_v9 = vperm.slane %v14458_v17, 3 }
 0x2f8   :  { %3760 = vmatpush.bf16.msrb.mxu0 %v10377_v43  ;;  %3773 = vmatpush.bf16.msrb.mxu1 %v10505_v44 }
 0x2f9   :  { %3786 = vmatpush.bf16.msrb.mxu2 %v10381_v47  ;;  %3799 = vmatpush.bf16.msrb.mxu3 %v10509_v48  ;;  %v10673_v48 = vld [vmem:[#allocation10 + $0x2e0] sm:$0xf] }
 0x2fa   :  { %v10674_v52 = vor.u32 %v13377_v49, %v10673_v48  ;;  %v10627_v49 = vld [vmem:[#allocation10 + $0x290] sm:$0xf0] }
 0x2fc   :  { %3761 = vmatpush.bf16.msrb.mxu0 %v10361_v57  ;;  %3774 = vmatpush.bf16.msrb.mxu1 %v10489_v58  ;;  %v13375_v57 = vld [vmem:[#allocation10 + $0x2e4] sm:$0xf]  ;;  %v10802_v58 = vor.u32 %v13409_v56, %v10801_v27 }
 0x2fd   :  { %3787 = vmatpush.bf16.msrb.mxu2 %v10365_v62  ;;  %3800 = vmatpush.bf16.msrb.mxu3 %v10493_v63  ;;  %v10803_v62 = vld [vmem:[#allocation10 + $0x3f0] sm:$0xf0]  ;;  %v10678_v63 = vor.u32 %v13375_v57, %v10675_v59  ;;  %v13395_v27 = vld [vmem:[#allocation10 + $0x384] sm:$0xf]  ;;  %v10609_v59 = vld [vmem:[#allocation10 + $0x260] sm:$0xf] }
 0x2fe   :  { %v10806_v6 = vor.u32 %v13407_v61, %v10803_v62  ;;  %v13361_v61 = vld [vmem:[#allocation10 + $0x26c] sm:$0xf0]  ;;  %v10737_v62 = vld [vmem:[#allocation10 + $0x360] sm:$0xf] }
 0x300   :  { %3762 = vmatpush.bf16.msrb.mxu0 %v10345_v11  ;;  %3775 = vmatpush.bf16.msrb.mxu1 %v10473_v12  ;;  %v10658_v12 = vor.u32 %v13373_v54, %v10657_v8  ;;  %v13393_v8 = vld [vmem:[#allocation10 + $0x36c] sm:$0xf0]  ;;  %v13359_v54 = vld [vmem:[#allocation10 + $0x264] sm:$0xf] }
 0x301   :  { %3788 = vmatpush.bf16.msrb.mxu2 %v10349_v21  ;;  %3801 = vmatpush.bf16.msrb.mxu3 %v10477_v22  ;;  %v10786_v22 = vor.u32 %v13405_v19, %v10785_v18  ;;  %v10739_v18 = vld [vmem:[#allocation10 + $0x370] sm:$0xf0] }
 0x304   :  { %3763 = vmatpush.bf16.msrb.mxu0 %v10329_v55  ;;  %3776 = vmatpush.bf16.msrb.mxu1 %v10457_v29 }
 0x305   :  { %3789 = vmatpush.bf16.msrb.mxu2 %v10333_v25  ;;  %3802 = vmatpush.bf16.msrb.mxu3 %v10461_v3  ;;  %v13369_v25 = vld [vmem:[#allocation10 + $0x2ac] sm:$0xf0]  ;;  %v10769_v3 = vld [vmem:[#allocation10 + $0x3a0] sm:$0xf] }
 0x306   :  { %v10642_v33 = vor.u32 %v13369_v25, %v10641_v30 }
 0x308   :  { %3764 = vmatpush.bf16.msrb.mxu0 %v10313_v36  ;;  %3777 = vmatpush.bf16.msrb.mxu1 %v10441_v37  ;;  %v10770_v36 = vor.u32 %v13401_v34, %v10769_v3  ;;  %v10646_v37 = vor.u32 %v13367_v13, %v10643_v2  ;;  %v13387_v3 = vld [vmem:[#allocation10 + $0x344] sm:$0xf] }
 0x309   :  { %3790 = vmatpush.bf16.msrb.mxu2 %v10317_v15  ;;  %3803 = vmatpush.bf16.msrb.mxu3 %v10445_v38  ;;  %v13399_v15 = vld [vmem:[#allocation10 + $0x3a4] sm:$0xf]  ;;  %v10771_v38 = vld [vmem:[#allocation10 + $0x3b0] sm:$0xf0] }
 0x30b   :  { %3765 = vmatmul.bf16.vlgmr.msrb.gmra.mxu0 %v14443_v14  ;;  %3778 = vmatmul.bf16.vlgmr.msrb.gmra.mxu1 %v14445_v20 }
 0x30c   :  { %3791 = vmatmul.bf16.vlgmr.msrb.gmra.mxu2 %v14443_v14  ;;  %3804 = vmatmul.bf16.vlgmr.msrb.gmra.mxu3 %v14445_v20 }
 0x30d   :  { %4234 = vmatpush.bf16.msra.mxu0 %v10674_v52  ;;  %4247 = vmatpush.bf16.msra.mxu1 %v10802_v58 }
 0x30e   :  { %4260 = vmatpush.bf16.msra.mxu2 %v10678_v63  ;;  %4273 = vmatpush.bf16.msra.mxu3 %v10806_v6  ;;  %v10610_v6 = vor.u32 %v13361_v61, %v10609_v59  ;;  %v10563_v59 = vld [vmem:[#allocation10 + $0x210] sm:$0xf0] }
 0x311   :  { %4235 = vmatpush.bf16.msra.mxu0 %v10658_v12  ;;  %4248 = vmatpush.bf16.msra.mxu1 %v10786_v22  ;;  %v13391_v12 = vld [vmem:[#allocation10 + $0x364] sm:$0xf] }
 0x312   :  { %4261 = vmatpush.bf16.msra.mxu2 %v10662_v16  ;;  %4274 = vmatpush.bf16.msra.mxu3 %v10790_v26  ;;  %v10742_v22 = vor.u32 %v13391_v12, %v10739_v18  ;;  %v10595_v26 = vld [vmem:[#allocation10 + $0x250] sm:$0xf0]  ;;  %v13378_v12 = vld [vmem:[#allocation10 + $0x2f4] sm:$0xf0]  ;;  %v10809_v18 = vld [vmem:[#allocation10 + $0x3e8] sm:$0xf] }
 0x315   :  { %4236 = vmatpush.bf16.msra.mxu0 %v10642_v33  ;;  %4249 = vmatpush.bf16.msra.mxu1 %v10770_v36  ;;  %v14471_v33 = vld [vmem:[%s14798_s3] sm:$0xf]  ;;  %v10577_v36 = vld [vmem:[#allocation10 + $0x220] sm:$0xf] }
 0x316   :  { %4262 = vmatpush.bf16.msra.mxu2 %v10646_v37  ;;  %v13353_v37 = vld [vmem:[#allocation10 + $0x22c] sm:$0xf0] }
 0x347   :  { %v3171_v31 = vpop.f32.mrf.mxu0  ;;  %v3184_v24 = vpop.f32.mrf.mxu1 }
 0x348   :  { %v3172_v40 = vadd.f32 %v3171_v31, %v2827_v39  ;;  %v10774_v39 = vor.u32 %v13399_v15, %v10771_v38  ;;  %v10705_v15 = vld [vmem:[#allocation10 + $0x320] sm:$0xf] }
 0x34a   :  { %v3185_v42 = vadd.f32 %v3184_v24, %v3172_v40  ;;  %4275 = vmatpush.bf16.msra.mxu3 %v10774_v39  ;;  %v10578_v39 = vor.u32 %v13353_v37, %v10577_v36 }
 0x34c   :  { %v3266_v47 = vmul.f32 0.5, %v3185_v42  ;;  %v13365_v42 = vld [vmem:[#allocation10 + $0x28c] sm:$0xf0] }
 0x34e   :  { %v3197_v43 = vpop.f32.mrf.mxu2  ;;  %v3210_v44 = vpop.f32.mrf.mxu3  ;;  %13994 = vtanh.f32 %v3266_v47  ;;  %v13397_v47 = vld [vmem:[#allocation10 + $0x38c] sm:$0xf0] }
 0x34f   :  { %v3198_v45 = vadd.f32 %v3197_v43, %v2828_v41  ;;  %v3173_v46 = vpop.f32.mrf.mxu0  ;;  %v3186_v14 = vpop.f32.mrf.mxu1  ;;  %v10625_v41 = vld [vmem:[#allocation10 + $0x280] sm:$0xf] }
 0x350   :  { %v10626_v46 = vor.u32 %v13365_v42, %v10625_v41  ;;  %v10753_v14 = vld [vmem:[#allocation10 + $0x380] sm:$0xf]  ;;  %v10579_v42 = vld [vmem:[#allocation10 + $0x230] sm:$0xf0] }
 0x351   :  { %v3211_v20 = vadd.f32 %v3210_v44, %v3198_v45  ;;  %v10754_v48 = vor.u32 %v13397_v47, %v10753_v14  ;;  %v3294_v16 = vpop.permute.xlu1 %3293  ;;  %v13368_v14 = vld [vmem:[#allocation10 + $0x2ac] sm:$0xf] }
 0x352   :  { %4237 = vmatpush.bf16.msra.mxu0 %v10626_v46  ;;  %vm3295_vm7 = vcmp.eq.s32.totalorder %v3294_v16, 1  ;;  %v3371_v46 = vperm.slane %v14471_v33, 1 }
 0x353   :  { %v3270_v50 = vmul.f32 0.5, %v3211_v20  ;;  %v13363_v20 = vld [vmem:[#allocation10 + $0x284] sm:$0xf]  ;;  %4250 = vmatpush.bf16.msra.mxu1 %v10754_v48  ;;  %vm14481_vm8 = vmpackc.low %vm3295_vm7, %vm3295_vm7  ;;  %v10561_v48 = vld [vmem:[#allocation10 + $0x200] sm:$0xf] }
 0x354   :  { %v13995_v55 = vpop.eup %13994  ;;  %v10630_v56 = vor.u32 %v13363_v20, %v10627_v49  ;;  %v13349_v49 = vld [vmem:[#allocation10 + $0x20c] sm:$0xf0] }
 0x355   :  { %13996 = vtanh.f32 %v3270_v50  ;;  %v3268_v17 = vadd.f32 1.0, %v13995_v55  ;;  %v10755_v50 = vld [vmem:[#allocation10 + $0x390] sm:$0xf0]  ;;  %v13389_v55 = vld [vmem:[#allocation10 + $0x34c] sm:$0xf0] }
 0x356   :  { %v3199_v1 = vpop.f32.mrf.mxu2  ;;  %v3212_v5 = vpop.f32.mrf.mxu3  ;;  %v10758_v57 = vor.u32 %v13395_v27, %v10755_v50  ;;  %4263 = vmatpush.bf16.msra.mxu2 %v10630_v56  ;;  %4238 = vmatpush.bf16.msra.mxu0 %v10610_v6  ;;  %v10689_v27 = vld [vmem:[#allocation10 + $0x300] sm:$0xf]  ;;  %v10562_v56 = vor.u32 %v13349_v49, %v10561_v48  ;;  %v13379_v6 = vld [vmem:[#allocation10 + $0x304] sm:$0xf] }
 0x357   :  { %v3223_v10 = vpop.f32.mrf.mxu0  ;;  %v3236_v11 = vpop.f32.mrf.mxu1 }
 0x358   :  { %v3224_v21 = vadd.f32 %v3223_v10, %v2829_v51  ;;  %v3269_v51 = vmul.f32 0.5, %v3268_v17  ;;  %4276 = vmatpush.bf16.msra.mxu3 %v10758_v57  ;;  %v10738_v10 = vor.u32 %v13393_v8, %v10737_v62  ;;  %v3370_v17 = vperm.slane %v14471_v33, 0  ;;  %v13381_v57 = vld [vmem:[#allocation10 + $0x30c] sm:$0xf0]  ;;  %v10691_v8 = vld [vmem:[#allocation10 + $0x310] sm:$0xf0] }
 0x35a   :  { %v3237_v29 = vadd.f32 %v3236_v11, %v3224_v21  ;;  %v10611_v11 = vld [vmem:[#allocation10 + $0x270] sm:$0xf0]  ;;  %4251 = vmatpush.bf16.msra.mxu1 %v10738_v10 }
 0x35b   :  { %v13997_v32 = vpop.eup %13996  ;;  %v10614_v21 = vor.u32 %v13359_v54, %v10611_v11  ;;  %v10681_v54 = vld [vmem:[#allocation10 + $0x2e8] sm:$0xf]  ;;  %v10694_v11 = vor.u32 %v13379_v6, %v10691_v8 }
 0x35c   :  { %v3272_v35 = vadd.f32 1.0, %v13997_v32  ;;  %13998 = vtanh.f32 %v3237_v29  ;;  %v13355_v29 = vld [vmem:[#allocation10 + $0x244] sm:$0xf]  ;;  %4277 = vmatpush.bf16.msra.mxu3 %v10742_v22  ;;  %v10723_v32 = vld [vmem:[#allocation10 + $0x350] sm:$0xf0] }
 0x35d   :  { %4264 = vmatpush.bf16.msra.mxu2 %v10614_v21  ;;  %v10598_v25 = vor.u32 %v13355_v29, %v10595_v26  ;;  %v10726_v2 = vor.u32 %v13387_v3, %v10723_v32  ;;  %v13410_v21 = vld [vmem:[#allocation10 + $0x3f4] sm:$0xf0]  ;;  %v10665_v29 = vld [vmem:[#allocation10 + $0x2c8] sm:$0xf] }
 0x35e   :  { %v3273_v31 = vmul.f32 0.5, %v3272_v35  ;;  %v3249_v24 = vpop.f32.mrf.mxu2  ;;  %v3262_v40 = vpop.f32.mrf.mxu3  ;;  %v10793_v32 = vld [vmem:[#allocation10 + $0x3c8] sm:$0xf] }
 0x35f   :  { %v3250_v43 = vadd.f32 %v3249_v24, %v2830_v9  ;;  %v3225_v44 = vpop.f32.mrf.mxu0  ;;  %v3238_v45 = vpop.f32.mrf.mxu1  ;;  %v10721_v9 = vld [vmem:[#allocation10 + $0x340] sm:$0xf]  ;;  %v13351_v24 = vld [vmem:[#allocation10 + $0x224] sm:$0xf]  ;;  %v10617_v8 = vld [vmem:[#allocation10 + $0x268] sm:$0xf] }
 0x360   :  { %v3280_v63 = vmul.f32 %v3273_v31, %v14397_v4  ;;  %v10593_v4 = vld [vmem:[#allocation10 + $0x240] sm:$0xf]  ;;  %v10722_v30 = vor.u32 %v13389_v55, %v10721_v9  ;;  %4278 = vmatpush.bf16.msra.mxu3 %v10726_v2  ;;  %v13385_v31 = vld [vmem:[#allocation10 + $0x32c] sm:$0xf0]  ;;  %v10707_v44 = vld [vmem:[#allocation10 + $0x330] sm:$0xf0]  ;;  %v10582_v47 = vor.u32 %v13351_v24, %v10579_v42 }
 0x361   :  { %v3263_v52 = vadd.f32 %v3262_v40, %v3250_v43  ;;  %v10594_v28 = vor.u32 %v13357_v7, %v10593_v4  ;;  %4265 = vmatpush.bf16.msra.mxu2 %v10598_v25  ;;  %v10706_v41 = vor.u32 %v13385_v31, %v10705_v15  ;;  %v13383_v43 = vld [vmem:[#allocation10 + $0x324] sm:$0xf]  ;;  %v13376_v4 = vld [vmem:[#allocation10 + $0x2ec] sm:$0xf]  ;;  %v10683_v7 = vld [vmem:[#allocation10 + $0x2f8] sm:$0xf0] }
 0x362   :  { %v13999_v58 = vpop.eup %13998  ;;  %4252 = vmatpush.bf16.msra.mxu1 %v10722_v30  ;;  %v10710_v20 = vor.u32 %v13383_v43, %v10707_v44  ;;  %v13408_v9 = vld [vmem:[#allocation10 + $0x3ec] sm:$0xf]  ;;  %v10811_v55 = vld [vmem:[#allocation10 + $0x3f8] sm:$0xf0]  ;;  %v13374_v30 = vld [vmem:[#allocation10 + $0x2d4] sm:$0xf0] }
 0x363   :  { %v3281_v1 = vmul.f32 %v13999_v58, %v3269_v51  ;;  %v3275_v5 = vmul.f32 0.5, %v3263_v52  ;;  %4239 = vmatpush.bf16.msra.mxu0 %v10594_v28  ;;  %v13347_v58 = vld [vmem:[#allocation10 + $0x204] sm:$0xf]  ;;  %v10686_v28 = vor.u32 %v13376_v4, %v10683_v7  ;;  %v10814_v26 = vor.u32 %v13408_v9, %v10811_v55  ;;  %v13406_v2 = vld [vmem:[#allocation10 + $0x3d4] sm:$0xf0] }
 0x364   :  { %4279 = vmatpush.bf16.msra.mxu3 %v10710_v20  ;;  %v10666_v3 = vor.u32 %v13374_v30, %v10665_v29  ;;  %v10794_v37 = vor.u32 %v13406_v2, %v10793_v32  ;;  %v10667_v15 = vld [vmem:[#allocation10 + $0x2d8] sm:$0xf0]  ;;  %v13370_v42 = vld [vmem:[#allocation10 + $0x2b4] sm:$0xf0]  ;;  %v13400_v20 = vld [vmem:[#allocation10 + $0x3ac] sm:$0xf] }
 0x365   :  { %v14465_v19 = vadd.f32 %v3281_v1, %v3280_v63  ;;  %14000 = vtanh.f32 %v3275_v5  ;;  %4266 = vmatpush.bf16.msra.mxu2 %v10582_v47  ;;  %v3290_v63 = vld [vmem:[#allocation6] sm:$0xf]  ;;  %v10690_v1 = vor.u32 %v13381_v57, %v10689_v27  ;;  %v10566_v5 = vor.u32 %v13347_v58, %v10563_v59  ;;  %v13402_v44 = vld [vmem:[#allocation10 + $0x3b4] sm:$0xf0]  ;;  %v13364_v59 = vld [vmem:[#allocation10 + $0x28c] sm:$0xf] }
 0x366   :  { %v3251_v23 = vpop.f32.mrf.mxu2  ;;  %v3264_v60 = vpop.f32.mrf.mxu3  ;;  %4253 = vmatpush.bf16.msra.mxu1 %v10706_v41  ;;  %v10649_v41 = vld [vmem:[#allocation10 + $0x2a8] sm:$0xf]  ;;  %v10651_v47 = vld [vmem:[#allocation10 + $0x2b8] sm:$0xf0]  ;;  %v13398_v58 = vld [vmem:[#allocation10 + $0x394] sm:$0xf0] }
 0x367   :  { %14002 = vtanh.f32 %v14465_v19  ;;  %4240 = vmatpush.bf16.msra.mxu0 %v10578_v39  ;;  %v10682_v23 = vor.u32 %v13378_v12, %v10681_v54  ;;  %v10810_v60 = vor.u32 %v13410_v21, %v10809_v18  ;;  %v10654_v49 = vor.u32 %v13368_v14, %v10651_v47  ;;  %v10779_v27 = vld [vmem:[#allocation10 + $0x3b8] sm:$0xf0]  ;;  %v13362_v54 = vld [vmem:[#allocation10 + $0x274] sm:$0xf0]  ;;  %v13360_v18 = vld [vmem:[#allocation10 + $0x26c] sm:$0xf] }
 0x368   :  { %v14473_v34 = vpop.f32.mrf.mxu0  ;;  %v14475_v13 = vpop.f32.mrf.mxu1  ;;  %4280 = vmatpush.bf16.msra.mxu3 %v10694_v11  ;;  %v10745_v11 = vld [vmem:[#allocation10 + $0x368] sm:$0xf]  ;;  %v13394_v12 = vld [vmem:[#allocation10 + $0x374] sm:$0xf0]  ;;  %v3372_v4 = vperm.slane %v14471_v33, 2  ;;  %v3373_v7 = vperm.slane %v14471_v33, 3 }
 0x369   :  { %4267 = vmatpush.bf16.msra.mxu2 %v10566_v5  ;;  %v3715_v25 = vadd.f32 %v14473_v34, %v3370_v17  ;;  %v10650_v34 = vor.u32 %v13370_v42, %v10649_v41  ;;  %v10777_v17 = vld [vmem:[#allocation10 + $0x3a8] sm:$0xf]  ;;  %v10763_v5 = vld [vmem:[#allocation10 + $0x398] sm:$0xf0]  ;;  %v10746_v21 = vor.u32 %v13394_v12, %v10745_v11  ;;  %v13358_v55 = vld [vmem:[#allocation10 + $0x254] sm:$0xf0] }
 0x36a   :  { %4254 = vmatpush.bf16.msra.mxu1 %v10690_v1  ;;  %v13396_v1 = vld [vmem:[#allocation10 + $0x38c] sm:$0xf]  ;;  %v10729_v29 = vld [vmem:[#allocation10 + $0x348] sm:$0xf]  ;;  %v13390_v30 = vld [vmem:[#allocation10 + $0x354] sm:$0xf0] }
 0x36b   :  { %v14001_v35 = vpop.eup %14000  ;;  %4241 = vmatpush.bf16.msra.mxu0 %v10562_v56  ;;  %v10761_v56 = vld [vmem:[#allocation10 + $0x388] sm:$0xf]  ;;  %v10766_v6 = vor.u32 %v13396_v1, %v10763_v5  ;;  %v10731_v33 = vld [vmem:[#allocation10 + $0x358] sm:$0xf0]  ;;  %v13386_v41 = vld [vmem:[#allocation10 + $0x334] sm:$0xf0] }
 0x36c   :  { %v3277_v38 = vadd.f32 1.0, %v14001_v35  ;;  %v13372_v35 = vld [vmem:[#allocation10 + $0x2cc] sm:$0xf]  ;;  %4325 = vmatpush.bf16.msrb.mxu3 %v10814_v26  ;;  %v10715_v47 = vld [vmem:[#allocation10 + $0x338] sm:$0xf0] }
 0x36d   :  { %v14003_v40 = vpop.eup %14002  ;;  %4312 = vmatpush.bf16.msrb.mxu2 %v10686_v28  ;;  %v10670_v24 = vor.u32 %v13372_v35, %v10667_v15  ;;  %v10601_v28 = vld [vmem:[#allocation10 + $0x248] sm:$0xf]  ;;  %v13388_v15 = vld [vmem:[#allocation10 + $0x34c] sm:$0xf] }
 0x36e   :  { %v3278_v45 = vmul.f32 0.5, %v3277_v38  ;;  %4299 = vmatpush.bf16.msrb.mxu1 %v10810_v60  ;;  %v13404_v38 = vld [vmem:[#allocation10 + $0x3cc] sm:$0xf]  ;;  %v10747_v60 = vld [vmem:[#allocation10 + $0x378] sm:$0xf0]  ;;  %v10602_v26 = vor.u32 %v13358_v55, %v10601_v28 }
 0x36f   :  { %4286 = vmatpush.bf16.msrb.mxu0 %v10682_v23  ;;  %v13392_v23 = vld [vmem:[#allocation10 + $0x36c] sm:$0xf] }
 0x370   :  { %v3284_v50 = vmul.f32 %v14003_v40, %v3278_v45  ;;  %v3716_v61 = vpop.f32.mrf.mxu0  ;;  %v3729_v62 = vpop.f32.mrf.mxu1  ;;  %v10795_v40 = vld [vmem:[#allocation10 + $0x3d8] sm:$0xf0]  ;;  %v3728_v45 = vadd.f32 %v14475_v13, %v3715_v25  ;;  %v13356_v25 = vld [vmem:[#allocation10 + $0x24c] sm:$0xf] }
 0x371   :  { %v3740_v51 = vpop.f32.mrf.mxu2  ;;  %v3753_v52 = vpop.f32.mrf.mxu3  ;;  %v10798_v43 = vor.u32 %v13404_v38, %v10795_v40  ;;  %4313 = vmatpush.bf16.msrb.mxu2 %v10670_v24  ;;  %v10635_v61 = vld [vmem:[#allocation10 + $0x298] sm:$0xf0]  ;;  %v10762_v62 = vor.u32 %v13398_v58, %v10761_v56  ;;  %v10585_v38 = vld [vmem:[#allocation10 + $0x228] sm:$0xf]  ;;  %v13354_v24 = vld [vmem:[#allocation10 + $0x234] sm:$0xf0] }
 0x372   :  { %v3286_v10 = vpack.c.bf16 %v3284_v50, %v3284_v50  ;;  %v3741_v22 = vadd.f32 %v3740_v51, %v3371_v46  ;;  %4300 = vmatpush.bf16.msrb.mxu1 %v10794_v37  ;;  %v10778_v46 = vor.u32 %v13402_v44, %v10777_v17  ;;  %v10782_v50 = vor.u32 %v13400_v20, %v10779_v27  ;;  %v10633_v51 = vld [vmem:[#allocation10 + $0x288] sm:$0xf]  ;;  %v13384_v17 = vld [vmem:[#allocation10 + $0x32c] sm:$0xf] }
 0x373   :  { %4287 = vmatpush.bf16.msrb.mxu0 %v10666_v3  ;;  %4326 = vmatpush.bf16.msrb.mxu3 %v10798_v43  ;;  %v3809_v13 = vmul.f32 0.5, %v3728_v45  ;;  %v10603_v3 = vld [vmem:[#allocation10 + $0x258] sm:$0xf0]  ;;  %v10713_v40 = vld [vmem:[#allocation10 + $0x328] sm:$0xf] }
 0x374   :  { %3287 = vst [vmem:[#allocation3 + $0x4] sm:$0xf] %v3286_v10  ;;  %v3297_v16 = vsel %vm14481_vm8, %v3286_v10, %v3290_v63  ;;  %v3754_v36 = vadd.f32 %v3753_v52, %v3741_v22  ;;  %v13366_v52 = vld [vmem:[#allocation10 + $0x294] sm:$0xf0]  ;;  %v10638_v63 = vor.u32 %v13364_v59, %v10635_v61  ;;  %v10618_v10 = vor.u32 %v13362_v54, %v10617_v8  ;;  %v10619_v22 = vld [vmem:[#allocation10 + $0x278] sm:$0xf0] }
 0x375   :  { %3298 = vst [vmem:[#allocation6] sm:$0xf] %v3297_v16  ;;  %v10634_v57 = vor.u32 %v13366_v52, %v10633_v51  ;;  %4314 = vmatpush.bf16.msrb.mxu2 %v10654_v49  ;;  %v10622_v9 = vor.u32 %v13360_v18, %v10619_v22  ;;  %v10750_v16 = vor.u32 %v13392_v23, %v10747_v60  ;;  %v13352_v43 = vld [vmem:[#allocation10 + $0x22c] sm:$0xf]  ;;  %v10569_v20 = vld [vmem:[#allocation10 + $0x208] sm:$0xf] }
 0x376   :  { %v3813_v48 = vmul.f32 0.5, %v3754_v36  ;;  %4301 = vmatpush.bf16.msrb.mxu1 %v10778_v46  ;;  %v10730_v36 = vor.u32 %v13390_v30, %v10729_v29  ;;  %v10606_v37 = vor.u32 %v13356_v25, %v10603_v3  ;;  %v10586_v46 = vor.u32 %v13354_v24, %v10585_v38  ;;  %v13350_v49 = vld [vmem:[#allocation10 + $0x214] sm:$0xf0]  ;;  %v10697_v27 = vld [vmem:[#allocation10 + $0x308] sm:$0xf] }
 0x377   :  { %4288 = vmatpush.bf16.msrb.mxu0 %v10650_v34  ;;  %4327 = vmatpush.bf16.msrb.mxu3 %v10782_v50  ;;  %v10587_v34 = vld [vmem:[#allocation10 + $0x238] sm:$0xf0]  ;;  %v10714_v14 = vor.u32 %v13386_v41, %v10713_v40  ;;  %v13382_v50 = vld [vmem:[#allocation10 + $0x314] sm:$0xf0]  ;;  %v10718_v52 = vor.u32 %v13384_v17, %v10715_v47  ;;  %v13348_v56 = vld [vmem:[#allocation10 + $0x20c] sm:$0xf] }
 0x378   :  { %14004 = vtanh.f32 %v3813_v48  ;;  %v10590_v48 = vor.u32 %v13352_v43, %v10587_v34  ;;  %v13380_v58 = vld [vmem:[#allocation10 + $0x30c] sm:$0xf]  ;;  %v10699_v59 = vld [vmem:[#allocation10 + $0x318] sm:$0xf0]  ;;  %v4373_v61 = vld [vmem:[#allocation7 + $0x10] sm:$0xf]  ;;  %v10698_v1 = vor.u32 %v13382_v50, %v10697_v27 }
 0x379   :  { %v3742_v39 = vpop.f32.mrf.mxu2  ;;  %v3755_v31 = vpop.f32.mrf.mxu3  ;;  %14006 = vtanh.f32 %v3809_v13  ;;  %4315 = vmatpush.bf16.msrb.mxu2 %v10638_v63  ;;  %v10570_v63 = vor.u32 %v13350_v49, %v10569_v20  ;;  %4374 = vst [vmem:[#allocation2] sm:$0xf] %v4373_v61  ;;  %v10702_v11 = vor.u32 %v13380_v58, %v10699_v59  ;;  %v13441_v25 = vld [vmem:[#allocation10 + $0xec] sm:$0xf0]  ;;  %v11057_v3 = vld [vmem:[#allocation10 + $0x1e0] sm:$0xf] }
 0x37a   :  { %4302 = vmatpush.bf16.msrb.mxu1 %v10762_v62  ;;  %v10734_v31 = vor.u32 %v13388_v15, %v10731_v33  ;;  %v10931_v15 = vld [vmem:[#allocation10 + $0xf0] sm:$0xf0]  ;;  %v13471_v33 = vld [vmem:[#allocation10 + $0x1e4] sm:$0xf]  ;;  %v10913_v41 = vld [vmem:[#allocation10 + $0xc0] sm:$0xf] }
 0x37b   :  { %4289 = vmatpush.bf16.msrb.mxu0 %v10634_v57  ;;  %4328 = vmatpush.bf16.msrb.mxu3 %v10766_v6  ;;  %v10571_v57 = vld [vmem:[#allocation10 + $0x218] sm:$0xf0]  ;;  %v11059_v38 = vld [vmem:[#allocation10 + $0x1f0] sm:$0xf0]  ;;  %v11041_v17 = vld [vmem:[#allocation10 + $0x1c0] sm:$0xf] }
 0x37c   :  { %v11062_v34 = vor.u32 %v13471_v33, %v11059_v38  ;;  %v11043_v47 = vld [vmem:[#allocation10 + $0x1d0] sm:$0xf0]  ;;  %v10897_v20 = vld [vmem:[#allocation10 + $0xa0] sm:$0xf]  ;;  %v13465_v58 = vld [vmem:[#allocation10 + $0x1ac] sm:$0xf0] }
 0x37d   :  { %4316 = vmatpush.bf16.msrb.mxu2 %v10622_v9  ;;  %v11025_v50 = vld [vmem:[#allocation10 + $0x1a0] sm:$0xf]  ;;  %v13431_v59 = vld [vmem:[#allocation10 + $0xa4] sm:$0xf]  ;;  %v10899_v61 = vld [vmem:[#allocation10 + $0xb0] sm:$0xf0] }
 0x37e   :  { %4303 = vmatpush.bf16.msrb.mxu1 %v10746_v21  ;;  %v14005_v32 = vpop.eup %14004  ;;  %v13453_v33 = vld [vmem:[#allocation10 + $0x14c] sm:$0xf0]  ;;  %v13419_v38 = vld [vmem:[#allocation10 + $0x44] sm:$0xf] }
 0x37f   :  { %4290 = vmatpush.bf16.msrb.mxu0 %v10618_v10  ;;  %4329 = vmatpush.bf16.msrb.mxu3 %v10750_v16  ;;  %v14007_v42 = vpop.eup %14006  ;;  %v3815_v44 = vadd.f32 1.0, %v14005_v32  ;;  %v10574_v10 = vor.u32 %v13348_v56, %v10571_v57 }
 0x380   :  { %v3811_v51 = vadd.f32 1.0, %v14007_v42  ;;  %v13437_v42 = vld [vmem:[#allocation10 + $0xcc] sm:$0xf0] }
 0x381   :  { %4317 = vmatpush.bf16.msrb.mxu2 %v10606_v37  ;;  %v3816_v5 = vmul.f32 0.5, %v3815_v44  ;;  %v13469_v44 = vld [vmem:[#allocation10 + $0x1cc] sm:$0xf0]  ;;  %v10914_v49 = vor.u32 %v13437_v42, %v10913_v41  ;;  %v10979_v41 = vld [vmem:[#allocation10 + $0x150] sm:$0xf0] }
 0x382   :  { %4304 = vmatpush.bf16.msrb.mxu1 %v10730_v36  ;;  %v3812_v12 = vmul.f32 0.5, %v3811_v51  ;;  %v11042_v27 = vor.u32 %v13469_v44, %v11041_v17  ;;  %v13417_v17 = vld [vmem:[#allocation10 + $0x2c] sm:$0xf0] }
 0x383   :  { %4291 = vmatpush.bf16.msrb.mxu0 %v10602_v26  ;;  %4330 = vmatpush.bf16.msrb.mxu3 %v10734_v31  ;;  %v3823_v22 = vmul.f32 %v3816_v5, %v14424_v53  ;;  %v10929_v53 = vld [vmem:[#allocation10 + $0xe0] sm:$0xf] }
 0x384   :  { %v10930_v24 = vor.u32 %v13441_v25, %v10929_v53  ;;  %v10881_v5 = vld [vmem:[#allocation10 + $0x80] sm:$0xf]  ;;  %v13455_v53 = vld [vmem:[#allocation10 + $0x164] sm:$0xf]  ;;  %v10995_v25 = vld [vmem:[#allocation10 + $0x170] sm:$0xf0] }
 0x385   :  { %4318 = vmatpush.bf16.msrb.mxu2 %v10590_v48  ;;  %v13433_v48 = vld [vmem:[#allocation10 + $0xac] sm:$0xf0] }
 0x386   :  { %4305 = vmatpush.bf16.msrb.mxu1 %v10714_v14  ;;  %v13467_v14 = vld [vmem:[#allocation10 + $0x1c4] sm:$0xf] }
 0x387   :  { %4292 = vmatpush.bf16.msrb.mxu0 %v10586_v46  ;;  %4331 = vmatpush.bf16.msrb.mxu3 %v10718_v52  ;;  %v10915_v46 = vld [vmem:[#allocation10 + $0xd0] sm:$0xf0]  ;;  %v11046_v57 = vor.u32 %v13467_v14, %v11043_v47  ;;  %v13449_v14 = vld [vmem:[#allocation10 + $0x12c] sm:$0xf0]  ;;  %v13415_v47 = vld [vmem:[#allocation10 + $0x24] sm:$0xf] }
 0x388   :  { %v3766_v2 = vpop.f32.mrf.mxu0  ;;  %v3779_v35 = vpop.f32.mrf.mxu1  ;;  %v5445_v52 = vld [vmem:[#allocation7 + $0x14] sm:$0xf] }
 0x389   :  { %v3767_v39 = vadd.f32 %v3766_v2, %v3372_v4  ;;  %4319 = vmatpush.bf16.msrb.mxu2 %v10574_v10  ;;  %v13473_v2 = vld [vmem:[#allocation10 + $0x1ec] sm:$0xf0]  ;;  %v11009_v10 = vld [vmem:[#allocation10 + $0x180] sm:$0xf] }
 0x38a   :  { %4306 = vmatpush.bf16.msrb.mxu1 %v10698_v1  ;;  %v11058_v40 = vor.u32 %v13473_v2, %v11057_v3  ;;  %v11026_v1 = vor.u32 %v13465_v58, %v11025_v50  ;;  %v10849_v2 = vld [vmem:[#allocation10 + $0x40] sm:$0xf] }
 0x38b   :  { %v3780_v45 = vadd.f32 %v3779_v35, %v3767_v39  ;;  %4293 = vmatpush.bf16.msrb.mxu0 %v10570_v63  ;;  %4332 = vmatpush.bf16.msrb.mxu3 %v10702_v11  ;;  %v13439_v35 = vld [vmem:[#allocation10 + $0xe4] sm:$0xf]  ;;  %v10898_v63 = vor.u32 %v13433_v48, %v10897_v20  ;;  %v13461_v11 = vld [vmem:[#allocation10 + $0x18c] sm:$0xf0]  ;;  %v10835_v20 = vld [vmem:[#allocation10 + $0x30] sm:$0xf0] }
 0x38c   :  { %v10934_v43 = vor.u32 %v13439_v35, %v10931_v15  ;;  %v13421_v35 = vld [vmem:[#allocation10 + $0x4c] sm:$0xf0]  ;;  %v10977_v15 = vld [vmem:[#allocation10 + $0x140] sm:$0xf]  ;;  %v13447_v48 = vld [vmem:[#allocation10 + $0x124] sm:$0xf] }
 0x38d   :  { %14008 = vtanh.f32 %v3780_v45  ;;  %v13435_v45 = vld [vmem:[#allocation10 + $0xc4] sm:$0xf]  ;;  %v10850_v42 = vor.u32 %v13421_v35, %v10849_v2  ;;  %v13468_v2 = vld [vmem:[#allocation10 + $0x1cc] sm:$0xf]  ;;  %v11051_v35 = vld [vmem:[#allocation10 + $0x1d8] sm:$0xf0] }
 0x38e   :  { %v10918_v56 = vor.u32 %v13435_v45, %v10915_v46  ;;  %v10961_v46 = vld [vmem:[#allocation10 + $0x120] sm:$0xf] }
 0x38f   :  { %v3792_v13 = vpop.f32.mrf.mxu2  ;;  %v3805_v62 = vpop.f32.mrf.mxu3 }
 0x390   :  { %v3793_v6 = vadd.f32 %v3792_v13, %v3373_v7  ;;  %v3768_v8 = vpop.f32.mrf.mxu0  ;;  %v3781_v54 = vpop.f32.mrf.mxu1  ;;  %v13463_v13 = vld [vmem:[#allocation10 + $0x1a4] sm:$0xf] }
 0x391   :  { %v10902_v8 = vor.u32 %v13431_v59, %v10899_v61  ;;  %v10838_v59 = vor.u32 %v13415_v47, %v10835_v20  ;;  %v13430_v47 = vld [vmem:[#allocation10 + $0x94] sm:$0xf0] }
 0x392   :  { %v3806_v18 = vadd.f32 %v3805_v62, %v3793_v6  ;;  %v11027_v62 = vld [vmem:[#allocation10 + $0x1b0] sm:$0xf0]  ;;  %v13429_v6 = vld [vmem:[#allocation10 + $0x8c] sm:$0xf0] }
 0x393   :  { %v14009_v21 = vpop.eup %14008  ;;  %v11030_v54 = vor.u32 %v13463_v13, %v11027_v62  ;;  %v13411_v13 = vld [vmem:[#allocation10 + $0x4] sm:$0xf]  ;;  %v10819_v62 = vld [vmem:[#allocation10 + $0x10] sm:$0xf0] }
 0x394   :  { %v3824_v23 = vmul.f32 %v14009_v21, %v3812_v12  ;;  %v3818_v60 = vmul.f32 0.5, %v3806_v18  ;;  %v13427_v12 = vld [vmem:[#allocation10 + $0x84] sm:$0xf]  ;;  %v10883_v18 = vld [vmem:[#allocation10 + $0x90] sm:$0xf0] }
 0x395   :  { %v13459_v21 = vld [vmem:[#allocation10 + $0x184] sm:$0xf] }
 0x396   :  { %v14492_v4 = vadd.f32 %v3824_v23, %v3823_v22  ;;  %14010 = vtanh.f32 %v3818_v60  ;;  %v11011_v22 = vld [vmem:[#allocation10 + $0x190] sm:$0xf0]  ;;  %v10882_v23 = vor.u32 %v13429_v6, %v10881_v5  ;;  %v11010_v60 = vor.u32 %v13461_v11, %v11009_v10  ;;  %v10937_v5 = vld [vmem:[#allocation10 + $0xe8] sm:$0xf]  ;;  %v13442_v6 = vld [vmem:[#allocation10 + $0xf4] sm:$0xf0] }
 0x397   :  { %v3794_v7 = vpop.f32.mrf.mxu2  ;;  %v3807_v9 = vpop.f32.mrf.mxu3  ;;  %v13440_v10 = vld [vmem:[#allocation10 + $0xec] sm:$0xf] }
 0x398   :  { %14012 = vtanh.f32 %v14492_v4  ;;  %v10865_v7 = vld [vmem:[#allocation10 + $0x60] sm:$0xf]  ;;  %v13425_v9 = vld [vmem:[#allocation10 + $0x6c] sm:$0xf0] }
 0x399   :  { %v10866_v3 = vor.u32 %v13425_v9, %v10865_v7  ;;  %v10938_v9 = vor.u32 %v13442_v6, %v10937_v5  ;;  %v10875_v5 = vld [vmem:[#allocation10 + $0x78] sm:$0xf0]  ;;  %v13456_v6 = vld [vmem:[#allocation10 + $0x16c] sm:$0xf] }
 0x39c   :  { %v14011_v16 = vpop.eup %14010 }
 0x39d   :  { %v3820_v28 = vadd.f32 1.0, %v14011_v16  ;;  %v10886_v16 = vor.u32 %v13427_v12, %v10883_v18  ;;  %v10939_v18 = vld [vmem:[#allocation10 + $0xf8] sm:$0xf0] }
 0x39e   :  { %v14013_v55 = vpop.eup %14012 }
 0x39f   :  { %v3821_v29 = vmul.f32 0.5, %v3820_v28  ;;  %v11014_v28 = vor.u32 %v13459_v21, %v11011_v22  ;;  %v13472_v21 = vld [vmem:[#allocation10 + $0x1ec] sm:$0xf]  ;;  %v11067_v22 = vld [vmem:[#allocation10 + $0x1f8] sm:$0xf0] }
 0x3a1   :  { %v3827_v26 = vmul.f32 %v14013_v55, %v3821_v29  ;;  %v10993_v55 = vld [vmem:[#allocation10 + $0x160] sm:$0xf]  ;;  %v13457_v29 = vld [vmem:[#allocation10 + $0x16c] sm:$0xf0] }
 0x3a3   :  { %v3829_v30 = vpack.c.bf16 %v3827_v26, %v3827_v26  ;;  %v13423_v26 = vld [vmem:[#allocation10 + $0x64] sm:$0xf] }
 0x3a5   :  { %3830 = vst [vmem:[#allocation2 + $0x4] sm:$0xf] %v3829_v30 }
 0x3a6   :  { %3831 = vst [vmem:[#allocation3] sm:$0xf] %v3829_v30  ;;  %v10867_v30 = vld [vmem:[#allocation10 + $0x70] sm:$0xf0] }
 0x3ac   :  { %v14503_v51 = vld [vmem:[#allocation2] sm:$0xff] }
 0x3ad   :  { %v3832_v32 = vld [vmem:[#allocation3] sm:$0xff]  ;;  %5446 = vst [vmem:[#allocation2] sm:$0xf] %v5445_v52  ;;  %v10962_v52 = vor.u32 %v13449_v14, %v10961_v46  ;;  %v4451_v7 = vunpack.c.l.b16 %v14503_v51  ;;  %v10889_v14 = vld [vmem:[#allocation10 + $0x88] sm:$0xf] }
 0x3ae   :  { %v3908_v36 = vunpack.c.l.b16 %v3832_v32  ;;  %v3909_v37 = vunpack.c.h.b16 %v3832_v32  ;;  %v10994_v32 = vor.u32 %v13457_v29, %v10993_v55  ;;  %v10921_v55 = vld [vmem:[#allocation10 + $0xc8] sm:$0xf]  ;;  %v13438_v29 = vld [vmem:[#allocation10 + $0xd4] sm:$0xf0] }
 0x3b0   :  { %v14495_v39 = vpack.c.b16 %v3908_v36, %v3908_v36  ;;  %v14497_v31 = vpack.c.b16 %v3909_v37, %v3909_v37  ;;  %v10870_v36 = vor.u32 %v13423_v26, %v10867_v30  ;;  %v10998_v37 = vor.u32 %v13455_v53, %v10995_v25  ;;  %v11049_v53 = vld [vmem:[#allocation10 + $0x1c8] sm:$0xf]  ;;  %v13470_v25 = vld [vmem:[#allocation10 + $0x1d4] sm:$0xf0] }
 0x3b1   :  { %v10942_v26 = vor.u32 %v13440_v10, %v10939_v18  ;;  %v11070_v30 = vor.u32 %v13472_v21, %v11067_v22  ;;  %v10985_v22 = vld [vmem:[#allocation10 + $0x148] sm:$0xf] }
 0x3b2   :  { %4242 = vmatmul.bf16.vlgmr.msra.gmra.mxu0 %v14495_v39  ;;  %4255 = vmatmul.bf16.vlgmr.msra.gmra.mxu1 %v14497_v31 }
 0x3b3   :  { %4268 = vmatmul.bf16.vlgmr.msra.gmra.mxu2 %v14495_v39  ;;  %4281 = vmatmul.bf16.vlgmr.msra.gmra.mxu3 %v14497_v31 }
 0x3b4   :  { %4777 = vmatpush.bf16.msra.mxu0 %v10930_v24  ;;  %4790 = vmatpush.bf16.msra.mxu1 %v11058_v40  ;;  %v10851_v24 = vld [vmem:[#allocation10 + $0x50] sm:$0xf0]  ;;  %v13451_v40 = vld [vmem:[#allocation10 + $0x144] sm:$0xf] }
 0x3b5   :  { %4803 = vmatpush.bf16.msra.mxu2 %v10934_v43  ;;  %4816 = vmatpush.bf16.msra.mxu3 %v11062_v34  ;;  %v10978_v43 = vor.u32 %v13453_v33, %v10977_v15  ;;  %v10833_v34 = vld [vmem:[#allocation10 + $0x20] sm:$0xf]  ;;  %v10854_v44 = vor.u32 %v13419_v38, %v10851_v24  ;;  %v10982_v45 = vor.u32 %v13451_v40, %v10979_v41  ;;  %v10905_v33 = vld [vmem:[#allocation10 + $0xa8] sm:$0xf]  ;;  %v13434_v38 = vld [vmem:[#allocation10 + $0xb4] sm:$0xf0] }
 0x3b6   :  { %v10834_v50 = vor.u32 %v13417_v17, %v10833_v34  ;;  %v11050_v15 = vor.u32 %v13470_v25, %v11049_v53  ;;  %v11054_v40 = vor.u32 %v13468_v2, %v11051_v35  ;;  %v11033_v41 = vld [vmem:[#allocation10 + $0x1a8] sm:$0xf]  ;;  %v10907_v34 = vld [vmem:[#allocation10 + $0xb8] sm:$0xf0]  ;;  %v13464_v17 = vld [vmem:[#allocation10 + $0x1ac] sm:$0xf] }
 0x3b7   :  { %v10969_v25 = vld [vmem:[#allocation10 + $0x128] sm:$0xf]  ;;  %v10843_v2 = vld [vmem:[#allocation10 + $0x38] sm:$0xf0]  ;;  %v13448_v35 = vld [vmem:[#allocation10 + $0x12c] sm:$0xf] }
 0x3b8   :  { %4778 = vmatpush.bf16.msra.mxu0 %v10914_v49  ;;  %4791 = vmatpush.bf16.msra.mxu1 %v11042_v27  ;;  %v10963_v49 = vld [vmem:[#allocation10 + $0x130] sm:$0xf0]  ;;  %v10817_v27 = vld [vmem:[#allocation10] sm:$0xf] }
 0x3b9   :  { %4804 = vmatpush.bf16.msra.mxu2 %v10918_v56  ;;  %4817 = vmatpush.bf16.msra.mxu3 %v11046_v57  ;;  %v10945_v56 = vld [vmem:[#allocation10 + $0x100] sm:$0xf]  ;;  %v13445_v57 = vld [vmem:[#allocation10 + $0x10c] sm:$0xf0]  ;;  %v10966_v61 = vor.u32 %v13447_v48, %v10963_v49  ;;  %v11017_v49 = vld [vmem:[#allocation10 + $0x188] sm:$0xf] }
 0x3ba   :  { %v10946_v12 = vor.u32 %v13445_v57, %v10945_v56  ;;  %v10890_v56 = vor.u32 %v13430_v47, %v10889_v14 }
 0x3bc   :  { %4779 = vmatpush.bf16.msra.mxu0 %v10898_v63  ;;  %4792 = vmatpush.bf16.msra.mxu1 %v11026_v1  ;;  %v13443_v63 = vld [vmem:[#allocation10 + $0x104] sm:$0xf]  ;;  %v10947_v1 = vld [vmem:[#allocation10 + $0x110] sm:$0xf0] }
 0x3bd   :  { %4805 = vmatpush.bf16.msra.mxu2 %v10902_v8  ;;  %4818 = vmatpush.bf16.msra.mxu3 %v11030_v54  ;;  %v11065_v8 = vld [vmem:[#allocation10 + $0x1e8] sm:$0xf]  ;;  %v13474_v54 = vld [vmem:[#allocation10 + $0x1f4] sm:$0xf0] }
 0x3c0   :  { %4780 = vmatpush.bf16.msra.mxu0 %v10882_v23  ;;  %4793 = vmatpush.bf16.msra.mxu1 %v11010_v60  ;;  %v10822_v23 = vor.u32 %v13411_v13, %v10819_v62  ;;  %v10950_v60 = vor.u32 %v13443_v63, %v10947_v1  ;;  %v11001_v62 = vld [vmem:[#allocation10 + $0x168] sm:$0xf]  ;;  %v13458_v63 = vld [vmem:[#allocation10 + $0x174] sm:$0xf0]  ;;  %v13424_v1 = vld [vmem:[#allocation10 + $0x6c] sm:$0xf] }
 0x3c1   :  { %4806 = vmatpush.bf16.msra.mxu2 %v10886_v16  ;;  %4819 = vmatpush.bf16.msra.mxu3 %v11014_v28  ;;  %v11066_v16 = vor.u32 %v13474_v54, %v11065_v8  ;;  %v4452_v28 = vunpack.c.h.b16 %v14503_v51  ;;  %v10922_v51 = vor.u32 %v13438_v29, %v10921_v55  ;;  %v11003_v8 = vld [vmem:[#allocation10 + $0x178] sm:$0xf0]  ;;  %v11002_v10 = vor.u32 %v13458_v63, %v11001_v62  ;;  %v10841_v29 = vld [vmem:[#allocation10 + $0x28] sm:$0xf]  ;;  %v13505_v62 = vld [vmem:[#allocation10 + $0x2ec] sm:$0xf0] }
 0x3c2   :  { %4294 = vmatmul.bf16.vlgmr.msrb.gmra.mxu0 %v14495_v39  ;;  %4307 = vmatmul.bf16.vlgmr.msrb.gmra.mxu1 %v14497_v31  ;;  %v10878_v18 = vor.u32 %v13424_v1, %v10875_v5  ;;  %v11006_v21 = vor.u32 %v13456_v6, %v11003_v8  ;;  %v11314_v63 = vld [vmem:[#allocation10 + $0x3e0] sm:$0xf]  ;;  %v13537_v8 = vld [vmem:[#allocation10 + $0x3ec] sm:$0xf0] }
 0x3c3   :  { %4320 = vmatmul.bf16.vlgmr.msrb.gmra.mxu2 %v14495_v39  ;;  %4333 = vmatmul.bf16.vlgmr.msrb.gmra.mxu3 %v14497_v31  ;;  %v13413_v39 = vld [vmem:[#allocation10 + $0xc] sm:$0xf0] }
 0x3c4   :  { %4781 = vmatpush.bf16.msra.mxu0 %v10866_v3  ;;  %4794 = vmatpush.bf16.msra.mxu1 %v10994_v32  ;;  %v14106_v31 = vld [vmem:[%s14795_s0] sm:$0xff]  ;;  %v10818_v11 = vor.u32 %v13413_v39, %v10817_v27  ;;  %v10923_v32 = vld [vmem:[#allocation10 + $0xd8] sm:$0xf0]  ;;  %v13462_v27 = vld [vmem:[#allocation10 + $0x194] sm:$0xf0] }
 0x3c5   :  { %4807 = vmatpush.bf16.msra.mxu2 %v10870_v36  ;;  %4820 = vmatpush.bf16.msra.mxu3 %v10998_v37  ;;  %vm4361_vm9 = vcmp.eq.s32.totalorder %v14106_v31, 3  ;;  %v13436_v3 = vld [vmem:[#allocation10 + $0xcc] sm:$0xf]  ;;  %v14515_v36 = vpack.c.b16 %v4451_v7, %v4451_v7  ;;  %v14517_v37 = vpack.c.b16 %v4452_v28, %v4452_v28  ;;  %v10891_v31 = vld [vmem:[#allocation10 + $0x98] sm:$0xf0]  ;;  %v11018_v57 = vor.u32 %v13462_v27, %v11017_v49 }
 0x3c6   :  { %v4363_v58 = vsel %vm4361_vm9, 1, %v14219_v0  ;;  %v10926_v24 = vor.u32 %v13436_v3, %v10923_v32  ;;  %v13428_v39 = vld [vmem:[#allocation10 + $0x8c] sm:$0xf]  ;;  %v10859_v7 = vld [vmem:[#allocation10 + $0x58] sm:$0xf0] }
 0x3c7   :  { %4365 = vperm.xlu1 %13941, %v4363_v58   ;;  %v10873_v58 = vld [vmem:[#allocation10 + $0x68] sm:$0xf]  ;;  %v13450_v3 = vld [vmem:[#allocation10 + $0x134] sm:$0xf0]  ;;  %v13416_v32 = vld [vmem:[#allocation10 + $0x2c] sm:$0xf] }
 0x3c8   :  { %4782 = vmatpush.bf16.msra.mxu0 %v10850_v42  ;;  %4795 = vmatpush.bf16.msra.mxu1 %v10978_v43  ;;  %v13466_v42 = vld [vmem:[#allocation10 + $0x1b4] sm:$0xf0]  ;;  %v13432_v43 = vld [vmem:[#allocation10 + $0xac] sm:$0xf] }
 0x3c9   :  { %4808 = vmatpush.bf16.msra.mxu2 %v10854_v44  ;;  %4821 = vmatpush.bf16.msra.mxu3 %v10982_v45  ;;  %v11035_v44 = vld [vmem:[#allocation10 + $0x1b8] sm:$0xf0]  ;;  %v10906_v45 = vor.u32 %v13434_v38, %v10905_v33  ;;  %v11034_v46 = vor.u32 %v13466_v42, %v11033_v41  ;;  %v10910_v20 = vor.u32 %v13432_v43, %v10907_v34  ;;  %v10825_v38 = vld [vmem:[#allocation10 + $0x8] sm:$0xf]  ;;  %v13446_v43 = vld [vmem:[#allocation10 + $0x114] sm:$0xf0] }
 0x3ca   :  { %v11038_v48 = vor.u32 %v13464_v17, %v11035_v44  ;;  %v10970_v33 = vor.u32 %v13450_v3, %v10969_v25  ;;  %v10953_v42 = vld [vmem:[#allocation10 + $0x108] sm:$0xf]  ;;  %v13412_v34 = vld [vmem:[#allocation10 + $0xc] sm:$0xf]  ;;  %v10827_v17 = vld [vmem:[#allocation10 + $0x18] sm:$0xf0] }
 0x3cb   :  { %v13444_v44 = vld [vmem:[#allocation10 + $0x10c] sm:$0xf]  ;;  %v10954_v14 = vor.u32 %v13446_v43, %v10953_v42  ;;  %v10830_v47 = vor.u32 %v13412_v34, %v10827_v17  ;;  %v13499_v25 = vld [vmem:[#allocation10 + $0x2c4] sm:$0xf]  ;;  %v11172_v3 = vld [vmem:[#allocation10 + $0x2d0] sm:$0xf0] }
 0x3cc   :  { %4783 = vmatpush.bf16.msra.mxu0 %v10834_v50  ;;  %4796 = vmatpush.bf16.msra.mxu1 %v10962_v52  ;;  %v13460_v50 = vld [vmem:[#allocation10 + $0x18c] sm:$0xf]  ;;  %v11019_v52 = vld [vmem:[#allocation10 + $0x198] sm:$0xf0]  ;;  %v13529_v34 = vld [vmem:[#allocation10 + $0x3ac] sm:$0xf0] }
 0x3cd   :  { %4809 = vmatpush.bf16.msra.mxu2 %v10838_v59  ;;  %4822 = vmatpush.bf16.msra.mxu3 %v10966_v61  ;;  %v13426_v59 = vld [vmem:[#allocation10 + $0x74] sm:$0xf0]  ;;  %v10894_v61 = vor.u32 %v13428_v39, %v10891_v31  ;;  %v11022_v13 = vor.u32 %v13460_v50, %v11019_v52  ;;  %v13495_v17 = vld [vmem:[#allocation10 + $0x2a4] sm:$0xf] }
 0x3ce   :  { %v10874_v54 = vor.u32 %v13426_v59, %v10873_v58 }
 0x3d0   :  { %4784 = vmatpush.bf16.msra.mxu0 %v10818_v11  ;;  %4797 = vmatpush.bf16.msra.mxu1 %v10946_v12  ;;  %v10857_v11 = vld [vmem:[#allocation10 + $0x48] sm:$0xf]  ;;  %v13422_v12 = vld [vmem:[#allocation10 + $0x54] sm:$0xf0] }
 0x3d1   :  { %4810 = vmatpush.bf16.msra.mxu2 %v10822_v23  ;;  %4823 = vmatpush.bf16.msra.mxu3 %v10950_v60  ;;  %v13454_v23 = vld [vmem:[#allocation10 + $0x154] sm:$0xf0]  ;;  %v13420_v60 = vld [vmem:[#allocation10 + $0x4c] sm:$0xf]  ;;  %v10858_v28 = vor.u32 %v13422_v12, %v10857_v11  ;;  %v11188_v11 = vld [vmem:[#allocation10 + $0x2f0] sm:$0xf0] }
 0x3d2   :  { %v10986_v55 = vor.u32 %v13454_v23, %v10985_v22  ;;  %v13535_v12 = vld [vmem:[#allocation10 + $0x3e4] sm:$0xf] }
 0x3d3   :  { %4785 = vmatmul.bf16.vlgmr.msra.gmra.mxu0 %v14515_v36  ;;  %4798 = vmatmul.bf16.vlgmr.msra.gmra.mxu1 %v14517_v37 }
 0x3d4   :  { %4829 = vmatpush.bf16.msrb.mxu0 %v10938_v9  ;;  %4842 = vmatpush.bf16.msrb.mxu1 %v11066_v16  ;;  %v13452_v9 = vld [vmem:[#allocation10 + $0x14c] sm:$0xf]  ;;  %v10987_v16 = vld [vmem:[#allocation10 + $0x158] sm:$0xf0] }
 0x3d5   :  { %4855 = vmatpush.bf16.msrb.mxu2 %v10942_v26  ;;  %4868 = vmatpush.bf16.msrb.mxu3 %v11070_v30  ;;  %v13418_v26 = vld [vmem:[#allocation10 + $0x34] sm:$0xf0]  ;;  %v10862_v30 = vor.u32 %v13420_v60, %v10859_v7  ;;  %v10990_v53 = vor.u32 %v13452_v9, %v10987_v16  ;;  %v11170_v7 = vld [vmem:[#allocation10 + $0x2c0] sm:$0xf]  ;;  %v13501_v9 = vld [vmem:[#allocation10 + $0x2cc] sm:$0xf0] }
 0x3d6   :  { %4811 = vmatmul.bf16.vlgmr.msra.gmra.mxu2 %v14515_v36  ;;  %4824 = vmatmul.bf16.vlgmr.msra.gmra.mxu3 %v14517_v37 }
 0x3d8   :  { %4830 = vmatpush.bf16.msrb.mxu0 %v10922_v51  ;;  %4843 = vmatpush.bf16.msrb.mxu1 %v11050_v15  ;;  %v10971_v51 = vld [vmem:[#allocation10 + $0x138] sm:$0xf0]  ;;  %v10842_v15 = vor.u32 %v13418_v26, %v10841_v29  ;;  %v11298_v29 = vld [vmem:[#allocation10 + $0x3c0] sm:$0xf]  ;;  %v13533_v26 = vld [vmem:[#allocation10 + $0x3cc] sm:$0xf0] }
 0x3d9   :  { %4856 = vmatpush.bf16.msrb.mxu2 %v10926_v24  ;;  %4869 = vmatpush.bf16.msrb.mxu3 %v11054_v40  ;;  %v13414_v24 = vld [vmem:[#allocation10 + $0x14] sm:$0xf0]  ;;  %v10846_v40 = vor.u32 %v13416_v32, %v10843_v2  ;;  %v10974_v41 = vor.u32 %v13448_v35, %v10971_v51  ;;  %v13531_v32 = vld [vmem:[#allocation10 + $0x3c4] sm:$0xf]  ;;  %v11175_v35 = vor.u32 %v13499_v25, %v11172_v3  ;;  %v11300_v51 = vld [vmem:[#allocation10 + $0x3d0] sm:$0xf0] }
 0x3dc   :  { %4831 = vmatpush.bf16.msrb.mxu0 %v10906_v45  ;;  %4844 = vmatpush.bf16.msrb.mxu1 %v11034_v46  ;;  %v10955_v45 = vld [vmem:[#allocation10 + $0x118] sm:$0xf0]  ;;  %v10826_v46 = vor.u32 %v13414_v24, %v10825_v38  ;;  %v11303_v38 = vor.u32 %v13531_v32, %v11300_v51  ;;  %v11154_v24 = vld [vmem:[#allocation10 + $0x2a0] sm:$0xf]  ;;  %v13485_v32 = vld [vmem:[#allocation10 + $0x24c] sm:$0xf0] }
 0x3dd   :  { %4857 = vmatpush.bf16.msrb.mxu2 %v10910_v20  ;;  %4870 = vmatpush.bf16.msrb.mxu3 %v11038_v48  ;;  %v10958_v20 = vor.u32 %v13444_v44, %v10955_v45  ;;  %v14530_v48 = vld [vmem:[%s14798_s3 + $0x4] sm:$0xf]  ;;  %v11156_v44 = vld [vmem:[#allocation10 + $0x2b0] sm:$0xf0] }
 0x3de   :  { %v3899_v49 = vperm.slane %v14530_v48, 0  ;;  %v3900_v50 = vperm.slane %v14530_v48, 1  ;;  %v3901_v5 = vperm.slane %v14530_v48, 2  ;;  %v3902_v2 = vperm.slane %v14530_v48, 3 }
 0x3e0   :  { %4832 = vmatpush.bf16.msrb.mxu0 %v10890_v56  ;;  %4845 = vmatpush.bf16.msrb.mxu1 %v11018_v57 }
 0x3e1   :  { %4858 = vmatpush.bf16.msrb.mxu2 %v10894_v61  ;;  %4871 = vmatpush.bf16.msrb.mxu3 %v11022_v13  ;;  %v11186_v13 = vld [vmem:[#allocation10 + $0x2e0] sm:$0xf] }
 0x3e2   :  { %v11187_v6 = vor.u32 %v13505_v62, %v11186_v13  ;;  %v11140_v62 = vld [vmem:[#allocation10 + $0x290] sm:$0xf0] }
 0x3e4   :  { %4833 = vmatpush.bf16.msrb.mxu0 %v10874_v54  ;;  %4846 = vmatpush.bf16.msrb.mxu1 %v11002_v10  ;;  %v13503_v54 = vld [vmem:[#allocation10 + $0x2e4] sm:$0xf]  ;;  %v11315_v10 = vor.u32 %v13537_v8, %v11314_v63 }
 0x3e5   :  { %4859 = vmatpush.bf16.msrb.mxu2 %v10878_v18  ;;  %4872 = vmatpush.bf16.msrb.mxu3 %v11006_v21  ;;  %v11316_v18 = vld [vmem:[#allocation10 + $0x3f0] sm:$0xf0]  ;;  %v11191_v21 = vor.u32 %v13503_v54, %v11188_v11  ;;  %v13523_v63 = vld [vmem:[#allocation10 + $0x384] sm:$0xf]  ;;  %v11122_v11 = vld [vmem:[#allocation10 + $0x260] sm:$0xf] }
 0x3e6   :  { %v11319_v60 = vor.u32 %v13535_v12, %v11316_v18  ;;  %v13489_v12 = vld [vmem:[#allocation10 + $0x26c] sm:$0xf0]  ;;  %v11250_v18 = vld [vmem:[#allocation10 + $0x360] sm:$0xf] }
 0x3e8   :  { %4834 = vmatpush.bf16.msrb.mxu0 %v10858_v28  ;;  %4847 = vmatpush.bf16.msrb.mxu1 %v10986_v55  ;;  %v11171_v55 = vor.u32 %v13501_v9, %v11170_v7  ;;  %v13521_v7 = vld [vmem:[#allocation10 + $0x36c] sm:$0xf0]  ;;  %v13487_v9 = vld [vmem:[#allocation10 + $0x264] sm:$0xf] }
 0x3e9   :  { %4860 = vmatpush.bf16.msrb.mxu2 %v10862_v30  ;;  %4873 = vmatpush.bf16.msrb.mxu3 %v10990_v53  ;;  %v11299_v53 = vor.u32 %v13533_v26, %v11298_v29  ;;  %v11252_v29 = vld [vmem:[#allocation10 + $0x370] sm:$0xf0] }
 0x3ec   :  { %4835 = vmatpush.bf16.msrb.mxu0 %v10842_v15  ;;  %4848 = vmatpush.bf16.msrb.mxu1 %v10970_v33 }
 0x3ed   :  { %4861 = vmatpush.bf16.msrb.mxu2 %v10846_v40  ;;  %4874 = vmatpush.bf16.msrb.mxu3 %v10974_v41  ;;  %v13497_v40 = vld [vmem:[#allocation10 + $0x2ac] sm:$0xf0]  ;;  %v11282_v41 = vld [vmem:[#allocation10 + $0x3a0] sm:$0xf] }
 0x3ee   :  { %v11155_v43 = vor.u32 %v13497_v40, %v11154_v24 }
 0x3f0   :  { %4836 = vmatpush.bf16.msrb.mxu0 %v10826_v46  ;;  %4849 = vmatpush.bf16.msrb.mxu1 %v10954_v14  ;;  %v11283_v46 = vor.u32 %v13529_v34, %v11282_v41  ;;  %v11159_v14 = vor.u32 %v13495_v17, %v11156_v44  ;;  %v13515_v41 = vld [vmem:[#allocation10 + $0x344] sm:$0xf] }
 0x3f1   :  { %4862 = vmatpush.bf16.msrb.mxu2 %v10830_v47  ;;  %4875 = vmatpush.bf16.msrb.mxu3 %v10958_v20  ;;  %v13527_v47 = vld [vmem:[#allocation10 + $0x3a4] sm:$0xf]  ;;  %v11284_v20 = vld [vmem:[#allocation10 + $0x3b0] sm:$0xf0] }
 0x3f3   :  { %4837 = vmatmul.bf16.vlgmr.msrb.gmra.mxu0 %v14515_v36  ;;  %4850 = vmatmul.bf16.vlgmr.msrb.gmra.mxu1 %v14517_v37 }
 0x3f4   :  { %4863 = vmatmul.bf16.vlgmr.msrb.gmra.mxu2 %v14515_v36  ;;  %4876 = vmatmul.bf16.vlgmr.msrb.gmra.mxu3 %v14517_v37 }
 0x3f5   :  { %5306 = vmatpush.bf16.msra.mxu0 %v11187_v6  ;;  %5319 = vmatpush.bf16.msra.mxu1 %v11315_v10 }
 0x3f6   :  { %5332 = vmatpush.bf16.msra.mxu2 %v11191_v21  ;;  %5345 = vmatpush.bf16.msra.mxu3 %v11319_v60  ;;  %v11123_v60 = vor.u32 %v13489_v12, %v11122_v11  ;;  %v11076_v11 = vld [vmem:[#allocation10 + $0x210] sm:$0xf0] }
 0x3f9   :  { %5307 = vmatpush.bf16.msra.mxu0 %v11171_v55  ;;  %5320 = vmatpush.bf16.msra.mxu1 %v11299_v53  ;;  %v13519_v55 = vld [vmem:[#allocation10 + $0x364] sm:$0xf] }
 0x3fa   :  { %5333 = vmatpush.bf16.msra.mxu2 %v11175_v35  ;;  %5346 = vmatpush.bf16.msra.mxu3 %v11303_v38  ;;  %v11255_v53 = vor.u32 %v13519_v55, %v11252_v29  ;;  %v11108_v38 = vld [vmem:[#allocation10 + $0x250] sm:$0xf0]  ;;  %v13506_v55 = vld [vmem:[#allocation10 + $0x2f4] sm:$0xf0]  ;;  %v11322_v29 = vld [vmem:[#allocation10 + $0x3e8] sm:$0xf] }
 0x3fd   :  { %5308 = vmatpush.bf16.msra.mxu0 %v11155_v43  ;;  %5321 = vmatpush.bf16.msra.mxu1 %v11283_v46  ;;  %v14543_v43 = vld [vmem:[%s14798_s3] sm:$0xf]  ;;  %v11090_v46 = vld [vmem:[#allocation10 + $0x220] sm:$0xf] }
 0x3fe   :  { %5334 = vmatpush.bf16.msra.mxu2 %v11159_v14  ;;  %v13481_v14 = vld [vmem:[#allocation10 + $0x22c] sm:$0xf0] }
 0x42f   :  { %v4243_v27 = vpop.f32.mrf.mxu0  ;;  %v4256_v39 = vpop.f32.mrf.mxu1 }
 0x430   :  { %v4244_v31 = vadd.f32 %v4243_v27, %v3899_v49  ;;  %v11287_v49 = vor.u32 %v13527_v47, %v11284_v20  ;;  %v11218_v47 = vld [vmem:[#allocation10 + $0x320] sm:$0xf] }
 0x432   :  { %v4257_v52 = vadd.f32 %v4256_v39, %v4244_v31  ;;  %5347 = vmatpush.bf16.msra.mxu3 %v11287_v49  ;;  %v11091_v49 = vor.u32 %v13481_v14, %v11090_v46 }
 0x434   :  { %v4338_v61 = vmul.f32 0.5, %v4257_v52  ;;  %v13493_v52 = vld [vmem:[#allocation10 + $0x28c] sm:$0xf0] }
 0x436   :  { %v4269_v56 = vpop.f32.mrf.mxu2  ;;  %v4282_v57 = vpop.f32.mrf.mxu3  ;;  %14014 = vtanh.f32 %v4338_v61  ;;  %v13525_v61 = vld [vmem:[#allocation10 + $0x38c] sm:$0xf0] }
 0x437   :  { %v4270_v58 = vadd.f32 %v4269_v56, %v3900_v50  ;;  %v4245_v59 = vpop.f32.mrf.mxu0  ;;  %v4258_v36 = vpop.f32.mrf.mxu1  ;;  %v11138_v50 = vld [vmem:[#allocation10 + $0x280] sm:$0xf] }
 0x438   :  { %v11139_v59 = vor.u32 %v13493_v52, %v11138_v50  ;;  %v11266_v36 = vld [vmem:[#allocation10 + $0x380] sm:$0xf]  ;;  %v11092_v52 = vld [vmem:[#allocation10 + $0x230] sm:$0xf0] }
 0x439   :  { %v4283_v37 = vadd.f32 %v4282_v57, %v4270_v58  ;;  %v11267_v13 = vor.u32 %v13525_v61, %v11266_v36  ;;  %v4366_v35 = vpop.permute.xlu1 %4365 }
 0x43a   :  { %5309 = vmatpush.bf16.msra.mxu0 %v11139_v59  ;;  %vm4367_vm10 = vcmp.eq.s32.totalorder %v4366_v35, 1  ;;  %v4443_v59 = vperm.slane %v14543_v43, 1 }
 0x43b   :  { %v4342_v1 = vmul.f32 0.5, %v4283_v37  ;;  %v13491_v37 = vld [vmem:[#allocation10 + $0x284] sm:$0xf]  ;;  %5322 = vmatpush.bf16.msra.mxu1 %v11267_v13  ;;  %vm14553_vm11 = vmpackc.low %vm4367_vm10, %vm4367_vm10  ;;  %v11074_v13 = vld [vmem:[#allocation10 + $0x200] sm:$0xf] }
 0x43c   :  { %v14015_v15 = vpop.eup %14014  ;;  %v11143_v8 = vor.u32 %v13491_v37, %v11140_v62  ;;  %v13477_v62 = vld [vmem:[#allocation10 + $0x20c] sm:$0xf0] }
 0x43d   :  { %14016 = vtanh.f32 %v4342_v1  ;;  %v4340_v48 = vadd.f32 1.0, %v14015_v15  ;;  %v11268_v1 = vld [vmem:[#allocation10 + $0x390] sm:$0xf0]  ;;  %v13517_v15 = vld [vmem:[#allocation10 + $0x34c] sm:$0xf0] }
 0x43e   :  { %v4271_v22 = vpop.f32.mrf.mxu2  ;;  %v4284_v23 = vpop.f32.mrf.mxu3  ;;  %v11271_v54 = vor.u32 %v13523_v63, %v11268_v1  ;;  %5335 = vmatpush.bf16.msra.mxu2 %v11143_v8  ;;  %5310 = vmatpush.bf16.msra.mxu0 %v11123_v60  ;;  %v11202_v63 = vld [vmem:[#allocation10 + $0x300] sm:$0xf]  ;;  %v11075_v8 = vor.u32 %v13477_v62, %v11074_v13  ;;  %v13507_v60 = vld [vmem:[#allocation10 + $0x304] sm:$0xf] }
 0x43f   :  { %v4295_v16 = vpop.f32.mrf.mxu0  ;;  %v4308_v28 = vpop.f32.mrf.mxu1 }
 0x440   :  { %v4296_v30 = vadd.f32 %v4295_v16, %v3901_v5  ;;  %v4341_v5 = vmul.f32 0.5, %v4340_v48  ;;  %5348 = vmatpush.bf16.msra.mxu3 %v11271_v54  ;;  %v11251_v16 = vor.u32 %v13521_v7, %v11250_v18  ;;  %v4442_v48 = vperm.slane %v14543_v43, 0  ;;  %v13509_v54 = vld [vmem:[#allocation10 + $0x30c] sm:$0xf0]  ;;  %v11204_v7 = vld [vmem:[#allocation10 + $0x310] sm:$0xf0] }
 0x442   :  { %v4309_v33 = vadd.f32 %v4308_v28, %v4296_v30  ;;  %v11124_v28 = vld [vmem:[#allocation10 + $0x270] sm:$0xf0]  ;;  %5323 = vmatpush.bf16.msra.mxu1 %v11251_v16 }
 0x443   :  { %v14017_v42 = vpop.eup %14016  ;;  %v11127_v30 = vor.u32 %v13487_v9, %v11124_v28  ;;  %v11194_v9 = vld [vmem:[#allocation10 + $0x2e8] sm:$0xf]  ;;  %v11207_v28 = vor.u32 %v13507_v60, %v11204_v7  ;;  %v4444_v7 = vperm.slane %v14543_v43, 2 }
 0x444   :  { %v4344_v45 = vadd.f32 1.0, %v14017_v42  ;;  %14018 = vtanh.f32 %v4309_v33  ;;  %v13483_v33 = vld [vmem:[#allocation10 + $0x244] sm:$0xf]  ;;  %5349 = vmatpush.bf16.msra.mxu3 %v11255_v53  ;;  %v11236_v42 = vld [vmem:[#allocation10 + $0x350] sm:$0xf0] }
 0x445   :  { %5336 = vmatpush.bf16.msra.mxu2 %v11127_v30  ;;  %v11111_v40 = vor.u32 %v13483_v33, %v11108_v38  ;;  %v11239_v44 = vor.u32 %v13515_v41, %v11236_v42  ;;  %v13538_v30 = vld [vmem:[#allocation10 + $0x3f4] sm:$0xf0]  ;;  %v11178_v33 = vld [vmem:[#allocation10 + $0x2c8] sm:$0xf] }
 0x446   :  { %v4345_v27 = vmul.f32 0.5, %v4344_v45  ;;  %v4321_v39 = vpop.f32.mrf.mxu2  ;;  %v4334_v31 = vpop.f32.mrf.mxu3  ;;  %v11306_v41 = vld [vmem:[#allocation10 + $0x3c8] sm:$0xf]  ;;  %v13534_v42 = vld [vmem:[#allocation10 + $0x3d4] sm:$0xf0] }
 0x447   :  { %v4322_v56 = vadd.f32 %v4321_v39, %v3902_v2  ;;  %v4297_v57 = vpop.f32.mrf.mxu0  ;;  %v4310_v58 = vpop.f32.mrf.mxu1  ;;  %v11234_v2 = vld [vmem:[#allocation10 + $0x340] sm:$0xf]  ;;  %v13479_v39 = vld [vmem:[#allocation10 + $0x224] sm:$0xf]  ;;  %v11307_v14 = vor.u32 %v13534_v42, %v11306_v41  ;;  %v11116_v41 = vld [vmem:[#allocation10 + $0x258] sm:$0xf0] }
 0x448   :  { %v4352_v21 = vmul.f32 %v4345_v27, %v14465_v19  ;;  %v11106_v19 = vld [vmem:[#allocation10 + $0x240] sm:$0xf]  ;;  %v11235_v24 = vor.u32 %v13517_v15, %v11234_v2  ;;  %5350 = vmatpush.bf16.msra.mxu3 %v11239_v44  ;;  %v13513_v27 = vld [vmem:[#allocation10 + $0x32c] sm:$0xf0]  ;;  %v11220_v57 = vld [vmem:[#allocation10 + $0x330] sm:$0xf0]  ;;  %v11095_v61 = vor.u32 %v13479_v39, %v11092_v52 }
 0x449   :  { %v4335_v6 = vadd.f32 %v4334_v31, %v4322_v56  ;;  %v11107_v51 = vor.u32 %v13485_v32, %v11106_v19  ;;  %5337 = vmatpush.bf16.msra.mxu2 %v11111_v40  ;;  %v11219_v50 = vor.u32 %v13513_v27, %v11218_v47  ;;  %v13511_v56 = vld [vmem:[#allocation10 + $0x324] sm:$0xf]  ;;  %v13504_v19 = vld [vmem:[#allocation10 + $0x2ec] sm:$0xf]  ;;  %v11196_v32 = vld [vmem:[#allocation10 + $0x2f8] sm:$0xf0] }
 0x44a   :  { %v14019_v10 = vpop.eup %14018  ;;  %5324 = vmatpush.bf16.msra.mxu1 %v11235_v24  ;;  %v11223_v37 = vor.u32 %v13511_v56, %v11220_v57  ;;  %v13536_v2 = vld [vmem:[#allocation10 + $0x3ec] sm:$0xf]  ;;  %v11324_v15 = vld [vmem:[#allocation10 + $0x3f8] sm:$0xf0]  ;;  %v13502_v24 = vld [vmem:[#allocation10 + $0x2d4] sm:$0xf0] }
 0x44b   :  { %v4353_v22 = vmul.f32 %v14019_v10, %v4341_v5  ;;  %v4347_v23 = vmul.f32 0.5, %v4335_v6  ;;  %5311 = vmatpush.bf16.msra.mxu0 %v11107_v51  ;;  %v13475_v10 = vld [vmem:[#allocation10 + $0x204] sm:$0xf]  ;;  %v11199_v51 = vor.u32 %v13504_v19, %v11196_v32  ;;  %v11327_v38 = vor.u32 %v13536_v2, %v11324_v15  ;;  %v13500_v44 = vld [vmem:[#allocation10 + $0x2cc] sm:$0xf] }
 0x44c   :  { %5351 = vmatpush.bf16.msra.mxu3 %v11223_v37  ;;  %v11179_v40 = vor.u32 %v13502_v24, %v11178_v33  ;;  %v11180_v47 = vld [vmem:[#allocation10 + $0x2d8] sm:$0xf0]  ;;  %v13498_v52 = vld [vmem:[#allocation10 + $0x2b4] sm:$0xf0]  ;;  %v4445_v32 = vperm.slane %v14543_v43, 3 }
 0x44d   :  { %v14537_v26 = vadd.f32 %v4353_v22, %v4352_v21  ;;  %14020 = vtanh.f32 %v4347_v23  ;;  %5338 = vmatpush.bf16.msra.mxu2 %v11095_v61  ;;  %v4362_v21 = vld [vmem:[#allocation6] sm:$0xf]  ;;  %v11203_v22 = vor.u32 %v13509_v54, %v11202_v63  ;;  %v11079_v23 = vor.u32 %v13475_v10, %v11076_v11  ;;  %v13528_v61 = vld [vmem:[#allocation10 + $0x3ac] sm:$0xf]  ;;  %v13526_v10 = vld [vmem:[#allocation10 + $0x394] sm:$0xf0] }
 0x44e   :  { %v4323_v25 = vpop.f32.mrf.mxu2  ;;  %v4336_v3 = vpop.f32.mrf.mxu3  ;;  %5325 = vmatpush.bf16.msra.mxu1 %v11219_v50  ;;  %v11183_v39 = vor.u32 %v13500_v44, %v11180_v47  ;;  %v11162_v50 = vld [vmem:[#allocation10 + $0x2a8] sm:$0xf]  ;;  %v11292_v63 = vld [vmem:[#allocation10 + $0x3b8] sm:$0xf0]  ;;  %v13492_v11 = vld [vmem:[#allocation10 + $0x28c] sm:$0xf] }
 0x44f   :  { %14022 = vtanh.f32 %v14537_v26  ;;  %5312 = vmatpush.bf16.msra.mxu0 %v11091_v49  ;;  %v11195_v25 = vor.u32 %v13506_v55, %v11194_v9  ;;  %v11323_v3 = vor.u32 %v13538_v30, %v11322_v29  ;;  %v11163_v57 = vor.u32 %v13498_v52, %v11162_v50  ;;  %v11130_v9 = vld [vmem:[#allocation10 + $0x268] sm:$0xf]  ;;  %v13522_v29 = vld [vmem:[#allocation10 + $0x374] sm:$0xf0]  ;;  %v13488_v30 = vld [vmem:[#allocation10 + $0x26c] sm:$0xf] }
 0x450   :  { %v14545_v34 = vpop.f32.mrf.mxu0  ;;  %v14547_v17 = vpop.f32.mrf.mxu1  ;;  %5352 = vmatpush.bf16.msra.mxu3 %v11207_v28  ;;  %v11258_v55 = vld [vmem:[#allocation10 + $0x368] sm:$0xf]  ;;  %v11260_v19 = vld [vmem:[#allocation10 + $0x378] sm:$0xf0]  ;;  %v13486_v15 = vld [vmem:[#allocation10 + $0x254] sm:$0xf0] }
 0x451   :  { %5339 = vmatpush.bf16.msra.mxu2 %v11079_v23  ;;  %v11276_v23 = vld [vmem:[#allocation10 + $0x398] sm:$0xf0]  ;;  %v11242_v33 = vld [vmem:[#allocation10 + $0x348] sm:$0xf]  ;;  %v13518_v24 = vld [vmem:[#allocation10 + $0x354] sm:$0xf0] }
 0x452   :  { %5326 = vmatpush.bf16.msra.mxu1 %v11203_v22  ;;  %v13524_v22 = vld [vmem:[#allocation10 + $0x38c] sm:$0xf]  ;;  %v11244_v43 = vld [vmem:[#allocation10 + $0x358] sm:$0xf0]  ;;  %v13514_v50 = vld [vmem:[#allocation10 + $0x334] sm:$0xf0] }
 0x453   :  { %v14021_v45 = vpop.eup %14020  ;;  %5313 = vmatpush.bf16.msra.mxu0 %v11075_v8  ;;  %v11274_v8 = vld [vmem:[#allocation10 + $0x388] sm:$0xf]  ;;  %v11279_v60 = vor.u32 %v13524_v22, %v11276_v23  ;;  %v13516_v47 = vld [vmem:[#allocation10 + $0x34c] sm:$0xf] }
 0x454   :  { %v4349_v20 = vadd.f32 1.0, %v14021_v45  ;;  %v4787_v45 = vadd.f32 %v14545_v34, %v4442_v48  ;;  %5397 = vmatpush.bf16.msrb.mxu3 %v11327_v38  ;;  %v13496_v34 = vld [vmem:[#allocation10 + $0x2ac] sm:$0xf]  ;;  %v11164_v48 = vld [vmem:[#allocation10 + $0x2b8] sm:$0xf0] }
 0x455   :  { %v14023_v31 = vpop.eup %14022  ;;  %5384 = vmatpush.bf16.msrb.mxu2 %v11199_v51  ;;  %v11167_v62 = vor.u32 %v13496_v34, %v11164_v48  ;;  %v11114_v51 = vld [vmem:[#allocation10 + $0x248] sm:$0xf]  ;;  %v13480_v52 = vld [vmem:[#allocation10 + $0x22c] sm:$0xf] }
 0x456   :  { %v4350_v58 = vmul.f32 0.5, %v4349_v20  ;;  %5371 = vmatpush.bf16.msrb.mxu1 %v11323_v3  ;;  %v13532_v20 = vld [vmem:[#allocation10 + $0x3cc] sm:$0xf]  ;;  %v4800_v37 = vadd.f32 %v14547_v17, %v4787_v45  ;;  %v11115_v38 = vor.u32 %v13486_v15, %v11114_v51 }
 0x457   :  { %5358 = vmatpush.bf16.msrb.mxu0 %v11195_v25  ;;  %v11132_v25 = vld [vmem:[#allocation10 + $0x278] sm:$0xf0]  ;;  %v13520_v3 = vld [vmem:[#allocation10 + $0x36c] sm:$0xf] }
 0x458   :  { %v4356_v1 = vmul.f32 %v14023_v31, %v4350_v58  ;;  %v4788_v12 = vpop.f32.mrf.mxu0  ;;  %v4801_v18 = vpop.f32.mrf.mxu1  ;;  %v11308_v31 = vld [vmem:[#allocation10 + $0x3d8] sm:$0xf0]  ;;  %v11290_v58 = vld [vmem:[#allocation10 + $0x3a8] sm:$0xf]  ;;  %v4881_v17 = vmul.f32 0.5, %v4800_v37  ;;  %v11135_v2 = vor.u32 %v13488_v30, %v11132_v25 }
 0x459   :  { %v4812_v5 = vpop.f32.mrf.mxu2  ;;  %v4825_v6 = vpop.f32.mrf.mxu3  ;;  %v11311_v56 = vor.u32 %v13532_v20, %v11308_v31  ;;  %5385 = vmatpush.bf16.msrb.mxu2 %v11183_v39  ;;  %v11148_v12 = vld [vmem:[#allocation10 + $0x298] sm:$0xf0]  ;;  %v11275_v18 = vor.u32 %v13526_v10, %v11274_v8  ;;  %v11098_v20 = vld [vmem:[#allocation10 + $0x228] sm:$0xf]  ;;  %v13482_v39 = vld [vmem:[#allocation10 + $0x234] sm:$0xf0] }
 0x45a   :  { %v4358_v16 = vpack.c.bf16 %v4356_v1, %v4356_v1  ;;  %v4813_v53 = vadd.f32 %v4812_v5, %v4443_v59  ;;  %5372 = vmatpush.bf16.msrb.mxu1 %v11307_v14  ;;  %v13530_v59 = vld [vmem:[#allocation10 + $0x3b4] sm:$0xf0]  ;;  %v11295_v1 = vor.u32 %v13528_v61, %v11292_v63  ;;  %v11146_v5 = vld [vmem:[#allocation10 + $0x288] sm:$0xf]  ;;  %v11099_v34 = vor.u32 %v13482_v39, %v11098_v20  ;;  %v11228_v61 = vld [vmem:[#allocation10 + $0x338] sm:$0xf0] }
 0x45b   :  { %5359 = vmatpush.bf16.msrb.mxu0 %v11179_v40  ;;  %v11291_v36 = vor.u32 %v13530_v59, %v11290_v58  ;;  %5398 = vmatpush.bf16.msrb.mxu3 %v11311_v56  ;;  %v13484_v40 = vld [vmem:[#allocation10 + $0x24c] sm:$0xf]  ;;  %v11226_v31 = vld [vmem:[#allocation10 + $0x328] sm:$0xf]  ;;  %v11100_v56 = vld [vmem:[#allocation10 + $0x238] sm:$0xf0] }
 0x45c   :  { %4359 = vst [vmem:[#allocation3 + $0x4] sm:$0xf] %v4358_v16  ;;  %v4369_v35 = vsel %vm14553_vm11, %v4358_v16, %v4362_v21  ;;  %v4826_v46 = vadd.f32 %v4825_v6, %v4813_v53  ;;  %v13494_v6 = vld [vmem:[#allocation10 + $0x294] sm:$0xf0]  ;;  %v11151_v21 = vor.u32 %v13492_v11, %v11148_v12  ;;  %v11259_v53 = vor.u32 %v13522_v29, %v11258_v55  ;;  %v11082_v37 = vld [vmem:[#allocation10 + $0x208] sm:$0xf] }
 0x45d   :  { %4370 = vst [vmem:[#allocation6] sm:$0xf] %v4369_v35  ;;  %v11147_v54 = vor.u32 %v13494_v6, %v11146_v5  ;;  %5386 = vmatpush.bf16.msrb.mxu2 %v11167_v62  ;;  %v13490_v16 = vld [vmem:[#allocation10 + $0x274] sm:$0xf0]  ;;  %v11263_v35 = vor.u32 %v13520_v3, %v11260_v19  ;;  %v11119_v14 = vor.u32 %v13484_v40, %v11116_v41  ;;  %v11210_v63 = vld [vmem:[#allocation10 + $0x308] sm:$0xf] }
 0x45e   :  { %v4885_v13 = vmul.f32 0.5, %v4826_v46  ;;  %5373 = vmatpush.bf16.msrb.mxu1 %v11291_v36  ;;  %v11131_v28 = vor.u32 %v13490_v16, %v11130_v9  ;;  %v11243_v46 = vor.u32 %v13518_v24, %v11242_v33  ;;  %v11227_v48 = vor.u32 %v13514_v50, %v11226_v31  ;;  %v13478_v62 = vld [vmem:[#allocation10 + $0x214] sm:$0xf0]  ;;  %v13476_v6 = vld [vmem:[#allocation10 + $0x20c] sm:$0xf] }
 0x45f   :  { %5360 = vmatpush.bf16.msrb.mxu0 %v11163_v57  ;;  %5399 = vmatpush.bf16.msrb.mxu3 %v11295_v1  ;;  %v13512_v57 = vld [vmem:[#allocation10 + $0x32c] sm:$0xf]  ;;  %v13510_v1 = vld [vmem:[#allocation10 + $0x314] sm:$0xf0]  ;;  %v11084_v8 = vld [vmem:[#allocation10 + $0x218] sm:$0xf0] }
 0x460   :  { %14024 = vtanh.f32 %v4885_v13  ;;  %v11103_v13 = vor.u32 %v13480_v52, %v11100_v56  ;;  %v11231_v5 = vor.u32 %v13512_v57, %v11228_v61  ;;  %v13508_v10 = vld [vmem:[#allocation10 + $0x30c] sm:$0xf]  ;;  %v11212_v11 = vld [vmem:[#allocation10 + $0x318] sm:$0xf0]  ;;  %v11211_v22 = vor.u32 %v13510_v1, %v11210_v63  ;;  %v13569_v24 = vld [vmem:[#allocation10 + $0xec] sm:$0xf0] }
 0x461   :  { %v4814_v49 = vpop.f32.mrf.mxu2  ;;  %v4827_v27 = vpop.f32.mrf.mxu3  ;;  %5387 = vmatpush.bf16.msrb.mxu2 %v11151_v21  ;;  %14026 = vtanh.f32 %v4881_v17  ;;  %v11083_v21 = vor.u32 %v13478_v62, %v11082_v37  ;;  %v11087_v9 = vor.u32 %v13476_v6, %v11084_v8  ;;  %v11215_v16 = vor.u32 %v13508_v10, %v11212_v11  ;;  %v11570_v40 = vld [vmem:[#allocation10 + $0x1e0] sm:$0xf]  ;;  %v13565_v50 = vld [vmem:[#allocation10 + $0xcc] sm:$0xf0]  ;;  %v13559_v10 = vld [vmem:[#allocation10 + $0xa4] sm:$0xf] }
 0x462   :  { %5374 = vmatpush.bf16.msrb.mxu1 %v11275_v18  ;;  %v11247_v27 = vor.u32 %v13516_v47, %v11244_v43  ;;  %v13599_v47 = vld [vmem:[#allocation10 + $0x1e4] sm:$0xf]  ;;  %v11572_v43 = vld [vmem:[#allocation10 + $0x1f0] sm:$0xf0]  ;;  %v11426_v31 = vld [vmem:[#allocation10 + $0xc0] sm:$0xf] }
 0x463   :  { %5361 = vmatpush.bf16.msrb.mxu0 %v11147_v54  ;;  %5400 = vmatpush.bf16.msrb.mxu3 %v11279_v60  ;;  %v11575_v56 = vor.u32 %v13599_v47, %v11572_v43  ;;  %v11554_v57 = vld [vmem:[#allocation10 + $0x1c0] sm:$0xf]  ;;  %v13561_v37 = vld [vmem:[#allocation10 + $0xac] sm:$0xf0]  ;;  %v11412_v11 = vld [vmem:[#allocation10 + $0xb0] sm:$0xf0] }
 0x464   :  { %v11410_v61 = vld [vmem:[#allocation10 + $0xa0] sm:$0xf]  ;;  %v13581_v47 = vld [vmem:[#allocation10 + $0x14c] sm:$0xf0]  ;;  %v13547_v43 = vld [vmem:[#allocation10 + $0x44] sm:$0xf] }
 0x465   :  { %5388 = vmatpush.bf16.msrb.mxu2 %v11135_v2  ;;  %v11538_v63 = vld [vmem:[#allocation10 + $0x1a0] sm:$0xf] }
 0x466   :  { %5375 = vmatpush.bf16.msrb.mxu1 %v11259_v53  ;;  %v14025_v42 = vpop.eup %14024 }
 0x467   :  { %5362 = vmatpush.bf16.msrb.mxu0 %v11131_v28  ;;  %5401 = vmatpush.bf16.msrb.mxu3 %v11263_v35  ;;  %v14027_v58 = vpop.eup %14026  ;;  %v4887_v59 = vadd.f32 1.0, %v14025_v42  ;;  %v13601_v42 = vld [vmem:[#allocation10 + $0x1ec] sm:$0xf0] }
 0x468   :  { %v4883_v54 = vadd.f32 1.0, %v14027_v58  ;;  %v11571_v39 = vor.u32 %v13601_v42, %v11570_v40  ;;  %v13597_v58 = vld [vmem:[#allocation10 + $0x1cc] sm:$0xf0]  ;;  %v11362_v42 = vld [vmem:[#allocation10 + $0x40] sm:$0xf] }
 0x469   :  { %5389 = vmatpush.bf16.msrb.mxu2 %v11119_v14  ;;  %v4888_v23 = vmul.f32 0.5, %v4887_v59  ;;  %v11444_v14 = vld [vmem:[#allocation10 + $0xf0] sm:$0xf0]  ;;  %v13563_v59 = vld [vmem:[#allocation10 + $0xc4] sm:$0xf]  ;;  %v11555_v62 = vor.u32 %v13597_v58, %v11554_v57 }
 0x46a   :  { %5376 = vmatpush.bf16.msrb.mxu1 %v11243_v46  ;;  %v4884_v28 = vmul.f32 0.5, %v4883_v54  ;;  %v13593_v54 = vld [vmem:[#allocation10 + $0x1ac] sm:$0xf0] }
 0x46b   :  { %5363 = vmatpush.bf16.msrb.mxu0 %v11115_v38  ;;  %5402 = vmatpush.bf16.msrb.mxu3 %v11247_v27  ;;  %v4895_v30 = vmul.f32 %v4888_v23, %v14492_v4  ;;  %v11442_v4 = vld [vmem:[#allocation10 + $0xe0] sm:$0xf]  ;;  %v13545_v57 = vld [vmem:[#allocation10 + $0x2c] sm:$0xf0] }
 0x46c   :  { %v11443_v27 = vor.u32 %v13569_v24, %v11442_v4  ;;  %v11394_v23 = vld [vmem:[#allocation10 + $0x80] sm:$0xf]  ;;  %v13583_v4 = vld [vmem:[#allocation10 + $0x164] sm:$0xf]  ;;  %v11508_v24 = vld [vmem:[#allocation10 + $0x170] sm:$0xf0] }
 0x46d   :  { %5390 = vmatpush.bf16.msrb.mxu2 %v11103_v13  ;;  %v11427_v13 = vor.u32 %v13565_v50, %v11426_v31  ;;  %v11492_v31 = vld [vmem:[#allocation10 + $0x150] sm:$0xf0] }
 0x46e   :  { %5377 = vmatpush.bf16.msrb.mxu1 %v11227_v48  ;;  %v11556_v48 = vld [vmem:[#allocation10 + $0x1d0] sm:$0xf0] }
 0x46f   :  { %5364 = vmatpush.bf16.msrb.mxu0 %v11099_v34  ;;  %5403 = vmatpush.bf16.msrb.mxu3 %v11231_v5  ;;  %v13595_v34 = vld [vmem:[#allocation10 + $0x1c4] sm:$0xf]  ;;  %v6517_v5 = vld [vmem:[#allocation7 + $0x18] sm:$0xf] }
 0x470   :  { %v4838_v44 = vpop.f32.mrf.mxu0  ;;  %v4851_v45 = vpop.f32.mrf.mxu1  ;;  %v11559_v8 = vor.u32 %v13595_v34, %v11556_v48  ;;  %v13577_v34 = vld [vmem:[#allocation10 + $0x12c] sm:$0xf0]  ;;  %v13543_v48 = vld [vmem:[#allocation10 + $0x24] sm:$0xf] }
 0x471   :  { %v4839_v49 = vadd.f32 %v4838_v44, %v4444_v7  ;;  %5391 = vmatpush.bf16.msrb.mxu2 %v11087_v9  ;;  %v13567_v44 = vld [vmem:[#allocation10 + $0xe4] sm:$0xf]  ;;  %v11522_v9 = vld [vmem:[#allocation10 + $0x180] sm:$0xf] }
 0x472   :  { %5378 = vmatpush.bf16.msrb.mxu1 %v11211_v22  ;;  %v11447_v52 = vor.u32 %v13567_v44, %v11444_v14  ;;  %v11539_v22 = vor.u32 %v13593_v54, %v11538_v63  ;;  %v13549_v44 = vld [vmem:[#allocation10 + $0x4c] sm:$0xf0]  ;;  %v11490_v14 = vld [vmem:[#allocation10 + $0x140] sm:$0xf] }
 0x473   :  { %v4852_v36 = vadd.f32 %v4851_v45, %v4839_v49  ;;  %5365 = vmatpush.bf16.msrb.mxu0 %v11083_v21  ;;  %5404 = vmatpush.bf16.msrb.mxu3 %v11215_v16  ;;  %v11411_v21 = vor.u32 %v13561_v37, %v11410_v61  ;;  %v13589_v16 = vld [vmem:[#allocation10 + $0x18c] sm:$0xf0]  ;;  %v11363_v50 = vor.u32 %v13549_v44, %v11362_v42  ;;  %v11348_v61 = vld [vmem:[#allocation10 + $0x30] sm:$0xf0]  ;;  %v13575_v37 = vld [vmem:[#allocation10 + $0x124] sm:$0xf] }
 0x474   :  { %v13541_v63 = vld [vmem:[#allocation10 + $0xc] sm:$0xf0] }
 0x475   :  { %14028 = vtanh.f32 %v4852_v36  ;;  %v11428_v36 = vld [vmem:[#allocation10 + $0xd0] sm:$0xf0] }
 0x476   :  { %v11431_v6 = vor.u32 %v13563_v59, %v11428_v36  ;;  %v11474_v36 = vld [vmem:[#allocation10 + $0x120] sm:$0xf] }
 0x477   :  { %v4864_v12 = vpop.f32.mrf.mxu2  ;;  %v4877_v18 = vpop.f32.mrf.mxu3 }
 0x478   :  { %v4865_v17 = vadd.f32 %v4864_v12, %v4445_v32  ;;  %v4840_v60 = vpop.f32.mrf.mxu0  ;;  %v4853_v7 = vpop.f32.mrf.mxu1  ;;  %v13591_v12 = vld [vmem:[#allocation10 + $0x1a4] sm:$0xf] }
 0x479   :  { %v11415_v60 = vor.u32 %v13559_v10, %v11412_v11  ;;  %v13539_v10 = vld [vmem:[#allocation10 + $0x4] sm:$0xf]  ;;  %v11332_v11 = vld [vmem:[#allocation10 + $0x10] sm:$0xf0] }
 0x47a   :  { %v4878_v55 = vadd.f32 %v4877_v18, %v4865_v17  ;;  %v11540_v18 = vld [vmem:[#allocation10 + $0x1b0] sm:$0xf0]  ;;  %v13557_v17 = vld [vmem:[#allocation10 + $0x8c] sm:$0xf0] }
 0x47b   :  { %v14029_v29 = vpop.eup %14028  ;;  %v11543_v7 = vor.u32 %v13591_v12, %v11540_v18  ;;  %v13571_v12 = vld [vmem:[#allocation10 + $0x104] sm:$0xf]  ;;  %v11460_v18 = vld [vmem:[#allocation10 + $0x110] sm:$0xf0] }
 0x47c   :  { %v4896_v53 = vmul.f32 %v14029_v29, %v4884_v28  ;;  %v4890_v25 = vmul.f32 0.5, %v4878_v55  ;;  %v13555_v28 = vld [vmem:[#allocation10 + $0x84] sm:$0xf]  ;;  %v11396_v55 = vld [vmem:[#allocation10 + $0x90] sm:$0xf0] }
 0x47d   :  { %v13587_v29 = vld [vmem:[#allocation10 + $0x184] sm:$0xf] }
 0x47e   :  { %v14566_v3 = vadd.f32 %v4896_v53, %v4895_v30  ;;  %14030 = vtanh.f32 %v4890_v25  ;;  %v11524_v30 = vld [vmem:[#allocation10 + $0x190] sm:$0xf0]  ;;  %v11395_v53 = vor.u32 %v13557_v17, %v11394_v23  ;;  %v11523_v25 = vor.u32 %v13589_v16, %v11522_v9  ;;  %v11578_v23 = vld [vmem:[#allocation10 + $0x1e8] sm:$0xf]  ;;  %v13602_v17 = vld [vmem:[#allocation10 + $0x1f4] sm:$0xf0] }
 0x47f   :  { %v4866_v19 = vpop.f32.mrf.mxu2  ;;  %v4879_v32 = vpop.f32.mrf.mxu3  ;;  %v11452_v16 = vld [vmem:[#allocation10 + $0xf8] sm:$0xf0] }
 0x480   :  { %14032 = vtanh.f32 %v14566_v3  ;;  %v11378_v19 = vld [vmem:[#allocation10 + $0x60] sm:$0xf]  ;;  %v13553_v32 = vld [vmem:[#allocation10 + $0x6c] sm:$0xf0] }
 0x481   :  { %v11379_v40 = vor.u32 %v13553_v32, %v11378_v19  ;;  %v11579_v19 = vor.u32 %v13602_v17, %v11578_v23  ;;  %v11388_v23 = vld [vmem:[#allocation10 + $0x78] sm:$0xf0]  ;;  %v13584_v17 = vld [vmem:[#allocation10 + $0x16c] sm:$0xf] }
 0x484   :  { %v14031_v2 = vpop.eup %14030 }
 0x485   :  { %v4892_v35 = vadd.f32 1.0, %v14031_v2  ;;  %v11399_v2 = vor.u32 %v13555_v28, %v11396_v55  ;;  %v13600_v28 = vld [vmem:[#allocation10 + $0x1ec] sm:$0xf]  ;;  %v11580_v55 = vld [vmem:[#allocation10 + $0x1f8] sm:$0xf0] }
 0x486   :  { %v14033_v51 = vpop.eup %14032 }
 0x487   :  { %v4893_v15 = vmul.f32 0.5, %v4892_v35  ;;  %v11527_v35 = vor.u32 %v13587_v29, %v11524_v30  ;;  %v11335_v29 = vor.u32 %v13539_v10, %v11332_v11  ;;  %v11463_v30 = vor.u32 %v13571_v12, %v11460_v18  ;;  %v13554_v10 = vld [vmem:[#allocation10 + $0x74] sm:$0xf0]  ;;  %v11514_v18 = vld [vmem:[#allocation10 + $0x168] sm:$0xf] }
 0x489   :  { %v4899_v33 = vmul.f32 %v14033_v51, %v4893_v15  ;;  %v11506_v51 = vld [vmem:[#allocation10 + $0x160] sm:$0xf]  ;;  %v13585_v15 = vld [vmem:[#allocation10 + $0x16c] sm:$0xf0] }
 0x48b   :  { %v4901_v38 = vpack.c.bf16 %v4899_v33, %v4899_v33  ;;  %v13551_v33 = vld [vmem:[#allocation10 + $0x64] sm:$0xf] }
 0x48d   :  { %4902 = vst [vmem:[#allocation2 + $0x4] sm:$0xf] %v4901_v38 }
 0x48e   :  { %4903 = vst [vmem:[#allocation3] sm:$0xf] %v4901_v38  ;;  %v11380_v38 = vld [vmem:[#allocation10 + $0x70] sm:$0xf0] }
 0x494   :  { %v14577_v1 = vld [vmem:[#allocation2] sm:$0xff] }
 0x495   :  { %v4904_v41 = vld [vmem:[#allocation3] sm:$0xff]  ;;  %6518 = vst [vmem:[#allocation2] sm:$0xf] %v6517_v5  ;;  %v11458_v5 = vld [vmem:[#allocation10 + $0x100] sm:$0xf]  ;;  %v5524_v32 = vunpack.c.h.b16 %v14577_v1 }
 0x496   :  { %v4980_v45 = vunpack.c.l.b16 %v4904_v41  ;;  %v4981_v46 = vunpack.c.h.b16 %v4904_v41  ;;  %v11507_v41 = vor.u32 %v13585_v15, %v11506_v51  ;;  %v11583_v15 = vor.u32 %v13600_v28, %v11580_v55  ;;  %v13550_v28 = vld [vmem:[#allocation10 + $0x54] sm:$0xf0] }
 0x497   :  { %v14587_v44 = vpack.c.b16 %v5524_v32, %v5524_v32  ;;  %v13580_v32 = vld [vmem:[#allocation10 + $0x14c] sm:$0xf] }
 0x498   :  { %v14569_v20 = vpack.c.b16 %v4980_v45, %v4980_v45  ;;  %v14571_v49 = vpack.c.b16 %v4981_v46, %v4981_v46  ;;  %v11383_v45 = vor.u32 %v13551_v33, %v11380_v38  ;;  %v11511_v46 = vor.u32 %v13583_v4, %v11508_v24  ;;  %v11562_v33 = vld [vmem:[#allocation10 + $0x1c8] sm:$0xf]  ;;  %v13598_v38 = vld [vmem:[#allocation10 + $0x1d4] sm:$0xf0]  ;;  %v13564_v4 = vld [vmem:[#allocation10 + $0xcc] sm:$0xf] }
 0x499   :  { %v11436_v24 = vld [vmem:[#allocation10 + $0xd8] sm:$0xf0] }
 0x49a   :  { %5314 = vmatmul.bf16.vlgmr.msra.gmra.mxu0 %v14569_v20  ;;  %5327 = vmatmul.bf16.vlgmr.msra.gmra.mxu1 %v14571_v49 }
 0x49b   :  { %5340 = vmatmul.bf16.vlgmr.msra.gmra.mxu2 %v14569_v20  ;;  %5353 = vmatmul.bf16.vlgmr.msra.gmra.mxu3 %v14571_v49 }
 0x49c   :  { %5849 = vmatpush.bf16.msra.mxu0 %v11443_v27  ;;  %5862 = vmatpush.bf16.msra.mxu1 %v11571_v39  ;;  %v11364_v27 = vld [vmem:[#allocation10 + $0x50] sm:$0xf0]  ;;  %v13579_v39 = vld [vmem:[#allocation10 + $0x144] sm:$0xf] }
 0x49d   :  { %5875 = vmatpush.bf16.msra.mxu2 %v11447_v52  ;;  %5888 = vmatpush.bf16.msra.mxu3 %v11575_v56  ;;  %v11491_v52 = vor.u32 %v13581_v47, %v11490_v14  ;;  %v11346_v56 = vld [vmem:[#allocation10 + $0x20] sm:$0xf]  ;;  %v11367_v58 = vor.u32 %v13547_v43, %v11364_v27  ;;  %v11495_v59 = vor.u32 %v13579_v39, %v11492_v31  ;;  %v13562_v14 = vld [vmem:[#allocation10 + $0xb4] sm:$0xf0]  ;;  %v14107_v47 = vld [vmem:[%s14795_s0] sm:$0xff] }
 0x49e   :  { %vm5433_vm12 = vcmp.eq.s32.totalorder %v14107_v47, 4  ;;  %v11439_v43 = vor.u32 %v13564_v4, %v11436_v24  ;;  %v11546_v39 = vld [vmem:[#allocation10 + $0x1a8] sm:$0xf]  ;;  %v13594_v31 = vld [vmem:[#allocation10 + $0x1b4] sm:$0xf0] }
 0x49f   :  { %v11482_v24 = vld [vmem:[#allocation10 + $0x128] sm:$0xf] }
 0x4a0   :  { %5850 = vmatpush.bf16.msra.mxu0 %v11427_v13  ;;  %5863 = vmatpush.bf16.msra.mxu1 %v11555_v62  ;;  %v11476_v13 = vld [vmem:[#allocation10 + $0x130] sm:$0xf0]  ;;  %v11330_v62 = vld [vmem:[#allocation10] sm:$0xf] }
 0x4a1   :  { %5876 = vmatpush.bf16.msra.mxu2 %v11431_v6  ;;  %5889 = vmatpush.bf16.msra.mxu3 %v11559_v8  ;;  %v13573_v6 = vld [vmem:[#allocation10 + $0x10c] sm:$0xf0]  ;;  %v11351_v8 = vor.u32 %v13543_v48, %v11348_v61  ;;  %v11479_v54 = vor.u32 %v13575_v37, %v11476_v13  ;;  %v13558_v48 = vld [vmem:[#allocation10 + $0x94] sm:$0xf0]  ;;  %v11530_v13 = vld [vmem:[#allocation10 + $0x188] sm:$0xf] }
 0x4a2   :  { %v11459_v9 = vor.u32 %v13573_v6, %v11458_v5  ;;  %v11532_v5 = vld [vmem:[#allocation10 + $0x198] sm:$0xf0] }
 0x4a4   :  { %5851 = vmatpush.bf16.msra.mxu0 %v11411_v21  ;;  %5864 = vmatpush.bf16.msra.mxu1 %v11539_v22  ;;  %v11450_v21 = vld [vmem:[#allocation10 + $0xe8] sm:$0xf]  ;;  %v13570_v22 = vld [vmem:[#allocation10 + $0xf4] sm:$0xf0] }
 0x4a5   :  { %5877 = vmatpush.bf16.msra.mxu2 %v11415_v60  ;;  %5890 = vmatpush.bf16.msra.mxu3 %v11543_v7  ;;  %v13568_v60 = vld [vmem:[#allocation10 + $0xec] sm:$0xf]  ;;  %v11331_v7 = vor.u32 %v13541_v63, %v11330_v62  ;;  %v13590_v62 = vld [vmem:[#allocation10 + $0x194] sm:$0xf0] }
 0x4a6   :  { %v11455_v51 = vor.u32 %v13568_v60, %v11452_v16  ;;  %v13588_v63 = vld [vmem:[#allocation10 + $0x18c] sm:$0xf]  ;;  %v11516_v60 = vld [vmem:[#allocation10 + $0x178] sm:$0xf0]  ;;  %v11370_v16 = vld [vmem:[#allocation10 + $0x48] sm:$0xf] }
 0x4a7   :  { %v11535_v12 = vor.u32 %v13588_v63, %v11532_v5 }
 0x4a8   :  { %5852 = vmatpush.bf16.msra.mxu0 %v11395_v53  ;;  %5865 = vmatpush.bf16.msra.mxu1 %v11523_v25  ;;  %v5523_v53 = vunpack.c.l.b16 %v14577_v1  ;;  %v11451_v25 = vor.u32 %v13570_v22, %v11450_v21  ;;  %v13586_v21 = vld [vmem:[#allocation10 + $0x174] sm:$0xf0]  ;;  %v13552_v22 = vld [vmem:[#allocation10 + $0x6c] sm:$0xf] }
 0x4a9   :  { %5878 = vmatpush.bf16.msra.mxu2 %v11399_v2  ;;  %5891 = vmatpush.bf16.msra.mxu3 %v11527_v35  ;;  %v11434_v2 = vld [vmem:[#allocation10 + $0xc8] sm:$0xf]  ;;  %v13566_v35 = vld [vmem:[#allocation10 + $0xd4] sm:$0xf0]  ;;  %v11391_v55 = vor.u32 %v13552_v22, %v11388_v23 }
 0x4aa   :  { %5366 = vmatmul.bf16.vlgmr.msrb.gmra.mxu0 %v14569_v20  ;;  %5379 = vmatmul.bf16.vlgmr.msrb.gmra.mxu1 %v14571_v49  ;;  %v14585_v42 = vpack.c.b16 %v5523_v53, %v5523_v53  ;;  %v11435_v1 = vor.u32 %v13566_v35, %v11434_v2  ;;  %v13582_v53 = vld [vmem:[#allocation10 + $0x154] sm:$0xf0]  ;;  %v11500_v2 = vld [vmem:[#allocation10 + $0x158] sm:$0xf0]  ;;  %v11371_v35 = vor.u32 %v13550_v28, %v11370_v16  ;;  %v11701_v16 = vld [vmem:[#allocation10 + $0x2f0] sm:$0xf0] }
 0x4ab   :  { %5392 = vmatmul.bf16.vlgmr.msrb.gmra.mxu2 %v14569_v20  ;;  %5405 = vmatmul.bf16.vlgmr.msrb.gmra.mxu3 %v14571_v49  ;;  %v11347_v20 = vor.u32 %v13545_v57, %v11346_v56  ;;  %v11475_v49 = vor.u32 %v13577_v34, %v11474_v36  ;;  %v13592_v56 = vld [vmem:[#allocation10 + $0x1ac] sm:$0xf]  ;;  %v11548_v57 = vld [vmem:[#allocation10 + $0x1b8] sm:$0xf0]  ;;  %v11547_v36 = vor.u32 %v13594_v31, %v11546_v39  ;;  %v11402_v34 = vld [vmem:[#allocation10 + $0x88] sm:$0xf] }
 0x4ac   :  { %5853 = vmatpush.bf16.msra.mxu0 %v11379_v40  ;;  %5866 = vmatpush.bf16.msra.mxu1 %v11507_v41  ;;  %v13596_v40 = vld [vmem:[#allocation10 + $0x1cc] sm:$0xf]  ;;  %v11564_v41 = vld [vmem:[#allocation10 + $0x1d8] sm:$0xf0]  ;;  %v11551_v37 = vor.u32 %v13592_v56, %v11548_v57  ;;  %v11403_v6 = vor.u32 %v13558_v48, %v11402_v34  ;;  %v11503_v4 = vor.u32 %v13580_v32, %v11500_v2  ;;  %v13663_v28 = vld [vmem:[#allocation10 + $0x3e4] sm:$0xf] }
 0x4ad   :  { %5879 = vmatpush.bf16.msra.mxu2 %v11383_v45  ;;  %5892 = vmatpush.bf16.msra.mxu3 %v11511_v46  ;;  %v11563_v45 = vor.u32 %v13598_v38, %v11562_v33  ;;  %v11418_v46 = vld [vmem:[#allocation10 + $0xa8] sm:$0xf]  ;;  %v11567_v27 = vor.u32 %v13596_v40, %v11564_v41  ;;  %v13546_v33 = vld [vmem:[#allocation10 + $0x34] sm:$0xf0]  ;;  %v13544_v41 = vld [vmem:[#allocation10 + $0x2c] sm:$0xf] }
 0x4ae   :  { %v13578_v40 = vld [vmem:[#allocation10 + $0x134] sm:$0xf0]  ;;  %v13540_v56 = vld [vmem:[#allocation10 + $0xc] sm:$0xf]  ;;  %v11340_v57 = vld [vmem:[#allocation10 + $0x18] sm:$0xf0] }
 0x4af   :  { %v11483_v47 = vor.u32 %v13578_v40, %v11482_v24  ;;  %v11343_v48 = vor.u32 %v13540_v56, %v11340_v57  ;;  %v13629_v32 = vld [vmem:[#allocation10 + $0x2cc] sm:$0xf0]  ;;  %v13627_v24 = vld [vmem:[#allocation10 + $0x2c4] sm:$0xf]  ;;  %v11685_v40 = vld [vmem:[#allocation10 + $0x2d0] sm:$0xf0] }
 0x4b0   :  { %5854 = vmatpush.bf16.msra.mxu0 %v11363_v50  ;;  %5867 = vmatpush.bf16.msra.mxu1 %v11491_v52  ;;  %v13560_v50 = vld [vmem:[#allocation10 + $0xac] sm:$0xf]  ;;  %v11420_v52 = vld [vmem:[#allocation10 + $0xb8] sm:$0xf0]  ;;  %v13657_v56 = vld [vmem:[#allocation10 + $0x3ac] sm:$0xf0] }
 0x4b1   :  { %5880 = vmatpush.bf16.msra.mxu2 %v11367_v58  ;;  %5893 = vmatpush.bf16.msra.mxu3 %v11495_v59  ;;  %v5435_v58 = vsel %vm5433_vm12, 1, %v14219_v0  ;;  %v11419_v59 = vor.u32 %v13562_v14, %v11418_v46  ;;  %v11423_v61 = vor.u32 %v13560_v50, %v11420_v52  ;;  %v11484_v46 = vld [vmem:[#allocation10 + $0x138] sm:$0xf0]  ;;  %v11466_v50 = vld [vmem:[#allocation10 + $0x108] sm:$0xf] }
 0x4b2   :  { %5437 = vperm.xlu2 %13942, %v5435_v58   ;;  %v13574_v52 = vld [vmem:[#allocation10 + $0x114] sm:$0xf0]  ;;  %v13572_v58 = vld [vmem:[#allocation10 + $0x10c] sm:$0xf]  ;;  %v13623_v57 = vld [vmem:[#allocation10 + $0x2a4] sm:$0xf] }
 0x4b3   :  { %v11467_v34 = vor.u32 %v13574_v52, %v11466_v50 }
 0x4b4   :  { %5855 = vmatpush.bf16.msra.mxu0 %v11347_v20  ;;  %5868 = vmatpush.bf16.msra.mxu1 %v11475_v49  ;;  %v13556_v20 = vld [vmem:[#allocation10 + $0x8c] sm:$0xf]  ;;  %v11404_v49 = vld [vmem:[#allocation10 + $0x98] sm:$0xf0] }
 0x4b5   :  { %5881 = vmatpush.bf16.msra.mxu2 %v11351_v8  ;;  %5894 = vmatpush.bf16.msra.mxu3 %v11479_v54  ;;  %v11531_v8 = vor.u32 %v13590_v62, %v11530_v13  ;;  %v11386_v54 = vld [vmem:[#allocation10 + $0x68] sm:$0xf]  ;;  %v11407_v11 = vor.u32 %v13556_v20, %v11404_v49 }
 0x4b8   :  { %5856 = vmatpush.bf16.msra.mxu0 %v11331_v7  ;;  %5869 = vmatpush.bf16.msra.mxu1 %v11459_v9  ;;  %v11387_v7 = vor.u32 %v13554_v10, %v11386_v54  ;;  %v11515_v9 = vor.u32 %v13586_v21, %v11514_v18  ;;  %v13633_v18 = vld [vmem:[#allocation10 + $0x2ec] sm:$0xf0]  ;;  %v11827_v21 = vld [vmem:[#allocation10 + $0x3e0] sm:$0xf] }
 0x4b9   :  { %5882 = vmatpush.bf16.msra.mxu2 %v11335_v29  ;;  %5895 = vmatpush.bf16.msra.mxu3 %v11463_v30  ;;  %v11519_v29 = vor.u32 %v13584_v17, %v11516_v60  ;;  %v11498_v30 = vld [vmem:[#allocation10 + $0x148] sm:$0xf]  ;;  %v13665_v60 = vld [vmem:[#allocation10 + $0x3ec] sm:$0xf0] }
 0x4bb   :  { %5857 = vmatmul.bf16.vlgmr.msra.gmra.mxu0 %v14585_v42  ;;  %5870 = vmatmul.bf16.vlgmr.msra.gmra.mxu1 %v14587_v44 }
 0x4bc   :  { %5901 = vmatpush.bf16.msrb.mxu0 %v11451_v25  ;;  %5914 = vmatpush.bf16.msrb.mxu1 %v11579_v19  ;;  %v13548_v25 = vld [vmem:[#allocation10 + $0x4c] sm:$0xf]  ;;  %v11372_v19 = vld [vmem:[#allocation10 + $0x58] sm:$0xf0] }
 0x4bd   :  { %5927 = vmatpush.bf16.msrb.mxu2 %v11455_v51  ;;  %5940 = vmatpush.bf16.msrb.mxu3 %v11583_v15  ;;  %v11499_v51 = vor.u32 %v13582_v53, %v11498_v30  ;;  %v11354_v15 = vld [vmem:[#allocation10 + $0x28] sm:$0xf]  ;;  %v11375_v38 = vor.u32 %v13548_v25, %v11372_v19  ;;  %v11683_v19 = vld [vmem:[#allocation10 + $0x2c0] sm:$0xf] }
 0x4be   :  { %5883 = vmatmul.bf16.vlgmr.msra.gmra.mxu2 %v14585_v42  ;;  %5896 = vmatmul.bf16.vlgmr.msra.gmra.mxu3 %v14587_v44  ;;  %v11355_v14 = vor.u32 %v13546_v33, %v11354_v15  ;;  %v11811_v15 = vld [vmem:[#allocation10 + $0x3c0] sm:$0xf]  ;;  %v13661_v33 = vld [vmem:[#allocation10 + $0x3cc] sm:$0xf0] }
 0x4c0   :  { %5902 = vmatpush.bf16.msrb.mxu0 %v11435_v1  ;;  %5915 = vmatpush.bf16.msrb.mxu1 %v11563_v45  ;;  %v11356_v1 = vld [vmem:[#allocation10 + $0x38] sm:$0xf0]  ;;  %v13576_v45 = vld [vmem:[#allocation10 + $0x12c] sm:$0xf] }
 0x4c1   :  { %5928 = vmatpush.bf16.msrb.mxu2 %v11439_v43  ;;  %5941 = vmatpush.bf16.msrb.mxu3 %v11567_v27  ;;  %v11338_v43 = vld [vmem:[#allocation10 + $0x8] sm:$0xf]  ;;  %v13542_v27 = vld [vmem:[#allocation10 + $0x14] sm:$0xf0]  ;;  %v11359_v39 = vor.u32 %v13544_v41, %v11356_v1  ;;  %v11487_v31 = vor.u32 %v13576_v45, %v11484_v46  ;;  %v13659_v41 = vld [vmem:[#allocation10 + $0x3c4] sm:$0xf]  ;;  %v11688_v45 = vor.u32 %v13627_v24, %v11685_v40 }
 0x4c2   :  { %v11813_v46 = vld [vmem:[#allocation10 + $0x3d0] sm:$0xf0] }
 0x4c4   :  { %5903 = vmatpush.bf16.msrb.mxu0 %v11419_v59  ;;  %5916 = vmatpush.bf16.msrb.mxu1 %v11547_v36  ;;  %v11468_v59 = vld [vmem:[#allocation10 + $0x118] sm:$0xf0]  ;;  %v11339_v36 = vor.u32 %v13542_v27, %v11338_v43  ;;  %v11816_v43 = vor.u32 %v13659_v41, %v11813_v46  ;;  %v11667_v27 = vld [vmem:[#allocation10 + $0x2a0] sm:$0xf]  ;;  %v13613_v41 = vld [vmem:[#allocation10 + $0x24c] sm:$0xf0] }
 0x4c5   :  { %5929 = vmatpush.bf16.msrb.mxu2 %v11423_v61  ;;  %5942 = vmatpush.bf16.msrb.mxu3 %v11551_v37  ;;  %v11471_v61 = vor.u32 %v13572_v58, %v11468_v59  ;;  %v14604_v37 = vld [vmem:[%s14798_s3 + $0x4] sm:$0xf]  ;;  %v11669_v58 = vld [vmem:[#allocation10 + $0x2b0] sm:$0xf0] }
 0x4c6   :  { %v4971_v13 = vperm.slane %v14604_v37, 0  ;;  %v4972_v63 = vperm.slane %v14604_v37, 1  ;;  %v4973_v23 = vperm.slane %v14604_v37, 2  ;;  %v4974_v1 = vperm.slane %v14604_v37, 3 }
 0x4c8   :  { %5904 = vmatpush.bf16.msrb.mxu0 %v11403_v6  ;;  %5917 = vmatpush.bf16.msrb.mxu1 %v11531_v8 }
 0x4c9   :  { %5930 = vmatpush.bf16.msrb.mxu2 %v11407_v11  ;;  %5943 = vmatpush.bf16.msrb.mxu3 %v11535_v12  ;;  %v11699_v12 = vld [vmem:[#allocation10 + $0x2e0] sm:$0xf] }
 0x4ca   :  { %v11700_v17 = vor.u32 %v13633_v18, %v11699_v12  ;;  %v11653_v18 = vld [vmem:[#allocation10 + $0x290] sm:$0xf0] }
 0x4cc   :  { %5905 = vmatpush.bf16.msrb.mxu0 %v11387_v7  ;;  %5918 = vmatpush.bf16.msrb.mxu1 %v11515_v9  ;;  %v13631_v7 = vld [vmem:[#allocation10 + $0x2e4] sm:$0xf]  ;;  %v11828_v9 = vor.u32 %v13665_v60, %v11827_v21 }
 0x4cd   :  { %5931 = vmatpush.bf16.msrb.mxu2 %v11391_v55  ;;  %5944 = vmatpush.bf16.msrb.mxu3 %v11519_v29  ;;  %v11829_v55 = vld [vmem:[#allocation10 + $0x3f0] sm:$0xf0]  ;;  %v11704_v29 = vor.u32 %v13631_v7, %v11701_v16  ;;  %v13651_v21 = vld [vmem:[#allocation10 + $0x384] sm:$0xf]  ;;  %v11635_v16 = vld [vmem:[#allocation10 + $0x260] sm:$0xf] }
 0x4ce   :  { %v11832_v25 = vor.u32 %v13663_v28, %v11829_v55  ;;  %v13617_v28 = vld [vmem:[#allocation10 + $0x26c] sm:$0xf0]  ;;  %v11763_v55 = vld [vmem:[#allocation10 + $0x360] sm:$0xf] }
 0x4d0   :  { %5906 = vmatpush.bf16.msrb.mxu0 %v11371_v35  ;;  %5919 = vmatpush.bf16.msrb.mxu1 %v11499_v51  ;;  %v11684_v51 = vor.u32 %v13629_v32, %v11683_v19  ;;  %v13649_v19 = vld [vmem:[#allocation10 + $0x36c] sm:$0xf0]  ;;  %v13615_v32 = vld [vmem:[#allocation10 + $0x264] sm:$0xf] }
 0x4d1   :  { %5932 = vmatpush.bf16.msrb.mxu2 %v11375_v38  ;;  %5945 = vmatpush.bf16.msrb.mxu3 %v11503_v4  ;;  %v11812_v4 = vor.u32 %v13661_v33, %v11811_v15  ;;  %v11765_v15 = vld [vmem:[#allocation10 + $0x370] sm:$0xf0] }
 0x4d4   :  { %5907 = vmatpush.bf16.msrb.mxu0 %v11355_v14  ;;  %5920 = vmatpush.bf16.msrb.mxu1 %v11483_v47 }
 0x4d5   :  { %5933 = vmatpush.bf16.msrb.mxu2 %v11359_v39  ;;  %5946 = vmatpush.bf16.msrb.mxu3 %v11487_v31  ;;  %v13625_v39 = vld [vmem:[#allocation10 + $0x2ac] sm:$0xf0]  ;;  %v11795_v31 = vld [vmem:[#allocation10 + $0x3a0] sm:$0xf] }
 0x4d6   :  { %v11668_v52 = vor.u32 %v13625_v39, %v11667_v27 }
 0x4d8   :  { %5908 = vmatpush.bf16.msrb.mxu0 %v11339_v36  ;;  %5921 = vmatpush.bf16.msrb.mxu1 %v11467_v34  ;;  %v11796_v36 = vor.u32 %v13657_v56, %v11795_v31  ;;  %v11672_v34 = vor.u32 %v13623_v57, %v11669_v58  ;;  %v13643_v31 = vld [vmem:[#allocation10 + $0x344] sm:$0xf] }
 0x4d9   :  { %5934 = vmatpush.bf16.msrb.mxu2 %v11343_v48  ;;  %5947 = vmatpush.bf16.msrb.mxu3 %v11471_v61  ;;  %v13655_v48 = vld [vmem:[#allocation10 + $0x3a4] sm:$0xf]  ;;  %v11797_v61 = vld [vmem:[#allocation10 + $0x3b0] sm:$0xf0] }
 0x4db   :  { %5909 = vmatmul.bf16.vlgmr.msrb.gmra.mxu0 %v14585_v42  ;;  %5922 = vmatmul.bf16.vlgmr.msrb.gmra.mxu1 %v14587_v44 }
 0x4dc   :  { %5935 = vmatmul.bf16.vlgmr.msrb.gmra.mxu2 %v14585_v42  ;;  %5948 = vmatmul.bf16.vlgmr.msrb.gmra.mxu3 %v14587_v44 }
 0x4dd   :  { %6378 = vmatpush.bf16.msra.mxu0 %v11700_v17  ;;  %6391 = vmatpush.bf16.msra.mxu1 %v11828_v9 }
 0x4de   :  { %6404 = vmatpush.bf16.msra.mxu2 %v11704_v29  ;;  %6417 = vmatpush.bf16.msra.mxu3 %v11832_v25  ;;  %v11636_v25 = vor.u32 %v13617_v28, %v11635_v16  ;;  %v11589_v16 = vld [vmem:[#allocation10 + $0x210] sm:$0xf0] }
 0x4e1   :  { %6379 = vmatpush.bf16.msra.mxu0 %v11684_v51  ;;  %6392 = vmatpush.bf16.msra.mxu1 %v11812_v4  ;;  %v13647_v51 = vld [vmem:[#allocation10 + $0x364] sm:$0xf] }
 0x4e2   :  { %6405 = vmatpush.bf16.msra.mxu2 %v11688_v45  ;;  %6418 = vmatpush.bf16.msra.mxu3 %v11816_v43  ;;  %v11768_v4 = vor.u32 %v13647_v51, %v11765_v15  ;;  %v11621_v43 = vld [vmem:[#allocation10 + $0x250] sm:$0xf0]  ;;  %v13634_v51 = vld [vmem:[#allocation10 + $0x2f4] sm:$0xf0]  ;;  %v11835_v15 = vld [vmem:[#allocation10 + $0x3e8] sm:$0xf] }
 0x4e5   :  { %6380 = vmatpush.bf16.msra.mxu0 %v11668_v52  ;;  %6393 = vmatpush.bf16.msra.mxu1 %v11796_v36  ;;  %v14617_v52 = vld [vmem:[%s14798_s3] sm:$0xf]  ;;  %v11603_v36 = vld [vmem:[#allocation10 + $0x220] sm:$0xf] }
 0x4e6   :  { %6406 = vmatpush.bf16.msra.mxu2 %v11672_v34  ;;  %v13609_v34 = vld [vmem:[#allocation10 + $0x22c] sm:$0xf0] }
 0x50c   :  { %v5438_v45 = vpop.permute.xlu2 %5437 }
 0x50d   :  { %vm5439_vm13 = vcmp.eq.s32.totalorder %v5438_v45, 1 }
 0x50e   :  { %vm14627_vm14 = vmpackc.low %vm5439_vm13, %vm5439_vm13 }
 0x517   :  { %v5315_v62 = vpop.f32.mrf.mxu0  ;;  %v5328_v20 = vpop.f32.mrf.mxu1 }
 0x518   :  { %v5316_v49 = vadd.f32 %v5315_v62, %v4971_v13  ;;  %v11800_v13 = vor.u32 %v13655_v48, %v11797_v61  ;;  %v11731_v48 = vld [vmem:[#allocation10 + $0x320] sm:$0xf] }
 0x51a   :  { %v5329_v5 = vadd.f32 %v5328_v20, %v5316_v49  ;;  %6419 = vmatpush.bf16.msra.mxu3 %v11800_v13  ;;  %v11604_v13 = vor.u32 %v13609_v34, %v11603_v36 }
 0x51c   :  { %v5410_v11 = vmul.f32 0.5, %v5329_v5  ;;  %v13621_v5 = vld [vmem:[#allocation10 + $0x28c] sm:$0xf0] }
 0x51e   :  { %v5341_v6 = vpop.f32.mrf.mxu2  ;;  %v5354_v8 = vpop.f32.mrf.mxu3  ;;  %14034 = vtanh.f32 %v5410_v11  ;;  %v13653_v11 = vld [vmem:[#allocation10 + $0x38c] sm:$0xf0] }
 0x51f   :  { %v5342_v54 = vadd.f32 %v5341_v6, %v4972_v63  ;;  %v5317_v10 = vpop.f32.mrf.mxu0  ;;  %v5330_v42 = vpop.f32.mrf.mxu1  ;;  %v11651_v63 = vld [vmem:[#allocation10 + $0x280] sm:$0xf] }
 0x520   :  { %v11652_v10 = vor.u32 %v13621_v5, %v11651_v63  ;;  %v11779_v42 = vld [vmem:[#allocation10 + $0x380] sm:$0xf]  ;;  %v11605_v5 = vld [vmem:[#allocation10 + $0x230] sm:$0xf0] }
 0x521   :  { %v5355_v44 = vadd.f32 %v5354_v8, %v5342_v54  ;;  %v11780_v12 = vor.u32 %v13653_v11, %v11779_v42 }
 0x522   :  { %6381 = vmatpush.bf16.msra.mxu0 %v11652_v10  ;;  %v5515_v10 = vperm.slane %v14617_v52, 1 }
 0x523   :  { %v5414_v22 = vmul.f32 0.5, %v5355_v44  ;;  %v13619_v44 = vld [vmem:[#allocation10 + $0x284] sm:$0xf]  ;;  %6394 = vmatpush.bf16.msra.mxu1 %v11780_v12  ;;  %v11587_v12 = vld [vmem:[#allocation10 + $0x200] sm:$0xf] }
 0x524   :  { %v14035_v14 = vpop.eup %14034  ;;  %v11656_v60 = vor.u32 %v13619_v44, %v11653_v18  ;;  %v13605_v18 = vld [vmem:[#allocation10 + $0x20c] sm:$0xf0] }
 0x525   :  { %14036 = vtanh.f32 %v5414_v22  ;;  %v5412_v37 = vadd.f32 1.0, %v14035_v14  ;;  %v11781_v22 = vld [vmem:[#allocation10 + $0x390] sm:$0xf0]  ;;  %v13645_v14 = vld [vmem:[#allocation10 + $0x34c] sm:$0xf0] }
 0x526   :  { %v5343_v30 = vpop.f32.mrf.mxu2  ;;  %v5356_v53 = vpop.f32.mrf.mxu3  ;;  %v11784_v7 = vor.u32 %v13651_v21, %v11781_v22  ;;  %6407 = vmatpush.bf16.msra.mxu2 %v11656_v60  ;;  %6382 = vmatpush.bf16.msra.mxu0 %v11636_v25  ;;  %v11715_v21 = vld [vmem:[#allocation10 + $0x300] sm:$0xf]  ;;  %v11588_v60 = vor.u32 %v13605_v18, %v11587_v12  ;;  %v13635_v25 = vld [vmem:[#allocation10 + $0x304] sm:$0xf] }
 0x527   :  { %v5367_v2 = vpop.f32.mrf.mxu0  ;;  %v5380_v35 = vpop.f32.mrf.mxu1 }
 0x528   :  { %v5368_v38 = vadd.f32 %v5367_v2, %v4973_v23  ;;  %v5413_v23 = vmul.f32 0.5, %v5412_v37  ;;  %6420 = vmatpush.bf16.msra.mxu3 %v11784_v7  ;;  %v11764_v2 = vor.u32 %v13649_v19, %v11763_v55  ;;  %v5514_v37 = vperm.slane %v14617_v52, 0  ;;  %v13637_v7 = vld [vmem:[#allocation10 + $0x30c] sm:$0xf0]  ;;  %v11717_v19 = vld [vmem:[#allocation10 + $0x310] sm:$0xf0] }
 0x52a   :  { %v5381_v47 = vadd.f32 %v5380_v35, %v5368_v38  ;;  %v11637_v35 = vld [vmem:[#allocation10 + $0x270] sm:$0xf0]  ;;  %6395 = vmatpush.bf16.msra.mxu1 %v11764_v2 }
 0x52b   :  { %v14037_v50 = vpop.eup %14036  ;;  %v11640_v38 = vor.u32 %v13615_v32, %v11637_v35  ;;  %v11707_v32 = vld [vmem:[#allocation10 + $0x2e8] sm:$0xf]  ;;  %v11720_v35 = vor.u32 %v13635_v25, %v11717_v19  ;;  %v5516_v19 = vperm.slane %v14617_v52, 2 }
 0x52c   :  { %v5416_v59 = vadd.f32 1.0, %v14037_v50  ;;  %14038 = vtanh.f32 %v5381_v47  ;;  %v13611_v47 = vld [vmem:[#allocation10 + $0x244] sm:$0xf]  ;;  %6421 = vmatpush.bf16.msra.mxu3 %v11768_v4  ;;  %v11749_v50 = vld [vmem:[#allocation10 + $0x350] sm:$0xf0] }
 0x52d   :  { %6408 = vmatpush.bf16.msra.mxu2 %v11640_v38  ;;  %v11624_v39 = vor.u32 %v13611_v47, %v11621_v43  ;;  %v11752_v58 = vor.u32 %v13643_v31, %v11749_v50  ;;  %v13666_v38 = vld [vmem:[#allocation10 + $0x3f4] sm:$0xf0]  ;;  %v11691_v47 = vld [vmem:[#allocation10 + $0x2c8] sm:$0xf] }
 0x52e   :  { %v5417_v62 = vmul.f32 0.5, %v5416_v59  ;;  %v5393_v20 = vpop.f32.mrf.mxu2  ;;  %v5406_v49 = vpop.f32.mrf.mxu3  ;;  %v11819_v31 = vld [vmem:[#allocation10 + $0x3c8] sm:$0xf]  ;;  %v13662_v50 = vld [vmem:[#allocation10 + $0x3d4] sm:$0xf0] }
 0x52f   :  { %v5394_v6 = vadd.f32 %v5393_v20, %v4974_v1  ;;  %v5369_v8 = vpop.f32.mrf.mxu0  ;;  %v5382_v54 = vpop.f32.mrf.mxu1  ;;  %v11747_v1 = vld [vmem:[#allocation10 + $0x340] sm:$0xf]  ;;  %v13607_v20 = vld [vmem:[#allocation10 + $0x224] sm:$0xf]  ;;  %v11820_v34 = vor.u32 %v13662_v50, %v11819_v31  ;;  %v11629_v31 = vld [vmem:[#allocation10 + $0x258] sm:$0xf0] }
 0x530   :  { %v5424_v29 = vmul.f32 %v5417_v62, %v14537_v26  ;;  %v11619_v26 = vld [vmem:[#allocation10 + $0x240] sm:$0xf]  ;;  %v11748_v27 = vor.u32 %v13645_v14, %v11747_v1  ;;  %6422 = vmatpush.bf16.msra.mxu3 %v11752_v58  ;;  %v13641_v62 = vld [vmem:[#allocation10 + $0x32c] sm:$0xf0]  ;;  %v11733_v8 = vld [vmem:[#allocation10 + $0x330] sm:$0xf0]  ;;  %v11608_v11 = vor.u32 %v13607_v20, %v11605_v5 }
 0x531   :  { %v5407_v17 = vadd.f32 %v5406_v49, %v5394_v6  ;;  %v11620_v46 = vor.u32 %v13613_v41, %v11619_v26  ;;  %6409 = vmatpush.bf16.msra.mxu2 %v11624_v39  ;;  %v11732_v63 = vor.u32 %v13641_v62, %v11731_v48  ;;  %v13639_v6 = vld [vmem:[#allocation10 + $0x324] sm:$0xf]  ;;  %v13632_v26 = vld [vmem:[#allocation10 + $0x2ec] sm:$0xf]  ;;  %v11709_v41 = vld [vmem:[#allocation10 + $0x2f8] sm:$0xf0] }
 0x532   :  { %v14039_v9 = vpop.eup %14038  ;;  %6396 = vmatpush.bf16.msra.mxu1 %v11748_v27  ;;  %v11736_v44 = vor.u32 %v13639_v6, %v11733_v8  ;;  %v13664_v1 = vld [vmem:[#allocation10 + $0x3ec] sm:$0xf]  ;;  %v11837_v14 = vld [vmem:[#allocation10 + $0x3f8] sm:$0xf0]  ;;  %v13630_v27 = vld [vmem:[#allocation10 + $0x2d4] sm:$0xf0] }
 0x533   :  { %v5425_v30 = vmul.f32 %v14039_v9, %v5413_v23  ;;  %v5419_v53 = vmul.f32 0.5, %v5407_v17  ;;  %6383 = vmatpush.bf16.msra.mxu0 %v11620_v46  ;;  %v13603_v9 = vld [vmem:[#allocation10 + $0x204] sm:$0xf]  ;;  %v11712_v46 = vor.u32 %v13632_v26, %v11709_v41  ;;  %v11840_v43 = vor.u32 %v13664_v1, %v11837_v14  ;;  %v13628_v58 = vld [vmem:[#allocation10 + $0x2cc] sm:$0xf] }
 0x534   :  { %6423 = vmatpush.bf16.msra.mxu3 %v11736_v44  ;;  %v11692_v39 = vor.u32 %v13630_v27, %v11691_v47  ;;  %v11693_v48 = vld [vmem:[#allocation10 + $0x2d8] sm:$0xf0]  ;;  %v13626_v5 = vld [vmem:[#allocation10 + $0x2b4] sm:$0xf0]  ;;  %v5517_v41 = vperm.slane %v14617_v52, 3 }
 0x535   :  { %v14611_v33 = vadd.f32 %v5425_v30, %v5424_v29  ;;  %14040 = vtanh.f32 %v5419_v53  ;;  %6410 = vmatpush.bf16.msra.mxu2 %v11608_v11  ;;  %v5434_v29 = vld [vmem:[#allocation6] sm:$0xf]  ;;  %v11716_v30 = vor.u32 %v13637_v7, %v11715_v21  ;;  %v11592_v53 = vor.u32 %v13603_v9, %v11589_v16  ;;  %v13656_v11 = vld [vmem:[#allocation10 + $0x3ac] sm:$0xf]  ;;  %v13654_v9 = vld [vmem:[#allocation10 + $0x394] sm:$0xf0] }
 0x536   :  { %v5395_v24 = vpop.f32.mrf.mxu2  ;;  %v5408_v40 = vpop.f32.mrf.mxu3  ;;  %6397 = vmatpush.bf16.msra.mxu1 %v11732_v63  ;;  %v11696_v20 = vor.u32 %v13628_v58, %v11693_v48  ;;  %v11675_v63 = vld [vmem:[#allocation10 + $0x2a8] sm:$0xf]  ;;  %v11805_v21 = vld [vmem:[#allocation10 + $0x3b8] sm:$0xf0]  ;;  %v13620_v16 = vld [vmem:[#allocation10 + $0x28c] sm:$0xf] }
 0x537   :  { %14042 = vtanh.f32 %v14611_v33  ;;  %6384 = vmatpush.bf16.msra.mxu0 %v11604_v13  ;;  %v11708_v24 = vor.u32 %v13634_v51, %v11707_v32  ;;  %v11836_v40 = vor.u32 %v13666_v38, %v11835_v15  ;;  %v11676_v8 = vor.u32 %v13626_v5, %v11675_v63  ;;  %v11643_v32 = vld [vmem:[#allocation10 + $0x268] sm:$0xf]  ;;  %v13650_v15 = vld [vmem:[#allocation10 + $0x374] sm:$0xf0]  ;;  %v13616_v38 = vld [vmem:[#allocation10 + $0x26c] sm:$0xf] }
 0x538   :  { %v14619_v56 = vpop.f32.mrf.mxu0  ;;  %v14621_v57 = vpop.f32.mrf.mxu1  ;;  %6424 = vmatpush.bf16.msra.mxu3 %v11720_v35  ;;  %v11771_v51 = vld [vmem:[#allocation10 + $0x368] sm:$0xf]  ;;  %v11773_v26 = vld [vmem:[#allocation10 + $0x378] sm:$0xf0]  ;;  %v13614_v14 = vld [vmem:[#allocation10 + $0x254] sm:$0xf0] }
 0x539   :  { %6411 = vmatpush.bf16.msra.mxu2 %v11592_v53  ;;  %v11789_v53 = vld [vmem:[#allocation10 + $0x398] sm:$0xf0]  ;;  %v11755_v47 = vld [vmem:[#allocation10 + $0x348] sm:$0xf]  ;;  %v13646_v27 = vld [vmem:[#allocation10 + $0x354] sm:$0xf0] }
 0x53a   :  { %6398 = vmatpush.bf16.msra.mxu1 %v11716_v30  ;;  %v13652_v30 = vld [vmem:[#allocation10 + $0x38c] sm:$0xf]  ;;  %v11757_v52 = vld [vmem:[#allocation10 + $0x358] sm:$0xf0]  ;;  %v13642_v63 = vld [vmem:[#allocation10 + $0x334] sm:$0xf0] }
 0x53b   :  { %v14041_v59 = vpop.eup %14040  ;;  %6385 = vmatpush.bf16.msra.mxu0 %v11588_v60  ;;  %v11787_v60 = vld [vmem:[#allocation10 + $0x388] sm:$0xf]  ;;  %v11792_v25 = vor.u32 %v13652_v30, %v11789_v53  ;;  %v13644_v48 = vld [vmem:[#allocation10 + $0x34c] sm:$0xf] }
 0x53c   :  { %v5421_v61 = vadd.f32 1.0, %v14041_v59  ;;  %v5859_v59 = vadd.f32 %v14619_v56, %v5514_v37  ;;  %6469 = vmatpush.bf16.msrb.mxu3 %v11840_v43  ;;  %v13624_v56 = vld [vmem:[#allocation10 + $0x2ac] sm:$0xf]  ;;  %v11677_v37 = vld [vmem:[#allocation10 + $0x2b8] sm:$0xf0] }
 0x53d   :  { %v14043_v49 = vpop.eup %14042  ;;  %6456 = vmatpush.bf16.msrb.mxu2 %v11712_v46  ;;  %v11680_v18 = vor.u32 %v13624_v56, %v11677_v37  ;;  %v11627_v46 = vld [vmem:[#allocation10 + $0x248] sm:$0xf]  ;;  %v13608_v5 = vld [vmem:[#allocation10 + $0x22c] sm:$0xf] }
 0x53e   :  { %v5422_v54 = vmul.f32 0.5, %v5421_v61  ;;  %6443 = vmatpush.bf16.msrb.mxu1 %v11836_v40  ;;  %v13660_v61 = vld [vmem:[#allocation10 + $0x3cc] sm:$0xf]  ;;  %v5872_v44 = vadd.f32 %v14621_v57, %v5859_v59  ;;  %v11628_v43 = vor.u32 %v13614_v14, %v11627_v46 }
 0x53f   :  { %6430 = vmatpush.bf16.msrb.mxu0 %v11708_v24  ;;  %v11645_v24 = vld [vmem:[#allocation10 + $0x278] sm:$0xf0]  ;;  %v13648_v40 = vld [vmem:[#allocation10 + $0x36c] sm:$0xf] }
 0x540   :  { %v5428_v22 = vmul.f32 %v14043_v49, %v5422_v54  ;;  %v5860_v28 = vpop.f32.mrf.mxu0  ;;  %v5873_v55 = vpop.f32.mrf.mxu1  ;;  %v11821_v49 = vld [vmem:[#allocation10 + $0x3d8] sm:$0xf0]  ;;  %v11803_v54 = vld [vmem:[#allocation10 + $0x3a8] sm:$0xf]  ;;  %v5953_v57 = vmul.f32 0.5, %v5872_v44  ;;  %v11648_v1 = vor.u32 %v13616_v38, %v11645_v24 }
 0x541   :  { %v5884_v23 = vpop.f32.mrf.mxu2  ;;  %v5897_v17 = vpop.f32.mrf.mxu3  ;;  %v11824_v6 = vor.u32 %v13660_v61, %v11821_v49  ;;  %6457 = vmatpush.bf16.msrb.mxu2 %v11696_v20  ;;  %v11661_v28 = vld [vmem:[#allocation10 + $0x298] sm:$0xf0]  ;;  %v11788_v55 = vor.u32 %v13654_v9, %v11787_v60  ;;  %v11611_v61 = vld [vmem:[#allocation10 + $0x228] sm:$0xf]  ;;  %v13610_v20 = vld [vmem:[#allocation10 + $0x234] sm:$0xf0] }
 0x542   :  { %v5430_v2 = vpack.c.bf16 %v5428_v22, %v5428_v22  ;;  %v5885_v4 = vadd.f32 %v5884_v23, %v5515_v10  ;;  %6444 = vmatpush.bf16.msrb.mxu1 %v11820_v34  ;;  %v13658_v10 = vld [vmem:[#allocation10 + $0x3b4] sm:$0xf0]  ;;  %v11808_v22 = vor.u32 %v13656_v11, %v11805_v21  ;;  %v11659_v23 = vld [vmem:[#allocation10 + $0x288] sm:$0xf]  ;;  %v11612_v56 = vor.u32 %v13610_v20, %v11611_v61  ;;  %v11741_v11 = vld [vmem:[#allocation10 + $0x338] sm:$0xf0] }
 0x543   :  { %6431 = vmatpush.bf16.msrb.mxu0 %v11692_v39  ;;  %v11804_v42 = vor.u32 %v13658_v10, %v11803_v54  ;;  %6470 = vmatpush.bf16.msrb.mxu3 %v11824_v6  ;;  %v13612_v39 = vld [vmem:[#allocation10 + $0x24c] sm:$0xf]  ;;  %v11739_v49 = vld [vmem:[#allocation10 + $0x328] sm:$0xf]  ;;  %v11613_v6 = vld [vmem:[#allocation10 + $0x238] sm:$0xf0] }
 0x544   :  { %5431 = vst [vmem:[#allocation3 + $0x4] sm:$0xf] %v5430_v2  ;;  %v5441_v45 = vsel %vm14627_vm14, %v5430_v2, %v5434_v29  ;;  %v5898_v36 = vadd.f32 %v5897_v17, %v5885_v4  ;;  %v13622_v17 = vld [vmem:[#allocation10 + $0x294] sm:$0xf0]  ;;  %v11664_v29 = vor.u32 %v13620_v16, %v11661_v28  ;;  %v11772_v4 = vor.u32 %v13650_v15, %v11771_v51  ;;  %v11595_v44 = vld [vmem:[#allocation10 + $0x208] sm:$0xf] }
 0x545   :  { %5442 = vst [vmem:[#allocation6] sm:$0xf] %v5441_v45  ;;  %v11660_v7 = vor.u32 %v13622_v17, %v11659_v23  ;;  %6458 = vmatpush.bf16.msrb.mxu2 %v11680_v18  ;;  %v13618_v2 = vld [vmem:[#allocation10 + $0x274] sm:$0xf0]  ;;  %v11776_v45 = vor.u32 %v13648_v40, %v11773_v26  ;;  %v11632_v34 = vor.u32 %v13612_v39, %v11629_v31  ;;  %v11723_v21 = vld [vmem:[#allocation10 + $0x308] sm:$0xf] }
 0x546   :  { %v5957_v12 = vmul.f32 0.5, %v5898_v36  ;;  %6445 = vmatpush.bf16.msrb.mxu1 %v11804_v42  ;;  %v11644_v35 = vor.u32 %v13618_v2, %v11643_v32  ;;  %v11756_v36 = vor.u32 %v13646_v27, %v11755_v47  ;;  %v11740_v37 = vor.u32 %v13642_v63, %v11739_v49  ;;  %v13606_v18 = vld [vmem:[#allocation10 + $0x214] sm:$0xf0]  ;;  %v13604_v17 = vld [vmem:[#allocation10 + $0x20c] sm:$0xf] }
 0x547   :  { %6432 = vmatpush.bf16.msrb.mxu0 %v11676_v8  ;;  %6471 = vmatpush.bf16.msrb.mxu3 %v11808_v22  ;;  %v13640_v8 = vld [vmem:[#allocation10 + $0x32c] sm:$0xf]  ;;  %v13638_v22 = vld [vmem:[#allocation10 + $0x314] sm:$0xf0]  ;;  %v11597_v60 = vld [vmem:[#allocation10 + $0x218] sm:$0xf0] }
 0x548   :  { %14044 = vtanh.f32 %v5957_v12  ;;  %v11616_v12 = vor.u32 %v13608_v5, %v11613_v6  ;;  %v11744_v23 = vor.u32 %v13640_v8, %v11741_v11  ;;  %v13636_v9 = vld [vmem:[#allocation10 + $0x30c] sm:$0xf]  ;;  %v11725_v16 = vld [vmem:[#allocation10 + $0x318] sm:$0xf0]  ;;  %v11724_v30 = vor.u32 %v13638_v22, %v11723_v21  ;;  %v13697_v27 = vld [vmem:[#allocation10 + $0xec] sm:$0xf0] }
 0x549   :  { %v5886_v13 = vpop.f32.mrf.mxu2  ;;  %v5899_v62 = vpop.f32.mrf.mxu3  ;;  %6459 = vmatpush.bf16.msrb.mxu2 %v11664_v29  ;;  %14046 = vtanh.f32 %v5953_v57  ;;  %v11596_v29 = vor.u32 %v13606_v18, %v11595_v44  ;;  %v11600_v32 = vor.u32 %v13604_v17, %v11597_v60  ;;  %v11728_v2 = vor.u32 %v13636_v9, %v11725_v16  ;;  %v12083_v39 = vld [vmem:[#allocation10 + $0x1e0] sm:$0xf]  ;;  %v13693_v63 = vld [vmem:[#allocation10 + $0xcc] sm:$0xf0]  ;;  %v13687_v9 = vld [vmem:[#allocation10 + $0xa4] sm:$0xf] }
 0x54a   :  { %6446 = vmatpush.bf16.msrb.mxu1 %v11788_v55  ;;  %v11760_v62 = vor.u32 %v13644_v48, %v11757_v52  ;;  %v13727_v48 = vld [vmem:[#allocation10 + $0x1e4] sm:$0xf]  ;;  %v12085_v52 = vld [vmem:[#allocation10 + $0x1f0] sm:$0xf0]  ;;  %v11939_v49 = vld [vmem:[#allocation10 + $0xc0] sm:$0xf] }
 0x54b   :  { %6433 = vmatpush.bf16.msrb.mxu0 %v11660_v7  ;;  %6472 = vmatpush.bf16.msrb.mxu3 %v11792_v25  ;;  %v12088_v6 = vor.u32 %v13727_v48, %v12085_v52  ;;  %v12067_v8 = vld [vmem:[#allocation10 + $0x1c0] sm:$0xf]  ;;  %v13689_v44 = vld [vmem:[#allocation10 + $0xac] sm:$0xf0]  ;;  %v11925_v16 = vld [vmem:[#allocation10 + $0xb0] sm:$0xf0] }
 0x54c   :  { %v11923_v11 = vld [vmem:[#allocation10 + $0xa0] sm:$0xf]  ;;  %v13709_v48 = vld [vmem:[#allocation10 + $0x14c] sm:$0xf0]  ;;  %v13675_v52 = vld [vmem:[#allocation10 + $0x44] sm:$0xf] }
 0x54d   :  { %6460 = vmatpush.bf16.msrb.mxu2 %v11648_v1  ;;  %v12051_v21 = vld [vmem:[#allocation10 + $0x1a0] sm:$0xf] }
 0x54e   :  { %6447 = vmatpush.bf16.msrb.mxu1 %v11772_v4  ;;  %v14045_v50 = vpop.eup %14044 }
 0x54f   :  { %6434 = vmatpush.bf16.msrb.mxu0 %v11644_v35  ;;  %6473 = vmatpush.bf16.msrb.mxu3 %v11776_v45  ;;  %v14047_v54 = vpop.eup %14046  ;;  %v5959_v10 = vadd.f32 1.0, %v14045_v50  ;;  %v13729_v50 = vld [vmem:[#allocation10 + $0x1ec] sm:$0xf0] }
 0x550   :  { %v5955_v7 = vadd.f32 1.0, %v14047_v54  ;;  %v12084_v20 = vor.u32 %v13729_v50, %v12083_v39  ;;  %v13725_v54 = vld [vmem:[#allocation10 + $0x1cc] sm:$0xf0]  ;;  %v11875_v50 = vld [vmem:[#allocation10 + $0x40] sm:$0xf] }
 0x551   :  { %6461 = vmatpush.bf16.msrb.mxu2 %v11632_v34  ;;  %v5960_v53 = vmul.f32 0.5, %v5959_v10  ;;  %v11957_v34 = vld [vmem:[#allocation10 + $0xf0] sm:$0xf0]  ;;  %v13691_v10 = vld [vmem:[#allocation10 + $0xc4] sm:$0xf]  ;;  %v12068_v18 = vor.u32 %v13725_v54, %v12067_v8 }
 0x552   :  { %6448 = vmatpush.bf16.msrb.mxu1 %v11756_v36  ;;  %v5956_v35 = vmul.f32 0.5, %v5955_v7  ;;  %v13721_v7 = vld [vmem:[#allocation10 + $0x1ac] sm:$0xf0] }
 0x553   :  { %6435 = vmatpush.bf16.msrb.mxu0 %v11628_v43  ;;  %6474 = vmatpush.bf16.msrb.mxu3 %v11760_v62  ;;  %v5967_v38 = vmul.f32 %v5960_v53, %v14566_v3  ;;  %v11955_v3 = vld [vmem:[#allocation10 + $0xe0] sm:$0xf]  ;;  %v13673_v8 = vld [vmem:[#allocation10 + $0x2c] sm:$0xf0] }
 0x554   :  { %v11956_v62 = vor.u32 %v13697_v27, %v11955_v3  ;;  %v11907_v53 = vld [vmem:[#allocation10 + $0x80] sm:$0xf]  ;;  %v13711_v3 = vld [vmem:[#allocation10 + $0x164] sm:$0xf]  ;;  %v12021_v27 = vld [vmem:[#allocation10 + $0x170] sm:$0xf0] }
 0x555   :  { %6462 = vmatpush.bf16.msrb.mxu2 %v11616_v12  ;;  %v11940_v12 = vor.u32 %v13693_v63, %v11939_v49  ;;  %v12005_v49 = vld [vmem:[#allocation10 + $0x150] sm:$0xf0] }
 0x556   :  { %6449 = vmatpush.bf16.msrb.mxu1 %v11740_v37  ;;  %v12069_v37 = vld [vmem:[#allocation10 + $0x1d0] sm:$0xf0] }
 0x557   :  { %6436 = vmatpush.bf16.msrb.mxu0 %v11612_v56  ;;  %6475 = vmatpush.bf16.msrb.mxu3 %v11744_v23  ;;  %v13723_v56 = vld [vmem:[#allocation10 + $0x1c4] sm:$0xf]  ;;  %v7589_v23 = vld [vmem:[#allocation7 + $0x1c] sm:$0xf] }
 0x558   :  { %v5910_v58 = vpop.f32.mrf.mxu0  ;;  %v5923_v59 = vpop.f32.mrf.mxu1  ;;  %v12072_v60 = vor.u32 %v13723_v56, %v12069_v37  ;;  %v13705_v56 = vld [vmem:[#allocation10 + $0x12c] sm:$0xf0]  ;;  %v13671_v37 = vld [vmem:[#allocation10 + $0x24] sm:$0xf] }
 0x559   :  { %v5911_v13 = vadd.f32 %v5910_v58, %v5516_v19  ;;  %6463 = vmatpush.bf16.msrb.mxu2 %v11600_v32  ;;  %v13695_v58 = vld [vmem:[#allocation10 + $0xe4] sm:$0xf]  ;;  %v12035_v32 = vld [vmem:[#allocation10 + $0x180] sm:$0xf] }
 0x55a   :  { %6450 = vmatpush.bf16.msrb.mxu1 %v11724_v30  ;;  %v11960_v5 = vor.u32 %v13695_v58, %v11957_v34  ;;  %v12052_v30 = vor.u32 %v13721_v7, %v12051_v21  ;;  %v13677_v58 = vld [vmem:[#allocation10 + $0x4c] sm:$0xf0]  ;;  %v12003_v34 = vld [vmem:[#allocation10 + $0x140] sm:$0xf] }
 0x55b   :  { %v5924_v42 = vadd.f32 %v5923_v59, %v5911_v13  ;;  %6437 = vmatpush.bf16.msrb.mxu0 %v11596_v29  ;;  %6476 = vmatpush.bf16.msrb.mxu3 %v11728_v2  ;;  %v11924_v29 = vor.u32 %v13689_v44, %v11923_v11  ;;  %v13717_v2 = vld [vmem:[#allocation10 + $0x18c] sm:$0xf0]  ;;  %v11876_v63 = vor.u32 %v13677_v58, %v11875_v50  ;;  %v11861_v11 = vld [vmem:[#allocation10 + $0x30] sm:$0xf0]  ;;  %v13703_v44 = vld [vmem:[#allocation10 + $0x124] sm:$0xf] }
 0x55c   :  { %v13669_v21 = vld [vmem:[#allocation10 + $0xc] sm:$0xf0] }
 0x55d   :  { %14048 = vtanh.f32 %v5924_v42  ;;  %v11941_v42 = vld [vmem:[#allocation10 + $0xd0] sm:$0xf0] }
 0x55e   :  { %v11944_v17 = vor.u32 %v13691_v10, %v11941_v42  ;;  %v11987_v42 = vld [vmem:[#allocation10 + $0x120] sm:$0xf] }
 0x55f   :  { %v5936_v28 = vpop.f32.mrf.mxu2  ;;  %v5949_v55 = vpop.f32.mrf.mxu3 }
 0x560   :  { %v5937_v57 = vadd.f32 %v5936_v28, %v5517_v41  ;;  %v5912_v25 = vpop.f32.mrf.mxu0  ;;  %v5925_v19 = vpop.f32.mrf.mxu1  ;;  %v13719_v28 = vld [vmem:[#allocation10 + $0x1a4] sm:$0xf] }
 0x561   :  { %v11928_v25 = vor.u32 %v13687_v9, %v11925_v16  ;;  %v13667_v9 = vld [vmem:[#allocation10 + $0x4] sm:$0xf]  ;;  %v11845_v16 = vld [vmem:[#allocation10 + $0x10] sm:$0xf0] }
 0x562   :  { %v5950_v51 = vadd.f32 %v5949_v55, %v5937_v57  ;;  %v12053_v55 = vld [vmem:[#allocation10 + $0x1b0] sm:$0xf0]  ;;  %v13685_v57 = vld [vmem:[#allocation10 + $0x8c] sm:$0xf0] }
 0x563   :  { %v14049_v15 = vpop.eup %14048  ;;  %v12056_v19 = vor.u32 %v13719_v28, %v12053_v55  ;;  %v13699_v28 = vld [vmem:[#allocation10 + $0x104] sm:$0xf]  ;;  %v11973_v55 = vld [vmem:[#allocation10 + $0x110] sm:$0xf0] }
 0x564   :  { %v5968_v4 = vmul.f32 %v14049_v15, %v5956_v35  ;;  %v5962_v24 = vmul.f32 0.5, %v5950_v51  ;;  %v13683_v35 = vld [vmem:[#allocation10 + $0x84] sm:$0xf]  ;;  %v11909_v51 = vld [vmem:[#allocation10 + $0x90] sm:$0xf0] }
 0x565   :  { %v13715_v15 = vld [vmem:[#allocation10 + $0x184] sm:$0xf] }
 0x566   :  { %v14640_v40 = vadd.f32 %v5968_v4, %v5967_v38  ;;  %14050 = vtanh.f32 %v5962_v24  ;;  %v12037_v38 = vld [vmem:[#allocation10 + $0x190] sm:$0xf0]  ;;  %v11908_v4 = vor.u32 %v13685_v57, %v11907_v53  ;;  %v12036_v24 = vor.u32 %v13717_v2, %v12035_v32  ;;  %v12091_v53 = vld [vmem:[#allocation10 + $0x1e8] sm:$0xf]  ;;  %v13730_v57 = vld [vmem:[#allocation10 + $0x1f4] sm:$0xf0] }
 0x567   :  { %v5938_v26 = vpop.f32.mrf.mxu2  ;;  %v5951_v41 = vpop.f32.mrf.mxu3  ;;  %v11965_v2 = vld [vmem:[#allocation10 + $0xf8] sm:$0xf0] }
 0x568   :  { %14052 = vtanh.f32 %v14640_v40  ;;  %v11891_v26 = vld [vmem:[#allocation10 + $0x60] sm:$0xf]  ;;  %v13681_v41 = vld [vmem:[#allocation10 + $0x6c] sm:$0xf0] }
 0x569   :  { %v11892_v39 = vor.u32 %v13681_v41, %v11891_v26  ;;  %v12092_v26 = vor.u32 %v13730_v57, %v12091_v53  ;;  %v11901_v53 = vld [vmem:[#allocation10 + $0x78] sm:$0xf0]  ;;  %v13712_v57 = vld [vmem:[#allocation10 + $0x16c] sm:$0xf] }
 0x56c   :  { %v14051_v1 = vpop.eup %14050 }
 0x56d   :  { %v5964_v45 = vadd.f32 1.0, %v14051_v1  ;;  %v11912_v1 = vor.u32 %v13683_v35, %v11909_v51  ;;  %v13728_v35 = vld [vmem:[#allocation10 + $0x1ec] sm:$0xf]  ;;  %v12093_v51 = vld [vmem:[#allocation10 + $0x1f8] sm:$0xf0] }
 0x56e   :  { %v14053_v46 = vpop.eup %14052 }
 0x56f   :  { %v5965_v14 = vmul.f32 0.5, %v5964_v45  ;;  %v12040_v45 = vor.u32 %v13715_v15, %v12037_v38  ;;  %v11848_v15 = vor.u32 %v13667_v9, %v11845_v16  ;;  %v11976_v38 = vor.u32 %v13699_v28, %v11973_v55  ;;  %v13682_v9 = vld [vmem:[#allocation10 + $0x74] sm:$0xf0]  ;;  %v12027_v55 = vld [vmem:[#allocation10 + $0x168] sm:$0xf] }
 0x571   :  { %v5971_v47 = vmul.f32 %v14053_v46, %v5965_v14  ;;  %v12019_v46 = vld [vmem:[#allocation10 + $0x160] sm:$0xf]  ;;  %v13713_v14 = vld [vmem:[#allocation10 + $0x16c] sm:$0xf0] }
 0x573   :  { %v5973_v43 = vpack.c.bf16 %v5971_v47, %v5971_v47  ;;  %v13679_v47 = vld [vmem:[#allocation10 + $0x64] sm:$0xf] }
 0x575   :  { %5974 = vst [vmem:[#allocation2 + $0x4] sm:$0xf] %v5973_v43 }
 0x576   :  { %5975 = vst [vmem:[#allocation3] sm:$0xf] %v5973_v43  ;;  %v11893_v43 = vld [vmem:[#allocation10 + $0x70] sm:$0xf0] }
 0x57c   :  { %v14651_v22 = vld [vmem:[#allocation2] sm:$0xff] }
 0x57d   :  { %v5976_v31 = vld [vmem:[#allocation3] sm:$0xff]  ;;  %7590 = vst [vmem:[#allocation2] sm:$0xf] %v7589_v23  ;;  %v11971_v23 = vld [vmem:[#allocation10 + $0x100] sm:$0xf]  ;;  %v6596_v41 = vunpack.c.h.b16 %v14651_v22 }
 0x57e   :  { %v6052_v59 = vunpack.c.l.b16 %v5976_v31  ;;  %v6053_v36 = vunpack.c.h.b16 %v5976_v31  ;;  %v12020_v31 = vor.u32 %v13713_v14, %v12019_v46  ;;  %v12096_v14 = vor.u32 %v13728_v35, %v12093_v51  ;;  %v13678_v35 = vld [vmem:[#allocation10 + $0x54] sm:$0xf0] }
 0x57f   :  { %v14661_v58 = vpack.c.b16 %v6596_v41, %v6596_v41  ;;  %v13708_v41 = vld [vmem:[#allocation10 + $0x14c] sm:$0xf] }
 0x580   :  { %v14643_v61 = vpack.c.b16 %v6052_v59, %v6052_v59  ;;  %v14645_v13 = vpack.c.b16 %v6053_v36, %v6053_v36  ;;  %v11896_v59 = vor.u32 %v13679_v47, %v11893_v43  ;;  %v12024_v36 = vor.u32 %v13711_v3, %v12021_v27  ;;  %v12075_v47 = vld [vmem:[#allocation10 + $0x1c8] sm:$0xf]  ;;  %v13726_v43 = vld [vmem:[#allocation10 + $0x1d4] sm:$0xf0]  ;;  %v13692_v3 = vld [vmem:[#allocation10 + $0xcc] sm:$0xf] }
 0x581   :  { %v11949_v27 = vld [vmem:[#allocation10 + $0xd8] sm:$0xf0] }
 0x582   :  { %6386 = vmatmul.bf16.vlgmr.msra.gmra.mxu0 %v14643_v61  ;;  %6399 = vmatmul.bf16.vlgmr.msra.gmra.mxu1 %v14645_v13 }
 0x583   :  { %6412 = vmatmul.bf16.vlgmr.msra.gmra.mxu2 %v14643_v61  ;;  %6425 = vmatmul.bf16.vlgmr.msra.gmra.mxu3 %v14645_v13 }
 0x584   :  { %6921 = vmatpush.bf16.msra.mxu0 %v11956_v62  ;;  %6934 = vmatpush.bf16.msra.mxu1 %v12084_v20  ;;  %v11877_v62 = vld [vmem:[#allocation10 + $0x50] sm:$0xf0]  ;;  %v13707_v20 = vld [vmem:[#allocation10 + $0x144] sm:$0xf] }
 0x585   :  { %6947 = vmatpush.bf16.msra.mxu2 %v11960_v5  ;;  %6960 = vmatpush.bf16.msra.mxu3 %v12088_v6  ;;  %v12004_v5 = vor.u32 %v13709_v48, %v12003_v34  ;;  %v11859_v6 = vld [vmem:[#allocation10 + $0x20] sm:$0xf]  ;;  %v11880_v54 = vor.u32 %v13675_v52, %v11877_v62  ;;  %v12008_v10 = vor.u32 %v13707_v20, %v12005_v49  ;;  %v13690_v34 = vld [vmem:[#allocation10 + $0xb4] sm:$0xf0]  ;;  %v14108_v48 = vld [vmem:[%s14795_s0] sm:$0xff] }
 0x586   :  { %vm6505_vm15 = vcmp.eq.s32.totalorder %v14108_v48, 5  ;;  %v11952_v52 = vor.u32 %v13692_v3, %v11949_v27  ;;  %v12059_v20 = vld [vmem:[#allocation10 + $0x1a8] sm:$0xf]  ;;  %v13722_v49 = vld [vmem:[#allocation10 + $0x1b4] sm:$0xf0] }
 0x587   :  { %v11995_v27 = vld [vmem:[#allocation10 + $0x128] sm:$0xf] }
 0x588   :  { %6922 = vmatpush.bf16.msra.mxu0 %v11940_v12  ;;  %6935 = vmatpush.bf16.msra.mxu1 %v12068_v18  ;;  %v11989_v12 = vld [vmem:[#allocation10 + $0x130] sm:$0xf0]  ;;  %v11843_v18 = vld [vmem:[#allocation10] sm:$0xf] }
 0x589   :  { %6948 = vmatpush.bf16.msra.mxu2 %v11944_v17  ;;  %6961 = vmatpush.bf16.msra.mxu3 %v12072_v60  ;;  %v13701_v17 = vld [vmem:[#allocation10 + $0x10c] sm:$0xf0]  ;;  %v11864_v60 = vor.u32 %v13671_v37, %v11861_v11  ;;  %v11992_v7 = vor.u32 %v13703_v44, %v11989_v12  ;;  %v13686_v37 = vld [vmem:[#allocation10 + $0x94] sm:$0xf0]  ;;  %v12043_v12 = vld [vmem:[#allocation10 + $0x188] sm:$0xf] }
 0x58a   :  { %v11972_v32 = vor.u32 %v13701_v17, %v11971_v23  ;;  %v12045_v23 = vld [vmem:[#allocation10 + $0x198] sm:$0xf0] }
 0x58c   :  { %6923 = vmatpush.bf16.msra.mxu0 %v11924_v29  ;;  %6936 = vmatpush.bf16.msra.mxu1 %v12052_v30  ;;  %v11963_v29 = vld [vmem:[#allocation10 + $0xe8] sm:$0xf]  ;;  %v13698_v30 = vld [vmem:[#allocation10 + $0xf4] sm:$0xf0] }
 0x58d   :  { %6949 = vmatpush.bf16.msra.mxu2 %v11928_v25  ;;  %6962 = vmatpush.bf16.msra.mxu3 %v12056_v19  ;;  %v13696_v25 = vld [vmem:[#allocation10 + $0xec] sm:$0xf]  ;;  %v11844_v19 = vor.u32 %v13669_v21, %v11843_v18  ;;  %v13718_v18 = vld [vmem:[#allocation10 + $0x194] sm:$0xf0] }
 0x58e   :  { %v11968_v46 = vor.u32 %v13696_v25, %v11965_v2  ;;  %v13716_v21 = vld [vmem:[#allocation10 + $0x18c] sm:$0xf]  ;;  %v12029_v25 = vld [vmem:[#allocation10 + $0x178] sm:$0xf0]  ;;  %v11883_v2 = vld [vmem:[#allocation10 + $0x48] sm:$0xf] }
 0x58f   :  { %v12048_v28 = vor.u32 %v13716_v21, %v12045_v23 }
 0x590   :  { %6924 = vmatpush.bf16.msra.mxu0 %v11908_v4  ;;  %6937 = vmatpush.bf16.msra.mxu1 %v12036_v24  ;;  %v6595_v4 = vunpack.c.l.b16 %v14651_v22  ;;  %v11964_v24 = vor.u32 %v13698_v30, %v11963_v29  ;;  %v13714_v29 = vld [vmem:[#allocation10 + $0x174] sm:$0xf0]  ;;  %v13680_v30 = vld [vmem:[#allocation10 + $0x6c] sm:$0xf] }
 0x591   :  { %6950 = vmatpush.bf16.msra.mxu2 %v11912_v1  ;;  %6963 = vmatpush.bf16.msra.mxu3 %v12040_v45  ;;  %v11947_v1 = vld [vmem:[#allocation10 + $0xc8] sm:$0xf]  ;;  %v13694_v45 = vld [vmem:[#allocation10 + $0xd4] sm:$0xf0]  ;;  %v11904_v51 = vor.u32 %v13680_v30, %v11901_v53 }
 0x592   :  { %6438 = vmatmul.bf16.vlgmr.msrb.gmra.mxu0 %v14643_v61  ;;  %6451 = vmatmul.bf16.vlgmr.msrb.gmra.mxu1 %v14645_v13  ;;  %v14659_v50 = vpack.c.b16 %v6595_v4, %v6595_v4  ;;  %v11948_v22 = vor.u32 %v13694_v45, %v11947_v1  ;;  %v13710_v4 = vld [vmem:[#allocation10 + $0x154] sm:$0xf0]  ;;  %v12013_v1 = vld [vmem:[#allocation10 + $0x158] sm:$0xf0]  ;;  %v11884_v45 = vor.u32 %v13678_v35, %v11883_v2  ;;  %v12214_v2 = vld [vmem:[#allocation10 + $0x2f0] sm:$0xf0] }
 0x593   :  { %6464 = vmatmul.bf16.vlgmr.msrb.gmra.mxu2 %v14643_v61  ;;  %6477 = vmatmul.bf16.vlgmr.msrb.gmra.mxu3 %v14645_v13  ;;  %v11860_v61 = vor.u32 %v13673_v8, %v11859_v6  ;;  %v11988_v13 = vor.u32 %v13705_v56, %v11987_v42  ;;  %v13720_v6 = vld [vmem:[#allocation10 + $0x1ac] sm:$0xf]  ;;  %v12061_v8 = vld [vmem:[#allocation10 + $0x1b8] sm:$0xf0]  ;;  %v12060_v42 = vor.u32 %v13722_v49, %v12059_v20  ;;  %v11915_v56 = vld [vmem:[#allocation10 + $0x88] sm:$0xf] }
 0x594   :  { %6925 = vmatpush.bf16.msra.mxu0 %v11892_v39  ;;  %6938 = vmatpush.bf16.msra.mxu1 %v12020_v31  ;;  %v13724_v39 = vld [vmem:[#allocation10 + $0x1cc] sm:$0xf]  ;;  %v12077_v31 = vld [vmem:[#allocation10 + $0x1d8] sm:$0xf0]  ;;  %v12064_v44 = vor.u32 %v13720_v6, %v12061_v8  ;;  %v11916_v17 = vor.u32 %v13686_v37, %v11915_v56  ;;  %v12016_v3 = vor.u32 %v13708_v41, %v12013_v1  ;;  %v13791_v35 = vld [vmem:[#allocation10 + $0x3e4] sm:$0xf] }
 0x595   :  { %6951 = vmatpush.bf16.msra.mxu2 %v11896_v59  ;;  %6964 = vmatpush.bf16.msra.mxu3 %v12024_v36  ;;  %v12076_v59 = vor.u32 %v13726_v43, %v12075_v47  ;;  %v11931_v36 = vld [vmem:[#allocation10 + $0xa8] sm:$0xf]  ;;  %v12080_v62 = vor.u32 %v13724_v39, %v12077_v31  ;;  %v13674_v47 = vld [vmem:[#allocation10 + $0x34] sm:$0xf0]  ;;  %v13672_v31 = vld [vmem:[#allocation10 + $0x2c] sm:$0xf] }
 0x596   :  { %v13706_v39 = vld [vmem:[#allocation10 + $0x134] sm:$0xf0]  ;;  %v13668_v6 = vld [vmem:[#allocation10 + $0xc] sm:$0xf]  ;;  %v11853_v8 = vld [vmem:[#allocation10 + $0x18] sm:$0xf0] }
 0x597   :  { %v11996_v48 = vor.u32 %v13706_v39, %v11995_v27  ;;  %v11856_v37 = vor.u32 %v13668_v6, %v11853_v8  ;;  %v13757_v41 = vld [vmem:[#allocation10 + $0x2cc] sm:$0xf0]  ;;  %v13755_v27 = vld [vmem:[#allocation10 + $0x2c4] sm:$0xf]  ;;  %v12198_v39 = vld [vmem:[#allocation10 + $0x2d0] sm:$0xf0] }
 0x598   :  { %6926 = vmatpush.bf16.msra.mxu0 %v11876_v63  ;;  %6939 = vmatpush.bf16.msra.mxu1 %v12004_v5  ;;  %v13688_v63 = vld [vmem:[#allocation10 + $0xac] sm:$0xf]  ;;  %v11933_v5 = vld [vmem:[#allocation10 + $0xb8] sm:$0xf0]  ;;  %v13785_v6 = vld [vmem:[#allocation10 + $0x3ac] sm:$0xf0] }
 0x599   :  { %6952 = vmatpush.bf16.msra.mxu2 %v11880_v54  ;;  %6965 = vmatpush.bf16.msra.mxu3 %v12008_v10  ;;  %v6507_v54 = vsel %vm6505_vm15, 1, %v14219_v0  ;;  %v11932_v10 = vor.u32 %v13690_v34, %v11931_v36  ;;  %v11936_v11 = vor.u32 %v13688_v63, %v11933_v5  ;;  %v11997_v36 = vld [vmem:[#allocation10 + $0x138] sm:$0xf0]  ;;  %v11979_v63 = vld [vmem:[#allocation10 + $0x108] sm:$0xf] }
 0x59a   :  { %6509 = vperm.xlu2 %13942, %v6507_v54   ;;  %v13702_v5 = vld [vmem:[#allocation10 + $0x114] sm:$0xf0]  ;;  %v13700_v54 = vld [vmem:[#allocation10 + $0x10c] sm:$0xf]  ;;  %v13751_v8 = vld [vmem:[#allocation10 + $0x2a4] sm:$0xf] }
 0x59b   :  { %v11980_v56 = vor.u32 %v13702_v5, %v11979_v63 }
 0x59c   :  { %6927 = vmatpush.bf16.msra.mxu0 %v11860_v61  ;;  %6940 = vmatpush.bf16.msra.mxu1 %v11988_v13  ;;  %v13684_v61 = vld [vmem:[#allocation10 + $0x8c] sm:$0xf]  ;;  %v11917_v13 = vld [vmem:[#allocation10 + $0x98] sm:$0xf0] }
 0x59d   :  { %6953 = vmatpush.bf16.msra.mxu2 %v11864_v60  ;;  %6966 = vmatpush.bf16.msra.mxu3 %v11992_v7  ;;  %v12044_v60 = vor.u32 %v13718_v18, %v12043_v12  ;;  %v11899_v7 = vld [vmem:[#allocation10 + $0x68] sm:$0xf]  ;;  %v11920_v16 = vor.u32 %v13684_v61, %v11917_v13 }
 0x5a0   :  { %6928 = vmatpush.bf16.msra.mxu0 %v11844_v19  ;;  %6941 = vmatpush.bf16.msra.mxu1 %v11972_v32  ;;  %v11900_v19 = vor.u32 %v13682_v9, %v11899_v7  ;;  %v12028_v32 = vor.u32 %v13714_v29, %v12027_v55  ;;  %v13761_v55 = vld [vmem:[#allocation10 + $0x2ec] sm:$0xf0]  ;;  %v12340_v29 = vld [vmem:[#allocation10 + $0x3e0] sm:$0xf] }
 0x5a1   :  { %6954 = vmatpush.bf16.msra.mxu2 %v11848_v15  ;;  %6967 = vmatpush.bf16.msra.mxu3 %v11976_v38  ;;  %v12032_v15 = vor.u32 %v13712_v57, %v12029_v25  ;;  %v12011_v38 = vld [vmem:[#allocation10 + $0x148] sm:$0xf]  ;;  %v13793_v25 = vld [vmem:[#allocation10 + $0x3ec] sm:$0xf0] }
 0x5a3   :  { %6929 = vmatmul.bf16.vlgmr.msra.gmra.mxu0 %v14659_v50  ;;  %6942 = vmatmul.bf16.vlgmr.msra.gmra.mxu1 %v14661_v58 }
 0x5a4   :  { %6973 = vmatpush.bf16.msrb.mxu0 %v11964_v24  ;;  %6986 = vmatpush.bf16.msrb.mxu1 %v12092_v26  ;;  %v13676_v24 = vld [vmem:[#allocation10 + $0x4c] sm:$0xf]  ;;  %v11885_v26 = vld [vmem:[#allocation10 + $0x58] sm:$0xf0] }
 0x5a5   :  { %6999 = vmatpush.bf16.msrb.mxu2 %v11968_v46  ;;  %7012 = vmatpush.bf16.msrb.mxu3 %v12096_v14  ;;  %v12012_v46 = vor.u32 %v13710_v4, %v12011_v38  ;;  %v11867_v14 = vld [vmem:[#allocation10 + $0x28] sm:$0xf]  ;;  %v11888_v43 = vor.u32 %v13676_v24, %v11885_v26  ;;  %v12196_v26 = vld [vmem:[#allocation10 + $0x2c0] sm:$0xf] }
 0x5a6   :  { %6955 = vmatmul.bf16.vlgmr.msra.gmra.mxu2 %v14659_v50  ;;  %6968 = vmatmul.bf16.vlgmr.msra.gmra.mxu3 %v14661_v58  ;;  %v11868_v34 = vor.u32 %v13674_v47, %v11867_v14  ;;  %v12324_v14 = vld [vmem:[#allocation10 + $0x3c0] sm:$0xf]  ;;  %v13789_v47 = vld [vmem:[#allocation10 + $0x3cc] sm:$0xf0] }
 0x5a8   :  { %6974 = vmatpush.bf16.msrb.mxu0 %v11948_v22  ;;  %6987 = vmatpush.bf16.msrb.mxu1 %v12076_v59  ;;  %v11869_v22 = vld [vmem:[#allocation10 + $0x38] sm:$0xf0]  ;;  %v13704_v59 = vld [vmem:[#allocation10 + $0x12c] sm:$0xf] }
 0x5a9   :  { %7000 = vmatpush.bf16.msrb.mxu2 %v11952_v52  ;;  %7013 = vmatpush.bf16.msrb.mxu3 %v12080_v62  ;;  %v11851_v52 = vld [vmem:[#allocation10 + $0x8] sm:$0xf]  ;;  %v13670_v62 = vld [vmem:[#allocation10 + $0x14] sm:$0xf0]  ;;  %v11872_v20 = vor.u32 %v13672_v31, %v11869_v22  ;;  %v12000_v49 = vor.u32 %v13704_v59, %v11997_v36  ;;  %v13787_v31 = vld [vmem:[#allocation10 + $0x3c4] sm:$0xf]  ;;  %v12201_v59 = vor.u32 %v13755_v27, %v12198_v39 }
 0x5aa   :  { %v12326_v36 = vld [vmem:[#allocation10 + $0x3d0] sm:$0xf0] }
 0x5ac   :  { %6975 = vmatpush.bf16.msrb.mxu0 %v11932_v10  ;;  %6988 = vmatpush.bf16.msrb.mxu1 %v12060_v42  ;;  %v11981_v10 = vld [vmem:[#allocation10 + $0x118] sm:$0xf0]  ;;  %v11852_v42 = vor.u32 %v13670_v62, %v11851_v52  ;;  %v12329_v52 = vor.u32 %v13787_v31, %v12326_v36  ;;  %v12180_v62 = vld [vmem:[#allocation10 + $0x2a0] sm:$0xf]  ;;  %v13741_v31 = vld [vmem:[#allocation10 + $0x24c] sm:$0xf0] }
 0x5ad   :  { %7001 = vmatpush.bf16.msrb.mxu2 %v11936_v11  ;;  %7014 = vmatpush.bf16.msrb.mxu3 %v12064_v44  ;;  %v11984_v11 = vor.u32 %v13700_v54, %v11981_v10  ;;  %v14678_v44 = vld [vmem:[%s14798_s3 + $0x4] sm:$0xf]  ;;  %v12182_v54 = vld [vmem:[#allocation10 + $0x2b0] sm:$0xf0] }
 0x5ae   :  { %v6043_v12 = vperm.slane %v14678_v44, 0  ;;  %v6044_v21 = vperm.slane %v14678_v44, 1  ;;  %v6045_v53 = vperm.slane %v14678_v44, 2  ;;  %v6046_v22 = vperm.slane %v14678_v44, 3 }
 0x5b0   :  { %6976 = vmatpush.bf16.msrb.mxu0 %v11916_v17  ;;  %6989 = vmatpush.bf16.msrb.mxu1 %v12044_v60 }
 0x5b1   :  { %7002 = vmatpush.bf16.msrb.mxu2 %v11920_v16  ;;  %7015 = vmatpush.bf16.msrb.mxu3 %v12048_v28  ;;  %v12212_v28 = vld [vmem:[#allocation10 + $0x2e0] sm:$0xf] }
 0x5b2   :  { %v12213_v57 = vor.u32 %v13761_v55, %v12212_v28  ;;  %v12166_v55 = vld [vmem:[#allocation10 + $0x290] sm:$0xf0] }
 0x5b4   :  { %6977 = vmatpush.bf16.msrb.mxu0 %v11900_v19  ;;  %6990 = vmatpush.bf16.msrb.mxu1 %v12028_v32  ;;  %v13759_v19 = vld [vmem:[#allocation10 + $0x2e4] sm:$0xf]  ;;  %v12341_v32 = vor.u32 %v13793_v25, %v12340_v29 }
 0x5b5   :  { %7003 = vmatpush.bf16.msrb.mxu2 %v11904_v51  ;;  %7016 = vmatpush.bf16.msrb.mxu3 %v12032_v15  ;;  %v12342_v51 = vld [vmem:[#allocation10 + $0x3f0] sm:$0xf0]  ;;  %v12217_v15 = vor.u32 %v13759_v19, %v12214_v2  ;;  %v13779_v29 = vld [vmem:[#allocation10 + $0x384] sm:$0xf]  ;;  %v12148_v2 = vld [vmem:[#allocation10 + $0x260] sm:$0xf] }
 0x5b6   :  { %v12345_v24 = vor.u32 %v13791_v35, %v12342_v51  ;;  %v13745_v35 = vld [vmem:[#allocation10 + $0x26c] sm:$0xf0]  ;;  %v12276_v51 = vld [vmem:[#allocation10 + $0x360] sm:$0xf] }
 0x5b8   :  { %6978 = vmatpush.bf16.msrb.mxu0 %v11884_v45  ;;  %6991 = vmatpush.bf16.msrb.mxu1 %v12012_v46  ;;  %v12197_v46 = vor.u32 %v13757_v41, %v12196_v26  ;;  %v13777_v26 = vld [vmem:[#allocation10 + $0x36c] sm:$0xf0]  ;;  %v13743_v41 = vld [vmem:[#allocation10 + $0x264] sm:$0xf] }
 0x5b9   :  { %7004 = vmatpush.bf16.msrb.mxu2 %v11888_v43  ;;  %7017 = vmatpush.bf16.msrb.mxu3 %v12016_v3  ;;  %v12325_v3 = vor.u32 %v13789_v47, %v12324_v14  ;;  %v12278_v14 = vld [vmem:[#allocation10 + $0x370] sm:$0xf0] }
 0x5bc   :  { %6979 = vmatpush.bf16.msrb.mxu0 %v11868_v34  ;;  %6992 = vmatpush.bf16.msrb.mxu1 %v11996_v48 }
 0x5bd   :  { %7005 = vmatpush.bf16.msrb.mxu2 %v11872_v20  ;;  %7018 = vmatpush.bf16.msrb.mxu3 %v12000_v49  ;;  %v13753_v20 = vld [vmem:[#allocation10 + $0x2ac] sm:$0xf0]  ;;  %v12308_v49 = vld [vmem:[#allocation10 + $0x3a0] sm:$0xf] }
 0x5be   :  { %v12181_v5 = vor.u32 %v13753_v20, %v12180_v62 }
 0x5c0   :  { %6980 = vmatpush.bf16.msrb.mxu0 %v11852_v42  ;;  %6993 = vmatpush.bf16.msrb.mxu1 %v11980_v56  ;;  %v12309_v42 = vor.u32 %v13785_v6, %v12308_v49  ;;  %v12185_v56 = vor.u32 %v13751_v8, %v12182_v54  ;;  %v13771_v49 = vld [vmem:[#allocation10 + $0x344] sm:$0xf] }
 0x5c1   :  { %7006 = vmatpush.bf16.msrb.mxu2 %v11856_v37  ;;  %7019 = vmatpush.bf16.msrb.mxu3 %v11984_v11  ;;  %v13783_v37 = vld [vmem:[#allocation10 + $0x3a4] sm:$0xf]  ;;  %v12310_v11 = vld [vmem:[#allocation10 + $0x3b0] sm:$0xf0] }
 0x5c3   :  { %6981 = vmatmul.bf16.vlgmr.msrb.gmra.mxu0 %v14659_v50  ;;  %6994 = vmatmul.bf16.vlgmr.msrb.gmra.mxu1 %v14661_v58 }
 0x5c4   :  { %7007 = vmatmul.bf16.vlgmr.msrb.gmra.mxu2 %v14659_v50  ;;  %7020 = vmatmul.bf16.vlgmr.msrb.gmra.mxu3 %v14661_v58 }
 0x5c5   :  { %7450 = vmatpush.bf16.msra.mxu0 %v12213_v57  ;;  %7463 = vmatpush.bf16.msra.mxu1 %v12341_v32 }
 0x5c6   :  { %7476 = vmatpush.bf16.msra.mxu2 %v12217_v15  ;;  %7489 = vmatpush.bf16.msra.mxu3 %v12345_v24  ;;  %v12149_v24 = vor.u32 %v13745_v35, %v12148_v2  ;;  %v12102_v2 = vld [vmem:[#allocation10 + $0x210] sm:$0xf0] }
 0x5c9   :  { %7451 = vmatpush.bf16.msra.mxu0 %v12197_v46  ;;  %7464 = vmatpush.bf16.msra.mxu1 %v12325_v3  ;;  %v13775_v46 = vld [vmem:[#allocation10 + $0x364] sm:$0xf] }
 0x5ca   :  { %7477 = vmatpush.bf16.msra.mxu2 %v12201_v59  ;;  %7490 = vmatpush.bf16.msra.mxu3 %v12329_v52  ;;  %v12281_v3 = vor.u32 %v13775_v46, %v12278_v14  ;;  %v12134_v52 = vld [vmem:[#allocation10 + $0x250] sm:$0xf0]  ;;  %v13762_v46 = vld [vmem:[#allocation10 + $0x2f4] sm:$0xf0]  ;;  %v12348_v14 = vld [vmem:[#allocation10 + $0x3e8] sm:$0xf] }
 0x5cd   :  { %7452 = vmatpush.bf16.msra.mxu0 %v12181_v5  ;;  %7465 = vmatpush.bf16.msra.mxu1 %v12309_v42  ;;  %v14691_v5 = vld [vmem:[%s14798_s3] sm:$0xf]  ;;  %v12116_v42 = vld [vmem:[#allocation10 + $0x220] sm:$0xf] }
 0x5ce   :  { %7478 = vmatpush.bf16.msra.mxu2 %v12185_v56  ;;  %v13737_v56 = vld [vmem:[#allocation10 + $0x22c] sm:$0xf0] }
 0x5f4   :  { %v6510_v59 = vpop.permute.xlu2 %6509 }
 0x5f5   :  { %vm6511_vm0 = vcmp.eq.s32.totalorder %v6510_v59, 1 }
 0x5f6   :  { %vm14701_vm1 = vmpackc.low %vm6511_vm0, %vm6511_vm0 }
 0x5ff   :  { %v6387_v18 = vpop.f32.mrf.mxu0  ;;  %v6400_v61 = vpop.f32.mrf.mxu1 }
 0x600   :  { %v6388_v13 = vadd.f32 %v6387_v18, %v6043_v12  ;;  %v12313_v12 = vor.u32 %v13783_v37, %v12310_v11  ;;  %v12244_v37 = vld [vmem:[#allocation10 + $0x320] sm:$0xf] }
 0x602   :  { %v6401_v23 = vadd.f32 %v6400_v61, %v6388_v13  ;;  %7491 = vmatpush.bf16.msra.mxu3 %v12313_v12  ;;  %v12117_v12 = vor.u32 %v13737_v56, %v12116_v42 }
 0x604   :  { %v6482_v16 = vmul.f32 0.5, %v6401_v23  ;;  %v13749_v23 = vld [vmem:[#allocation10 + $0x28c] sm:$0xf0] }
 0x606   :  { %v6413_v17 = vpop.f32.mrf.mxu2  ;;  %v6426_v60 = vpop.f32.mrf.mxu3  ;;  %14054 = vtanh.f32 %v6482_v16  ;;  %v13781_v16 = vld [vmem:[#allocation10 + $0x38c] sm:$0xf0] }
 0x607   :  { %v6414_v7 = vadd.f32 %v6413_v17, %v6044_v21  ;;  %v6389_v9 = vpop.f32.mrf.mxu0  ;;  %v6402_v50 = vpop.f32.mrf.mxu1  ;;  %v12164_v21 = vld [vmem:[#allocation10 + $0x280] sm:$0xf] }
 0x608   :  { %v12165_v9 = vor.u32 %v13749_v23, %v12164_v21  ;;  %v12292_v50 = vld [vmem:[#allocation10 + $0x380] sm:$0xf]  ;;  %v12118_v23 = vld [vmem:[#allocation10 + $0x230] sm:$0xf0] }
 0x609   :  { %v6427_v58 = vadd.f32 %v6426_v60, %v6414_v7  ;;  %v12293_v28 = vor.u32 %v13781_v16, %v12292_v50 }
 0x60a   :  { %7453 = vmatpush.bf16.msra.mxu0 %v12165_v9  ;;  %v6587_v9 = vperm.slane %v14691_v5, 1 }
 0x60b   :  { %v6486_v30 = vmul.f32 0.5, %v6427_v58  ;;  %v13747_v58 = vld [vmem:[#allocation10 + $0x284] sm:$0xf]  ;;  %7466 = vmatpush.bf16.msra.mxu1 %v12293_v28  ;;  %v12100_v28 = vld [vmem:[#allocation10 + $0x200] sm:$0xf] }
 0x60c   :  { %v14055_v34 = vpop.eup %14054  ;;  %v12169_v25 = vor.u32 %v13747_v58, %v12166_v55  ;;  %v13733_v55 = vld [vmem:[#allocation10 + $0x20c] sm:$0xf0] }
 0x60d   :  { %14056 = vtanh.f32 %v6486_v30  ;;  %v6484_v44 = vadd.f32 1.0, %v14055_v34  ;;  %v12294_v30 = vld [vmem:[#allocation10 + $0x390] sm:$0xf0]  ;;  %v13773_v34 = vld [vmem:[#allocation10 + $0x34c] sm:$0xf0] }
 0x60e   :  { %v6415_v38 = vpop.f32.mrf.mxu2  ;;  %v6428_v4 = vpop.f32.mrf.mxu3  ;;  %v12297_v19 = vor.u32 %v13779_v29, %v12294_v30  ;;  %7479 = vmatpush.bf16.msra.mxu2 %v12169_v25  ;;  %7454 = vmatpush.bf16.msra.mxu0 %v12149_v24  ;;  %v12228_v29 = vld [vmem:[#allocation10 + $0x300] sm:$0xf]  ;;  %v12101_v25 = vor.u32 %v13733_v55, %v12100_v28  ;;  %v13763_v24 = vld [vmem:[#allocation10 + $0x304] sm:$0xf] }
 0x60f   :  { %v6439_v1 = vpop.f32.mrf.mxu0  ;;  %v6452_v45 = vpop.f32.mrf.mxu1 }
 0x610   :  { %v6440_v43 = vadd.f32 %v6439_v1, %v6045_v53  ;;  %v6485_v53 = vmul.f32 0.5, %v6484_v44  ;;  %7492 = vmatpush.bf16.msra.mxu3 %v12297_v19  ;;  %v12277_v1 = vor.u32 %v13777_v26, %v12276_v51  ;;  %v6586_v44 = vperm.slane %v14691_v5, 0  ;;  %v13765_v19 = vld [vmem:[#allocation10 + $0x30c] sm:$0xf0]  ;;  %v12230_v26 = vld [vmem:[#allocation10 + $0x310] sm:$0xf0] }
 0x612   :  { %v6453_v48 = vadd.f32 %v6452_v45, %v6440_v43  ;;  %v12150_v45 = vld [vmem:[#allocation10 + $0x270] sm:$0xf0]  ;;  %7467 = vmatpush.bf16.msra.mxu1 %v12277_v1 }
 0x613   :  { %v14057_v63 = vpop.eup %14056  ;;  %v12153_v43 = vor.u32 %v13743_v41, %v12150_v45  ;;  %v12220_v41 = vld [vmem:[#allocation10 + $0x2e8] sm:$0xf]  ;;  %v12233_v45 = vor.u32 %v13763_v24, %v12230_v26  ;;  %v6588_v26 = vperm.slane %v14691_v5, 2 }
 0x614   :  { %v6488_v10 = vadd.f32 1.0, %v14057_v63  ;;  %14058 = vtanh.f32 %v6453_v48  ;;  %v13739_v48 = vld [vmem:[#allocation10 + $0x244] sm:$0xf]  ;;  %7493 = vmatpush.bf16.msra.mxu3 %v12281_v3  ;;  %v12262_v63 = vld [vmem:[#allocation10 + $0x350] sm:$0xf0] }
 0x615   :  { %7480 = vmatpush.bf16.msra.mxu2 %v12153_v43  ;;  %v12137_v20 = vor.u32 %v13739_v48, %v12134_v52  ;;  %v12265_v54 = vor.u32 %v13771_v49, %v12262_v63  ;;  %v13794_v43 = vld [vmem:[#allocation10 + $0x3f4] sm:$0xf0]  ;;  %v12204_v48 = vld [vmem:[#allocation10 + $0x2c8] sm:$0xf] }
 0x616   :  { %v6489_v18 = vmul.f32 0.5, %v6488_v10  ;;  %v6465_v61 = vpop.f32.mrf.mxu2  ;;  %v6478_v13 = vpop.f32.mrf.mxu3  ;;  %v12332_v49 = vld [vmem:[#allocation10 + $0x3c8] sm:$0xf]  ;;  %v13790_v63 = vld [vmem:[#allocation10 + $0x3d4] sm:$0xf0] }
 0x617   :  { %v6466_v17 = vadd.f32 %v6465_v61, %v6046_v22  ;;  %v6441_v60 = vpop.f32.mrf.mxu0  ;;  %v6454_v7 = vpop.f32.mrf.mxu1  ;;  %v12260_v22 = vld [vmem:[#allocation10 + $0x340] sm:$0xf]  ;;  %v13735_v61 = vld [vmem:[#allocation10 + $0x224] sm:$0xf]  ;;  %v12333_v56 = vor.u32 %v13790_v63, %v12332_v49  ;;  %v12142_v49 = vld [vmem:[#allocation10 + $0x258] sm:$0xf0] }
 0x618   :  { %v6496_v15 = vmul.f32 %v6489_v18, %v14611_v33  ;;  %v12132_v33 = vld [vmem:[#allocation10 + $0x240] sm:$0xf]  ;;  %v12261_v62 = vor.u32 %v13773_v34, %v12260_v22  ;;  %7494 = vmatpush.bf16.msra.mxu3 %v12265_v54  ;;  %v13769_v18 = vld [vmem:[#allocation10 + $0x32c] sm:$0xf0]  ;;  %v12246_v60 = vld [vmem:[#allocation10 + $0x330] sm:$0xf0]  ;;  %v12121_v16 = vor.u32 %v13735_v61, %v12118_v23 }
 0x619   :  { %v6479_v57 = vadd.f32 %v6478_v13, %v6466_v17  ;;  %v12133_v36 = vor.u32 %v13741_v31, %v12132_v33  ;;  %7481 = vmatpush.bf16.msra.mxu2 %v12137_v20  ;;  %v12245_v21 = vor.u32 %v13769_v18, %v12244_v37  ;;  %v13767_v17 = vld [vmem:[#allocation10 + $0x324] sm:$0xf]  ;;  %v13760_v33 = vld [vmem:[#allocation10 + $0x2ec] sm:$0xf]  ;;  %v12222_v31 = vld [vmem:[#allocation10 + $0x2f8] sm:$0xf0] }
 0x61a   :  { %v14059_v32 = vpop.eup %14058  ;;  %7468 = vmatpush.bf16.msra.mxu1 %v12261_v62  ;;  %v12249_v58 = vor.u32 %v13767_v17, %v12246_v60  ;;  %v13792_v22 = vld [vmem:[#allocation10 + $0x3ec] sm:$0xf]  ;;  %v12350_v34 = vld [vmem:[#allocation10 + $0x3f8] sm:$0xf0]  ;;  %v13758_v62 = vld [vmem:[#allocation10 + $0x2d4] sm:$0xf0] }
 0x61b   :  { %v6497_v38 = vmul.f32 %v14059_v32, %v6485_v53  ;;  %v6491_v4 = vmul.f32 0.5, %v6479_v57  ;;  %7455 = vmatpush.bf16.msra.mxu0 %v12133_v36  ;;  %v13731_v32 = vld [vmem:[#allocation10 + $0x204] sm:$0xf]  ;;  %v12225_v36 = vor.u32 %v13760_v33, %v12222_v31  ;;  %v12353_v52 = vor.u32 %v13792_v22, %v12350_v34  ;;  %v13756_v54 = vld [vmem:[#allocation10 + $0x2cc] sm:$0xf] }
 0x61c   :  { %7495 = vmatpush.bf16.msra.mxu3 %v12249_v58  ;;  %v12205_v20 = vor.u32 %v13758_v62, %v12204_v48  ;;  %v12206_v37 = vld [vmem:[#allocation10 + $0x2d8] sm:$0xf0]  ;;  %v13754_v23 = vld [vmem:[#allocation10 + $0x2b4] sm:$0xf0]  ;;  %v6589_v31 = vperm.slane %v14691_v5, 3 }
 0x61d   :  { %v14685_v47 = vadd.f32 %v6497_v38, %v6496_v15  ;;  %14060 = vtanh.f32 %v6491_v4  ;;  %7482 = vmatpush.bf16.msra.mxu2 %v12121_v16  ;;  %v6506_v15 = vld [vmem:[#allocation6] sm:$0xf]  ;;  %v12229_v38 = vor.u32 %v13765_v19, %v12228_v29  ;;  %v12105_v4 = vor.u32 %v13731_v32, %v12102_v2  ;;  %v13784_v16 = vld [vmem:[#allocation10 + $0x3ac] sm:$0xf]  ;;  %v13782_v32 = vld [vmem:[#allocation10 + $0x394] sm:$0xf0] }
 0x61e   :  { %v6467_v27 = vpop.f32.mrf.mxu2  ;;  %v6480_v39 = vpop.f32.mrf.mxu3  ;;  %7469 = vmatpush.bf16.msra.mxu1 %v12245_v21  ;;  %v12209_v61 = vor.u32 %v13756_v54, %v12206_v37  ;;  %v12188_v21 = vld [vmem:[#allocation10 + $0x2a8] sm:$0xf]  ;;  %v12318_v29 = vld [vmem:[#allocation10 + $0x3b8] sm:$0xf0]  ;;  %v13748_v2 = vld [vmem:[#allocation10 + $0x28c] sm:$0xf] }
 0x61f   :  { %14062 = vtanh.f32 %v14685_v47  ;;  %7456 = vmatpush.bf16.msra.mxu0 %v12117_v12  ;;  %v12221_v27 = vor.u32 %v13762_v46, %v12220_v41  ;;  %v12349_v39 = vor.u32 %v13794_v43, %v12348_v14  ;;  %v12189_v60 = vor.u32 %v13754_v23, %v12188_v21  ;;  %v12156_v41 = vld [vmem:[#allocation10 + $0x268] sm:$0xf]  ;;  %v13778_v14 = vld [vmem:[#allocation10 + $0x374] sm:$0xf0]  ;;  %v13744_v43 = vld [vmem:[#allocation10 + $0x26c] sm:$0xf] }
 0x620   :  { %v14693_v6 = vpop.f32.mrf.mxu0  ;;  %v14695_v8 = vpop.f32.mrf.mxu1  ;;  %7496 = vmatpush.bf16.msra.mxu3 %v12233_v45  ;;  %v12284_v46 = vld [vmem:[#allocation10 + $0x368] sm:$0xf]  ;;  %v12286_v33 = vld [vmem:[#allocation10 + $0x378] sm:$0xf0]  ;;  %v13742_v34 = vld [vmem:[#allocation10 + $0x254] sm:$0xf0] }
 0x621   :  { %7483 = vmatpush.bf16.msra.mxu2 %v12105_v4  ;;  %v12302_v4 = vld [vmem:[#allocation10 + $0x398] sm:$0xf0]  ;;  %v12268_v48 = vld [vmem:[#allocation10 + $0x348] sm:$0xf]  ;;  %v13774_v62 = vld [vmem:[#allocation10 + $0x354] sm:$0xf0] }
 0x622   :  { %7470 = vmatpush.bf16.msra.mxu1 %v12229_v38  ;;  %v13780_v38 = vld [vmem:[#allocation10 + $0x38c] sm:$0xf]  ;;  %v12270_v5 = vld [vmem:[#allocation10 + $0x358] sm:$0xf0]  ;;  %v13770_v21 = vld [vmem:[#allocation10 + $0x334] sm:$0xf0] }
 0x623   :  { %v14061_v10 = vpop.eup %14060  ;;  %7457 = vmatpush.bf16.msra.mxu0 %v12101_v25  ;;  %v12300_v25 = vld [vmem:[#allocation10 + $0x388] sm:$0xf]  ;;  %v12305_v24 = vor.u32 %v13780_v38, %v12302_v4  ;;  %v13772_v37 = vld [vmem:[#allocation10 + $0x34c] sm:$0xf] }
 0x624   :  { %v6493_v11 = vadd.f32 1.0, %v14061_v10  ;;  %v6931_v10 = vadd.f32 %v14693_v6, %v6586_v44  ;;  %7541 = vmatpush.bf16.msrb.mxu3 %v12353_v52  ;;  %v13752_v6 = vld [vmem:[#allocation10 + $0x2ac] sm:$0xf]  ;;  %v12190_v44 = vld [vmem:[#allocation10 + $0x2b8] sm:$0xf0] }
 0x625   :  { %v14063_v13 = vpop.eup %14062  ;;  %7528 = vmatpush.bf16.msrb.mxu2 %v12225_v36  ;;  %v12193_v55 = vor.u32 %v13752_v6, %v12190_v44  ;;  %v12140_v36 = vld [vmem:[#allocation10 + $0x248] sm:$0xf]  ;;  %v13736_v23 = vld [vmem:[#allocation10 + $0x22c] sm:$0xf] }
 0x626   :  { %v6494_v7 = vmul.f32 0.5, %v6493_v11  ;;  %7515 = vmatpush.bf16.msrb.mxu1 %v12349_v39  ;;  %v13788_v11 = vld [vmem:[#allocation10 + $0x3cc] sm:$0xf]  ;;  %v6944_v58 = vadd.f32 %v14695_v8, %v6931_v10  ;;  %v12141_v52 = vor.u32 %v13742_v34, %v12140_v36 }
 0x627   :  { %7502 = vmatpush.bf16.msrb.mxu0 %v12221_v27  ;;  %v12158_v27 = vld [vmem:[#allocation10 + $0x278] sm:$0xf0]  ;;  %v13776_v39 = vld [vmem:[#allocation10 + $0x36c] sm:$0xf] }
 0x628   :  { %v6500_v30 = vmul.f32 %v14063_v13, %v6494_v7  ;;  %v6932_v35 = vpop.f32.mrf.mxu0  ;;  %v6945_v51 = vpop.f32.mrf.mxu1  ;;  %v12334_v13 = vld [vmem:[#allocation10 + $0x3d8] sm:$0xf0]  ;;  %v12316_v7 = vld [vmem:[#allocation10 + $0x3a8] sm:$0xf]  ;;  %v7025_v8 = vmul.f32 0.5, %v6944_v58  ;;  %v12161_v22 = vor.u32 %v13744_v43, %v12158_v27 }
 0x629   :  { %v6956_v53 = vpop.f32.mrf.mxu2  ;;  %v6969_v57 = vpop.f32.mrf.mxu3  ;;  %v12337_v17 = vor.u32 %v13788_v11, %v12334_v13  ;;  %7529 = vmatpush.bf16.msrb.mxu2 %v12209_v61  ;;  %v12174_v35 = vld [vmem:[#allocation10 + $0x298] sm:$0xf0]  ;;  %v12301_v51 = vor.u32 %v13782_v32, %v12300_v25  ;;  %v12124_v11 = vld [vmem:[#allocation10 + $0x228] sm:$0xf]  ;;  %v13738_v61 = vld [vmem:[#allocation10 + $0x234] sm:$0xf0] }
 0x62a   :  { %v6502_v1 = vpack.c.bf16 %v6500_v30, %v6500_v30  ;;  %v6957_v3 = vadd.f32 %v6956_v53, %v6587_v9  ;;  %7516 = vmatpush.bf16.msrb.mxu1 %v12333_v56  ;;  %v13786_v9 = vld [vmem:[#allocation10 + $0x3b4] sm:$0xf0]  ;;  %v12321_v30 = vor.u32 %v13784_v16, %v12318_v29  ;;  %v12172_v53 = vld [vmem:[#allocation10 + $0x288] sm:$0xf]  ;;  %v12125_v6 = vor.u32 %v13738_v61, %v12124_v11  ;;  %v12254_v16 = vld [vmem:[#allocation10 + $0x338] sm:$0xf0] }
 0x62b   :  { %7503 = vmatpush.bf16.msrb.mxu0 %v12205_v20  ;;  %v12317_v50 = vor.u32 %v13786_v9, %v12316_v7  ;;  %7542 = vmatpush.bf16.msrb.mxu3 %v12337_v17  ;;  %v13740_v20 = vld [vmem:[#allocation10 + $0x24c] sm:$0xf]  ;;  %v12252_v13 = vld [vmem:[#allocation10 + $0x328] sm:$0xf]  ;;  %v12126_v17 = vld [vmem:[#allocation10 + $0x238] sm:$0xf0] }
 0x62c   :  { %6503 = vst [vmem:[#allocation3 + $0x4] sm:$0xf] %v6502_v1  ;;  %v6513_v59 = vsel %vm14701_vm1, %v6502_v1, %v6506_v15  ;;  %v6970_v42 = vadd.f32 %v6969_v57, %v6957_v3  ;;  %v13750_v57 = vld [vmem:[#allocation10 + $0x294] sm:$0xf0]  ;;  %v12177_v15 = vor.u32 %v13748_v2, %v12174_v35  ;;  %v12285_v3 = vor.u32 %v13778_v14, %v12284_v46  ;;  %v12108_v58 = vld [vmem:[#allocation10 + $0x208] sm:$0xf] }
 0x62d   :  { %6514 = vst [vmem:[#allocation6] sm:$0xf] %v6513_v59  ;;  %v12173_v19 = vor.u32 %v13750_v57, %v12172_v53  ;;  %7530 = vmatpush.bf16.msrb.mxu2 %v12193_v55  ;;  %v13746_v1 = vld [vmem:[#allocation10 + $0x274] sm:$0xf0]  ;;  %v12289_v59 = vor.u32 %v13776_v39, %v12286_v33  ;;  %v12145_v56 = vor.u32 %v13740_v20, %v12142_v49  ;;  %v12236_v29 = vld [vmem:[#allocation10 + $0x308] sm:$0xf] }
 0x62e   :  { %v7029_v28 = vmul.f32 0.5, %v6970_v42  ;;  %7517 = vmatpush.bf16.msrb.mxu1 %v12317_v50  ;;  %v12157_v45 = vor.u32 %v13746_v1, %v12156_v41  ;;  %v12269_v42 = vor.u32 %v13774_v62, %v12268_v48  ;;  %v12253_v44 = vor.u32 %v13770_v21, %v12252_v13  ;;  %v13734_v55 = vld [vmem:[#allocation10 + $0x214] sm:$0xf0]  ;;  %v13732_v57 = vld [vmem:[#allocation10 + $0x20c] sm:$0xf] }
 0x62f   :  { %7504 = vmatpush.bf16.msrb.mxu0 %v12189_v60  ;;  %7543 = vmatpush.bf16.msrb.mxu3 %v12321_v30  ;;  %v13768_v60 = vld [vmem:[#allocation10 + $0x32c] sm:$0xf]  ;;  %v13766_v30 = vld [vmem:[#allocation10 + $0x314] sm:$0xf0]  ;;  %v12110_v25 = vld [vmem:[#allocation10 + $0x218] sm:$0xf0] }
 0x630   :  { %14064 = vtanh.f32 %v7029_v28  ;;  %v12129_v28 = vor.u32 %v13736_v23, %v12126_v17  ;;  %v12257_v53 = vor.u32 %v13768_v60, %v12254_v16  ;;  %v13764_v32 = vld [vmem:[#allocation10 + $0x30c] sm:$0xf]  ;;  %v12238_v2 = vld [vmem:[#allocation10 + $0x318] sm:$0xf0]  ;;  %v12237_v38 = vor.u32 %v13766_v30, %v12236_v29  ;;  %v13825_v62 = vld [vmem:[#allocation10 + $0xec] sm:$0xf0] }
 0x631   :  { %v6958_v12 = vpop.f32.mrf.mxu2  ;;  %v6971_v18 = vpop.f32.mrf.mxu3  ;;  %7531 = vmatpush.bf16.msrb.mxu2 %v12177_v15  ;;  %14066 = vtanh.f32 %v7025_v8  ;;  %v12109_v15 = vor.u32 %v13734_v55, %v12108_v58  ;;  %v12113_v41 = vor.u32 %v13732_v57, %v12110_v25  ;;  %v12241_v1 = vor.u32 %v13764_v32, %v12238_v2  ;;  %v12596_v20 = vld [vmem:[#allocation10 + $0x1e0] sm:$0xf]  ;;  %v13821_v21 = vld [vmem:[#allocation10 + $0xcc] sm:$0xf0]  ;;  %v13815_v25 = vld [vmem:[#allocation10 + $0xa4] sm:$0xf] }
 0x632   :  { %7518 = vmatpush.bf16.msrb.mxu1 %v12301_v51  ;;  %v12273_v18 = vor.u32 %v13772_v37, %v12270_v5  ;;  %v13855_v37 = vld [vmem:[#allocation10 + $0x1e4] sm:$0xf]  ;;  %v12598_v5 = vld [vmem:[#allocation10 + $0x1f0] sm:$0xf0]  ;;  %v12452_v13 = vld [vmem:[#allocation10 + $0xc0] sm:$0xf] }
 0x633   :  { %7505 = vmatpush.bf16.msrb.mxu0 %v12173_v19  ;;  %7544 = vmatpush.bf16.msrb.mxu3 %v12305_v24  ;;  %v12601_v17 = vor.u32 %v13855_v37, %v12598_v5  ;;  %v12580_v60 = vld [vmem:[#allocation10 + $0x1c0] sm:$0xf]  ;;  %v12453_v16 = vor.u32 %v13821_v21, %v12452_v13  ;;  %v13817_v55 = vld [vmem:[#allocation10 + $0xac] sm:$0xf0]  ;;  %v13847_v32 = vld [vmem:[#allocation10 + $0x1a4] sm:$0xf] }
 0x634   :  { %v13849_v57 = vld [vmem:[#allocation10 + $0x1ac] sm:$0xf0]  ;;  %v12566_v2 = vld [vmem:[#allocation10 + $0x1b0] sm:$0xf0]  ;;  %v13835_v5 = vld [vmem:[#allocation10 + $0x144] sm:$0xf] }
 0x635   :  { %7532 = vmatpush.bf16.msrb.mxu2 %v12161_v22  ;;  %v12390_v37 = vld [vmem:[#allocation10 + $0x50] sm:$0xf0]  ;;  %v12372_v21 = vld [vmem:[#allocation10 + $0x20] sm:$0xf] }
 0x636   :  { %7519 = vmatpush.bf16.msrb.mxu1 %v12285_v3  ;;  %v14065_v63 = vpop.eup %14064 }
 0x637   :  { %7506 = vmatpush.bf16.msrb.mxu0 %v12157_v45  ;;  %7545 = vmatpush.bf16.msrb.mxu3 %v12289_v59  ;;  %v14067_v7 = vpop.eup %14066  ;;  %v7031_v9 = vadd.f32 1.0, %v14065_v63  ;;  %v13857_v63 = vld [vmem:[#allocation10 + $0x1ec] sm:$0xf0] }
 0x638   :  { %v7027_v19 = vadd.f32 1.0, %v14067_v7  ;;  %v12597_v61 = vor.u32 %v13857_v63, %v12596_v20  ;;  %v13853_v7 = vld [vmem:[#allocation10 + $0x1cc] sm:$0xf0]  ;;  %v12388_v20 = vld [vmem:[#allocation10 + $0x40] sm:$0xf] }
 0x639   :  { %7533 = vmatpush.bf16.msrb.mxu2 %v12145_v56  ;;  %v7032_v4 = vmul.f32 0.5, %v7031_v9  ;;  %v12470_v56 = vld [vmem:[#allocation10 + $0xf0] sm:$0xf0]  ;;  %v13819_v9 = vld [vmem:[#allocation10 + $0xc4] sm:$0xf]  ;;  %v12581_v58 = vor.u32 %v13853_v7, %v12580_v60 }
 0x63a   :  { %7520 = vmatpush.bf16.msrb.mxu1 %v12269_v42  ;;  %v7028_v45 = vmul.f32 0.5, %v7027_v19  ;;  %v12438_v19 = vld [vmem:[#allocation10 + $0xb0] sm:$0xf0]  ;;  %v12500_v7 = vld [vmem:[#allocation10 + $0x120] sm:$0xf] }
 0x63b   :  { %7507 = vmatpush.bf16.msrb.mxu0 %v12141_v52  ;;  %7546 = vmatpush.bf16.msrb.mxu3 %v12273_v18  ;;  %v7039_v43 = vmul.f32 %v7032_v4, %v14640_v40  ;;  %v12468_v40 = vld [vmem:[#allocation10 + $0xe0] sm:$0xf]  ;;  %v12441_v4 = vor.u32 %v13815_v25, %v12438_v19 }
 0x63c   :  { %v12469_v18 = vor.u32 %v13825_v62, %v12468_v40 }
 0x63d   :  { %7534 = vmatpush.bf16.msrb.mxu2 %v12129_v28  ;;  %v12436_v28 = vld [vmem:[#allocation10 + $0xa0] sm:$0xf] }
 0x63e   :  { %7521 = vmatpush.bf16.msrb.mxu1 %v12253_v44  ;;  %v12582_v44 = vld [vmem:[#allocation10 + $0x1d0] sm:$0xf0] }
 0x63f   :  { %7508 = vmatpush.bf16.msrb.mxu0 %v12125_v6  ;;  %7547 = vmatpush.bf16.msrb.mxu3 %v12257_v53  ;;  %v13851_v6 = vld [vmem:[#allocation10 + $0x1c4] sm:$0xf]  ;;  %v12564_v53 = vld [vmem:[#allocation10 + $0x1a0] sm:$0xf] }
 0x640   :  { %v6982_v54 = vpop.f32.mrf.mxu0  ;;  %v6995_v10 = vpop.f32.mrf.mxu1  ;;  %v12585_v30 = vor.u32 %v13851_v6, %v12582_v44  ;;  %v12374_v6 = vld [vmem:[#allocation10 + $0x30] sm:$0xf0]  ;;  %v13831_v44 = vld [vmem:[#allocation10 + $0x124] sm:$0xf] }
 0x641   :  { %v6983_v12 = vadd.f32 %v6982_v54, %v6588_v26  ;;  %7535 = vmatpush.bf16.msrb.mxu2 %v12113_v41  ;;  %v13823_v54 = vld [vmem:[#allocation10 + $0xe4] sm:$0xf] }
 0x642   :  { %7522 = vmatpush.bf16.msrb.mxu1 %v12237_v38  ;;  %v12473_v23 = vor.u32 %v13823_v54, %v12470_v56  ;;  %v13813_v38 = vld [vmem:[#allocation10 + $0x8c] sm:$0xf0]  ;;  %v13811_v41 = vld [vmem:[#allocation10 + $0x84] sm:$0xf] }
 0x643   :  { %v6996_v50 = vadd.f32 %v6995_v10, %v6983_v12  ;;  %7509 = vmatpush.bf16.msrb.mxu0 %v12109_v15  ;;  %7548 = vmatpush.bf16.msrb.mxu3 %v12241_v1  ;;  %v12420_v15 = vld [vmem:[#allocation10 + $0x80] sm:$0xf]  ;;  %v12422_v1 = vld [vmem:[#allocation10 + $0x90] sm:$0xf0]  ;;  %v13803_v56 = vld [vmem:[#allocation10 + $0x44] sm:$0xf] }
 0x645   :  { %14068 = vtanh.f32 %v6996_v50  ;;  %v12454_v50 = vld [vmem:[#allocation10 + $0xd0] sm:$0xf0] }
 0x646   :  { %v12457_v29 = vor.u32 %v13819_v9, %v12454_v50  ;;  %v13833_v9 = vld [vmem:[#allocation10 + $0x12c] sm:$0xf0]  ;;  %v13799_v50 = vld [vmem:[#allocation10 + $0x24] sm:$0xf] }
 0x647   :  { %v7008_v35 = vpop.f32.mrf.mxu2  ;;  %v7021_v51 = vpop.f32.mrf.mxu3  ;;  %v12377_v25 = vor.u32 %v13799_v50, %v12374_v6  ;;  %v12428_v50 = vld [vmem:[#allocation10 + $0x88] sm:$0xf]  ;;  %v13814_v6 = vld [vmem:[#allocation10 + $0x94] sm:$0xf0] }
 0x648   :  { %v7009_v8 = vadd.f32 %v7008_v35, %v6589_v31  ;;  %v6984_v24 = vpop.f32.mrf.mxu0  ;;  %v6997_v26 = vpop.f32.mrf.mxu1  ;;  %v12437_v35 = vor.u32 %v13817_v55, %v12436_v28  ;;  %v12484_v28 = vld [vmem:[#allocation10 + $0x100] sm:$0xf] }
 0x649   :  { %v12548_v24 = vld [vmem:[#allocation10 + $0x180] sm:$0xf]  ;;  %v13845_v26 = vld [vmem:[#allocation10 + $0x18c] sm:$0xf0] }
 0x64a   :  { %v7022_v46 = vadd.f32 %v7021_v51, %v7009_v8  ;;  %v12565_v51 = vor.u32 %v13849_v57, %v12564_v53  ;;  %v12569_v8 = vor.u32 %v13847_v32, %v12566_v2  ;;  %v13795_v53 = vld [vmem:[#allocation10 + $0x4] sm:$0xf]  ;;  %v12358_v32 = vld [vmem:[#allocation10 + $0x10] sm:$0xf0] }
 0x64b   :  { %v14069_v14 = vpop.eup %14068  ;;  %v13827_v2 = vld [vmem:[#allocation10 + $0x104] sm:$0xf] }
 0x64c   :  { %v7040_v3 = vmul.f32 %v14069_v14, %v7028_v45  ;;  %v7034_v27 = vmul.f32 0.5, %v7022_v46  ;;  %v13843_v45 = vld [vmem:[#allocation10 + $0x184] sm:$0xf]  ;;  %v12550_v46 = vld [vmem:[#allocation10 + $0x190] sm:$0xf0]  ;;  %v12421_v14 = vor.u32 %v13813_v38, %v12420_v15 }
 0x64d   :  { %v13826_v15 = vld [vmem:[#allocation10 + $0xf4] sm:$0xf0] }
 0x64e   :  { %v14714_v39 = vadd.f32 %v7040_v3, %v7039_v43  ;;  %14070 = vtanh.f32 %v7034_v27  ;;  %v12549_v43 = vor.u32 %v13845_v26, %v12548_v24  ;;  %v12404_v3 = vld [vmem:[#allocation10 + $0x60] sm:$0xf]  ;;  %v13809_v27 = vld [vmem:[#allocation10 + $0x6c] sm:$0xf0]  ;;  %v13824_v24 = vld [vmem:[#allocation10 + $0xec] sm:$0xf] }
 0x64f   :  { %v7010_v33 = vpop.f32.mrf.mxu2  ;;  %v7023_v31 = vpop.f32.mrf.mxu3  ;;  %v12405_v40 = vor.u32 %v13809_v27, %v12404_v3 }
 0x650   :  { %14072 = vtanh.f32 %v14714_v39  ;;  %v12425_v33 = vor.u32 %v13811_v41, %v12422_v1  ;;  %v12553_v31 = vor.u32 %v13843_v45, %v12550_v46  ;;  %v12478_v1 = vld [vmem:[#allocation10 + $0xf8] sm:$0xf0]  ;;  %v13856_v45 = vld [vmem:[#allocation10 + $0x1ec] sm:$0xf] }
 0x651   :  { %v12606_v46 = vld [vmem:[#allocation10 + $0x1f8] sm:$0xf0] }
 0x654   :  { %v14071_v22 = vpop.eup %14070 }
 0x655   :  { %v7036_v59 = vadd.f32 1.0, %v14071_v22  ;;  %v12532_v22 = vld [vmem:[#allocation10 + $0x160] sm:$0xf] }
 0x656   :  { %v14073_v36 = vpop.eup %14072 }
 0x657   :  { %v7037_v34 = vmul.f32 0.5, %v7036_v59  ;;  %v13841_v59 = vld [vmem:[#allocation10 + $0x16c] sm:$0xf0] }
 0x658   :  { %v12533_v62 = vor.u32 %v13841_v59, %v12532_v22  ;;  %v12460_v22 = vld [vmem:[#allocation10 + $0xc8] sm:$0xf]  ;;  %v13822_v59 = vld [vmem:[#allocation10 + $0xd4] sm:$0xf0] }
 0x659   :  { %v7043_v48 = vmul.f32 %v14073_v36, %v7037_v34  ;;  %v13807_v36 = vld [vmem:[#allocation10 + $0x64] sm:$0xf]  ;;  %v12406_v34 = vld [vmem:[#allocation10 + $0x70] sm:$0xf0] }
 0x65a   :  { %v12409_v63 = vor.u32 %v13807_v36, %v12406_v34  ;;  %v12481_v36 = vor.u32 %v13824_v24, %v12478_v1  ;;  %v12609_v34 = vor.u32 %v13856_v45, %v12606_v46  ;;  %v13806_v1 = vld [vmem:[#allocation10 + $0x54] sm:$0xf0] }
 0x65b   :  { %v7045_v52 = vpack.c.bf16 %v7043_v48, %v7043_v48  ;;  %v13839_v48 = vld [vmem:[#allocation10 + $0x164] sm:$0xf] }
 0x65d   :  { %7047 = vst [vmem:[#allocation3] sm:$0xf] %v7045_v52 }
 0x65e   :  { %7046 = vst [vmem:[#allocation2 + $0x4] sm:$0xf] %v7045_v52  ;;  %v12534_v52 = vld [vmem:[#allocation10 + $0x170] sm:$0xf0] }
 0x65f   :  { %v12537_v54 = vor.u32 %v13839_v48, %v12534_v52  ;;  %v12588_v48 = vld [vmem:[#allocation10 + $0x1c8] sm:$0xf]  ;;  %v13854_v52 = vld [vmem:[#allocation10 + $0x1d4] sm:$0xf0] }
 0x664   :  { %v7048_v49 = vld [vmem:[#allocation3] sm:$0xff] }
 0x665   :  { %v7124_v10 = vunpack.c.l.b16 %v7048_v49  ;;  %v7125_v42 = vunpack.c.h.b16 %v7048_v49  ;;  %v13805_v49 = vld [vmem:[#allocation10 + $0x4c] sm:$0xf0] }
 0x666   :  { %v7591_v38 = vld [vmem:[#allocation2] sm:$0xff] }
 0x667   :  { %v14717_v11 = vpack.c.b16 %v7124_v10, %v7124_v10  ;;  %v14719_v12 = vpack.c.b16 %v7125_v42, %v7125_v42  ;;  %v12516_v10 = vld [vmem:[#allocation10 + $0x140] sm:$0xf]  ;;  %v13837_v42 = vld [vmem:[#allocation10 + $0x14c] sm:$0xf0]  ;;  %v7667_v3 = vunpack.c.l.b16 %v7591_v38 }
 0x668   :  { %v12517_v13 = vor.u32 %v13837_v42, %v12516_v10  ;;  %v12461_v10 = vor.u32 %v13822_v59, %v12460_v22  ;;  %v12589_v42 = vor.u32 %v13854_v52, %v12588_v48 }
 0x669   :  { %7458 = vmatmul.bf16.vlgmr.msra.gmra.mxu0 %v14717_v11  ;;  %7471 = vmatmul.bf16.vlgmr.msra.gmra.mxu1 %v14719_v12 }
 0x66a   :  { %7484 = vmatmul.bf16.vlgmr.msra.gmra.mxu2 %v14717_v11  ;;  %7497 = vmatmul.bf16.vlgmr.msra.gmra.mxu3 %v14719_v12 }
 0x66b   :  { %7993 = vmatpush.bf16.msra.mxu0 %v12469_v18  ;;  %8006 = vmatpush.bf16.msra.mxu1 %v12597_v61  ;;  %v12518_v18 = vld [vmem:[#allocation10 + $0x150] sm:$0xf0]  ;;  %v12389_v61 = vor.u32 %v13805_v49, %v12388_v20  ;;  %v13852_v20 = vld [vmem:[#allocation10 + $0x1cc] sm:$0xf]  ;;  %v12590_v49 = vld [vmem:[#allocation10 + $0x1d8] sm:$0xf0] }
 0x66c   :  { %8019 = vmatpush.bf16.msra.mxu2 %v12473_v23  ;;  %8032 = vmatpush.bf16.msra.mxu3 %v12601_v17  ;;  %v13801_v23 = vld [vmem:[#allocation10 + $0x2c] sm:$0xf0]  ;;  %v12393_v17 = vor.u32 %v13803_v56, %v12390_v37  ;;  %v12521_v60 = vor.u32 %v13835_v5, %v12518_v18  ;;  %v12444_v56 = vld [vmem:[#allocation10 + $0xa8] sm:$0xf]  ;;  %v13818_v37 = vld [vmem:[#allocation10 + $0xb4] sm:$0xf0]  ;;  %v12593_v18 = vor.u32 %v13852_v20, %v12590_v49 }
 0x66d   :  { %v12373_v55 = vor.u32 %v13801_v23, %v12372_v21  ;;  %v13816_v21 = vld [vmem:[#allocation10 + $0xac] sm:$0xf]  ;;  %v12446_v23 = vld [vmem:[#allocation10 + $0xb8] sm:$0xf0] }
 0x66e   :  { %v13800_v20 = vld [vmem:[#allocation10 + $0x2c] sm:$0xf]  ;;  %v12382_v49 = vld [vmem:[#allocation10 + $0x38] sm:$0xf0] }
 0x66f   :  { %7994 = vmatpush.bf16.msra.mxu0 %v12453_v16  ;;  %8007 = vmatpush.bf16.msra.mxu1 %v12581_v58  ;;  %v12502_v16 = vld [vmem:[#allocation10 + $0x130] sm:$0xf0]  ;;  %v12356_v58 = vld [vmem:[#allocation10] sm:$0xf] }
 0x670   :  { %8020 = vmatpush.bf16.msra.mxu2 %v12457_v29  ;;  %8033 = vmatpush.bf16.msra.mxu3 %v12585_v30  ;;  %v12501_v29 = vor.u32 %v13833_v9, %v12500_v7  ;;  %v13829_v30 = vld [vmem:[#allocation10 + $0x10c] sm:$0xf0]  ;;  %v12505_v19 = vor.u32 %v13831_v44, %v12502_v16  ;;  %v12445_v7 = vor.u32 %v13818_v37, %v12444_v56 }
 0x671   :  { %v12485_v41 = vor.u32 %v13829_v30, %v12484_v28  ;;  %v12449_v44 = vor.u32 %v13816_v21, %v12446_v23  ;;  %v13812_v28 = vld [vmem:[#allocation10 + $0x8c] sm:$0xf]  ;;  %v12558_v30 = vld [vmem:[#allocation10 + $0x198] sm:$0xf0]  ;;  %v12492_v21 = vld [vmem:[#allocation10 + $0x108] sm:$0xf] }
 0x672   :  { %v13830_v23 = vld [vmem:[#allocation10 + $0x114] sm:$0xf0] }
 0x673   :  { %7995 = vmatpush.bf16.msra.mxu0 %v12437_v35  ;;  %8008 = vmatpush.bf16.msra.mxu1 %v12565_v51  ;;  %v12486_v35 = vld [vmem:[#allocation10 + $0x110] sm:$0xf0]  ;;  %v12476_v51 = vld [vmem:[#allocation10 + $0xe8] sm:$0xf] }
 0x674   :  { %8021 = vmatpush.bf16.msra.mxu2 %v12441_v4  ;;  %8034 = vmatpush.bf16.msra.mxu3 %v12569_v8  ;;  %v12604_v4 = vld [vmem:[#allocation10 + $0x1e8] sm:$0xf]  ;;  %v13858_v8 = vld [vmem:[#allocation10 + $0x1f4] sm:$0xf0]  ;;  %v12477_v27 = vor.u32 %v13826_v15, %v12476_v51  ;;  %v13808_v15 = vld [vmem:[#allocation10 + $0x6c] sm:$0xf] }
 0x675   :  { %v13842_v51 = vld [vmem:[#allocation10 + $0x174] sm:$0xf0] }
 0x677   :  { %7996 = vmatpush.bf16.msra.mxu0 %v12421_v14  ;;  %8009 = vmatpush.bf16.msra.mxu1 %v12549_v43  ;;  %v12361_v14 = vor.u32 %v13795_v53, %v12358_v32  ;;  %v12489_v43 = vor.u32 %v13827_v2, %v12486_v35  ;;  %v12429_v53 = vor.u32 %v13814_v6, %v12428_v50  ;;  %v12540_v35 = vld [vmem:[#allocation10 + $0x168] sm:$0xf] }
 0x678   :  { %8022 = vmatpush.bf16.msra.mxu2 %v12425_v33  ;;  %8035 = vmatpush.bf16.msra.mxu3 %v12553_v31  ;;  %v12605_v33 = vor.u32 %v13858_v8, %v12604_v4  ;;  %v7668_v31 = vunpack.c.h.b16 %v7591_v38  ;;  %v12414_v38 = vld [vmem:[#allocation10 + $0x78] sm:$0xf0]  ;;  %v13840_v4 = vld [vmem:[#allocation10 + $0x16c] sm:$0xf]  ;;  %v12493_v6 = vor.u32 %v13830_v23, %v12492_v21  ;;  %v12855_v21 = vld [vmem:[#allocation10 + $0x3f0] sm:$0xf0] }
 0x679   :  { %7510 = vmatmul.bf16.vlgmr.msrb.gmra.mxu0 %v14717_v11  ;;  %7523 = vmatmul.bf16.vlgmr.msrb.gmra.mxu1 %v14719_v12  ;;  %v12542_v8 = vld [vmem:[#allocation10 + $0x178] sm:$0xf0]  ;;  %v12417_v45 = vor.u32 %v13808_v15, %v12414_v38 }
 0x67a   :  { %7536 = vmatmul.bf16.vlgmr.msrb.gmra.mxu2 %v14717_v11  ;;  %7549 = vmatmul.bf16.vlgmr.msrb.gmra.mxu3 %v14719_v12  ;;  %v13797_v11 = vld [vmem:[#allocation10 + $0xc] sm:$0xf0]  ;;  %v12545_v46 = vor.u32 %v13840_v4, %v12542_v8 }
 0x67b   :  { %7997 = vmatpush.bf16.msra.mxu0 %v12405_v40  ;;  %8010 = vmatpush.bf16.msra.mxu1 %v12533_v62  ;;  %v14732_v12 = vld [vmem:[%s14795_s0] sm:$0xff]  ;;  %v12357_v26 = vor.u32 %v13797_v11, %v12356_v58  ;;  %v12462_v62 = vld [vmem:[#allocation10 + $0xd8] sm:$0xf0]  ;;  %v12556_v58 = vld [vmem:[#allocation10 + $0x188] sm:$0xf] }
 0x67c   :  { %8023 = vmatpush.bf16.msra.mxu2 %v12409_v63  ;;  %8036 = vmatpush.bf16.msra.mxu3 %v12537_v54  ;;  %vm7577_vm2 = vcmp.eq.s32.totalorder %v14732_v12, 6  ;;  %v13820_v40 = vld [vmem:[#allocation10 + $0xcc] sm:$0xf]  ;;  %v14736_v63 = vpack.c.b16 %v7667_v3, %v7667_v3  ;;  %v14738_v54 = vpack.c.b16 %v7668_v31, %v7668_v31  ;;  %v13846_v11 = vld [vmem:[#allocation10 + $0x194] sm:$0xf0]  ;;  %vm8649_vm5 = vcmp.eq.s32.totalorder %v14732_v12, 7 }
 0x67d   :  { %v7579_v57 = vsel %vm7577_vm2, 1, %v14219_v0  ;;  %v12465_v5 = vor.u32 %v13820_v40, %v12462_v62  ;;  %v13804_v3 = vld [vmem:[#allocation10 + $0x4c] sm:$0xf]  ;;  %v12526_v31 = vld [vmem:[#allocation10 + $0x158] sm:$0xf0] }
 0x67e   :  { %7581 = vperm.xlu0 %13940, %v7579_v57   ;;  %v12557_v57 = vor.u32 %v13846_v11, %v12556_v58  ;;  %v12508_v40 = vld [vmem:[#allocation10 + $0x128] sm:$0xf]  ;;  %v13834_v62 = vld [vmem:[#allocation10 + $0x134] sm:$0xf0]  ;;  %v12097_v58 = vld [vmem:[%s14798_s3 + $0x4] sm:$0xf] }
 0x67f   :  { %7998 = vmatpush.bf16.msra.mxu0 %v12389_v61  ;;  %8011 = vmatpush.bf16.msra.mxu1 %v12517_v13  ;;  %v12572_v61 = vld [vmem:[#allocation10 + $0x1a8] sm:$0xf]  ;;  %v13850_v13 = vld [vmem:[#allocation10 + $0x1b4] sm:$0xf0]  ;;  %v12509_v37 = vor.u32 %v13834_v62, %v12508_v40  ;;  %v7115_v11 = vperm.slane %v12097_v58, 0 }
 0x680   :  { %8024 = vmatpush.bf16.msra.mxu2 %v12393_v17  ;;  %8037 = vmatpush.bf16.msra.mxu3 %v12521_v60  ;;  %v13848_v17 = vld [vmem:[#allocation10 + $0x1ac] sm:$0xf]  ;;  %v12574_v60 = vld [vmem:[#allocation10 + $0x1b8] sm:$0xf0]  ;;  %v12573_v9 = vor.u32 %v13850_v13, %v12572_v61  ;;  %v12385_v61 = vor.u32 %v13800_v20, %v12382_v49  ;;  %v12853_v40 = vld [vmem:[#allocation10 + $0x3e0] sm:$0xf] }
 0x681   :  { %v12577_v16 = vor.u32 %v13848_v17, %v12574_v60  ;;  %v13796_v17 = vld [vmem:[#allocation10 + $0xc] sm:$0xf]  ;;  %v12366_v60 = vld [vmem:[#allocation10 + $0x18] sm:$0xf0] }
 0x683   :  { %7999 = vmatpush.bf16.msra.mxu0 %v12373_v55  ;;  %8012 = vmatpush.bf16.msra.mxu1 %v12501_v29  ;;  %v12430_v55 = vld [vmem:[#allocation10 + $0x98] sm:$0xf0]  ;;  %v13844_v29 = vld [vmem:[#allocation10 + $0x18c] sm:$0xf] }
 0x684   :  { %8025 = vmatpush.bf16.msra.mxu2 %v12377_v25  ;;  %8038 = vmatpush.bf16.msra.mxu3 %v12505_v19  ;;  %v12412_v25 = vld [vmem:[#allocation10 + $0x68] sm:$0xf]  ;;  %v13810_v19 = vld [vmem:[#allocation10 + $0x74] sm:$0xf0]  ;;  %v12433_v32 = vor.u32 %v13812_v28, %v12430_v55  ;;  %v12561_v2 = vor.u32 %v13844_v29, %v12558_v30 }
 0x685   :  { %v12413_v24 = vor.u32 %v13810_v19, %v12412_v25 }
 0x687   :  { %8000 = vmatpush.bf16.msra.mxu0 %v12357_v26  ;;  %8013 = vmatpush.bf16.msra.mxu1 %v12485_v41  ;;  %v12541_v26 = vor.u32 %v13842_v51, %v12540_v35  ;;  %v12396_v41 = vld [vmem:[#allocation10 + $0x48] sm:$0xf] }
 0x688   :  { %8026 = vmatpush.bf16.msra.mxu2 %v12361_v14  ;;  %8039 = vmatpush.bf16.msra.mxu3 %v12489_v43  ;;  %v12524_v14 = vld [vmem:[#allocation10 + $0x148] sm:$0xf]  ;;  %v13838_v43 = vld [vmem:[#allocation10 + $0x154] sm:$0xf0]  ;;  %v12397_v22 = vor.u32 %v13806_v1, %v12396_v41 }
 0x689   :  { %v12525_v59 = vor.u32 %v13838_v43, %v12524_v14 }
 0x68a   :  { %8001 = vmatmul.bf16.vlgmr.msra.gmra.mxu0 %v14736_v63  ;;  %8014 = vmatmul.bf16.vlgmr.msra.gmra.mxu1 %v14738_v54 }
 0x68b   :  { %8045 = vmatpush.bf16.msrb.mxu0 %v12477_v27  ;;  %8058 = vmatpush.bf16.msrb.mxu1 %v12605_v33  ;;  %v12398_v27 = vld [vmem:[#allocation10 + $0x58] sm:$0xf0]  ;;  %v13836_v33 = vld [vmem:[#allocation10 + $0x14c] sm:$0xf] }
 0x68c   :  { %8071 = vmatpush.bf16.msrb.mxu2 %v12481_v36  ;;  %8084 = vmatpush.bf16.msrb.mxu3 %v12609_v34  ;;  %v12380_v36 = vld [vmem:[#allocation10 + $0x28] sm:$0xf]  ;;  %v13802_v34 = vld [vmem:[#allocation10 + $0x34] sm:$0xf0]  ;;  %v12401_v48 = vor.u32 %v13804_v3, %v12398_v27  ;;  %v12529_v52 = vor.u32 %v13836_v33, %v12526_v31 }
 0x68d   :  { %8027 = vmatmul.bf16.vlgmr.msra.gmra.mxu2 %v14736_v63  ;;  %8040 = vmatmul.bf16.vlgmr.msra.gmra.mxu3 %v14738_v54  ;;  %v12381_v56 = vor.u32 %v13802_v34, %v12380_v36  ;;  %v14754_v36 = vld [vmem:[%s14798_s3] sm:$0xf] }
 0x68e   :  { %v7658_v23 = vperm.slane %v14754_v36, 0 }
 0x68f   :  { %8046 = vmatpush.bf16.msrb.mxu0 %v12461_v10  ;;  %8059 = vmatpush.bf16.msrb.mxu1 %v12589_v42  ;;  %v13832_v10 = vld [vmem:[#allocation10 + $0x12c] sm:$0xf]  ;;  %v12510_v42 = vld [vmem:[#allocation10 + $0x138] sm:$0xf0] }
 0x690   :  { %8072 = vmatpush.bf16.msrb.mxu2 %v12465_v5  ;;  %8085 = vmatpush.bf16.msrb.mxu3 %v12593_v18  ;;  %v12364_v5 = vld [vmem:[#allocation10 + $0x8] sm:$0xf]  ;;  %v13798_v18 = vld [vmem:[#allocation10 + $0x14] sm:$0xf0]  ;;  %v12513_v13 = vor.u32 %v13832_v10, %v12510_v42  ;;  %v13921_v10 = vld [vmem:[#allocation10 + $0x3ec] sm:$0xf0] }
 0x691   :  { %v12365_v50 = vor.u32 %v13798_v18, %v12364_v5  ;;  %v13887_v42 = vld [vmem:[#allocation10 + $0x2e4] sm:$0xf]  ;;  %v12854_v18 = vor.u32 %v13921_v10, %v12853_v40 }
 0x692   :  { %v13907_v40 = vld [vmem:[#allocation10 + $0x384] sm:$0xf] }
 0x693   :  { %8047 = vmatpush.bf16.msrb.mxu0 %v12445_v7  ;;  %8060 = vmatpush.bf16.msrb.mxu1 %v12573_v9  ;;  %v13828_v7 = vld [vmem:[#allocation10 + $0x10c] sm:$0xf]  ;;  %v12494_v9 = vld [vmem:[#allocation10 + $0x118] sm:$0xf0] }
 0x694   :  { %8073 = vmatpush.bf16.msrb.mxu2 %v12449_v44  ;;  %8086 = vmatpush.bf16.msrb.mxu3 %v12577_v16  ;;  %v12369_v44 = vor.u32 %v13796_v17, %v12366_v60  ;;  %v12497_v16 = vor.u32 %v13828_v7, %v12494_v9  ;;  %v13885_v7 = vld [vmem:[#allocation10 + $0x2cc] sm:$0xf0]  ;;  %v12837_v9 = vld [vmem:[#allocation10 + $0x3c0] sm:$0xf] }
 0x697   :  { %8048 = vmatpush.bf16.msrb.mxu0 %v12429_v53  ;;  %8061 = vmatpush.bf16.msrb.mxu1 %v12557_v57  ;;  %v7116_v53 = vperm.slane %v12097_v58, 1 }
 0x698   :  { %8074 = vmatpush.bf16.msrb.mxu2 %v12433_v32  ;;  %8087 = vmatpush.bf16.msrb.mxu3 %v12561_v2 }
 0x69b   :  { %8049 = vmatpush.bf16.msrb.mxu0 %v12413_v24  ;;  %8062 = vmatpush.bf16.msrb.mxu1 %v12541_v26 }
 0x69c   :  { %8075 = vmatpush.bf16.msrb.mxu2 %v12417_v45  ;;  %8088 = vmatpush.bf16.msrb.mxu3 %v12545_v46  ;;  %v7118_v45 = vperm.slane %v12097_v58, 3 }
 0x69f   :  { %8050 = vmatpush.bf16.msrb.mxu0 %v12397_v22  ;;  %8063 = vmatpush.bf16.msrb.mxu1 %v12525_v59 }
 0x6a0   :  { %8076 = vmatpush.bf16.msrb.mxu2 %v12401_v48  ;;  %8089 = vmatpush.bf16.msrb.mxu3 %v12529_v52  ;;  %v12725_v48 = vld [vmem:[#allocation10 + $0x2e0] sm:$0xf]  ;;  %v13889_v52 = vld [vmem:[#allocation10 + $0x2ec] sm:$0xf0] }
 0x6a1   :  { %v12726_v49 = vor.u32 %v13889_v52, %v12725_v48  ;;  %v13875_v48 = vld [vmem:[#allocation10 + $0x284] sm:$0xf]  ;;  %v12679_v52 = vld [vmem:[#allocation10 + $0x290] sm:$0xf0] }
 0x6a3   :  { %8051 = vmatpush.bf16.msrb.mxu0 %v12381_v56  ;;  %8064 = vmatpush.bf16.msrb.mxu1 %v12509_v37  ;;  %v12727_v56 = vld [vmem:[#allocation10 + $0x2f0] sm:$0xf0] }
 0x6a4   :  { %8077 = vmatpush.bf16.msrb.mxu2 %v12385_v61  ;;  %8090 = vmatpush.bf16.msrb.mxu3 %v12513_v13  ;;  %v12730_v61 = vor.u32 %v13887_v42, %v12727_v56  ;;  %v13919_v13 = vld [vmem:[#allocation10 + $0x3e4] sm:$0xf]  ;;  %v12682_v56 = vor.u32 %v13875_v48, %v12679_v52  ;;  %v12613_v48 = vld [vmem:[#allocation10 + $0x200] sm:$0xf]  ;;  %v13861_v52 = vld [vmem:[#allocation10 + $0x20c] sm:$0xf0] }
 0x6a5   :  { %v12858_v17 = vor.u32 %v13919_v13, %v12855_v21  ;;  %v12661_v21 = vld [vmem:[#allocation10 + $0x260] sm:$0xf]  ;;  %v13859_v42 = vld [vmem:[#allocation10 + $0x204] sm:$0xf] }
 0x6a7   :  { %8052 = vmatpush.bf16.msrb.mxu0 %v12365_v50  ;;  %8065 = vmatpush.bf16.msrb.mxu1 %v12493_v6 }
 0x6a8   :  { %8078 = vmatpush.bf16.msrb.mxu2 %v12369_v44  ;;  %8091 = vmatpush.bf16.msrb.mxu3 %v12497_v16  ;;  %v13917_v16 = vld [vmem:[#allocation10 + $0x3cc] sm:$0xf0] }
 0x6aa   :  { %8053 = vmatmul.bf16.vlgmr.msrb.gmra.mxu0 %v14736_v63  ;;  %8066 = vmatmul.bf16.vlgmr.msrb.gmra.mxu1 %v14738_v54 }
 0x6ab   :  { %8079 = vmatmul.bf16.vlgmr.msrb.gmra.mxu2 %v14736_v63  ;;  %8092 = vmatmul.bf16.vlgmr.msrb.gmra.mxu3 %v14738_v54  ;;  %v7117_v54 = vperm.slane %v12097_v58, 2  ;;  %v13883_v58 = vld [vmem:[#allocation10 + $0x2c4] sm:$0xf] }
 0x6ac   :  { %8522 = vmatpush.bf16.msra.mxu0 %v12726_v49  ;;  %8535 = vmatpush.bf16.msra.mxu1 %v12854_v18 }
 0x6ad   :  { %8548 = vmatpush.bf16.msra.mxu2 %v12730_v61  ;;  %8561 = vmatpush.bf16.msra.mxu3 %v12858_v17  ;;  %v12789_v17 = vld [vmem:[#allocation10 + $0x360] sm:$0xf] }
 0x6e6   :  { %v7459_v28 = vpop.f32.mrf.mxu0  ;;  %v7472_v55 = vpop.f32.mrf.mxu1 }
 0x6e7   :  { %v7460_v29 = vadd.f32 %v7459_v28, %v7115_v11  ;;  %v12711_v11 = vld [vmem:[#allocation10 + $0x2d0] sm:$0xf0]  ;;  %v12838_v28 = vor.u32 %v13917_v16, %v12837_v9  ;;  %v13905_v9 = vld [vmem:[#allocation10 + $0x36c] sm:$0xf0]  ;;  %v7578_v16 = vld [vmem:[#allocation6] sm:$0xf] }
 0x6e9   :  { %v7473_v30 = vadd.f32 %v7472_v55, %v7460_v29  ;;  %v12714_v55 = vor.u32 %v13883_v58, %v12711_v11  ;;  %v13915_v29 = vld [vmem:[#allocation10 + $0x3c4] sm:$0xf]  ;;  %8536 = vmatpush.bf16.msra.mxu1 %v12838_v28  ;;  %v12790_v58 = vor.u32 %v13905_v9, %v12789_v17  ;;  %v12733_v17 = vld [vmem:[#allocation10 + $0x2e8] sm:$0xf] }
 0x6ea   :  { %v13903_v28 = vld [vmem:[#allocation10 + $0x364] sm:$0xf]  ;;  %v12861_v9 = vld [vmem:[#allocation10 + $0x3e8] sm:$0xf] }
 0x6eb   :  { %v7554_v19 = vmul.f32 0.5, %v7473_v30  ;;  %v12839_v30 = vld [vmem:[#allocation10 + $0x3d0] sm:$0xf0]  ;;  %8549 = vmatpush.bf16.msra.mxu2 %v12714_v55 }
 0x6ec   :  { %v12791_v55 = vld [vmem:[#allocation10 + $0x370] sm:$0xf0] }
 0x6ed   :  { %v7485_v57 = vpop.f32.mrf.mxu2  ;;  %v7498_v25 = vpop.f32.mrf.mxu3  ;;  %14074 = vtanh.f32 %v7554_v19  ;;  %v12693_v19 = vld [vmem:[#allocation10 + $0x2a0] sm:$0xf] }
 0x6ee   :  { %v7486_v32 = vadd.f32 %v7485_v57, %v7116_v53  ;;  %v7461_v2 = vpop.f32.mrf.mxu0  ;;  %v7474_v35 = vpop.f32.mrf.mxu1  ;;  %v12842_v53 = vor.u32 %v13915_v29, %v12839_v30  ;;  %v12794_v30 = vor.u32 %v13903_v28, %v12791_v55 }
 0x6ef   :  { %v12821_v2 = vld [vmem:[#allocation10 + $0x3a0] sm:$0xf] }
 0x6f0   :  { %v7499_v51 = vadd.f32 %v7498_v25, %v7486_v32  ;;  %v13881_v32 = vld [vmem:[#allocation10 + $0x2ac] sm:$0xf0]  ;;  %8562 = vmatpush.bf16.msra.mxu3 %v12842_v53 }
 0x6f2   :  { %v7558_v63 = vmul.f32 0.5, %v7499_v51  ;;  %v7582_v51 = vpop.permute.xlu0 %7581 }
 0x6f3   :  { %v14075_v26 = vpop.eup %14074  ;;  %vm7583_vm3 = vcmp.eq.s32.totalorder %v7582_v51, 1  ;;  %v13867_v51 = vld [vmem:[#allocation10 + $0x244] sm:$0xf] }
 0x6f4   :  { %14076 = vtanh.f32 %v7558_v63  ;;  %v7556_v46 = vadd.f32 1.0, %v14075_v26  ;;  %v12694_v63 = vor.u32 %v13881_v32, %v12693_v19  ;;  %v13911_v26 = vld [vmem:[#allocation10 + $0x3a4] sm:$0xf]  ;;  %vm14764_vm4 = vmpackc.low %vm7583_vm3, %vm7583_vm3  ;;  %v12773_v19 = vld [vmem:[#allocation10 + $0x340] sm:$0xf] }
 0x6f5   :  { %v7487_v15 = vpop.f32.mrf.mxu2  ;;  %v7500_v38 = vpop.f32.mrf.mxu3  ;;  %v13901_v32 = vld [vmem:[#allocation10 + $0x34c] sm:$0xf0] }
 0x6f6   :  { %v7511_v4 = vpop.f32.mrf.mxu0  ;;  %v7524_v8 = vpop.f32.mrf.mxu1  ;;  %v7557_v59 = vmul.f32 0.5, %v7556_v46  ;;  %v13879_v15 = vld [vmem:[#allocation10 + $0x2a4] sm:$0xf]  ;;  %v12695_v38 = vld [vmem:[#allocation10 + $0x2b0] sm:$0xf0] }
 0x6f7   :  { %v7512_v24 = vadd.f32 %v7511_v4, %v7117_v54  ;;  %v13913_v54 = vld [vmem:[#allocation10 + $0x3ac] sm:$0xf0] }
 0x6f9   :  { %v7525_v41 = vadd.f32 %v7524_v8, %v7512_v24  ;;  %v12822_v8 = vor.u32 %v13913_v54, %v12821_v2  ;;  %v12698_v24 = vor.u32 %v13879_v15, %v12695_v38 }
 0x6fa   :  { %v14077_v1 = vpop.eup %14076 }
 0x6fb   :  { %v7560_v14 = vadd.f32 1.0, %v14077_v1  ;;  %14078 = vtanh.f32 %v7525_v41  ;;  %v12823_v41 = vld [vmem:[#allocation10 + $0x3b0] sm:$0xf0]  ;;  %8537 = vmatpush.bf16.msra.mxu1 %v12822_v8  ;;  %8550 = vmatpush.bf16.msra.mxu2 %v12698_v24 }
 0x6fc   :  { %v12826_v46 = vor.u32 %v13911_v26, %v12823_v41  ;;  %v12775_v8 = vld [vmem:[#allocation10 + $0x350] sm:$0xf0]  ;;  %v12629_v26 = vld [vmem:[#allocation10 + $0x220] sm:$0xf]  ;;  %v13865_v41 = vld [vmem:[#allocation10 + $0x22c] sm:$0xf0] }
 0x6fd   :  { %v7561_v43 = vmul.f32 0.5, %v7560_v14  ;;  %v7537_v3 = vpop.f32.mrf.mxu2  ;;  %v7550_v27 = vpop.f32.mrf.mxu3 }
 0x6fe   :  { %v7538_v33 = vadd.f32 %v7537_v3, %v7118_v45  ;;  %v7513_v31 = vpop.f32.mrf.mxu0  ;;  %v7526_v22 = vpop.f32.mrf.mxu1  ;;  %v12677_v3 = vld [vmem:[#allocation10 + $0x280] sm:$0xf]  ;;  %8563 = vmatpush.bf16.msra.mxu3 %v12826_v46  ;;  %v13897_v46 = vld [vmem:[#allocation10 + $0x32c] sm:$0xf0] }
 0x6ff   :  { %v7568_v20 = vmul.f32 %v7561_v43, %v14685_v47  ;;  %v12709_v47 = vld [vmem:[#allocation10 + $0x2c0] sm:$0xf]  ;;  %v7659_v43 = vperm.slane %v14754_v36, 1  ;;  %8551 = vmatpush.bf16.msra.mxu2 %v12682_v56 }
 0x700   :  { %v7551_v34 = vadd.f32 %v7550_v27, %v7538_v33  ;;  %v12710_v44 = vor.u32 %v13885_v7, %v12709_v47  ;;  %v13877_v27 = vld [vmem:[#allocation10 + $0x28c] sm:$0xf0]  ;;  %v12805_v22 = vld [vmem:[#allocation10 + $0x380] sm:$0xf] }
 0x701   :  { %v14079_v62 = vpop.eup %14078  ;;  %v12678_v31 = vor.u32 %v13877_v27, %v12677_v3  ;;  %v12631_v3 = vld [vmem:[#allocation10 + $0x230] sm:$0xf0]  ;;  %v13895_v27 = vld [vmem:[#allocation10 + $0x324] sm:$0xf] }
 0x702   :  { %v7569_v37 = vmul.f32 %v14079_v62, %v7557_v59  ;;  %v7563_v5 = vmul.f32 0.5, %v7551_v34  ;;  %8523 = vmatpush.bf16.msra.mxu0 %v12710_v44  ;;  %v13909_v59 = vld [vmem:[#allocation10 + $0x38c] sm:$0xf0] }
 0x703   :  { %v12806_v34 = vor.u32 %v13909_v59, %v12805_v22 }
 0x704   :  { %v14758_v60 = vadd.f32 %v7569_v37, %v7568_v20  ;;  %14080 = vtanh.f32 %v7563_v5  ;;  %v12807_v37 = vld [vmem:[#allocation10 + $0x390] sm:$0xf0] }
 0x705   :  { %v7539_v50 = vpop.f32.mrf.mxu2  ;;  %v7552_v6 = vpop.f32.mrf.mxu3  ;;  %8538 = vmatpush.bf16.msra.mxu1 %v12806_v34  ;;  %v12810_v13 = vor.u32 %v13907_v40, %v12807_v37  ;;  %v12741_v40 = vld [vmem:[#allocation10 + $0x300] sm:$0xf]  ;;  %v12615_v37 = vld [vmem:[#allocation10 + $0x210] sm:$0xf0] }
 0x706   :  { %14082 = vtanh.f32 %v14758_v60  ;;  %8524 = vmatpush.bf16.msra.mxu0 %v12694_v63  ;;  %v13871_v50 = vld [vmem:[#allocation10 + $0x264] sm:$0xf]  ;;  %v12663_v6 = vld [vmem:[#allocation10 + $0x270] sm:$0xf0] }
 0x707   :  { %v8002_v57 = vpop.f32.mrf.mxu0  ;;  %v8015_v25 = vpop.f32.mrf.mxu1  ;;  %8564 = vmatpush.bf16.msra.mxu3 %v12810_v13  ;;  %v12666_v11 = vor.u32 %v13871_v50, %v12663_v6  ;;  %v12647_v63 = vld [vmem:[#allocation10 + $0x250] sm:$0xf0]  ;;  %v13922_v50 = vld [vmem:[#allocation10 + $0x3f4] sm:$0xf0]  ;;  %v13888_v6 = vld [vmem:[#allocation10 + $0x2ec] sm:$0xf] }
 0x708   :  { %v8003_v35 = vadd.f32 %v8002_v57, %v7658_v23  ;;  %v13873_v23 = vld [vmem:[#allocation10 + $0x26c] sm:$0xf0]  ;;  %v12645_v57 = vld [vmem:[#allocation10 + $0x240] sm:$0xf]  ;;  %v12650_v38 = vor.u32 %v13867_v51, %v12647_v63  ;;  %v13916_v51 = vld [vmem:[#allocation10 + $0x3cc] sm:$0xf] }
 0x709   :  { %v12662_v7 = vor.u32 %v13873_v23, %v12661_v21  ;;  %8539 = vmatpush.bf16.msra.mxu1 %v12790_v58  ;;  %8552 = vmatpush.bf16.msra.mxu2 %v12666_v11  ;;  %v12618_v21 = vor.u32 %v13859_v42, %v12615_v37  ;;  %v13920_v58 = vld [vmem:[#allocation10 + $0x3ec] sm:$0xf]  ;;  %v12863_v11 = vld [vmem:[#allocation10 + $0x3f8] sm:$0xf0] }
 0x70a   :  { %v14081_v4 = vpop.eup %14080  ;;  %v8016_v45 = vadd.f32 %v8015_v25, %v8003_v35  ;;  %8525 = vmatpush.bf16.msra.mxu0 %v12678_v31  ;;  %v13869_v25 = vld [vmem:[#allocation10 + $0x24c] sm:$0xf0]  ;;  %v12774_v35 = vor.u32 %v13901_v32, %v12773_v19  ;;  %v12866_v55 = vor.u32 %v13920_v58, %v12863_v11  ;;  %v13884_v19 = vld [vmem:[#allocation10 + $0x2cc] sm:$0xf]  ;;  %v12719_v32 = vld [vmem:[#allocation10 + $0x2d8] sm:$0xf0] }
 0x70b   :  { %v7565_v1 = vadd.f32 1.0, %v14081_v4  ;;  %8565 = vmatpush.bf16.msra.mxu3 %v12794_v30  ;;  %v12646_v2 = vor.u32 %v13869_v25, %v12645_v57  ;;  %v13899_v4 = vld [vmem:[#allocation10 + $0x344] sm:$0xf]  ;;  %v13886_v30 = vld [vmem:[#allocation10 + $0x2d4] sm:$0xf0] }
 0x70c   :  { %v14083_v14 = vpop.eup %14082  ;;  %v8097_v20 = vmul.f32 0.5, %v8016_v45  ;;  %v12778_v24 = vor.u32 %v13899_v4, %v12775_v8  ;;  %v12757_v45 = vld [vmem:[#allocation10 + $0x320] sm:$0xf]  ;;  %v13918_v25 = vld [vmem:[#allocation10 + $0x3d4] sm:$0xf0] }
 0x70d   :  { %v7566_v33 = vmul.f32 0.5, %v7565_v1  ;;  %8540 = vmatpush.bf16.msra.mxu1 %v12774_v35  ;;  %8553 = vmatpush.bf16.msra.mxu2 %v12650_v38  ;;  %v12630_v1 = vor.u32 %v13865_v41, %v12629_v26  ;;  %v12722_v35 = vor.u32 %v13884_v19, %v12719_v32  ;;  %v12847_v63 = vld [vmem:[#allocation10 + $0x3d8] sm:$0xf0]  ;;  %v13882_v8 = vld [vmem:[#allocation10 + $0x2b4] sm:$0xf0] }
 0x70e   :  { %8526 = vmatpush.bf16.msra.mxu0 %v12662_v7  ;;  %14084 = vtanh.f32 %v8097_v20  ;;  %v7661_v20 = vperm.slane %v14754_v36, 3  ;;  %v12850_v4 = vor.u32 %v13916_v51, %v12847_v63  ;;  %v13914_v26 = vld [vmem:[#allocation10 + $0x3b4] sm:$0xf0]  ;;  %v13872_v58 = vld [vmem:[#allocation10 + $0x26c] sm:$0xf] }
 0x70f   :  { %v7572_v62 = vmul.f32 %v14083_v14, %v7566_v33  ;;  %v8004_v18 = vpop.f32.mrf.mxu0  ;;  %v8017_v61 = vpop.f32.mrf.mxu1  ;;  %v13863_v14 = vld [vmem:[#allocation10 + $0x224] sm:$0xf]  ;;  %8566 = vmatpush.bf16.msra.mxu3 %v12778_v24  ;;  %v12759_v33 = vld [vmem:[#allocation10 + $0x330] sm:$0xf0]  ;;  %v12829_v24 = vld [vmem:[#allocation10 + $0x3a8] sm:$0xf] }
 0x710   :  { %v8028_v49 = vpop.f32.mrf.mxu2  ;;  %v8041_v10 = vpop.f32.mrf.mxu3  ;;  %v12634_v22 = vor.u32 %v13863_v14, %v12631_v3  ;;  %v12762_v59 = vor.u32 %v13895_v27, %v12759_v33  ;;  %v12743_v18 = vld [vmem:[#allocation10 + $0x310] sm:$0xf0]  ;;  %v13912_v14 = vld [vmem:[#allocation10 + $0x3ac] sm:$0xf]  ;;  %v12831_v3 = vld [vmem:[#allocation10 + $0x3b8] sm:$0xf0] }
 0x711   :  { %v8029_v5 = vadd.f32 %v8028_v49, %v7659_v43  ;;  %v7574_v47 = vpack.c.bf16 %v7572_v62, %v7572_v62  ;;  %v12758_v43 = vor.u32 %v13897_v46, %v12757_v45  ;;  %v7660_v62 = vperm.slane %v14754_v36, 2  ;;  %v13880_v45 = vld [vmem:[#allocation10 + $0x2ac] sm:$0xf]  ;;  %v12703_v46 = vld [vmem:[#allocation10 + $0x2b8] sm:$0xf0] }
 0x712   :  { %8527 = vmatpush.bf16.msra.mxu0 %v12646_v2  ;;  %8554 = vmatpush.bf16.msra.mxu2 %v12634_v22  ;;  %v12614_v49 = vor.u32 %v13861_v52, %v12613_v48  ;;  %v12685_v27 = vld [vmem:[#allocation10 + $0x288] sm:$0xf]  ;;  %v13878_v33 = vld [vmem:[#allocation10 + $0x294] sm:$0xf0]  ;;  %v12706_v22 = vor.u32 %v13880_v45, %v12703_v46  ;;  %v13876_v52 = vld [vmem:[#allocation10 + $0x28c] sm:$0xf] }
 0x713   :  { %v8042_v44 = vadd.f32 %v8041_v10, %v8029_v5  ;;  %7575 = vst [vmem:[#allocation3 + $0x4] sm:$0xf] %v7574_v47  ;;  %v7585_v29 = vsel %vm14764_vm4, %v7574_v47, %v7578_v16  ;;  %8541 = vmatpush.bf16.msra.mxu1 %v12758_v43  ;;  %v13893_v10 = vld [vmem:[#allocation10 + $0x30c] sm:$0xf0]  ;;  %8567 = vmatpush.bf16.msra.mxu3 %v12762_v59  ;;  %v13891_v5 = vld [vmem:[#allocation10 + $0x304] sm:$0xf] }
 0x714   :  { %7586 = vst [vmem:[#allocation6] sm:$0xf] %v7585_v29  ;;  %v14085_v31 = vpop.eup %14084  ;;  %v12742_v56 = vor.u32 %v13893_v10, %v12741_v40  ;;  %v12746_v23 = vor.u32 %v13891_v5, %v12743_v18  ;;  %v13890_v47 = vld [vmem:[#allocation10 + $0x2f4] sm:$0xf0]  ;;  %v12735_v16 = vld [vmem:[#allocation10 + $0x2f8] sm:$0xf0]  ;;  %v12830_v43 = vor.u32 %v13914_v26, %v12829_v24  ;;  %v12834_v59 = vor.u32 %v13912_v14, %v12831_v3 }
 0x715   :  { %v8101_v53 = vmul.f32 0.5, %v8042_v44  ;;  %v14772_v61 = vadd.f32 1.0, %v14085_v31  ;;  %v12734_v7 = vor.u32 %v13890_v47, %v12733_v17  ;;  %v12862_v44 = vor.u32 %v13922_v50, %v12861_v9  ;;  %v12717_v29 = vld [vmem:[#allocation10 + $0x2c8] sm:$0xf]  ;;  %v13910_v48 = vld [vmem:[#allocation10 + $0x394] sm:$0xf0] }
 0x716   :  { %8528 = vmatpush.bf16.msra.mxu0 %v12630_v1  ;;  %8555 = vmatpush.bf16.msra.mxu2 %v12618_v21  ;;  %v12738_v28 = vor.u32 %v13888_v6, %v12735_v16  ;;  %v12718_v57 = vor.u32 %v13886_v30, %v12717_v29  ;;  %v12687_v40 = vld [vmem:[#allocation10 + $0x298] sm:$0xf0]  ;;  %v12686_v10 = vor.u32 %v13878_v33, %v12685_v27  ;;  %v12669_v9 = vld [vmem:[#allocation10 + $0x268] sm:$0xf]  ;;  %v13874_v50 = vld [vmem:[#allocation10 + $0x274] sm:$0xf0] }
 0x717   :  { %14086 = vtanh.f32 %v8101_v53  ;;  %8542 = vmatpush.bf16.msra.mxu1 %v12742_v56  ;;  %8568 = vmatpush.bf16.msra.mxu3 %v12746_v23  ;;  %v12845_v53 = vld [vmem:[#allocation10 + $0x3c8] sm:$0xf]  ;;  %v12690_v18 = vor.u32 %v13876_v52, %v12687_v40  ;;  %v8100_v23 = vmul.f32 0.5, %v14772_v61  ;;  %v13906_v16 = vld [vmem:[#allocation10 + $0x374] sm:$0xf0] }
 0x718   :  { %v8030_v54 = vpop.f32.mrf.mxu2  ;;  %v8043_v15 = vpop.f32.mrf.mxu3  ;;  %v12846_v2 = vor.u32 %v13918_v25, %v12845_v53  ;;  %v12797_v6 = vld [vmem:[#allocation10 + $0x368] sm:$0xf]  ;;  %v12671_v11 = vld [vmem:[#allocation10 + $0x278] sm:$0xf0]  ;;  %v13870_v19 = vld [vmem:[#allocation10 + $0x254] sm:$0xf0] }
 0x719   :  { %v12701_v54 = vld [vmem:[#allocation10 + $0x2a8] sm:$0xf]  ;;  %v12798_v61 = vor.u32 %v13906_v16, %v12797_v6  ;;  %v12674_v36 = vor.u32 %v13872_v58, %v12671_v11  ;;  %v12799_v29 = vld [vmem:[#allocation10 + $0x378] sm:$0xf0]  ;;  %v13868_v51 = vld [vmem:[#allocation10 + $0x24c] sm:$0xf] }
 0x71a   :  { %8529 = vmatpush.bf16.msra.mxu0 %v12614_v49  ;;  %8600 = vmatpush.bf16.msrb.mxu2 %v12738_v28  ;;  %v12702_v1 = vor.u32 %v13882_v8, %v12701_v54  ;;  %v12815_v49 = vld [vmem:[#allocation10 + $0x398] sm:$0xf0]  ;;  %v12653_v30 = vld [vmem:[#allocation10 + $0x248] sm:$0xf]  ;;  %v13866_v45 = vld [vmem:[#allocation10 + $0x234] sm:$0xf0] }
 0x71b   :  { %8587 = vmatpush.bf16.msrb.mxu1 %v12862_v44  ;;  %8613 = vmatpush.bf16.msrb.mxu3 %v12866_v55  ;;  %v12781_v32 = vld [vmem:[#allocation10 + $0x348] sm:$0xf]  ;;  %v12655_v63 = vld [vmem:[#allocation10 + $0x258] sm:$0xf0]  ;;  %v13898_v14 = vld [vmem:[#allocation10 + $0x334] sm:$0xf0] }
 0x71c   :  { %v12658_v26 = vor.u32 %v13868_v51, %v12655_v63  ;;  %v12765_v46 = vld [vmem:[#allocation10 + $0x328] sm:$0xf]  ;;  %v12639_v3 = vld [vmem:[#allocation10 + $0x238] sm:$0xf0]  ;;  %v13896_v33 = vld [vmem:[#allocation10 + $0x32c] sm:$0xf] }
 0x71d   :  { %v14087_v34 = vpop.eup %14086  ;;  %v13894_v52 = vld [vmem:[#allocation10 + $0x314] sm:$0xf0]  ;;  %v13860_v40 = vld [vmem:[#allocation10 + $0x20c] sm:$0xf]  ;;  %v13929_v58 = vld [vmem:[#allocation12 + $0x30] sm:$0xff] }
 0x71e   :  { %v14774_v13 = vadd.f32 1.0, %v14087_v34  ;;  %8574 = vmatpush.bf16.msrb.mxu0 %v12734_v7  ;;  %8601 = vmatpush.bf16.msrb.mxu2 %v12722_v35  ;;  %v12813_v34 = vld [vmem:[#allocation10 + $0x388] sm:$0xf]  ;;  %v13902_v35 = vld [vmem:[#allocation10 + $0x354] sm:$0xf0]  ;;  %v13925_v63 = vld [vmem:[#allocation12 + $0x10] sm:$0xff] }
 0x71f   :  { %8588 = vmatpush.bf16.msrb.mxu1 %v12846_v2  ;;  %8614 = vmatpush.bf16.msrb.mxu3 %v12850_v4  ;;  %v12814_v42 = vor.u32 %v13910_v48, %v12813_v34  ;;  %v12654_v2 = vor.u32 %v13870_v19, %v12653_v30  ;;  %v12782_v54 = vor.u32 %v13902_v35, %v12781_v32  ;;  %v12637_v4 = vld [vmem:[#allocation10 + $0x228] sm:$0xf]  ;;  %v13862_v34 = vld [vmem:[#allocation10 + $0x214] sm:$0xf0]  ;;  %v12610_v11 = vld [vmem:[%s14798_s3 + $0x4] sm:$0xf] }
 0x720   :  { %v8104_v56 = vmul.f32 0.5, %v14774_v13  ;;  %v12670_v13 = vor.u32 %v13874_v50, %v12669_v9  ;;  %v12638_v27 = vor.u32 %v13866_v45, %v12637_v4  ;;  %v13930_v16 = vld [vmem:[#allocation12 + $0x38] sm:$0xff]  ;;  %v8188_v30 = vperm.slane %v12610_v11, 1 }
 0x722   :  { %8575 = vmatpush.bf16.msrb.mxu0 %v12718_v57  ;;  %8602 = vmatpush.bf16.msrb.mxu2 %v12706_v22  ;;  %v8111_v55 = vmul.f32 %v8104_v56, %v14714_v39  ;;  %v12766_v22 = vor.u32 %v13898_v14, %v12765_v46 }
 0x723   :  { %8589 = vmatpush.bf16.msrb.mxu1 %v12830_v43  ;;  %8615 = vmatpush.bf16.msrb.mxu3 %v12834_v59  ;;  %v13864_v43 = vld [vmem:[#allocation10 + $0x22c] sm:$0xf]  ;;  %v12621_v59 = vld [vmem:[#allocation10 + $0x208] sm:$0xf] }
 0x724   :  { %v12642_v48 = vor.u32 %v13864_v43, %v12639_v3  ;;  %v8190_v43 = vperm.slane %v12610_v11, 3 }
 0x726   :  { %8576 = vmatpush.bf16.msrb.mxu0 %v12702_v1  ;;  %8603 = vmatpush.bf16.msrb.mxu2 %v12690_v18  ;;  %v8651_v1 = vsel %vm8649_vm5, 1, %v14219_v0  ;;  %v12749_v0 = vld [vmem:[#allocation10 + $0x308] sm:$0xf] }
 0x727   :  { %v8054_v15 = vpop.f32.mrf.mxu0  ;;  %v8067_v38 = vpop.f32.mrf.mxu1  ;;  %8590 = vmatpush.bf16.msrb.mxu1 %v12814_v42  ;;  %8653 = vperm.xlu1 %13941, %v8651_v1   ;;  %v12751_v42 = vld [vmem:[#allocation10 + $0x318] sm:$0xf0]  ;;  %v12750_v18 = vor.u32 %v13894_v52, %v12749_v0 }
 0x728   :  { %v8055_v41 = vadd.f32 %v8054_v15, %v7660_v62  ;;  %v13908_v62 = vld [vmem:[#allocation10 + $0x38c] sm:$0xf] }
 0x729   :  { %v12818_v21 = vor.u32 %v13908_v62, %v12815_v49  ;;  %v13900_v15 = vld [vmem:[#allocation10 + $0x34c] sm:$0xf]  ;;  %v12623_v49 = vld [vmem:[#allocation10 + $0x218] sm:$0xf0] }
 0x72a   :  { %v8068_v31 = vadd.f32 %v8067_v38, %v8055_v41  ;;  %8577 = vmatpush.bf16.msrb.mxu0 %v12686_v10  ;;  %v12783_v38 = vld [vmem:[#allocation10 + $0x358] sm:$0xf0]  ;;  %8604 = vmatpush.bf16.msrb.mxu2 %v12674_v36  ;;  %v13892_v10 = vld [vmem:[#allocation10 + $0x30c] sm:$0xf] }
 0x72b   :  { %8616 = vmatpush.bf16.msrb.mxu3 %v12818_v21  ;;  %8591 = vmatpush.bf16.msrb.mxu1 %v12798_v61  ;;  %v12786_v41 = vor.u32 %v13900_v15, %v12783_v38  ;;  %v8189_v15 = vperm.slane %v12610_v11, 2  ;;  %v13924_v38 = vld [vmem:[#allocation12 + $0x8] sm:$0xff] }
 0x72c   :  { %14088 = vtanh.f32 %v8068_v31  ;;  %v12767_v31 = vld [vmem:[#allocation10 + $0x338] sm:$0xf0] }
 0x72d   :  { %v12770_v12 = vor.u32 %v13896_v33, %v12767_v31 }
 0x72e   :  { %v8080_v37 = vpop.f32.mrf.mxu2  ;;  %v8093_v5 = vpop.f32.mrf.mxu3  ;;  %8578 = vmatpush.bf16.msrb.mxu0 %v12670_v13  ;;  %8605 = vmatpush.bf16.msrb.mxu2 %v12658_v26 }
 0x72f   :  { %v8081_v17 = vadd.f32 %v8080_v37, %v7661_v20  ;;  %v8056_v47 = vpop.f32.mrf.mxu0  ;;  %v8069_v7 = vpop.f32.mrf.mxu1  ;;  %v13904_v20 = vld [vmem:[#allocation10 + $0x36c] sm:$0xf]  ;;  %8592 = vmatpush.bf16.msrb.mxu1 %v12782_v54  ;;  %v12622_v37 = vor.u32 %v13862_v34, %v12621_v59 }
 0x730   :  { %v12802_v25 = vor.u32 %v13904_v20, %v12799_v29  ;;  %v13927_v29 = vld [vmem:[#allocation12 + $0x20] sm:$0xff] }
 0x731   :  { %v8094_v44 = vadd.f32 %v8093_v5, %v8081_v17  ;;  %v12754_v17 = vor.u32 %v13892_v10, %v12751_v42 }
 0x732   :  { %v14089_v28 = vpop.eup %14088  ;;  %8617 = vmatpush.bf16.msrb.mxu3 %v12802_v25  ;;  %8579 = vmatpush.bf16.msrb.mxu0 %v12654_v2 }
 0x733   :  { %v8112_v53 = vmul.f32 %v14089_v28, %v8100_v23  ;;  %v8106_v57 = vmul.f32 0.5, %v8094_v44  ;;  %8593 = vmatpush.bf16.msrb.mxu1 %v12766_v22  ;;  %8606 = vmatpush.bf16.msrb.mxu2 %v12642_v48  ;;  %v12626_v23 = vor.u32 %v13860_v40, %v12623_v49  ;;  %v8187_v28 = vperm.slane %v12610_v11, 0 }
 0x735   :  { %v8113_v39 = vadd.f32 %v8112_v53, %v8111_v55  ;;  %14090 = vtanh.f32 %v8106_v57  ;;  %v13928_v55 = vld [vmem:[#allocation12 + $0x28] sm:$0xff]  ;;  %v13926_v57 = vld [vmem:[#allocation12 + $0x18] sm:$0xff] }
 0x736   :  { %v8082_v8 = vpop.f32.mrf.mxu2  ;;  %v8095_v24 = vpop.f32.mrf.mxu3  ;;  %8618 = vmatpush.bf16.msrb.mxu3 %v12786_v41  ;;  %8580 = vmatpush.bf16.msrb.mxu0 %v12638_v27 }
 0x737   :  { %14092 = vtanh.f32 %v8113_v39  ;;  %8594 = vmatpush.bf16.msrb.mxu1 %v12750_v18  ;;  %8607 = vmatpush.bf16.msrb.mxu2 %v12626_v23  ;;  %v13923_v24 = vld [vmem:[#allocation12] sm:$0xff] }
 0x73a   :  { %8619 = vmatpush.bf16.msrb.mxu3 %v12770_v12  ;;  %8581 = vmatpush.bf16.msrb.mxu0 %v12622_v37 }
 0x73b   :  { %v14091_v62 = vpop.eup %14090 }
 0x73c   :  { %v8108_v56 = vadd.f32 1.0, %v14091_v62 }
 0x73d   :  { %v14093_v5 = vpop.eup %14092 }
 0x73e   :  { %v8109_v21 = vmul.f32 0.5, %v8108_v56  ;;  %8620 = vmatpush.bf16.msrb.mxu3 %v12754_v17 }
 0x740   :  { %v8115_v47 = vmul.f32 %v14093_v5, %v8109_v21 }
 0x742   :  { %v8117_v7 = vpack.c.bf16 %v8115_v47, %v8115_v47 }
 0x744   :  { %8118 = vst [vmem:[#allocation2 + $0x4] sm:$0xf] %v8117_v7 }
 0x745   :  { %8119 = vst [vmem:[#allocation3] sm:$0xf] %v8117_v7  ;;  %v8650_v7 = vld [vmem:[#allocation6] sm:$0xf] }
 0x74c   :  { %v8120_v9 = vld [vmem:[#allocation3] sm:$0xff] }
 0x74d   :  { %v8196_v50 = vunpack.c.l.b16 %v8120_v9  ;;  %v8197_v6 = vunpack.c.h.b16 %v8120_v9 }
 0x74f   :  { %v8198_v44 = vpack.c.b16 %v8196_v50, %v8196_v50  ;;  %v8199_v13 = vpack.c.b16 %v8197_v6, %v8197_v6  ;;  %v13943_v50 = vld [vmem:[%s14800_s5] ss:$0 sm:$0xff] }
 0x751   :  { %8530 = vmatmul.bf16.vlgmr.msra.gmra.mxu0 %v8198_v44  ;;  %8543 = vmatmul.bf16.vlgmr.msra.gmra.mxu1 %v8199_v13 }
 0x752   :  { %8556 = vmatmul.bf16.vlgmr.msra.gmra.mxu2 %v8198_v44  ;;  %8569 = vmatmul.bf16.vlgmr.msra.gmra.mxu3 %v8199_v13 }
 0x753   :  { %8731 = vmatpush.bf16.msra.mxu0 %v13930_v16 }
 0x757   :  { %8732 = vmatpush.bf16.msra.mxu0 %v13929_v58 }
 0x75b   :  { %8733 = vmatpush.bf16.msra.mxu0 %v13928_v55 }
 0x75f   :  { %8734 = vmatpush.bf16.msra.mxu0 %v13927_v29 }
 0x761   :  { %8582 = vmatmul.bf16.vlgmr.msrb.gmra.mxu0 %v8198_v44  ;;  %8595 = vmatmul.bf16.vlgmr.msrb.gmra.mxu1 %v8199_v13 }
 0x762   :  { %8608 = vmatmul.bf16.vlgmr.msrb.gmra.mxu2 %v8198_v44  ;;  %8621 = vmatmul.bf16.vlgmr.msrb.gmra.mxu3 %v8199_v13 }
 0x763   :  { %8735 = vmatpush.bf16.msra.mxu0 %v13926_v57 }
 0x767   :  { %8736 = vmatpush.bf16.msra.mxu0 %v13925_v63 }
 0x76b   :  { %8737 = vmatpush.bf16.msra.mxu0 %v13924_v38 }
 0x76f   :  { %8738 = vmatpush.bf16.msra.mxu0 %v13923_v24 }
 0x799   :  { %v8654_v21 = vpop.permute.xlu1 %8653 }
 0x79a   :  { %vm8655_vm6 = vcmp.eq.s32.totalorder %v8654_v21, 1 }
 0x79b   :  { %vm8656_vm7 = vmpackc.low %vm8655_vm6, %vm8655_vm6 }
 0x7ce   :  { %v8531_v61 = vpop.f32.mrf.mxu0  ;;  %v8544_v36 = vpop.f32.mrf.mxu1 }
 0x7cf   :  { %v8532_v20 = vadd.f32 %v8531_v61, %v8187_v28 }
 0x7d1   :  { %v8545_v53 = vadd.f32 %v8544_v36, %v8532_v20 }
 0x7d3   :  { %v8626_v51 = vmul.f32 0.5, %v8545_v53 }
 0x7d5   :  { %v8557_v25 = vpop.f32.mrf.mxu2  ;;  %v8570_v19 = vpop.f32.mrf.mxu3  ;;  %14094 = vtanh.f32 %v8626_v51 }
 0x7d6   :  { %v8558_v32 = vadd.f32 %v8557_v25, %v8188_v30  ;;  %v8533_v2 = vpop.f32.mrf.mxu0  ;;  %v8546_v35 = vpop.f32.mrf.mxu1 }
 0x7d8   :  { %v8571_v39 = vadd.f32 %v8570_v19, %v8558_v32 }
 0x7da   :  { %v8630_v54 = vmul.f32 0.5, %v8571_v39 }
 0x7db   :  { %v14095_v45 = vpop.eup %14094 }
 0x7dc   :  { %14096 = vtanh.f32 %v8630_v54  ;;  %v8628_v27 = vadd.f32 1.0, %v14095_v45 }
 0x7dd   :  { %v8559_v4 = vpop.f32.mrf.mxu2  ;;  %v8572_v8 = vpop.f32.mrf.mxu3 }
 0x7de   :  { %v8583_v26 = vpop.f32.mrf.mxu0  ;;  %v8596_v41 = vpop.f32.mrf.mxu1  ;;  %v8629_v12 = vmul.f32 0.5, %v8628_v27 }
 0x7df   :  { %v8584_v1 = vadd.f32 %v8583_v26, %v8189_v15 }
 0x7e1   :  { %v8597_v46 = vadd.f32 %v8596_v41, %v8584_v1 }
 0x7e2   :  { %v14097_v14 = vpop.eup %14096 }
 0x7e3   :  { %v8632_v3 = vadd.f32 1.0, %v14097_v14  ;;  %14098 = vtanh.f32 %v8597_v46 }
 0x7e5   :  { %v8609_v33 = vpop.f32.mrf.mxu2  ;;  %v8622_v31 = vpop.f32.mrf.mxu3  ;;  %v8633_v22 = vmul.f32 0.5, %v8632_v3 }
 0x7e6   :  { %v8610_v59 = vadd.f32 %v8609_v33, %v8190_v43  ;;  %v8585_v34 = vpop.f32.mrf.mxu0  ;;  %v8598_v48 = vpop.f32.mrf.mxu1 }
 0x7e7   :  { %v8640_v40 = vmul.f32 %v8633_v22, %v14758_v60 }
 0x7e8   :  { %v8623_v0 = vadd.f32 %v8622_v31, %v8610_v59 }
 0x7e9   :  { %v14099_v52 = vpop.eup %14098 }
 0x7ea   :  { %v8641_v62 = vmul.f32 %v14099_v52, %v8629_v12  ;;  %v8635_v49 = vmul.f32 0.5, %v8623_v0 }
 0x7ec   :  { %v8642_v10 = vadd.f32 %v8641_v62, %v8640_v40  ;;  %14100 = vtanh.f32 %v8635_v49 }
 0x7ed   :  { %v8611_v42 = vpop.f32.mrf.mxu2  ;;  %v8624_v56 = vpop.f32.mrf.mxu3 }
 0x7ee   :  { %14102 = vtanh.f32 %v8642_v10 }
 0x7f2   :  { %v14101_v37 = vpop.eup %14100 }
 0x7f3   :  { %v8637_v5 = vadd.f32 1.0, %v14101_v37 }
 0x7f4   :  { %v14103_v18 = vpop.eup %14102 }
 0x7f5   :  { %v8638_v23 = vmul.f32 0.5, %v8637_v5 }
 0x7f7   :  { %v8644_v17 = vmul.f32 %v14103_v18, %v8638_v23 }
 0x7f9   :  { %v8646_v47 = vpack.c.bf16 %v8644_v17, %v8644_v17 }
 0x7fb   :  { %8647 = vst [vmem:[#allocation3 + $0x4] sm:$0xf] %v8646_v47  ;;  %v8657_v9 = vsel %vm8656_vm7, %v8646_v47, %v8650_v7 }
 0x7fc   :  { %8658 = vst [vmem:[#allocation6] sm:$0xf] %v8657_v9 }
 0x803   :  { %v8662_v60 = vld [vmem:[#allocation6] sm:$0xf] }
 0x804   :  { %8739 = vmatmul.bf16.vlgmr.msra.gmra.mxu0 %v8662_v60 }
 0x881   :  { %v8740_v6 = vpop.f32.mrf.mxu0 }
 0x882   :  { %v8741_v44 = vadd.f32 %v13943_v50, %v8740_v6 }
 0x884   :  { %8744 = vst [vmem:[#allocation13] sm:$0xff] %v8741_v44 }
 0x885   :  { %8755 = dma.vmem_to_hbm [thread:$0]  %s8751_s9, 128, %s8753_s11, [#allocation9]  }
 0x889   :  { %v8742_v13 = vpop.f32.mrf.mxu0 }
 0x88a   :  { %14210 = dma.done.wait [#allocation9], 128  }
 0x88b   :  { %14211 = vsyncadd [#allocation9], 4294967168 }
 0x88c   :  { %8760 = vsyncpa [#allocation8], 1 }
 0x88d   :  { %8761 = vsyncpa [#allocation11], 1 }
 0x88e   :  { %8762 = vsyncpa [#allocation9], 1 }

</bundles_post_ra>
